<compile_context>
chip_gen: v5e
topology: v5e:2x2
jax: 0.10.0
libtpu: 0.0.40
codegen_flags: <defaults>
</compile_context>

<pallas_src>
import functools
import math

import jax
import jax.numpy as jnp
from jax.experimental import pallas as pl
from jax.experimental.pallas import tpu as pltpu

BN_EPS = 1e-5


def _derive_vmem_limit():
    """Per-generation VMEM budget: ~60% of physical on 64 MiB parts (v7x),
    ~75% on 128 MiB parts (v5e/v6e)."""
    try:
        cap = int(pltpu.get_tpu_info().vmem_capacity_bytes)
    except Exception:
        cap = 64 * 1024 * 1024
    frac = 0.75 if cap >= 96 * 1024 * 1024 else 0.60
    return int(cap * frac)


_VMEM_LIMIT = _derive_vmem_limit()
_FUSE_BYTES_LIMIT = int(0.4 * _VMEM_LIMIT)     # budget for single-block fused kernels


def _round_up(x, m):
    return ((x + m - 1) // m) * m


def _vmem_spec():
    return pl.BlockSpec(memory_space=pltpu.MemorySpace.VMEM)


def _vmem_specs(n):
    return [_vmem_spec() for _ in range(n)]


# ----------------------------------------------------------------------------
# Fused single-block kernel: G phase matmuls + joint train-mode BN + ReLU
# (encoder convs use G=1; decoder deconvs use G=4 output phases)
# ----------------------------------------------------------------------------
def _make_fused_conv_kernel(G, has_bn, relu, inv_total):
    def kernel(*refs):
        if has_bn:
            x_ref, w_ref, g_ref, b_ref, o_ref = refs
        else:
            x_ref, w_ref, o_ref = refs
        x = x_ref[...].astype(jnp.bfloat16)                       # in-kernel cast
        ys = [jnp.dot(x, w_ref[g, :, :], preferred_element_type=jnp.float32)
              for g in range(G)]
        if has_bn:
            # train-mode BN: batch stats over all G*M rows, centered (two-pass)
            # variance for numerical robustness, biased normalization.
            s1 = ys[0].sum(axis=0, keepdims=True)
            for g in range(1, G):
                s1 = s1 + ys[g].sum(axis=0, keepdims=True)
            mean = s1 * inv_total
            s2 = jnp.sum((ys[0] - mean) ** 2, axis=0, keepdims=True)
            for g in range(1, G):
                s2 = s2 + jnp.sum((ys[g] - mean) ** 2, axis=0, keepdims=True)
            scale = g_ref[...] * jax.lax.rsqrt(s2 * inv_total + BN_EPS)
            shift = b_ref[...] - mean * scale
        for g in range(G):
            y = ys[g]
            if has_bn:
                y = y * scale + shift
            if relu:
                y = jnp.maximum(y, 0.0)
            o_ref[g, :, :] = y.astype(o_ref.dtype)
    return kernel


def fused_conv_block(patches, w_g, gamma, beta, *, relu, out_dtype):
    """patches:(M,K), w_g:(G,K,C) bf16, gamma/beta:(1,C) or None.
    Returns (G,M,C) in out_dtype (BN/ReLU epilogue fused, bf16 output for
    intermediate layers)."""
    M, K = patches.shape
    G, _, C = w_g.shape
    has_bn = gamma is not None
    est = (M * K * (patches.dtype.itemsize + 2)                 # input + bf16 copy
           + G * K * C * 2                                      # bf16 weights
           + G * M * C * (4 + jnp.dtype(out_dtype).itemsize))   # f32 partials + out
    if est > _FUSE_BYTES_LIMIT:
        return _conv_block_tiled(patches, w_g, gamma, beta,
                                 relu=relu, out_dtype=out_dtype)

    inv_total = 1.0 / (G * M)
    kernel = _make_fused_conv_kernel(G, has_bn, relu, inv_total)
    args = [patches, w_g] + ([gamma, beta] if has_bn else [])
    return pl.pallas_call(
        kernel,
        out_shape=jax.ShapeDtypeStruct((G, M, C), out_dtype),
        in_specs=_vmem_specs(len(args)),
        out_specs=_vmem_spec(),
        compiler_params=pltpu.CompilerParams(vmem_limit_bytes=_VMEM_LIMIT),
    )(*args)


# ----------------------------------------------------------------------------
# Tiled fallbacks (only used when a layer does not fit one VMEM block)
# ----------------------------------------------------------------------------
def pallas_matmul_tiled(x, w_bf16, out_dtype=jnp.bfloat16, tm=512, tn=512, tk=512):
    """K-last accumulation tiled matmul; bf16 cast per block inside the kernel,
    bf16 (or requested) output; small K/C kept at full extent (no 128 round-up)."""
    M, K = x.shape
    C = w_bf16.shape[1]
    tk = K if K <= 2048 else tk
    tn = C if C <= 1024 else tn
    tm = min(tm, _round_up(M, 8))
    Mp, Kp, Cp = _round_up(M, tm), _round_up(K, tk), _round_up(C, tn)
    xp = x if (Mp, Kp) == (M, K) else jnp.pad(x, ((0, Mp - M), (0, Kp - K)))
    wp = w_bf16 if (Kp, Cp) == (K, C) else jnp.pad(w_bf16, ((0, Kp - K), (0, Cp - C)))

    def kernel(x_ref, w_ref, o_ref, acc_ref):
        @pl.when(pl.program_id(2) == 0)
        def _init():
            acc_ref[...] = jnp.zeros_like(acc_ref)

        acc_ref[...] += jnp.dot(x_ref[...].astype(jnp.bfloat16), w_ref[...],
                                preferred_element_type=jnp.float32)

        @pl.when(pl.program_id(2) == pl.num_programs(2) - 1)
        def _finalize():
            o_ref[...] = acc_ref[...].astype(o_ref.dtype)

    out = pl.pallas_call(
        kernel,
        grid=(Mp // tm, Cp // tn, Kp // tk),
        in_specs=[pl.BlockSpec((tm, tk), lambda i, j, k: (i, k)),
                  pl.BlockSpec((tk, tn), lambda i, j, k: (k, j))],
        out_specs=pl.BlockSpec((tm, tn), lambda i, j, k: (i, j)),
        out_shape=jax.ShapeDtypeStruct((Mp, Cp), out_dtype),
        scratch_shapes=[pltpu.VMEM((tm, tn), jnp.float32)],
        compiler_params=pltpu.CompilerParams(
            dimension_semantics=("parallel", "parallel", "arbitrary"),
            vmem_limit_bytes=_VMEM_LIMIT),
    )(xp, wp)
    return out[:M, :C]


def pallas_bn_relu_tiled(y, gamma, beta, *, relu=True, out_dtype=jnp.bfloat16, tm=512):
    """Two-pass train-mode BN(+ReLU) tiled over rows (review item: no single
    giant (M,C) block).  Pass 1 accumulates per-channel sums; pass 2 applies."""
    M, C = y.shape
    tm = min(tm, _round_up(M, 8))
    Mp = _round_up(M, tm)
    yp = y if Mp == M else jnp.pad(y, ((0, Mp - M), (0, 0)))
    inv = 1.0 / M

    def stats_kernel(y_ref, s_ref):
        @pl.when(pl.program_id(0) == 0)
        def _init():
            s_ref[...] = jnp.zeros_like(s_ref)
        yv = y_ref[...].astype(jnp.float32)
        s_ref[0:1, :] += jnp.sum(yv, axis=0, keepdims=True)
        s_ref[1:2, :] += jnp.sum(yv * yv, axis=0, keepdims=True)

    stats = pl.pallas_call(
        stats_kernel,
        grid=(Mp // tm,),
        in_specs=[pl.BlockSpec((tm, C), lambda i: (i, 0))],
        out_specs=pl.BlockSpec((2, C), lambda i: (0, 0)),
        out_shape=jax.ShapeDtypeStruct((2, C), jnp.float32),
        compiler_params=pltpu.CompilerParams(
            dimension_semantics=("arbitrary",), vmem_limit_bytes=_VMEM_LIMIT),
    )(yp)

    def apply_kernel(y_ref, s_ref, g_ref, b_ref, o_ref):
        mean = s_ref[0:1, :] * inv
        var = jnp.maximum(s_ref[1:2, :] * inv - mean * mean, 0.0)
        scale = g_ref[...] * jax.lax.rsqrt(var + BN_EPS)
        shift = b_ref[...] - mean * scale
        yv = y_ref[...].astype(jnp.float32) * scale + shift
        if relu:
            yv = jnp.maximum(yv, 0.0)
        o_ref[...] = yv.astype(o_ref.dtype)

    out = pl.pallas_call(
        apply_kernel,
        grid=(Mp // tm,),
        in_specs=[pl.BlockSpec((tm, C), lambda i: (i, 0)),
                  pl.BlockSpec((2, C), lambda i: (0, 0)),
                  pl.BlockSpec((1, C), lambda i: (0, 0)),
                  pl.BlockSpec((1, C), lambda i: (0, 0))],
        out_specs=pl.BlockSpec((tm, C), lambda i: (i, 0)),
        out_shape=jax.ShapeDtypeStruct((Mp, C), out_dtype),
        compiler_params=pltpu.CompilerParams(
            dimension_semantics=("parallel",), vmem_limit_bytes=_VMEM_LIMIT),
    )(yp, stats, gamma, beta)
    return out[:M]


def _conv_block_tiled(patches, w_g, gamma, beta, *, relu, out_dtype):
    """Fallback: per-phase tiled matmuls (bf16 out) + two-pass BN/ReLU over the
    raw (G*M, C) rows (row-permutation invariant) BEFORE the phase interleave."""
    G, _, C = w_g.shape
    M = patches.shape[0]
    ys = [pallas_matmul_tiled(
              patches, w_g[g],
              out_dtype=jnp.bfloat16 if gamma is not None else out_dtype)
          for g in range(G)]
    y = jnp.stack(ys, axis=0)                               # (G, M, C)
    if gamma is None:
        return jnp.maximum(y, 0.0).astype(out_dtype) if relu else y
    yn = pallas_bn_relu_tiled(y.reshape(G * M, C), gamma, beta,
                              relu=relu, out_dtype=out_dtype)
    return yn.reshape(G, M, C)


# ----------------------------------------------------------------------------
# Fully fused bottleneck: linear_enc -> memory unit -> linear_dec (one kernel)
# ----------------------------------------------------------------------------
def pallas_bottleneck(h, prep, shrink_thres):
    """Every intermediate stays VMEM-resident.  h:(N, f_in) bf16."""
    N, f_in = h.shape
    mem_dim, latent = prep["mem_w"].shape
    est = (2 * (prep["w1"].size + prep["w2"].size + prep["w3"].size + prep["w4"].size)
           + 4 * N * (2 * 2048 + 2 * f_in + mem_dim + latent) + 4 * 4 * 2048)
    # TODO(synk): for very large f_in (v7x: 64 MiB VMEM, 2 TCs) tile the first
    # matmul's K and the last matmul's N with a real grid instead of this
    # single-block kernel.
    assert est < _VMEM_LIMIT, "bottleneck exceeds single-block VMEM budget"

    def kernel(x_ref, w1_ref, g1_ref, be1_ref, w2_ref, b2_ref, mw_ref,
               w3_ref, g3_ref, be3_ref, w4_ref, b4_ref, out_ref, att_ref):

        def bn_relu(y, g, b):       # train-mode BatchNorm1d + ReLU (f32)
            mean = jnp.mean(y, axis=0, keepdims=True)
            var = jnp.mean((y - mean) ** 2, axis=0, keepdims=True)
            return jnp.maximum((y - mean) * jax.lax.rsqrt(var + BN_EPS) * g + b, 0.0)

        x = x_ref[...].astype(jnp.bfloat16)
        # linear_enc: Linear(f_in, 2048) -> BN1d -> ReLU (Linear bias is a
        # mathematical no-op before train-mode BN and is dropped).
        h1 = bn_relu(jnp.dot(x, w1_ref[...], preferred_element_type=jnp.float32),
                     g1_ref[...], be1_ref[...])
        # linear_enc: Linear(2048, latent)
        z = jnp.dot(h1.astype(jnp.bfloat16), w2_ref[...],
                    preferred_element_type=jnp.float32) + b2_ref[...]

        # MemoryUnit.  bf16 MXU inputs, f32 accumulation; exact reciprocals.
        mw = mw_ref[...].astype(jnp.bfloat16)               # (mem_dim, latent)
        logits = jax.lax.dot_general(z.astype(jnp.bfloat16), mw,
                                     (((1,), (1,)), ((), ())),
                                     preferred_element_type=jnp.float32)
        logits = logits - jnp.max(logits, axis=1, keepdims=True)
        e = jnp.exp(logits)
        att = e / jnp.sum(e, axis=1, keepdims=True)                 # softmax
        if shrink_thres > 0:
            shifted = att - shrink_thres                            # hard_shrink_relu
            att = jnp.maximum(shifted, 0.0) * att / (jnp.abs(shifted) + 1e-12)
            att = att / jnp.maximum(jnp.sum(jnp.abs(att), axis=1, keepdims=True),
                                    1e-12)                          # F.normalize p=1
        mem_out = jnp.dot(att.astype(jnp.bfloat16), mw,
                          preferred_element_type=jnp.float32)

        # linear_dec: Linear(latent, 2048) -> BN1d -> ReLU (bias dropped)
        h3 = bn_relu(jnp.dot(mem_out.astype(jnp.bfloat16), w3_ref[...],
                             preferred_element_type=jnp.float32),
                     g3_ref[...], be3_ref[...])
        # linear_dec: Linear(2048, f_in)  (columns pre-permuted to NHWC order)
        out = jnp.dot(h3.astype(jnp.bfloat16), w4_ref[...],
                      preferred_element_type=jnp.float32) + b4_ref[...]
        out_ref[...] = out.astype(out_ref.dtype)
        att_ref[...] = att

    out, att = pl.pallas_call(
        kernel,
        out_shape=(jax.ShapeDtypeStruct((N, f_in), jnp.bfloat16),
                   jax.ShapeDtypeStruct((N, mem_dim), jnp.float32)),
        in_specs=_vmem_specs(12),
        out_specs=tuple(_vmem_specs(2)),
        compiler_params=pltpu.CompilerParams(vmem_limit_bytes=_VMEM_LIMIT),
    )(h, prep["w1"], prep["g1"], prep["be1"], prep["w2"], prep["b2"],
      prep["mem_w"], prep["w3"], prep["g3"], prep["be3"], prep["w4"], prep["b4"])
    return out, att


# ----------------------------------------------------------------------------
# JAX glue: patch extraction (NHWC), conv / conv-transpose blocks
# ----------------------------------------------------------------------------
def im2col_nhwc(x, k, stride, pad):
    """x: NHWC -> (N*Ho*Wo, k*k*C); column order (kh*k + kw)*C + c.  The input
    dtype is preserved (bf16 activations stay bf16 - no wrapper casts)."""
    # TODO(synk): replace with an implicit-GEMM kernel (tap axis in the grid,
    # offset index_map into the padded NHWC input) so patches never hit HBM.
    N, H, W, C = x.shape
    xp = jnp.pad(x, ((0, 0), (pad, pad), (pad, pad), (0, 0)))
    Ho = (H + 2 * pad - k) // stride + 1
    Wo = (W + 2 * pad - k) // stride + 1
    cols = [xp[:, kh:kh + stride * Ho:stride, kw:kw + stride * Wo:stride, :]
            for kh in range(k) for kw in range(k)]
    pat = jnp.concatenate(cols, axis=-1)
    return pat.reshape(N * Ho * Wo, k * k * C), Ho, Wo


def conv_bn_relu_block(h, w_g, gamma, beta):
    """Conv2d(4,2,1,bias=False) + BatchNorm2d(train) + ReLU, NHWC, bf16 out."""
    N = h.shape[0]
    Cout = w_g.shape[-1]
    patches, Ho, Wo = im2col_nhwc(h, 4, 2, 1)
    y = fused_conv_block(patches, w_g, gamma, beta,
                         relu=True, out_dtype=jnp.bfloat16)     # (1, M, Cout)
    return y.reshape(N, Ho, Wo, Cout)


def conv_transpose_block(h, w_ph, gamma, beta, final=False):
    """ConvTranspose2d(4,2,1,bias=False) [+ BN2d(train) + ReLU], NHWC.

    Decomposed into 4 output phases; all phases consume the SAME 3x3/stride-1
    im2col of the UNdilated input with zero-padded tap weights.  BN is fused
    inside the kernel over all 4*N*H*W rows, so the interleave below only
    shuffles bf16 post-activation data."""
    N, H, W, _ = h.shape
    Cout = w_ph.shape[-1]
    patches, _, _ = im2col_nhwc(h, 3, 1, 1)                     # (N*H*W, 9*Cin)
    y = fused_conv_block(patches, w_ph,
                         None if final else gamma, None if final else beta,
                         relu=not final,
                         out_dtype=jnp.float32 if final else jnp.bfloat16)
    y = (y.reshape(2, 2, N, H, W, Cout)
          .transpose(2, 3, 0, 4, 1, 5)
          .reshape(N, 2 * H, 2 * W, Cout))                      # phase interleave
    return y


# ----------------------------------------------------------------------------
# Parameter init (PyTorch layouts) + one-time kernel-friendly preparation
# ----------------------------------------------------------------------------
def init_params(key, mem_dim, latent_size, multiplier, img_size):
    mp = multiplier
    fm = img_size // 16
    keys = iter(jax.random.split(key, 64))

    def unif(shape, stdv):
        return jax.random.uniform(next(keys), shape, jnp.float32, -stdv, stdv)

    def linear(fin, fout):
        stdv = 1.0 / math.sqrt(fin)
        return unif((fout, fin), stdv), unif((fout,), stdv)

    params = {}
    enc_ch = [1, int(16 * mp), int(32 * mp), int(64 * mp), int(64 * mp)]
    params["enc_convs"] = []
    for i in range(4):
        cin, cout = enc_ch[i], enc_ch[i + 1]
        w = unif((cout, cin, 4, 4), 1.0 / math.sqrt(cin * 16))
        params["enc_convs"].append((w, jnp.ones((cout,)), jnp.zeros((cout,))))

    f_in = int(64 * mp) * fm * fm
    w1, b1 = linear(f_in, 2048)
    params["lenc1"] = (w1, b1, jnp.ones((2048,)), jnp.zeros((2048,)))
    params["lenc2"] = linear(2048, latent_size)

    params["mem_w"] = unif((mem_dim, latent_size), 1.0 / math.sqrt(latent_size))

    w3, b3 = linear(latent_size, 2048)
    params["ldec1"] = (w3, b3, jnp.ones((2048,)), jnp.zeros((2048,)))
    params["ldec2"] = linear(2048, f_in)

    dec_ch = [int(64 * mp), int(64 * mp), int(32 * mp), int(16 * mp), 1]
    params["dec_convs"] = []
    for i in range(4):
        cin, cout = dec_ch[i], dec_ch[i + 1]
        w = unif((cin, cout, 4, 4), 1.0 / math.sqrt(cout * 16))
        params["dec_convs"].append((w, jnp.ones((cout,)), jnp.zeros((cout,))))
    return params


def _make_deconv_phase_weights(w_ct):
    """ConvTranspose2d(4,2,1) weight (Cin,Cout,4,4) -> (4, 9*Cin, Cout).

    Output phase (r,c) at coarse position (h,w) equals a stride-1 2x2 conv of
    the padded input; expressed against the shared 3x3-neighborhood im2col
    (taps (i,j), i,j in 0..2), phase (r,c) uses taps i in {r,r+1}, j in
    {c,c+1} with kernel entry W[:, :, 3+r-2i, 3+c-2j]; unused taps are zero."""
    cin, cout = w_ct.shape[0], w_ct.shape[1]
    phases = []
    for r in range(2):
        for c in range(2):
            w9 = jnp.zeros((3, 3, cin, cout), w_ct.dtype)
            for i in (r, r + 1):
                for j in (c, c + 1):
                    w9 = w9.at[i, j].set(w_ct[:, :, 3 + r - 2 * i, 3 + c - 2 * j])
            phases.append(w9.reshape(9 * cin, cout))
    return jnp.stack(phases, axis=0)


def prepare_params(params, multiplier, img_size):
    """One-time weight transposition / reshaping / bf16 cast."""
    fm = img_size // 16
    c64 = int(64 * multiplier)
    f_in = c64 * fm * fm
    prep = {}

    prep["enc_convs"] = []
    for (w, g, b) in params["enc_convs"]:
        cout, cin, k, _ = w.shape
        w_mat = (jnp.transpose(w, (2, 3, 1, 0))
                 .reshape(k * k * cin, cout).astype(jnp.bfloat16))
        prep["enc_convs"].append((w_mat[None], g.reshape(1, -1), b.reshape(1, -1)))

    w1, _b1, g1, be1 = params["lenc1"]          # b1 cancels under train-mode BN
    prep["w1"] = (w1.reshape(2048, c64, fm, fm).transpose(2, 3, 1, 0)
                  .reshape(f_in, 2048).astype(jnp.bfloat16))
    prep["g1"], prep["be1"] = g1.reshape(1, -1), be1.reshape(1, -1)

    w2, b2 = params["lenc2"]
    prep["w2"] = w2.T.astype(jnp.bfloat16)       # (2048, latent)
    prep["b2"] = b2.reshape(1, -1)

    prep["mem_w"] = params["mem_w"]              # (mem_dim, latent) f32

    w3, _b3, g3, be3 = params["ldec1"]           # b3 cancels under train-mode BN
    prep["w3"] = w3.T.astype(jnp.bfloat16)       # (latent, 2048)
    prep["g3"], prep["be3"] = g3.reshape(1, -1), be3.reshape(1, -1)

    w4, b4 = params["ldec2"]                     # output columns -> NHWC order
    prep["w4"] = (w4.reshape(c64, fm, fm, 2048).transpose(1, 2, 0, 3)
                  .reshape(f_in, 2048).T.astype(jnp.bfloat16))
    prep["b4"] = b4.reshape(c64, fm, fm).transpose(1, 2, 0).reshape(1, f_in)

    prep["dec_convs"] = []
    for (w_ct, g, b) in params["dec_convs"]:
        prep["dec_convs"].append(
            (_make_deconv_phase_weights(w_ct).astype(jnp.bfloat16),
             g.reshape(1, -1), b.reshape(1, -1)))
    return prep


# ----------------------------------------------------------------------------
# Full MemAE forward
# ----------------------------------------------------------------------------
@functools.partial(jax.jit, static_argnames=("shrink_thres",))
def memae_forward(x, prep, *, shrink_thres=0.0025):
    N = x.shape[0]
    h = jnp.transpose(x, (0, 2, 3, 1))           # NCHW -> NHWC once

    # encoder: 4 fused conv+BN+ReLU kernels (bf16 activations)
    for (w_g, g, b) in prep["enc_convs"]:
        h = conv_bn_relu_block(h, w_g, g, b)
    h = h.reshape(N, -1)                         # NHWC flatten (w1 pre-permuted)

    # fused linear_enc -> memory unit -> linear_dec
    out_flat, att = pallas_bottleneck(h, prep, shrink_thres)

    # decoder: 4 fused deconv(+BN+ReLU) kernels
    c_dec = prep["dec_convs"][0][0].shape[1] // 9
    fm = int(round(math.sqrt(out_flat.shape[1] // c_dec)))
    h = out_flat.reshape(N, fm, fm, c_dec)
    n_dec = len(prep["dec_convs"])
    for i, (wph, g, b) in enumerate(prep["dec_convs"]):
        h = conv_transpose_block(h, wph, g, b, final=(i == n_dec - 1))

    return {"output": jnp.transpose(h, (0, 3, 1, 2)), "att": att}


# ----------------------------------------------------------------------------
# main
# ----------------------------------------------------------------------------
if __name__ == "__main__":
    MEM_DIM = 16
    LATENT_SIZE = 8
    MULTIPLIER = 1
    IMG_SIZE = 16          # img_size=16 -> fm=1
    BATCH = 2

    key = jax.random.PRNGKey(0)
    pkey, xkey = jax.random.split(key)
    params = init_params(pkey, MEM_DIM, LATENT_SIZE, MULTIPLIER, IMG_SIZE)
    prep = prepare_params(params, MULTIPLIER, IMG_SIZE)
    x = jax.random.normal(xkey, (BATCH, 1, IMG_SIZE, IMG_SIZE), jnp.float32)

    res = memae_forward(x, prep, shrink_thres=0.0025)
    out = jax.block_until_ready(res["output"])
    att = jax.block_until_ready(res["att"])

    assert out.shape == (BATCH, 1, IMG_SIZE, IMG_SIZE), out.shape
    assert att.shape == (BATCH, MEM_DIM), att.shape
    assert bool(jnp.all(jnp.isfinite(out))) and bool(jnp.all(jnp.isfinite(att)))
    # attention rows are exactly L1-normalized after shrinkage (exact division)
    assert bool(jnp.allclose(jnp.sum(att, axis=1), 1.0, atol=1e-3))

    print("KERNEL_OK")
</pallas_src>

<mosaic_0001>
module attributes {stable_mosaic.version = 11 : i64} {
  func.func @kernel(%arg0: memref<128x16xf32, #tpu.memory_space<vmem>>, %arg1: memref<1x16x16xbf16, #tpu.memory_space<vmem>>, %arg2: memref<1x16xf32, #tpu.memory_space<vmem>>, %arg3: memref<1x16xf32, #tpu.memory_space<vmem>>, %arg4: memref<1x128x16xbf16, #tpu.memory_space<vmem>>) attributes {dimension_semantics = [], scalar_prefetch = 0 : i64, scratch_operands = 0 : i64, tpu.core_type = #tpu.core_type<tc>} {
    %c0 = arith.constant 0 : index
    %c0_0 = arith.constant 0 : index
    %0 = vector.load %arg0[%c0, %c0_0] : memref<128x16xf32, #tpu.memory_space<vmem>>, vector<128x16xf32>
    %1 = arith.truncf %0 : vector<128x16xf32> to vector<128x16xbf16>
    %c0_1 = arith.constant 0 : index
    %c0_2 = arith.constant 0 : index
    %c0_3 = arith.constant 0 : index
    %2 = vector.load %arg1[%c0_1, %c0_2, %c0_3] : memref<1x16x16xbf16, #tpu.memory_space<vmem>>, vector<1x16x16xbf16>
    %3 = vector.shape_cast %2 : vector<1x16x16xbf16> to vector<16x16xbf16>
    %cst = arith.constant dense<0.000000e+00> : vector<128x16xf32>
    %4 = tpu.matmul %1, %3, %cst {dimension_numbers = #tpu.dot_dimension_numbers<[1], [0], [0], [1], [0, 0, 1, 1], [], []>} : vector<128x16xbf16>, vector<16x16xbf16>, vector<128x16xf32> -> vector<128x16xf32>
    %cst_4 = arith.constant dense<0.000000e+00> : vector<16xf32>
    %5 = vector.multi_reduction <add>, %4, %cst_4 [0] : vector<128x16xf32> to vector<16xf32>
    %6 = vector.shape_cast %5 : vector<16xf32> to vector<1x16xf32>
    %cst_5 = arith.constant 7.812500e-03 : f32
    %7 = vector.broadcast %cst_5 : f32 to vector<1x16xf32>
    %8 = arith.mulf %6, %7 : vector<1x16xf32>
    %9 = vector.broadcast %8 : vector<1x16xf32> to vector<128x16xf32>
    %10 = arith.subf %4, %9 : vector<128x16xf32>
    %11 = arith.mulf %10, %10 : vector<128x16xf32>
    %cst_6 = arith.constant dense<0.000000e+00> : vector<16xf32>
    %12 = vector.multi_reduction <add>, %11, %cst_6 [0] : vector<128x16xf32> to vector<16xf32>
    %13 = vector.shape_cast %12 : vector<16xf32> to vector<1x16xf32>
    %c0_7 = arith.constant 0 : index
    %c0_8 = arith.constant 0 : index
    %14 = vector.load %arg2[%c0_7, %c0_8] : memref<1x16xf32, #tpu.memory_space<vmem>>, vector<1x16xf32>
    %cst_9 = arith.constant 7.812500e-03 : f32
    %15 = vector.broadcast %cst_9 : f32 to vector<1x16xf32>
    %16 = arith.mulf %13, %15 : vector<1x16xf32>
    %cst_10 = arith.constant 9.99999974E-6 : f32
    %17 = vector.broadcast %cst_10 : f32 to vector<1x16xf32>
    %18 = arith.addf %16, %17 : vector<1x16xf32>
    %19 = math.rsqrt %18 : vector<1x16xf32>
    %20 = arith.mulf %14, %19 : vector<1x16xf32>
    %c0_11 = arith.constant 0 : index
    %c0_12 = arith.constant 0 : index
    %21 = vector.load %arg3[%c0_11, %c0_12] : memref<1x16xf32, #tpu.memory_space<vmem>>, vector<1x16xf32>
    %22 = arith.mulf %8, %20 : vector<1x16xf32>
    %23 = arith.subf %21, %22 : vector<1x16xf32>
    %24 = vector.broadcast %20 : vector<1x16xf32> to vector<128x16xf32>
    %25 = arith.mulf %4, %24 : vector<128x16xf32>
    %26 = vector.broadcast %23 : vector<1x16xf32> to vector<128x16xf32>
    %27 = arith.addf %25, %26 : vector<128x16xf32>
    %cst_13 = arith.constant 0.000000e+00 : f32
    %28 = vector.broadcast %cst_13 : f32 to vector<128x16xf32>
    %29 = arith.maximumf %27, %28 : vector<128x16xf32>
    %30 = arith.truncf %29 : vector<128x16xf32> to vector<128x16xbf16>
    %c0_14 = arith.constant 0 : index
    %c0_15 = arith.constant 0 : index
    %c0_16 = arith.constant 0 : index
    %31 = vector.load %arg4[%c0_14, %c0_15, %c0_16] : memref<1x128x16xbf16, #tpu.memory_space<vmem>>, vector<1x128x16xbf16>
    %32 = vector.shape_cast %31 : vector<1x128x16xbf16> to vector<128x16xbf16>
    %33 = vector.shape_cast %30 : vector<128x16xbf16> to vector<1x128x16xbf16>
    tpu.vector_store %arg4[%c0_14, %c0_15, %c0_16], %33 {strides = array<i32>} : memref<1x128x16xbf16, #tpu.memory_space<vmem>>, vector<1x128x16xbf16>,
    return
  }
}

module attributes {stable_mosaic.version = 11 : i64} {
  func.func @kernel(%arg0: memref<32x256xbf16, #tpu.memory_space<vmem>>, %arg1: memref<1x256x32xbf16, #tpu.memory_space<vmem>>, %arg2: memref<1x32xf32, #tpu.memory_space<vmem>>, %arg3: memref<1x32xf32, #tpu.memory_space<vmem>>, %arg4: memref<1x32x32xbf16, #tpu.memory_space<vmem>>) attributes {dimension_semantics = [], scalar_prefetch = 0 : i64, scratch_operands = 0 : i64, tpu.core_type = #tpu.core_type<tc>} {
    %c0 = arith.constant 0 : index
    %c0_0 = arith.constant 0 : index
    %0 = vector.load %arg0[%c0, %c0_0] : memref<32x256xbf16, #tpu.memory_space<vmem>>, vector<32x256xbf16>
    %c0_1 = arith.constant 0 : index
    %c0_2 = arith.constant 0 : index
    %c0_3 = arith.constant 0 : index
    %1 = vector.load %arg1[%c0_1, %c0_2, %c0_3] : memref<1x256x32xbf16, #tpu.memory_space<vmem>>, vector<1x256x32xbf16>
    %2 = vector.shape_cast %1 : vector<1x256x32xbf16> to vector<256x32xbf16>
    %cst = arith.constant dense<0.000000e+00> : vector<32x32xf32>
    %3 = tpu.matmul %0, %2, %cst {dimension_numbers = #tpu.dot_dimension_numbers<[1], [0], [0], [1], [0, 0, 1, 1], [], []>} : vector<32x256xbf16>, vector<256x32xbf16>, vector<32x32xf32> -> vector<32x32xf32>
    %cst_4 = arith.constant dense<0.000000e+00> : vector<32xf32>
    %4 = vector.multi_reduction <add>, %3, %cst_4 [0] : vector<32x32xf32> to vector<32xf32>
    %5 = vector.shape_cast %4 : vector<32xf32> to vector<1x32xf32>
    %cst_5 = arith.constant 3.125000e-02 : f32
    %6 = vector.broadcast %cst_5 : f32 to vector<1x32xf32>
    %7 = arith.mulf %5, %6 : vector<1x32xf32>
    %8 = vector.broadcast %7 : vector<1x32xf32> to vector<32x32xf32>
    %9 = arith.subf %3, %8 : vector<32x32xf32>
    %10 = arith.mulf %9, %9 : vector<32x32xf32>
    %cst_6 = arith.constant dense<0.000000e+00> : vector<32xf32>
    %11 = vector.multi_reduction <add>, %10, %cst_6 [0] : vector<32x32xf32> to vector<32xf32>
    %12 = vector.shape_cast %11 : vector<32xf32> to vector<1x32xf32>
    %c0_7 = arith.constant 0 : index
    %c0_8 = arith.constant 0 : index
    %13 = vector.load %arg2[%c0_7, %c0_8] : memref<1x32xf32, #tpu.memory_space<vmem>>, vector<1x32xf32>
    %cst_9 = arith.constant 3.125000e-02 : f32
    %14 = vector.broadcast %cst_9 : f32 to vector<1x32xf32>
    %15 = arith.mulf %12, %14 : vector<1x32xf32>
    %cst_10 = arith.constant 9.99999974E-6 : f32
    %16 = vector.broadcast %cst_10 : f32 to vector<1x32xf32>
    %17 = arith.addf %15, %16 : vector<1x32xf32>
    %18 = math.rsqrt %17 : vector<1x32xf32>
    %19 = arith.mulf %13, %18 : vector<1x32xf32>
    %c0_11 = arith.constant 0 : index
    %c0_12 = arith.constant 0 : index
    %20 = vector.load %arg3[%c0_11, %c0_12] : memref<1x32xf32, #tpu.memory_space<vmem>>, vector<1x32xf32>
    %21 = arith.mulf %7, %19 : vector<1x32xf32>
    %22 = arith.subf %20, %21 : vector<1x32xf32>
    %23 = vector.broadcast %19 : vector<1x32xf32> to vector<32x32xf32>
    %24 = arith.mulf %3, %23 : vector<32x32xf32>
    %25 = vector.broadcast %22 : vector<1x32xf32> to vector<32x32xf32>
    %26 = arith.addf %24, %25 : vector<32x32xf32>
    %cst_13 = arith.constant 0.000000e+00 : f32
    %27 = vector.broadcast %cst_13 : f32 to vector<32x32xf32>
    %28 = arith.maximumf %26, %27 : vector<32x32xf32>
    %29 = arith.truncf %28 : vector<32x32xf32> to vector<32x32xbf16>
    %c0_14 = arith.constant 0 : index
    %c0_15 = arith.constant 0 : index
    %c0_16 = arith.constant 0 : index
    %30 = vector.load %arg4[%c0_14, %c0_15, %c0_16] : memref<1x32x32xbf16, #tpu.memory_space<vmem>>, vector<1x32x32xbf16>
    %31 = vector.shape_cast %30 : vector<1x32x32xbf16> to vector<32x32xbf16>
    %32 = vector.shape_cast %29 : vector<32x32xbf16> to vector<1x32x32xbf16>
    tpu.vector_store %arg4[%c0_14, %c0_15, %c0_16], %32 {strides = array<i32>} : memref<1x32x32xbf16, #tpu.memory_space<vmem>>, vector<1x32x32xbf16>,
    return
  }
}

module attributes {stable_mosaic.version = 11 : i64} {
  func.func @kernel(%arg0: memref<8x512xbf16, #tpu.memory_space<vmem>>, %arg1: memref<1x512x64xbf16, #tpu.memory_space<vmem>>, %arg2: memref<1x64xf32, #tpu.memory_space<vmem>>, %arg3: memref<1x64xf32, #tpu.memory_space<vmem>>, %arg4: memref<1x8x64xbf16, #tpu.memory_space<vmem>>) attributes {dimension_semantics = [], scalar_prefetch = 0 : i64, scratch_operands = 0 : i64, tpu.core_type = #tpu.core_type<tc>} {
    %c0 = arith.constant 0 : index
    %c0_0 = arith.constant 0 : index
    %0 = vector.load %arg0[%c0, %c0_0] : memref<8x512xbf16, #tpu.memory_space<vmem>>, vector<8x512xbf16>
    %c0_1 = arith.constant 0 : index
    %c0_2 = arith.constant 0 : index
    %c0_3 = arith.constant 0 : index
    %1 = vector.load %arg1[%c0_1, %c0_2, %c0_3] : memref<1x512x64xbf16, #tpu.memory_space<vmem>>, vector<1x512x64xbf16>
    %2 = vector.shape_cast %1 : vector<1x512x64xbf16> to vector<512x64xbf16>
    %cst = arith.constant dense<0.000000e+00> : vector<8x64xf32>
    %3 = tpu.matmul %0, %2, %cst {dimension_numbers = #tpu.dot_dimension_numbers<[1], [0], [0], [1], [0, 0, 1, 1], [], []>} : vector<8x512xbf16>, vector<512x64xbf16>, vector<8x64xf32> -> vector<8x64xf32>
    %cst_4 = arith.constant dense<0.000000e+00> : vector<64xf32>
    %4 = vector.multi_reduction <add>, %3, %cst_4 [0] : vector<8x64xf32> to vector<64xf32>
    %5 = vector.shape_cast %4 : vector<64xf32> to vector<1x64xf32>
    %cst_5 = arith.constant 1.250000e-01 : f32
    %6 = vector.broadcast %cst_5 : f32 to vector<1x64xf32>
    %7 = arith.mulf %5, %6 : vector<1x64xf32>
    %8 = vector.broadcast %7 : vector<1x64xf32> to vector<8x64xf32>
    %9 = arith.subf %3, %8 : vector<8x64xf32>
    %10 = arith.mulf %9, %9 : vector<8x64xf32>
    %cst_6 = arith.constant dense<0.000000e+00> : vector<64xf32>
    %11 = vector.multi_reduction <add>, %10, %cst_6 [0] : vector<8x64xf32> to vector<64xf32>
    %12 = vector.shape_cast %11 : vector<64xf32> to vector<1x64xf32>
    %c0_7 = arith.constant 0 : index
    %c0_8 = arith.constant 0 : index
    %13 = vector.load %arg2[%c0_7, %c0_8] : memref<1x64xf32, #tpu.memory_space<vmem>>, vector<1x64xf32>
    %cst_9 = arith.constant 1.250000e-01 : f32
    %14 = vector.broadcast %cst_9 : f32 to vector<1x64xf32>
    %15 = arith.mulf %12, %14 : vector<1x64xf32>
    %cst_10 = arith.constant 9.99999974E-6 : f32
    %16 = vector.broadcast %cst_10 : f32 to vector<1x64xf32>
    %17 = arith.addf %15, %16 : vector<1x64xf32>
    %18 = math.rsqrt %17 : vector<1x64xf32>
    %19 = arith.mulf %13, %18 : vector<1x64xf32>
    %c0_11 = arith.constant 0 : index
    %c0_12 = arith.constant 0 : index
    %20 = vector.load %arg3[%c0_11, %c0_12] : memref<1x64xf32, #tpu.memory_space<vmem>>, vector<1x64xf32>
    %21 = arith.mulf %7, %19 : vector<1x64xf32>
    %22 = arith.subf %20, %21 : vector<1x64xf32>
    %23 = vector.broadcast %19 : vector<1x64xf32> to vector<8x64xf32>
    %24 = arith.mulf %3, %23 : vector<8x64xf32>
    %25 = vector.broadcast %22 : vector<1x64xf32> to vector<8x64xf32>
    %26 = arith.addf %24, %25 : vector<8x64xf32>
    %cst_13 = arith.constant 0.000000e+00 : f32
    %27 = vector.broadcast %cst_13 : f32 to vector<8x64xf32>
    %28 = arith.maximumf %26, %27 : vector<8x64xf32>
    %29 = arith.truncf %28 : vector<8x64xf32> to vector<8x64xbf16>
    %c0_14 = arith.constant 0 : index
    %c0_15 = arith.constant 0 : index
    %c0_16 = arith.constant 0 : index
    %30 = vector.load %arg4[%c0_14, %c0_15, %c0_16] : memref<1x8x64xbf16, #tpu.memory_space<vmem>>, vector<1x8x64xbf16>
    %31 = vector.shape_cast %30 : vector<1x8x64xbf16> to vector<8x64xbf16>
    %32 = vector.shape_cast %29 : vector<8x64xbf16> to vector<1x8x64xbf16>
    tpu.vector_store %arg4[%c0_14, %c0_15, %c0_16], %32 {strides = array<i32>} : memref<1x8x64xbf16, #tpu.memory_space<vmem>>, vector<1x8x64xbf16>,
    return
  }
}

module attributes {stable_mosaic.version = 11 : i64} {
  func.func @kernel(%arg0: memref<2x1024xbf16, #tpu.memory_space<vmem>>, %arg1: memref<1x1024x64xbf16, #tpu.memory_space<vmem>>, %arg2: memref<1x64xf32, #tpu.memory_space<vmem>>, %arg3: memref<1x64xf32, #tpu.memory_space<vmem>>, %arg4: memref<1x2x64xbf16, #tpu.memory_space<vmem>>) attributes {dimension_semantics = [], scalar_prefetch = 0 : i64, scratch_operands = 0 : i64, tpu.core_type = #tpu.core_type<tc>} {
    %c0 = arith.constant 0 : index
    %c0_0 = arith.constant 0 : index
    %0 = vector.load %arg0[%c0, %c0_0] : memref<2x1024xbf16, #tpu.memory_space<vmem>>, vector<2x1024xbf16>
    %c0_1 = arith.constant 0 : index
    %c0_2 = arith.constant 0 : index
    %c0_3 = arith.constant 0 : index
    %1 = vector.load %arg1[%c0_1, %c0_2, %c0_3] : memref<1x1024x64xbf16, #tpu.memory_space<vmem>>, vector<1x1024x64xbf16>
    %2 = vector.shape_cast %1 : vector<1x1024x64xbf16> to vector<1024x64xbf16>
    %cst = arith.constant dense<0.000000e+00> : vector<2x64xf32>
    %3 = tpu.matmul %0, %2, %cst {dimension_numbers = #tpu.dot_dimension_numbers<[1], [0], [0], [1], [0, 0, 1, 1], [], []>} : vector<2x1024xbf16>, vector<1024x64xbf16>, vector<2x64xf32> -> vector<2x64xf32>
    %cst_4 = arith.constant dense<0.000000e+00> : vector<64xf32>
    %4 = vector.multi_reduction <add>, %3, %cst_4 [0] : vector<2x64xf32> to vector<64xf32>
    %5 = vector.shape_cast %4 : vector<64xf32> to vector<1x64xf32>
    %cst_5 = arith.constant 5.000000e-01 : f32
    %6 = vector.broadcast %cst_5 : f32 to vector<1x64xf32>
    %7 = arith.mulf %5, %6 : vector<1x64xf32>
    %8 = vector.broadcast %7 : vector<1x64xf32> to vector<2x64xf32>
    %9 = arith.subf %3, %8 : vector<2x64xf32>
    %10 = arith.mulf %9, %9 : vector<2x64xf32>
    %cst_6 = arith.constant dense<0.000000e+00> : vector<64xf32>
    %11 = vector.multi_reduction <add>, %10, %cst_6 [0] : vector<2x64xf32> to vector<64xf32>
    %12 = vector.shape_cast %11 : vector<64xf32> to vector<1x64xf32>
    %c0_7 = arith.constant 0 : index
    %c0_8 = arith.constant 0 : index
    %13 = vector.load %arg2[%c0_7, %c0_8] : memref<1x64xf32, #tpu.memory_space<vmem>>, vector<1x64xf32>
    %cst_9 = arith.constant 5.000000e-01 : f32
    %14 = vector.broadcast %cst_9 : f32 to vector<1x64xf32>
    %15 = arith.mulf %12, %14 : vector<1x64xf32>
    %cst_10 = arith.constant 9.99999974E-6 : f32
    %16 = vector.broadcast %cst_10 : f32 to vector<1x64xf32>
    %17 = arith.addf %15, %16 : vector<1x64xf32>
    %18 = math.rsqrt %17 : vector<1x64xf32>
    %19 = arith.mulf %13, %18 : vector<1x64xf32>
    %c0_11 = arith.constant 0 : index
    %c0_12 = arith.constant 0 : index
    %20 = vector.load %arg3[%c0_11, %c0_12] : memref<1x64xf32, #tpu.memory_space<vmem>>, vector<1x64xf32>
    %21 = arith.mulf %7, %19 : vector<1x64xf32>
    %22 = arith.subf %20, %21 : vector<1x64xf32>
    %23 = vector.broadcast %19 : vector<1x64xf32> to vector<2x64xf32>
    %24 = arith.mulf %3, %23 : vector<2x64xf32>
    %25 = vector.broadcast %22 : vector<1x64xf32> to vector<2x64xf32>
    %26 = arith.addf %24, %25 : vector<2x64xf32>
    %cst_13 = arith.constant 0.000000e+00 : f32
    %27 = vector.broadcast %cst_13 : f32 to vector<2x64xf32>
    %28 = arith.maximumf %26, %27 : vector<2x64xf32>
    %29 = arith.truncf %28 : vector<2x64xf32> to vector<2x64xbf16>
    %c0_14 = arith.constant 0 : index
    %c0_15 = arith.constant 0 : index
    %c0_16 = arith.constant 0 : index
    %30 = vector.load %arg4[%c0_14, %c0_15, %c0_16] : memref<1x2x64xbf16, #tpu.memory_space<vmem>>, vector<1x2x64xbf16>
    %31 = vector.shape_cast %30 : vector<1x2x64xbf16> to vector<2x64xbf16>
    %32 = vector.shape_cast %29 : vector<2x64xbf16> to vector<1x2x64xbf16>
    tpu.vector_store %arg4[%c0_14, %c0_15, %c0_16], %32 {strides = array<i32>} : memref<1x2x64xbf16, #tpu.memory_space<vmem>>, vector<1x2x64xbf16>,
    return
  }
}

module attributes {stable_mosaic.version = 11 : i64} {
  func.func @kernel(%arg0: memref<2x64xbf16, #tpu.memory_space<vmem>>, %arg1: memref<64x2048xbf16, #tpu.memory_space<vmem>>, %arg2: memref<1x2048xf32, #tpu.memory_space<vmem>>, %arg3: memref<1x2048xf32, #tpu.memory_space<vmem>>, %arg4: memref<2048x8xbf16, #tpu.memory_space<vmem>>, %arg5: memref<1x8xf32, #tpu.memory_space<vmem>>, %arg6: memref<16x8xf32, #tpu.memory_space<vmem>>, %arg7: memref<8x2048xbf16, #tpu.memory_space<vmem>>, %arg8: memref<1x2048xf32, #tpu.memory_space<vmem>>, %arg9: memref<1x2048xf32, #tpu.memory_space<vmem>>, %arg10: memref<2048x64xbf16, #tpu.memory_space<vmem>>, %arg11: memref<1x64xf32, #tpu.memory_space<vmem>>, %arg12: memref<2x64xbf16, #tpu.memory_space<vmem>>, %arg13: memref<2x16xf32, #tpu.memory_space<vmem>>) attributes {dimension_semantics = [], scalar_prefetch = 0 : i64, scratch_operands = 0 : i64, tpu.core_type = #tpu.core_type<tc>} {
    %c0 = arith.constant 0 : index
    %c0_0 = arith.constant 0 : index
    %0 = vector.load %arg0[%c0, %c0_0] : memref<2x64xbf16, #tpu.memory_space<vmem>>, vector<2x64xbf16>
    %c0_1 = arith.constant 0 : index
    %c0_2 = arith.constant 0 : index
    %1 = vector.load %arg1[%c0_1, %c0_2] : memref<64x2048xbf16, #tpu.memory_space<vmem>>, vector<64x2048xbf16>
    %cst = arith.constant dense<0.000000e+00> : vector<2x2048xf32>
    %2 = tpu.matmul %0, %1, %cst {dimension_numbers = #tpu.dot_dimension_numbers<[1], [0], [0], [1], [0, 0, 1, 1], [], []>} : vector<2x64xbf16>, vector<64x2048xbf16>, vector<2x2048xf32> -> vector<2x2048xf32>
    %c0_3 = arith.constant 0 : index
    %c0_4 = arith.constant 0 : index
    %3 = vector.load %arg2[%c0_3, %c0_4] : memref<1x2048xf32, #tpu.memory_space<vmem>>, vector<1x2048xf32>
    %c0_5 = arith.constant 0 : index
    %c0_6 = arith.constant 0 : index
    %4 = vector.load %arg3[%c0_5, %c0_6] : memref<1x2048xf32, #tpu.memory_space<vmem>>, vector<1x2048xf32>
    %cst_7 = arith.constant dense<0.000000e+00> : vector<2048xf32>
    %5 = vector.multi_reduction <add>, %2, %cst_7 [0] : vector<2x2048xf32> to vector<2048xf32>
    %6 = vector.shape_cast %5 : vector<2048xf32> to vector<1x2048xf32>
    %cst_8 = arith.constant 2.000000e+00 : f32
    %7 = vector.broadcast %cst_8 : f32 to vector<1x2048xf32>
    %8 = arith.divf %6, %7 : vector<1x2048xf32>
    %9 = vector.broadcast %8 : vector<1x2048xf32> to vector<2x2048xf32>
    %10 = arith.subf %2, %9 : vector<2x2048xf32>
    %11 = arith.mulf %10, %10 : vector<2x2048xf32>
    %cst_9 = arith.constant dense<0.000000e+00> : vector<2048xf32>
    %12 = vector.multi_reduction <add>, %11, %cst_9 [0] : vector<2x2048xf32> to vector<2048xf32>
    %13 = vector.shape_cast %12 : vector<2048xf32> to vector<1x2048xf32>
    %cst_10 = arith.constant 2.000000e+00 : f32
    %14 = vector.broadcast %cst_10 : f32 to vector<1x2048xf32>
    %15 = arith.divf %13, %14 : vector<1x2048xf32>
    %16 = vector.broadcast %8 : vector<1x2048xf32> to vector<2x2048xf32>
    %17 = arith.subf %2, %16 : vector<2x2048xf32>
    %cst_11 = arith.constant 9.99999974E-6 : f32
    %18 = vector.broadcast %cst_11 : f32 to vector<1x2048xf32>
    %19 = arith.addf %15, %18 : vector<1x2048xf32>
    %20 = math.rsqrt %19 : vector<1x2048xf32>
    %21 = vector.broadcast %20 : vector<1x2048xf32> to vector<2x2048xf32>
    %22 = arith.mulf %17, %21 : vector<2x2048xf32>
    %23 = vector.broadcast %3 : vector<1x2048xf32> to vector<2x2048xf32>
    %24 = arith.mulf %22, %23 : vector<2x2048xf32>
    %25 = vector.broadcast %4 : vector<1x2048xf32> to vector<2x2048xf32>
    %26 = arith.addf %24, %25 : vector<2x2048xf32>
    %cst_12 = arith.constant 0.000000e+00 : f32
    %27 = vector.broadcast %cst_12 : f32 to vector<2x2048xf32>
    %28 = arith.maximumf %26, %27 : vector<2x2048xf32>
    %29 = arith.truncf %28 : vector<2x2048xf32> to vector<2x2048xbf16>
    %c0_13 = arith.constant 0 : index
    %c0_14 = arith.constant 0 : index
    %30 = vector.load %arg4[%c0_13, %c0_14] : memref<2048x8xbf16, #tpu.memory_space<vmem>>, vector<2048x8xbf16>
    %cst_15 = arith.constant dense<0.000000e+00> : vector<2x8xf32>
    %31 = tpu.matmul %29, %30, %cst_15 {dimension_numbers = #tpu.dot_dimension_numbers<[1], [0], [0], [1], [0, 0, 1, 1], [], []>} : vector<2x2048xbf16>, vector<2048x8xbf16>, vector<2x8xf32> -> vector<2x8xf32>
    %c0_16 = arith.constant 0 : index
    %c0_17 = arith.constant 0 : index
    %32 = vector.load %arg5[%c0_16, %c0_17] : memref<1x8xf32, #tpu.memory_space<vmem>>, vector<1x8xf32>
    %33 = vector.broadcast %32 : vector<1x8xf32> to vector<2x8xf32>
    %34 = arith.addf %31, %33 : vector<2x8xf32>
    %c0_18 = arith.constant 0 : index
    %c0_19 = arith.constant 0 : index
    %35 = vector.load %arg6[%c0_18, %c0_19] : memref<16x8xf32, #tpu.memory_space<vmem>>, vector<16x8xf32>
    %36 = arith.truncf %35 : vector<16x8xf32> to vector<16x8xbf16>
    %37 = arith.truncf %34 : vector<2x8xf32> to vector<2x8xbf16>
    %cst_20 = arith.constant dense<0.000000e+00> : vector<2x16xf32>
    %38 = tpu.matmul %37, %36, %cst_20 {dimension_numbers = #tpu.dot_dimension_numbers<[1], [1], [0], [0], [0, 0, 1, 0], [], []>} : vector<2x8xbf16>, vector<16x8xbf16>, vector<2x16xf32> -> vector<2x16xf32>
    %cst_21 = arith.constant dense<0xFF800000> : vector<2xf32>
    %39 = vector.multi_reduction <maximumf>, %38, %cst_21 [1] : vector<2x16xf32> to vector<2xf32>
    %40 = vector.shape_cast %39 : vector<2xf32> to vector<2x1xf32>
    %41 = vector.broadcast %40 : vector<2x1xf32> to vector<2x16xf32>
    %42 = arith.subf %38, %41 : vector<2x16xf32>
    %43 = math.exp %42 : vector<2x16xf32>
    %cst_22 = arith.constant dense<0.000000e+00> : vector<2xf32>
    %44 = vector.multi_reduction <add>, %43, %cst_22 [1] : vector<2x16xf32> to vector<2xf32>
    %45 = vector.shape_cast %44 : vector<2xf32> to vector<2x1xf32>
    %46 = vector.broadcast %45 : vector<2x1xf32> to vector<2x16xf32>
    %47 = arith.divf %43, %46 : vector<2x16xf32>
    %cst_23 = arith.constant 2.500000e-03 : f32
    %48 = vector.broadcast %cst_23 : f32 to vector<2x16xf32>
    %49 = arith.subf %47, %48 : vector<2x16xf32>
    %cst_24 = arith.constant 0.000000e+00 : f32
    %50 = vector.broadcast %cst_24 : f32 to vector<2x16xf32>
    %51 = arith.maximumf %49, %50 : vector<2x16xf32>
    %52 = arith.mulf %51, %47 : vector<2x16xf32>
    %53 = math.absf %49 : vector<2x16xf32>
    %cst_25 = arith.constant 9.99999996E-13 : f32
    %54 = vector.broadcast %cst_25 : f32 to vector<2x16xf32>
    %55 = arith.addf %53, %54 : vector<2x16xf32>
    %56 = arith.divf %52, %55 : vector<2x16xf32>
    %57 = math.absf %56 : vector<2x16xf32>
    %cst_26 = arith.constant dense<0.000000e+00> : vector<2xf32>
    %58 = vector.multi_reduction <add>, %57, %cst_26 [1] : vector<2x16xf32> to vector<2xf32>
    %59 = vector.shape_cast %58 : vector<2xf32> to vector<2x1xf32>
    %cst_27 = arith.constant 9.99999996E-13 : f32
    %60 = vector.broadcast %cst_27 : f32 to vector<2x1xf32>
    %61 = arith.maximumf %59, %60 : vector<2x1xf32>
    %62 = vector.broadcast %61 : vector<2x1xf32> to vector<2x16xf32>
    %63 = arith.divf %56, %62 : vector<2x16xf32>
    %64 = arith.truncf %63 : vector<2x16xf32> to vector<2x16xbf16>
    %cst_28 = arith.constant dense<0.000000e+00> : vector<2x8xf32>
    %65 = tpu.matmul %64, %36, %cst_28 {dimension_numbers = #tpu.dot_dimension_numbers<[1], [0], [0], [1], [0, 0, 1, 1], [], []>} : vector<2x16xbf16>, vector<16x8xbf16>, vector<2x8xf32> -> vector<2x8xf32>
    %66 = arith.truncf %65 : vector<2x8xf32> to vector<2x8xbf16>
    %c0_29 = arith.constant 0 : index
    %c0_30 = arith.constant 0 : index
    %67 = vector.load %arg7[%c0_29, %c0_30] : memref<8x2048xbf16, #tpu.memory_space<vmem>>, vector<8x2048xbf16>
    %cst_31 = arith.constant dense<0.000000e+00> : vector<2x2048xf32>
    %68 = tpu.matmul %66, %67, %cst_31 {dimension_numbers = #tpu.dot_dimension_numbers<[1], [0], [0], [1], [0, 0, 1, 1], [], []>} : vector<2x8xbf16>, vector<8x2048xbf16>, vector<2x2048xf32> -> vector<2x2048xf32>
    %c0_32 = arith.constant 0 : index
    %c0_33 = arith.constant 0 : index
    %69 = vector.load %arg8[%c0_32, %c0_33] : memref<1x2048xf32, #tpu.memory_space<vmem>>, vector<1x2048xf32>
    %c0_34 = arith.constant 0 : index
    %c0_35 = arith.constant 0 : index
    %70 = vector.load %arg9[%c0_34, %c0_35] : memref<1x2048xf32, #tpu.memory_space<vmem>>, vector<1x2048xf32>
    %cst_36 = arith.constant dense<0.000000e+00> : vector<2048xf32>
    %71 = vector.multi_reduction <add>, %68, %cst_36 [0] : vector<2x2048xf32> to vector<2048xf32>
    %72 = vector.shape_cast %71 : vector<2048xf32> to vector<1x2048xf32>
    %cst_37 = arith.constant 2.000000e+00 : f32
    %73 = vector.broadcast %cst_37 : f32 to vector<1x2048xf32>
    %74 = arith.divf %72, %73 : vector<1x2048xf32>
    %75 = vector.broadcast %74 : vector<1x2048xf32> to vector<2x2048xf32>
    %76 = arith.subf %68, %75 : vector<2x2048xf32>
    %77 = arith.mulf %76, %76 : vector<2x2048xf32>
    %cst_38 = arith.constant dense<0.000000e+00> : vector<2048xf32>
    %78 = vector.multi_reduction <add>, %77, %cst_38 [0] : vector<2x2048xf32> to vector<2048xf32>
    %79 = vector.shape_cast %78 : vector<2048xf32> to vector<1x2048xf32>
    %cst_39 = arith.constant 2.000000e+00 : f32
    %80 = vector.broadcast %cst_39 : f32 to vector<1x2048xf32>
    %81 = arith.divf %79, %80 : vector<1x2048xf32>
    %82 = vector.broadcast %74 : vector<1x2048xf32> to vector<2x2048xf32>
    %83 = arith.subf %68, %82 : vector<2x2048xf32>
    %cst_40 = arith.constant 9.99999974E-6 : f32
    %84 = vector.broadcast %cst_40 : f32 to vector<1x2048xf32>
    %85 = arith.addf %81, %84 : vector<1x2048xf32>
    %86 = math.rsqrt %85 : vector<1x2048xf32>
    %87 = vector.broadcast %86 : vector<1x2048xf32> to vector<2x2048xf32>
    %88 = arith.mulf %83, %87 : vector<2x2048xf32>
    %89 = vector.broadcast %69 : vector<1x2048xf32> to vector<2x2048xf32>
    %90 = arith.mulf %88, %89 : vector<2x2048xf32>
    %91 = vector.broadcast %70 : vector<1x2048xf32> to vector<2x2048xf32>
    %92 = arith.addf %90, %91 : vector<2x2048xf32>
    %cst_41 = arith.constant 0.000000e+00 : f32
    %93 = vector.broadcast %cst_41 : f32 to vector<2x2048xf32>
    %94 = arith.maximumf %92, %93 : vector<2x2048xf32>
    %95 = arith.truncf %94 : vector<2x2048xf32> to vector<2x2048xbf16>
    %c0_42 = arith.constant 0 : index
    %c0_43 = arith.constant 0 : index
    %96 = vector.load %arg10[%c0_42, %c0_43] : memref<2048x64xbf16, #tpu.memory_space<vmem>>, vector<2048x64xbf16>
    %cst_44 = arith.constant dense<0.000000e+00> : vector<2x64xf32>
    %97 = tpu.matmul %95, %96, %cst_44 {dimension_numbers = #tpu.dot_dimension_numbers<[1], [0], [0], [1], [0, 0, 1, 1], [], []>} : vector<2x2048xbf16>, vector<2048x64xbf16>, vector<2x64xf32> -> vector<2x64xf32>
    %c0_45 = arith.constant 0 : index
    %c0_46 = arith.constant 0 : index
    %98 = vector.load %arg11[%c0_45, %c0_46] : memref<1x64xf32, #tpu.memory_space<vmem>>, vector<1x64xf32>
    %99 = vector.broadcast %98 : vector<1x64xf32> to vector<2x64xf32>
    %100 = arith.addf %97, %99 : vector<2x64xf32>
    %101 = arith.truncf %100 : vector<2x64xf32> to vector<2x64xbf16>
    %c0_47 = arith.constant 0 : index
    %c0_48 = arith.constant 0 : index
    %102 = vector.load %arg12[%c0_47, %c0_48] : memref<2x64xbf16, #tpu.memory_space<vmem>>, vector<2x64xbf16>
    tpu.vector_store %arg12[%c0_47, %c0_48], %101 {strides = array<i32>} : memref<2x64xbf16, #tpu.memory_space<vmem>>, vector<2x64xbf16>,
    %c0_49 = arith.constant 0 : index
    %c0_50 = arith.constant 0 : index
    %103 = vector.load %arg13[%c0_49, %c0_50] : memref<2x16xf32, #tpu.memory_space<vmem>>, vector<2x16xf32>
    tpu.vector_store %arg13[%c0_49, %c0_50], %63 {strides = array<i32>} : memref<2x16xf32, #tpu.memory_space<vmem>>, vector<2x16xf32>,
    return
  }
}

module attributes {stable_mosaic.version = 11 : i64} {
  func.func @kernel(%arg0: memref<2x576xbf16, #tpu.memory_space<vmem>>, %arg1: memref<4x576x64xbf16, #tpu.memory_space<vmem>>, %arg2: memref<1x64xf32, #tpu.memory_space<vmem>>, %arg3: memref<1x64xf32, #tpu.memory_space<vmem>>, %arg4: memref<4x2x64xbf16, #tpu.memory_space<vmem>>) attributes {dimension_semantics = [], scalar_prefetch = 0 : i64, scratch_operands = 0 : i64, tpu.core_type = #tpu.core_type<tc>} {
    %c0 = arith.constant 0 : index
    %c0_0 = arith.constant 0 : index
    %0 = vector.load %arg0[%c0, %c0_0] : memref<2x576xbf16, #tpu.memory_space<vmem>>, vector<2x576xbf16>
    %c0_1 = arith.constant 0 : index
    %c0_2 = arith.constant 0 : index
    %c0_3 = arith.constant 0 : index
    %1 = vector.load %arg1[%c0_1, %c0_2, %c0_3] : memref<4x576x64xbf16, #tpu.memory_space<vmem>>, vector<1x576x64xbf16>
    %2 = vector.shape_cast %1 : vector<1x576x64xbf16> to vector<576x64xbf16>
    %cst = arith.constant dense<0.000000e+00> : vector<2x64xf32>
    %3 = tpu.matmul %0, %2, %cst {dimension_numbers = #tpu.dot_dimension_numbers<[1], [0], [0], [1], [0, 0, 1, 1], [], []>} : vector<2x576xbf16>, vector<576x64xbf16>, vector<2x64xf32> -> vector<2x64xf32>
    %c1 = arith.constant 1 : index
    %c0_4 = arith.constant 0 : index
    %c0_5 = arith.constant 0 : index
    %4 = vector.load %arg1[%c1, %c0_4, %c0_5] : memref<4x576x64xbf16, #tpu.memory_space<vmem>>, vector<1x576x64xbf16>
    %5 = vector.shape_cast %4 : vector<1x576x64xbf16> to vector<576x64xbf16>
    %cst_6 = arith.constant dense<0.000000e+00> : vector<2x64xf32>
    %6 = tpu.matmul %0, %5, %cst_6 {dimension_numbers = #tpu.dot_dimension_numbers<[1], [0], [0], [1], [0, 0, 1, 1], [], []>} : vector<2x576xbf16>, vector<576x64xbf16>, vector<2x64xf32> -> vector<2x64xf32>
    %c2 = arith.constant 2 : index
    %c0_7 = arith.constant 0 : index
    %c0_8 = arith.constant 0 : index
    %7 = vector.load %arg1[%c2, %c0_7, %c0_8] : memref<4x576x64xbf16, #tpu.memory_space<vmem>>, vector<1x576x64xbf16>
    %8 = vector.shape_cast %7 : vector<1x576x64xbf16> to vector<576x64xbf16>
    %cst_9 = arith.constant dense<0.000000e+00> : vector<2x64xf32>
    %9 = tpu.matmul %0, %8, %cst_9 {dimension_numbers = #tpu.dot_dimension_numbers<[1], [0], [0], [1], [0, 0, 1, 1], [], []>} : vector<2x576xbf16>, vector<576x64xbf16>, vector<2x64xf32> -> vector<2x64xf32>
    %c3 = arith.constant 3 : index
    %c0_10 = arith.constant 0 : index
    %c0_11 = arith.constant 0 : index
    %10 = vector.load %arg1[%c3, %c0_10, %c0_11] : memref<4x576x64xbf16, #tpu.memory_space<vmem>>, vector<1x576x64xbf16>
    %11 = vector.shape_cast %10 : vector<1x576x64xbf16> to vector<576x64xbf16>
    %cst_12 = arith.constant dense<0.000000e+00> : vector<2x64xf32>
    %12 = tpu.matmul %0, %11, %cst_12 {dimension_numbers = #tpu.dot_dimension_numbers<[1], [0], [0], [1], [0, 0, 1, 1], [], []>} : vector<2x576xbf16>, vector<576x64xbf16>, vector<2x64xf32> -> vector<2x64xf32>
    %cst_13 = arith.constant dense<0.000000e+00> : vector<64xf32>
    %13 = vector.multi_reduction <add>, %3, %cst_13 [0] : vector<2x64xf32> to vector<64xf32>
    %14 = vector.shape_cast %13 : vector<64xf32> to vector<1x64xf32>
    %cst_14 = arith.constant dense<0.000000e+00> : vector<64xf32>
    %15 = vector.multi_reduction <add>, %6, %cst_14 [0] : vector<2x64xf32> to vector<64xf32>
    %16 = vector.shape_cast %15 : vector<64xf32> to vector<1x64xf32>
    %17 = arith.addf %14, %16 : vector<1x64xf32>
    %cst_15 = arith.constant dense<0.000000e+00> : vector<64xf32>
    %18 = vector.multi_reduction <add>, %9, %cst_15 [0] : vector<2x64xf32> to vector<64xf32>
    %19 = vector.shape_cast %18 : vector<64xf32> to vector<1x64xf32>
    %20 = arith.addf %17, %19 : vector<1x64xf32>
    %cst_16 = arith.constant dense<0.000000e+00> : vector<64xf32>
    %21 = vector.multi_reduction <add>, %12, %cst_16 [0] : vector<2x64xf32> to vector<64xf32>
    %22 = vector.shape_cast %21 : vector<64xf32> to vector<1x64xf32>
    %23 = arith.addf %20, %22 : vector<1x64xf32>
    %cst_17 = arith.constant 1.250000e-01 : f32
    %24 = vector.broadcast %cst_17 : f32 to vector<1x64xf32>
    %25 = arith.mulf %23, %24 : vector<1x64xf32>
    %26 = vector.broadcast %25 : vector<1x64xf32> to vector<2x64xf32>
    %27 = arith.subf %3, %26 : vector<2x64xf32>
    %28 = arith.mulf %27, %27 : vector<2x64xf32>
    %cst_18 = arith.constant dense<0.000000e+00> : vector<64xf32>
    %29 = vector.multi_reduction <add>, %28, %cst_18 [0] : vector<2x64xf32> to vector<64xf32>
    %30 = vector.shape_cast %29 : vector<64xf32> to vector<1x64xf32>
    %31 = vector.broadcast %25 : vector<1x64xf32> to vector<2x64xf32>
    %32 = arith.subf %6, %31 : vector<2x64xf32>
    %33 = arith.mulf %32, %32 : vector<2x64xf32>
    %cst_19 = arith.constant dense<0.000000e+00> : vector<64xf32>
    %34 = vector.multi_reduction <add>, %33, %cst_19 [0] : vector<2x64xf32> to vector<64xf32>
    %35 = vector.shape_cast %34 : vector<64xf32> to vector<1x64xf32>
    %36 = arith.addf %30, %35 : vector<1x64xf32>
    %37 = vector.broadcast %25 : vector<1x64xf32> to vector<2x64xf32>
    %38 = arith.subf %9, %37 : vector<2x64xf32>
    %39 = arith.mulf %38, %38 : vector<2x64xf32>
    %cst_20 = arith.constant dense<0.000000e+00> : vector<64xf32>
    %40 = vector.multi_reduction <add>, %39, %cst_20 [0] : vector<2x64xf32> to vector<64xf32>
    %41 = vector.shape_cast %40 : vector<64xf32> to vector<1x64xf32>
    %42 = arith.addf %36, %41 : vector<1x64xf32>
    %43 = vector.broadcast %25 : vector<1x64xf32> to vector<2x64xf32>
    %44 = arith.subf %12, %43 : vector<2x64xf32>
    %45 = arith.mulf %44, %44 : vector<2x64xf32>
    %cst_21 = arith.constant dense<0.000000e+00> : vector<64xf32>
    %46 = vector.multi_reduction <add>, %45, %cst_21 [0] : vector<2x64xf32> to vector<64xf32>
    %47 = vector.shape_cast %46 : vector<64xf32> to vector<1x64xf32>
    %48 = arith.addf %42, %47 : vector<1x64xf32>
    %c0_22 = arith.constant 0 : index
    %c0_23 = arith.constant 0 : index
    %49 = vector.load %arg2[%c0_22, %c0_23] : memref<1x64xf32, #tpu.memory_space<vmem>>, vector<1x64xf32>
    %cst_24 = arith.constant 1.250000e-01 : f32
    %50 = vector.broadcast %cst_24 : f32 to vector<1x64xf32>
    %51 = arith.mulf %48, %50 : vector<1x64xf32>
    %cst_25 = arith.constant 9.99999974E-6 : f32
    %52 = vector.broadcast %cst_25 : f32 to vector<1x64xf32>
    %53 = arith.addf %51, %52 : vector<1x64xf32>
    %54 = math.rsqrt %53 : vector<1x64xf32>
    %55 = arith.mulf %49, %54 : vector<1x64xf32>
    %c0_26 = arith.constant 0 : index
    %c0_27 = arith.constant 0 : index
    %56 = vector.load %arg3[%c0_26, %c0_27] : memref<1x64xf32, #tpu.memory_space<vmem>>, vector<1x64xf32>
    %57 = arith.mulf %25, %55 : vector<1x64xf32>
    %58 = arith.subf %56, %57 : vector<1x64xf32>
    %59 = vector.broadcast %55 : vector<1x64xf32> to vector<2x64xf32>
    %60 = arith.mulf %3, %59 : vector<2x64xf32>
    %61 = vector.broadcast %58 : vector<1x64xf32> to vector<2x64xf32>
    %62 = arith.addf %60, %61 : vector<2x64xf32>
    %cst_28 = arith.constant 0.000000e+00 : f32
    %63 = vector.broadcast %cst_28 : f32 to vector<2x64xf32>
    %64 = arith.maximumf %62, %63 : vector<2x64xf32>
    %65 = arith.truncf %64 : vector<2x64xf32> to vector<2x64xbf16>
    %c0_29 = arith.constant 0 : index
    %c0_30 = arith.constant 0 : index
    %c0_31 = arith.constant 0 : index
    %66 = vector.load %arg4[%c0_29, %c0_30, %c0_31] : memref<4x2x64xbf16, #tpu.memory_space<vmem>>, vector<1x2x64xbf16>
    %67 = vector.shape_cast %66 : vector<1x2x64xbf16> to vector<2x64xbf16>
    %68 = vector.shape_cast %65 : vector<2x64xbf16> to vector<1x2x64xbf16>
    tpu.vector_store %arg4[%c0_29, %c0_30, %c0_31], %68 {strides = array<i32>} : memref<4x2x64xbf16, #tpu.memory_space<vmem>>, vector<1x2x64xbf16>,
    %69 = vector.broadcast %55 : vector<1x64xf32> to vector<2x64xf32>
    %70 = arith.mulf %6, %69 : vector<2x64xf32>
    %71 = vector.broadcast %58 : vector<1x64xf32> to vector<2x64xf32>
    %72 = arith.addf %70, %71 : vector<2x64xf32>
    %cst_32 = arith.constant 0.000000e+00 : f32
    %73 = vector.broadcast %cst_32 : f32 to vector<2x64xf32>
    %74 = arith.maximumf %72, %73 : vector<2x64xf32>
    %75 = arith.truncf %74 : vector<2x64xf32> to vector<2x64xbf16>
    %c1_33 = arith.constant 1 : index
    %c0_34 = arith.constant 0 : index
    %c0_35 = arith.constant 0 : index
    %76 = vector.load %arg4[%c1_33, %c0_34, %c0_35] : memref<4x2x64xbf16, #tpu.memory_space<vmem>>, vector<1x2x64xbf16>
    %77 = vector.shape_cast %76 : vector<1x2x64xbf16> to vector<2x64xbf16>
    %78 = vector.shape_cast %75 : vector<2x64xbf16> to vector<1x2x64xbf16>
    tpu.vector_store %arg4[%c1_33, %c0_34, %c0_35], %78 {strides = array<i32>} : memref<4x2x64xbf16, #tpu.memory_space<vmem>>, vector<1x2x64xbf16>,
    %79 = vector.broadcast %55 : vector<1x64xf32> to vector<2x64xf32>
    %80 = arith.mulf %9, %79 : vector<2x64xf32>
    %81 = vector.broadcast %58 : vector<1x64xf32> to vector<2x64xf32>
    %82 = arith.addf %80, %81 : vector<2x64xf32>
    %cst_36 = arith.constant 0.000000e+00 : f32
    %83 = vector.broadcast %cst_36 : f32 to vector<2x64xf32>
    %84 = arith.maximumf %82, %83 : vector<2x64xf32>
    %85 = arith.truncf %84 : vector<2x64xf32> to vector<2x64xbf16>
    %c2_37 = arith.constant 2 : index
    %c0_38 = arith.constant 0 : index
    %c0_39 = arith.constant 0 : index
    %86 = vector.load %arg4[%c2_37, %c0_38, %c0_39] : memref<4x2x64xbf16, #tpu.memory_space<vmem>>, vector<1x2x64xbf16>
    %87 = vector.shape_cast %86 : vector<1x2x64xbf16> to vector<2x64xbf16>
    %88 = vector.shape_cast %85 : vector<2x64xbf16> to vector<1x2x64xbf16>
    tpu.vector_store %arg4[%c2_37, %c0_38, %c0_39], %88 {strides = array<i32>} : memref<4x2x64xbf16, #tpu.memory_space<vmem>>, vector<1x2x64xbf16>,
    %89 = vector.broadcast %55 : vector<1x64xf32> to vector<2x64xf32>
    %90 = arith.mulf %12, %89 : vector<2x64xf32>
    %91 = vector.broadcast %58 : vector<1x64xf32> to vector<2x64xf32>
    %92 = arith.addf %90, %91 : vector<2x64xf32>
    %cst_40 = arith.constant 0.000000e+00 : f32
    %93 = vector.broadcast %cst_40 : f32 to vector<2x64xf32>
    %94 = arith.maximumf %92, %93 : vector<2x64xf32>
    %95 = arith.truncf %94 : vector<2x64xf32> to vector<2x64xbf16>
    %c3_41 = arith.constant 3 : index
    %c0_42 = arith.constant 0 : index
    %c0_43 = arith.constant 0 : index
    %96 = vector.load %arg4[%c3_41, %c0_42, %c0_43] : memref<4x2x64xbf16, #tpu.memory_space<vmem>>, vector<1x2x64xbf16>
    %97 = vector.shape_cast %96 : vector<1x2x64xbf16> to vector<2x64xbf16>
    %98 = vector.shape_cast %95 : vector<2x64xbf16> to vector<1x2x64xbf16>
    tpu.vector_store %arg4[%c3_41, %c0_42, %c0_43], %98 {strides = array<i32>} : memref<4x2x64xbf16, #tpu.memory_space<vmem>>, vector<1x2x64xbf16>,
    return
  }
}

module attributes {stable_mosaic.version = 11 : i64} {
  func.func @kernel(%arg0: memref<8x576xbf16, #tpu.memory_space<vmem>>, %arg1: memref<4x576x32xbf16, #tpu.memory_space<vmem>>, %arg2: memref<1x32xf32, #tpu.memory_space<vmem>>, %arg3: memref<1x32xf32, #tpu.memory_space<vmem>>, %arg4: memref<4x8x32xbf16, #tpu.memory_space<vmem>>) attributes {dimension_semantics = [], scalar_prefetch = 0 : i64, scratch_operands = 0 : i64, tpu.core_type = #tpu.core_type<tc>} {
    %c0 = arith.constant 0 : index
    %c0_0 = arith.constant 0 : index
    %0 = vector.load %arg0[%c0, %c0_0] : memref<8x576xbf16, #tpu.memory_space<vmem>>, vector<8x576xbf16>
    %c0_1 = arith.constant 0 : index
    %c0_2 = arith.constant 0 : index
    %c0_3 = arith.constant 0 : index
    %1 = vector.load %arg1[%c0_1, %c0_2, %c0_3] : memref<4x576x32xbf16, #tpu.memory_space<vmem>>, vector<1x576x32xbf16>
    %2 = vector.shape_cast %1 : vector<1x576x32xbf16> to vector<576x32xbf16>
    %cst = arith.constant dense<0.000000e+00> : vector<8x32xf32>
    %3 = tpu.matmul %0, %2, %cst {dimension_numbers = #tpu.dot_dimension_numbers<[1], [0], [0], [1], [0, 0, 1, 1], [], []>} : vector<8x576xbf16>, vector<576x32xbf16>, vector<8x32xf32> -> vector<8x32xf32>
    %c1 = arith.constant 1 : index
    %c0_4 = arith.constant 0 : index
    %c0_5 = arith.constant 0 : index
    %4 = vector.load %arg1[%c1, %c0_4, %c0_5] : memref<4x576x32xbf16, #tpu.memory_space<vmem>>, vector<1x576x32xbf16>
    %5 = vector.shape_cast %4 : vector<1x576x32xbf16> to vector<576x32xbf16>
    %cst_6 = arith.constant dense<0.000000e+00> : vector<8x32xf32>
    %6 = tpu.matmul %0, %5, %cst_6 {dimension_numbers = #tpu.dot_dimension_numbers<[1], [0], [0], [1], [0, 0, 1, 1], [], []>} : vector<8x576xbf16>, vector<576x32xbf16>, vector<8x32xf32> -> vector<8x32xf32>
    %c2 = arith.constant 2 : index
    %c0_7 = arith.constant 0 : index
    %c0_8 = arith.constant 0 : index
    %7 = vector.load %arg1[%c2, %c0_7, %c0_8] : memref<4x576x32xbf16, #tpu.memory_space<vmem>>, vector<1x576x32xbf16>
    %8 = vector.shape_cast %7 : vector<1x576x32xbf16> to vector<576x32xbf16>
    %cst_9 = arith.constant dense<0.000000e+00> : vector<8x32xf32>
    %9 = tpu.matmul %0, %8, %cst_9 {dimension_numbers = #tpu.dot_dimension_numbers<[1], [0], [0], [1], [0, 0, 1, 1], [], []>} : vector<8x576xbf16>, vector<576x32xbf16>, vector<8x32xf32> -> vector<8x32xf32>
    %c3 = arith.constant 3 : index
    %c0_10 = arith.constant 0 : index
    %c0_11 = arith.constant 0 : index
    %10 = vector.load %arg1[%c3, %c0_10, %c0_11] : memref<4x576x32xbf16, #tpu.memory_space<vmem>>, vector<1x576x32xbf16>
    %11 = vector.shape_cast %10 : vector<1x576x32xbf16> to vector<576x32xbf16>
    %cst_12 = arith.constant dense<0.000000e+00> : vector<8x32xf32>
    %12 = tpu.matmul %0, %11, %cst_12 {dimension_numbers = #tpu.dot_dimension_numbers<[1], [0], [0], [1], [0, 0, 1, 1], [], []>} : vector<8x576xbf16>, vector<576x32xbf16>, vector<8x32xf32> -> vector<8x32xf32>
    %cst_13 = arith.constant dense<0.000000e+00> : vector<32xf32>
    %13 = vector.multi_reduction <add>, %3, %cst_13 [0] : vector<8x32xf32> to vector<32xf32>
    %14 = vector.shape_cast %13 : vector<32xf32> to vector<1x32xf32>
    %cst_14 = arith.constant dense<0.000000e+00> : vector<32xf32>
    %15 = vector.multi_reduction <add>, %6, %cst_14 [0] : vector<8x32xf32> to vector<32xf32>
    %16 = vector.shape_cast %15 : vector<32xf32> to vector<1x32xf32>
    %17 = arith.addf %14, %16 : vector<1x32xf32>
    %cst_15 = arith.constant dense<0.000000e+00> : vector<32xf32>
    %18 = vector.multi_reduction <add>, %9, %cst_15 [0] : vector<8x32xf32> to vector<32xf32>
    %19 = vector.shape_cast %18 : vector<32xf32> to vector<1x32xf32>
    %20 = arith.addf %17, %19 : vector<1x32xf32>
    %cst_16 = arith.constant dense<0.000000e+00> : vector<32xf32>
    %21 = vector.multi_reduction <add>, %12, %cst_16 [0] : vector<8x32xf32> to vector<32xf32>
    %22 = vector.shape_cast %21 : vector<32xf32> to vector<1x32xf32>
    %23 = arith.addf %20, %22 : vector<1x32xf32>
    %cst_17 = arith.constant 3.125000e-02 : f32
    %24 = vector.broadcast %cst_17 : f32 to vector<1x32xf32>
    %25 = arith.mulf %23, %24 : vector<1x32xf32>
    %26 = vector.broadcast %25 : vector<1x32xf32> to vector<8x32xf32>
    %27 = arith.subf %3, %26 : vector<8x32xf32>
    %28 = arith.mulf %27, %27 : vector<8x32xf32>
    %cst_18 = arith.constant dense<0.000000e+00> : vector<32xf32>
    %29 = vector.multi_reduction <add>, %28, %cst_18 [0] : vector<8x32xf32> to vector<32xf32>
    %30 = vector.shape_cast %29 : vector<32xf32> to vector<1x32xf32>
    %31 = vector.broadcast %25 : vector<1x32xf32> to vector<8x32xf32>
    %32 = arith.subf %6, %31 : vector<8x32xf32>
    %33 = arith.mulf %32, %32 : vector<8x32xf32>
    %cst_19 = arith.constant dense<0.000000e+00> : vector<32xf32>
    %34 = vector.multi_reduction <add>, %33, %cst_19 [0] : vector<8x32xf32> to vector<32xf32>
    %35 = vector.shape_cast %34 : vector<32xf32> to vector<1x32xf32>
    %36 = arith.addf %30, %35 : vector<1x32xf32>
    %37 = vector.broadcast %25 : vector<1x32xf32> to vector<8x32xf32>
    %38 = arith.subf %9, %37 : vector<8x32xf32>
    %39 = arith.mulf %38, %38 : vector<8x32xf32>
    %cst_20 = arith.constant dense<0.000000e+00> : vector<32xf32>
    %40 = vector.multi_reduction <add>, %39, %cst_20 [0] : vector<8x32xf32> to vector<32xf32>
    %41 = vector.shape_cast %40 : vector<32xf32> to vector<1x32xf32>
    %42 = arith.addf %36, %41 : vector<1x32xf32>
    %43 = vector.broadcast %25 : vector<1x32xf32> to vector<8x32xf32>
    %44 = arith.subf %12, %43 : vector<8x32xf32>
    %45 = arith.mulf %44, %44 : vector<8x32xf32>
    %cst_21 = arith.constant dense<0.000000e+00> : vector<32xf32>
    %46 = vector.multi_reduction <add>, %45, %cst_21 [0] : vector<8x32xf32> to vector<32xf32>
    %47 = vector.shape_cast %46 : vector<32xf32> to vector<1x32xf32>
    %48 = arith.addf %42, %47 : vector<1x32xf32>
    %c0_22 = arith.constant 0 : index
    %c0_23 = arith.constant 0 : index
    %49 = vector.load %arg2[%c0_22, %c0_23] : memref<1x32xf32, #tpu.memory_space<vmem>>, vector<1x32xf32>
    %cst_24 = arith.constant 3.125000e-02 : f32
    %50 = vector.broadcast %cst_24 : f32 to vector<1x32xf32>
    %51 = arith.mulf %48, %50 : vector<1x32xf32>
    %cst_25 = arith.constant 9.99999974E-6 : f32
    %52 = vector.broadcast %cst_25 : f32 to vector<1x32xf32>
    %53 = arith.addf %51, %52 : vector<1x32xf32>
    %54 = math.rsqrt %53 : vector<1x32xf32>
    %55 = arith.mulf %49, %54 : vector<1x32xf32>
    %c0_26 = arith.constant 0 : index
    %c0_27 = arith.constant 0 : index
    %56 = vector.load %arg3[%c0_26, %c0_27] : memref<1x32xf32, #tpu.memory_space<vmem>>, vector<1x32xf32>
    %57 = arith.mulf %25, %55 : vector<1x32xf32>
    %58 = arith.subf %56, %57 : vector<1x32xf32>
    %59 = vector.broadcast %55 : vector<1x32xf32> to vector<8x32xf32>
    %60 = arith.mulf %3, %59 : vector<8x32xf32>
    %61 = vector.broadcast %58 : vector<1x32xf32> to vector<8x32xf32>
    %62 = arith.addf %60, %61 : vector<8x32xf32>
    %cst_28 = arith.constant 0.000000e+00 : f32
    %63 = vector.broadcast %cst_28 : f32 to vector<8x32xf32>
    %64 = arith.maximumf %62, %63 : vector<8x32xf32>
    %65 = arith.truncf %64 : vector<8x32xf32> to vector<8x32xbf16>
    %c0_29 = arith.constant 0 : index
    %c0_30 = arith.constant 0 : index
    %c0_31 = arith.constant 0 : index
    %66 = vector.load %arg4[%c0_29, %c0_30, %c0_31] : memref<4x8x32xbf16, #tpu.memory_space<vmem>>, vector<1x8x32xbf16>
    %67 = vector.shape_cast %66 : vector<1x8x32xbf16> to vector<8x32xbf16>
    %68 = vector.shape_cast %65 : vector<8x32xbf16> to vector<1x8x32xbf16>
    tpu.vector_store %arg4[%c0_29, %c0_30, %c0_31], %68 {strides = array<i32>} : memref<4x8x32xbf16, #tpu.memory_space<vmem>>, vector<1x8x32xbf16>,
    %69 = vector.broadcast %55 : vector<1x32xf32> to vector<8x32xf32>
    %70 = arith.mulf %6, %69 : vector<8x32xf32>
    %71 = vector.broadcast %58 : vector<1x32xf32> to vector<8x32xf32>
    %72 = arith.addf %70, %71 : vector<8x32xf32>
    %cst_32 = arith.constant 0.000000e+00 : f32
    %73 = vector.broadcast %cst_32 : f32 to vector<8x32xf32>
    %74 = arith.maximumf %72, %73 : vector<8x32xf32>
    %75 = arith.truncf %74 : vector<8x32xf32> to vector<8x32xbf16>
    %c1_33 = arith.constant 1 : index
    %c0_34 = arith.constant 0 : index
    %c0_35 = arith.constant 0 : index
    %76 = vector.load %arg4[%c1_33, %c0_34, %c0_35] : memref<4x8x32xbf16, #tpu.memory_space<vmem>>, vector<1x8x32xbf16>
    %77 = vector.shape_cast %76 : vector<1x8x32xbf16> to vector<8x32xbf16>
    %78 = vector.shape_cast %75 : vector<8x32xbf16> to vector<1x8x32xbf16>
    tpu.vector_store %arg4[%c1_33, %c0_34, %c0_35], %78 {strides = array<i32>} : memref<4x8x32xbf16, #tpu.memory_space<vmem>>, vector<1x8x32xbf16>,
    %79 = vector.broadcast %55 : vector<1x32xf32> to vector<8x32xf32>
    %80 = arith.mulf %9, %79 : vector<8x32xf32>
    %81 = vector.broadcast %58 : vector<1x32xf32> to vector<8x32xf32>
    %82 = arith.addf %80, %81 : vector<8x32xf32>
    %cst_36 = arith.constant 0.000000e+00 : f32
    %83 = vector.broadcast %cst_36 : f32 to vector<8x32xf32>
    %84 = arith.maximumf %82, %83 : vector<8x32xf32>
    %85 = arith.truncf %84 : vector<8x32xf32> to vector<8x32xbf16>
    %c2_37 = arith.constant 2 : index
    %c0_38 = arith.constant 0 : index
    %c0_39 = arith.constant 0 : index
    %86 = vector.load %arg4[%c2_37, %c0_38, %c0_39] : memref<4x8x32xbf16, #tpu.memory_space<vmem>>, vector<1x8x32xbf16>
    %87 = vector.shape_cast %86 : vector<1x8x32xbf16> to vector<8x32xbf16>
    %88 = vector.shape_cast %85 : vector<8x32xbf16> to vector<1x8x32xbf16>
    tpu.vector_store %arg4[%c2_37, %c0_38, %c0_39], %88 {strides = array<i32>} : memref<4x8x32xbf16, #tpu.memory_space<vmem>>, vector<1x8x32xbf16>,
    %89 = vector.broadcast %55 : vector<1x32xf32> to vector<8x32xf32>
    %90 = arith.mulf %12, %89 : vector<8x32xf32>
    %91 = vector.broadcast %58 : vector<1x32xf32> to vector<8x32xf32>
    %92 = arith.addf %90, %91 : vector<8x32xf32>
    %cst_40 = arith.constant 0.000000e+00 : f32
    %93 = vector.broadcast %cst_40 : f32 to vector<8x32xf32>
    %94 = arith.maximumf %92, %93 : vector<8x32xf32>
    %95 = arith.truncf %94 : vector<8x32xf32> to vector<8x32xbf16>
    %c3_41 = arith.constant 3 : index
    %c0_42 = arith.constant 0 : index
    %c0_43 = arith.constant 0 : index
    %96 = vector.load %arg4[%c3_41, %c0_42, %c0_43] : memref<4x8x32xbf16, #tpu.memory_space<vmem>>, vector<1x8x32xbf16>
    %97 = vector.shape_cast %96 : vector<1x8x32xbf16> to vector<8x32xbf16>
    %98 = vector.shape_cast %95 : vector<8x32xbf16> to vector<1x8x32xbf16>
    tpu.vector_store %arg4[%c3_41, %c0_42, %c0_43], %98 {strides = array<i32>} : memref<4x8x32xbf16, #tpu.memory_space<vmem>>, vector<1x8x32xbf16>,
    return
  }
}

module attributes {stable_mosaic.version = 11 : i64} {
  func.func @kernel(%arg0: memref<32x288xbf16, #tpu.memory_space<vmem>>, %arg1: memref<4x288x16xbf16, #tpu.memory_space<vmem>>, %arg2: memref<1x16xf32, #tpu.memory_space<vmem>>, %arg3: memref<1x16xf32, #tpu.memory_space<vmem>>, %arg4: memref<4x32x16xbf16, #tpu.memory_space<vmem>>) attributes {dimension_semantics = [], scalar_prefetch = 0 : i64, scratch_operands = 0 : i64, tpu.core_type = #tpu.core_type<tc>} {
    %c0 = arith.constant 0 : index
    %c0_0 = arith.constant 0 : index
    %0 = vector.load %arg0[%c0, %c0_0] : memref<32x288xbf16, #tpu.memory_space<vmem>>, vector<32x288xbf16>
    %c0_1 = arith.constant 0 : index
    %c0_2 = arith.constant 0 : index
    %c0_3 = arith.constant 0 : index
    %1 = vector.load %arg1[%c0_1, %c0_2, %c0_3] : memref<4x288x16xbf16, #tpu.memory_space<vmem>>, vector<1x288x16xbf16>
    %2 = vector.shape_cast %1 : vector<1x288x16xbf16> to vector<288x16xbf16>
    %cst = arith.constant dense<0.000000e+00> : vector<32x16xf32>
    %3 = tpu.matmul %0, %2, %cst {dimension_numbers = #tpu.dot_dimension_numbers<[1], [0], [0], [1], [0, 0, 1, 1], [], []>} : vector<32x288xbf16>, vector<288x16xbf16>, vector<32x16xf32> -> vector<32x16xf32>
    %c1 = arith.constant 1 : index
    %c0_4 = arith.constant 0 : index
    %c0_5 = arith.constant 0 : index
    %4 = vector.load %arg1[%c1, %c0_4, %c0_5] : memref<4x288x16xbf16, #tpu.memory_space<vmem>>, vector<1x288x16xbf16>
    %5 = vector.shape_cast %4 : vector<1x288x16xbf16> to vector<288x16xbf16>
    %cst_6 = arith.constant dense<0.000000e+00> : vector<32x16xf32>
    %6 = tpu.matmul %0, %5, %cst_6 {dimension_numbers = #tpu.dot_dimension_numbers<[1], [0], [0], [1], [0, 0, 1, 1], [], []>} : vector<32x288xbf16>, vector<288x16xbf16>, vector<32x16xf32> -> vector<32x16xf32>
    %c2 = arith.constant 2 : index
    %c0_7 = arith.constant 0 : index
    %c0_8 = arith.constant 0 : index
    %7 = vector.load %arg1[%c2, %c0_7, %c0_8] : memref<4x288x16xbf16, #tpu.memory_space<vmem>>, vector<1x288x16xbf16>
    %8 = vector.shape_cast %7 : vector<1x288x16xbf16> to vector<288x16xbf16>
    %cst_9 = arith.constant dense<0.000000e+00> : vector<32x16xf32>
    %9 = tpu.matmul %0, %8, %cst_9 {dimension_numbers = #tpu.dot_dimension_numbers<[1], [0], [0], [1], [0, 0, 1, 1], [], []>} : vector<32x288xbf16>, vector<288x16xbf16>, vector<32x16xf32> -> vector<32x16xf32>
    %c3 = arith.constant 3 : index
    %c0_10 = arith.constant 0 : index
    %c0_11 = arith.constant 0 : index
    %10 = vector.load %arg1[%c3, %c0_10, %c0_11] : memref<4x288x16xbf16, #tpu.memory_space<vmem>>, vector<1x288x16xbf16>
    %11 = vector.shape_cast %10 : vector<1x288x16xbf16> to vector<288x16xbf16>
    %cst_12 = arith.constant dense<0.000000e+00> : vector<32x16xf32>
    %12 = tpu.matmul %0, %11, %cst_12 {dimension_numbers = #tpu.dot_dimension_numbers<[1], [0], [0], [1], [0, 0, 1, 1], [], []>} : vector<32x288xbf16>, vector<288x16xbf16>, vector<32x16xf32> -> vector<32x16xf32>
    %cst_13 = arith.constant dense<0.000000e+00> : vector<16xf32>
    %13 = vector.multi_reduction <add>, %3, %cst_13 [0] : vector<32x16xf32> to vector<16xf32>
    %14 = vector.shape_cast %13 : vector<16xf32> to vector<1x16xf32>
    %cst_14 = arith.constant dense<0.000000e+00> : vector<16xf32>
    %15 = vector.multi_reduction <add>, %6, %cst_14 [0] : vector<32x16xf32> to vector<16xf32>
    %16 = vector.shape_cast %15 : vector<16xf32> to vector<1x16xf32>
    %17 = arith.addf %14, %16 : vector<1x16xf32>
    %cst_15 = arith.constant dense<0.000000e+00> : vector<16xf32>
    %18 = vector.multi_reduction <add>, %9, %cst_15 [0] : vector<32x16xf32> to vector<16xf32>
    %19 = vector.shape_cast %18 : vector<16xf32> to vector<1x16xf32>
    %20 = arith.addf %17, %19 : vector<1x16xf32>
    %cst_16 = arith.constant dense<0.000000e+00> : vector<16xf32>
    %21 = vector.multi_reduction <add>, %12, %cst_16 [0] : vector<32x16xf32> to vector<16xf32>
    %22 = vector.shape_cast %21 : vector<16xf32> to vector<1x16xf32>
    %23 = arith.addf %20, %22 : vector<1x16xf32>
    %cst_17 = arith.constant 7.812500e-03 : f32
    %24 = vector.broadcast %cst_17 : f32 to vector<1x16xf32>
    %25 = arith.mulf %23, %24 : vector<1x16xf32>
    %26 = vector.broadcast %25 : vector<1x16xf32> to vector<32x16xf32>
    %27 = arith.subf %3, %26 : vector<32x16xf32>
    %28 = arith.mulf %27, %27 : vector<32x16xf32>
    %cst_18 = arith.constant dense<0.000000e+00> : vector<16xf32>
    %29 = vector.multi_reduction <add>, %28, %cst_18 [0] : vector<32x16xf32> to vector<16xf32>
    %30 = vector.shape_cast %29 : vector<16xf32> to vector<1x16xf32>
    %31 = vector.broadcast %25 : vector<1x16xf32> to vector<32x16xf32>
    %32 = arith.subf %6, %31 : vector<32x16xf32>
    %33 = arith.mulf %32, %32 : vector<32x16xf32>
    %cst_19 = arith.constant dense<0.000000e+00> : vector<16xf32>
    %34 = vector.multi_reduction <add>, %33, %cst_19 [0] : vector<32x16xf32> to vector<16xf32>
    %35 = vector.shape_cast %34 : vector<16xf32> to vector<1x16xf32>
    %36 = arith.addf %30, %35 : vector<1x16xf32>
    %37 = vector.broadcast %25 : vector<1x16xf32> to vector<32x16xf32>
    %38 = arith.subf %9, %37 : vector<32x16xf32>
    %39 = arith.mulf %38, %38 : vector<32x16xf32>
    %cst_20 = arith.constant dense<0.000000e+00> : vector<16xf32>
    %40 = vector.multi_reduction <add>, %39, %cst_20 [0] : vector<32x16xf32> to vector<16xf32>
    %41 = vector.shape_cast %40 : vector<16xf32> to vector<1x16xf32>
    %42 = arith.addf %36, %41 : vector<1x16xf32>
    %43 = vector.broadcast %25 : vector<1x16xf32> to vector<32x16xf32>
    %44 = arith.subf %12, %43 : vector<32x16xf32>
    %45 = arith.mulf %44, %44 : vector<32x16xf32>
    %cst_21 = arith.constant dense<0.000000e+00> : vector<16xf32>
    %46 = vector.multi_reduction <add>, %45, %cst_21 [0] : vector<32x16xf32> to vector<16xf32>
    %47 = vector.shape_cast %46 : vector<16xf32> to vector<1x16xf32>
    %48 = arith.addf %42, %47 : vector<1x16xf32>
    %c0_22 = arith.constant 0 : index
    %c0_23 = arith.constant 0 : index
    %49 = vector.load %arg2[%c0_22, %c0_23] : memref<1x16xf32, #tpu.memory_space<vmem>>, vector<1x16xf32>
    %cst_24 = arith.constant 7.812500e-03 : f32
    %50 = vector.broadcast %cst_24 : f32 to vector<1x16xf32>
    %51 = arith.mulf %48, %50 : vector<1x16xf32>
    %cst_25 = arith.constant 9.99999974E-6 : f32
    %52 = vector.broadcast %cst_25 : f32 to vector<1x16xf32>
    %53 = arith.addf %51, %52 : vector<1x16xf32>
    %54 = math.rsqrt %53 : vector<1x16xf32>
    %55 = arith.mulf %49, %54 : vector<1x16xf32>
    %c0_26 = arith.constant 0 : index
    %c0_27 = arith.constant 0 : index
    %56 = vector.load %arg3[%c0_26, %c0_27] : memref<1x16xf32, #tpu.memory_space<vmem>>, vector<1x16xf32>
    %57 = arith.mulf %25, %55 : vector<1x16xf32>
    %58 = arith.subf %56, %57 : vector<1x16xf32>
    %59 = vector.broadcast %55 : vector<1x16xf32> to vector<32x16xf32>
    %60 = arith.mulf %3, %59 : vector<32x16xf32>
    %61 = vector.broadcast %58 : vector<1x16xf32> to vector<32x16xf32>
    %62 = arith.addf %60, %61 : vector<32x16xf32>
    %cst_28 = arith.constant 0.000000e+00 : f32
    %63 = vector.broadcast %cst_28 : f32 to vector<32x16xf32>
    %64 = arith.maximumf %62, %63 : vector<32x16xf32>
    %65 = arith.truncf %64 : vector<32x16xf32> to vector<32x16xbf16>
    %c0_29 = arith.constant 0 : index
    %c0_30 = arith.constant 0 : index
    %c0_31 = arith.constant 0 : index
    %66 = vector.load %arg4[%c0_29, %c0_30, %c0_31] : memref<4x32x16xbf16, #tpu.memory_space<vmem>>, vector<1x32x16xbf16>
    %67 = vector.shape_cast %66 : vector<1x32x16xbf16> to vector<32x16xbf16>
    %68 = vector.shape_cast %65 : vector<32x16xbf16> to vector<1x32x16xbf16>
    tpu.vector_store %arg4[%c0_29, %c0_30, %c0_31], %68 {strides = array<i32>} : memref<4x32x16xbf16, #tpu.memory_space<vmem>>, vector<1x32x16xbf16>,
    %69 = vector.broadcast %55 : vector<1x16xf32> to vector<32x16xf32>
    %70 = arith.mulf %6, %69 : vector<32x16xf32>
    %71 = vector.broadcast %58 : vector<1x16xf32> to vector<32x16xf32>
    %72 = arith.addf %70, %71 : vector<32x16xf32>
    %cst_32 = arith.constant 0.000000e+00 : f32
    %73 = vector.broadcast %cst_32 : f32 to vector<32x16xf32>
    %74 = arith.maximumf %72, %73 : vector<32x16xf32>
    %75 = arith.truncf %74 : vector<32x16xf32> to vector<32x16xbf16>
    %c1_33 = arith.constant 1 : index
    %c0_34 = arith.constant 0 : index
    %c0_35 = arith.constant 0 : index
    %76 = vector.load %arg4[%c1_33, %c0_34, %c0_35] : memref<4x32x16xbf16, #tpu.memory_space<vmem>>, vector<1x32x16xbf16>
    %77 = vector.shape_cast %76 : vector<1x32x16xbf16> to vector<32x16xbf16>
    %78 = vector.shape_cast %75 : vector<32x16xbf16> to vector<1x32x16xbf16>
    tpu.vector_store %arg4[%c1_33, %c0_34, %c0_35], %78 {strides = array<i32>} : memref<4x32x16xbf16, #tpu.memory_space<vmem>>, vector<1x32x16xbf16>,
    %79 = vector.broadcast %55 : vector<1x16xf32> to vector<32x16xf32>
    %80 = arith.mulf %9, %79 : vector<32x16xf32>
    %81 = vector.broadcast %58 : vector<1x16xf32> to vector<32x16xf32>
    %82 = arith.addf %80, %81 : vector<32x16xf32>
    %cst_36 = arith.constant 0.000000e+00 : f32
    %83 = vector.broadcast %cst_36 : f32 to vector<32x16xf32>
    %84 = arith.maximumf %82, %83 : vector<32x16xf32>
    %85 = arith.truncf %84 : vector<32x16xf32> to vector<32x16xbf16>
    %c2_37 = arith.constant 2 : index
    %c0_38 = arith.constant 0 : index
    %c0_39 = arith.constant 0 : index
    %86 = vector.load %arg4[%c2_37, %c0_38, %c0_39] : memref<4x32x16xbf16, #tpu.memory_space<vmem>>, vector<1x32x16xbf16>
    %87 = vector.shape_cast %86 : vector<1x32x16xbf16> to vector<32x16xbf16>
    %88 = vector.shape_cast %85 : vector<32x16xbf16> to vector<1x32x16xbf16>
    tpu.vector_store %arg4[%c2_37, %c0_38, %c0_39], %88 {strides = array<i32>} : memref<4x32x16xbf16, #tpu.memory_space<vmem>>, vector<1x32x16xbf16>,
    %89 = vector.broadcast %55 : vector<1x16xf32> to vector<32x16xf32>
    %90 = arith.mulf %12, %89 : vector<32x16xf32>
    %91 = vector.broadcast %58 : vector<1x16xf32> to vector<32x16xf32>
    %92 = arith.addf %90, %91 : vector<32x16xf32>
    %cst_40 = arith.constant 0.000000e+00 : f32
    %93 = vector.broadcast %cst_40 : f32 to vector<32x16xf32>
    %94 = arith.maximumf %92, %93 : vector<32x16xf32>
    %95 = arith.truncf %94 : vector<32x16xf32> to vector<32x16xbf16>
    %c3_41 = arith.constant 3 : index
    %c0_42 = arith.constant 0 : index
    %c0_43 = arith.constant 0 : index
    %96 = vector.load %arg4[%c3_41, %c0_42, %c0_43] : memref<4x32x16xbf16, #tpu.memory_space<vmem>>, vector<1x32x16xbf16>
    %97 = vector.shape_cast %96 : vector<1x32x16xbf16> to vector<32x16xbf16>
    %98 = vector.shape_cast %95 : vector<32x16xbf16> to vector<1x32x16xbf16>
    tpu.vector_store %arg4[%c3_41, %c0_42, %c0_43], %98 {strides = array<i32>} : memref<4x32x16xbf16, #tpu.memory_space<vmem>>, vector<1x32x16xbf16>,
    return
  }
}

module attributes {stable_mosaic.version = 11 : i64} {
  func.func @kernel(%arg0: memref<128x144xbf16, #tpu.memory_space<vmem>>, %arg1: memref<4x144x1xbf16, #tpu.memory_space<vmem>>, %arg2: memref<4x128x1xf32, #tpu.memory_space<vmem>>) attributes {dimension_semantics = [], scalar_prefetch = 0 : i64, scratch_operands = 0 : i64, tpu.core_type = #tpu.core_type<tc>} {
    %c0 = arith.constant 0 : index
    %c0_0 = arith.constant 0 : index
    %0 = vector.load %arg0[%c0, %c0_0] : memref<128x144xbf16, #tpu.memory_space<vmem>>, vector<128x144xbf16>
    %c0_1 = arith.constant 0 : index
    %c0_2 = arith.constant 0 : index
    %c0_3 = arith.constant 0 : index
    %1 = vector.load %arg1[%c0_1, %c0_2, %c0_3] : memref<4x144x1xbf16, #tpu.memory_space<vmem>>, vector<1x144x1xbf16>
    %2 = vector.shape_cast %1 : vector<1x144x1xbf16> to vector<144x1xbf16>
    %cst = arith.constant dense<0.000000e+00> : vector<128x1xf32>
    %3 = tpu.matmul %0, %2, %cst {dimension_numbers = #tpu.dot_dimension_numbers<[1], [0], [0], [1], [0, 0, 1, 1], [], []>} : vector<128x144xbf16>, vector<144x1xbf16>, vector<128x1xf32> -> vector<128x1xf32>
    %c1 = arith.constant 1 : index
    %c0_4 = arith.constant 0 : index
    %c0_5 = arith.constant 0 : index
    %4 = vector.load %arg1[%c1, %c0_4, %c0_5] : memref<4x144x1xbf16, #tpu.memory_space<vmem>>, vector<1x144x1xbf16>
    %5 = vector.shape_cast %4 : vector<1x144x1xbf16> to vector<144x1xbf16>
    %cst_6 = arith.constant dense<0.000000e+00> : vector<128x1xf32>
    %6 = tpu.matmul %0, %5, %cst_6 {dimension_numbers = #tpu.dot_dimension_numbers<[1], [0], [0], [1], [0, 0, 1, 1], [], []>} : vector<128x144xbf16>, vector<144x1xbf16>, vector<128x1xf32> -> vector<128x1xf32>
    %c2 = arith.constant 2 : index
    %c0_7 = arith.constant 0 : index
    %c0_8 = arith.constant 0 : index
    %7 = vector.load %arg1[%c2, %c0_7, %c0_8] : memref<4x144x1xbf16, #tpu.memory_space<vmem>>, vector<1x144x1xbf16>
    %8 = vector.shape_cast %7 : vector<1x144x1xbf16> to vector<144x1xbf16>
    %cst_9 = arith.constant dense<0.000000e+00> : vector<128x1xf32>
    %9 = tpu.matmul %0, %8, %cst_9 {dimension_numbers = #tpu.dot_dimension_numbers<[1], [0], [0], [1], [0, 0, 1, 1], [], []>} : vector<128x144xbf16>, vector<144x1xbf16>, vector<128x1xf32> -> vector<128x1xf32>
    %c3 = arith.constant 3 : index
    %c0_10 = arith.constant 0 : index
    %c0_11 = arith.constant 0 : index
    %10 = vector.load %arg1[%c3, %c0_10, %c0_11] : memref<4x144x1xbf16, #tpu.memory_space<vmem>>, vector<1x144x1xbf16>
    %11 = vector.shape_cast %10 : vector<1x144x1xbf16> to vector<144x1xbf16>
    %cst_12 = arith.constant dense<0.000000e+00> : vector<128x1xf32>
    %12 = tpu.matmul %0, %11, %cst_12 {dimension_numbers = #tpu.dot_dimension_numbers<[1], [0], [0], [1], [0, 0, 1, 1], [], []>} : vector<128x144xbf16>, vector<144x1xbf16>, vector<128x1xf32> -> vector<128x1xf32>
    %c0_13 = arith.constant 0 : index
    %c0_14 = arith.constant 0 : index
    %c0_15 = arith.constant 0 : index
    %13 = vector.load %arg2[%c0_13, %c0_14, %c0_15] : memref<4x128x1xf32, #tpu.memory_space<vmem>>, vector<1x128x1xf32>
    %14 = vector.shape_cast %13 : vector<1x128x1xf32> to vector<128x1xf32>
    %15 = vector.shape_cast %3 : vector<128x1xf32> to vector<1x128x1xf32>
    tpu.vector_store %arg2[%c0_13, %c0_14, %c0_15], %15 {strides = array<i32>} : memref<4x128x1xf32, #tpu.memory_space<vmem>>, vector<1x128x1xf32>,
    %c1_16 = arith.constant 1 : index
    %c0_17 = arith.constant 0 : index
    %c0_18 = arith.constant 0 : index
    %16 = vector.load %arg2[%c1_16, %c0_17, %c0_18] : memref<4x128x1xf32, #tpu.memory_space<vmem>>, vector<1x128x1xf32>
    %17 = vector.shape_cast %16 : vector<1x128x1xf32> to vector<128x1xf32>
    %18 = vector.shape_cast %6 : vector<128x1xf32> to vector<1x128x1xf32>
    tpu.vector_store %arg2[%c1_16, %c0_17, %c0_18], %18 {strides = array<i32>} : memref<4x128x1xf32, #tpu.memory_space<vmem>>, vector<1x128x1xf32>,
    %c2_19 = arith.constant 2 : index
    %c0_20 = arith.constant 0 : index
    %c0_21 = arith.constant 0 : index
    %19 = vector.load %arg2[%c2_19, %c0_20, %c0_21] : memref<4x128x1xf32, #tpu.memory_space<vmem>>, vector<1x128x1xf32>
    %20 = vector.shape_cast %19 : vector<1x128x1xf32> to vector<128x1xf32>
    %21 = vector.shape_cast %9 : vector<128x1xf32> to vector<1x128x1xf32>
    tpu.vector_store %arg2[%c2_19, %c0_20, %c0_21], %21 {strides = array<i32>} : memref<4x128x1xf32, #tpu.memory_space<vmem>>, vector<1x128x1xf32>,
    %c3_22 = arith.constant 3 : index
    %c0_23 = arith.constant 0 : index
    %c0_24 = arith.constant 0 : index
    %22 = vector.load %arg2[%c3_22, %c0_23, %c0_24] : memref<4x128x1xf32, #tpu.memory_space<vmem>>, vector<1x128x1xf32>
    %23 = vector.shape_cast %22 : vector<1x128x1xf32> to vector<128x1xf32>
    %24 = vector.shape_cast %12 : vector<128x1xf32> to vector<1x128x1xf32>
    tpu.vector_store %arg2[%c3_22, %c0_23, %c0_24], %24 {strides = array<i32>} : memref<4x128x1xf32, #tpu.memory_space<vmem>>, vector<1x128x1xf32>,
    return
  }
}

</mosaic_0001>

<bundles_post_ra>
// kernel: memae_forward.9
= control target key start
LH: loop header
LB: loop body
LE: loop exit
PB: predicated region body
PF: predicated region fallthrough
CT: control target
= control target key end

     0   :  { %vm50_vm0 = vcmask 130048   ;;  %vm318_vm4 = vcmask 125952   ;;  %s642_s1 = inlined_call_operand.vmem [shape: bf16[1,16,16], index: 1, kind: input, shape index: {}]   ;;  %s643_s0 = inlined_call_operand.vmem [shape: f32[128,16], index: 0, kind: input, shape index: {}]   ;;  %s644_s2 = inlined_call_operand.vmem [shape: f32[1,16], index: 2, kind: input, shape index: {}]   ;;  %s645_s3 = inlined_call_operand.vmem [shape: f32[1,16], index: 3, kind: input, shape index: {}]   ;;  %s646_s4 = inlined_call_operand.vmem [shape: bf16[1,128,16], index: 4, kind: output, shape index: {}]  }
   0x1   :  { %v351_v0 = vld [vmem:[%s642_s1] sm:$0xff]  ;;  %v19_v2 = vld [vmem:[%s643_s0 + $0x8] sm:$0xff]  ;;  %v20_v13 = vld [vmem:[%s643_s0 + $0x10] sm:$0xff] }
   0x2   :  { %v18_v1 = vld [vmem:[%s643_s0] sm:$0xff]  ;;  %v23_v5 = vld [vmem:[%s643_s0 + $0x28] sm:$0xff]  ;;  %82 = vmatpush.bf16.msra.mxu0 %v351_v0  ;;  %352 = vmatpush.bf16.msra.mxu1 %v351_v0  ;;  %v21_v14 = vld [vmem:[%s643_s0 + $0x18] sm:$0xff] }
   0x3   :  { %v34_v3 = vpack.c.bf16 %v19_v2, %v18_v1  ;;  %v22_v4 = vld [vmem:[%s643_s0 + $0x20] sm:$0xff]  ;;  %v27_v8 = vld [vmem:[%s643_s0 + $0x48] sm:$0xff]  ;;  %353 = vmatpush.bf16.msra.mxu2 %v351_v0  ;;  %354 = vmatpush.bf16.msra.mxu3 %v351_v0  ;;  %v24_v15 = vld [vmem:[%s643_s0 + $0x30] sm:$0xff]  ;;  %v35_v21 = vpack.c.bf16 %v21_v14, %v20_v13 }
   0x4   :  { %v26_v6 = vld [vmem:[%s643_s0 + $0x40] sm:$0xff]  ;;  %v36_v7 = vpack.c.bf16 %v23_v5, %v22_v4  ;;  %v31_v10 = vld [vmem:[%s643_s0 + $0x68] sm:$0xff]  ;;  %v25_v16 = vld [vmem:[%s643_s0 + $0x38] sm:$0xff] }
   0x5   :  { %v30_v9 = vld [vmem:[%s643_s0 + $0x60] sm:$0xff]  ;;  %v38_v11 = vpack.c.bf16 %v27_v8, %v26_v6  ;;  %343 = vmatmul.msk.bf16.vlgmr.msra.gmra.mxu0 %vm50_vm0, %v34_v3  ;;  %v28_v17 = vld [vmem:[%s643_s0 + $0x50] sm:$0xff]  ;;  %v29_v18 = vld [vmem:[%s643_s0 + $0x58] sm:$0xff]  ;;  %v37_v22 = vpack.c.bf16 %v25_v16, %v24_v15 }
   0x6   :  { %v40_v12 = vpack.c.bf16 %v31_v10, %v30_v9  ;;  %345 = vmatmul.msk.bf16.vlgmr.msra.gmra.mxu1 %vm50_vm0, %v36_v7  ;;  %v32_v19 = vld [vmem:[%s643_s0 + $0x70] sm:$0xff]  ;;  %v33_v20 = vld [vmem:[%s643_s0 + $0x78] sm:$0xff]  ;;  %v39_v23 = vpack.c.bf16 %v29_v18, %v28_v17 }
   0x7   :  { %347 = vmatmul.msk.bf16.vlgmr.msra.gmra.mxu2 %vm50_vm0, %v38_v11  ;;  %v41_v24 = vpack.c.bf16 %v33_v20, %v32_v19 }
   0x8   :  { %349 = vmatmul.msk.bf16.vlgmr.msra.gmra.mxu3 %vm50_vm0, %v40_v12 }
  0x15   :  { %344 = vmatmul.msk.bf16.gmra.mxu0 %vm50_vm0, %v35_v21 }
  0x16   :  { %346 = vmatmul.msk.bf16.gmra.mxu1 %vm50_vm0, %v37_v22 }
  0x17   :  { %348 = vmatmul.msk.bf16.gmra.mxu2 %vm50_vm0, %v39_v23 }
  0x18   :  { %350 = vmatmul.msk.bf16.gmra.mxu3 %vm50_vm0, %v41_v24 }
  0x82   :  { %v441_v25 = vpop.f32.mrf.mxu0 }
  0x83   :  { %v443_v26 = vpop.f32.mrf.mxu1  ;;  %v124_v35 = vsel %vm50_vm0, %v441_v25, 0.0 }
  0x84   :  { %v131_v43 = vsel %vm50_vm0, %v443_v26, 0.0 }
  0x8a   :  { %v445_v27 = vpop.f32.mrf.mxu0  ;;  %v447_v28 = vpop.f32.mrf.mxu2 }
  0x8b   :  { %v449_v29 = vpop.f32.mrf.mxu1  ;;  %v453_v31 = vpop.f32.mrf.mxu3  ;;  %v125_v33 = vsel %vm50_vm0, %v445_v27, 0.0  ;;  %v139_v53 = vsel %vm50_vm0, %v447_v28, 0.0 }
  0x8c   :  { %v126_v37 = vadd.f32 %v125_v33, %v124_v35  ;;  %v133_v46 = vsel %vm50_vm0, %v449_v29, 0.0  ;;  %v147_v63 = vsel %vm50_vm0, %v453_v31, 0.0 }
  0x92   :  { %v451_v30 = vpop.f32.mrf.mxu0  ;;  %v455_v32 = vpop.f32.mrf.mxu2 }
  0x93   :  { %v459_v34 = vpop.f32.mrf.mxu1  ;;  %v127_v36 = vsel %vm50_vm0, %v451_v30, 0.0  ;;  %v469_v42 = vpop.f32.mrf.mxu3  ;;  %v141_v56 = vsel %vm50_vm0, %v455_v32, 0.0 }
  0x94   :  { %v128_v38 = vadd.f32 %v127_v36, %v126_v37  ;;  %v135_v49 = vsel %vm50_vm0, %v459_v34, 0.0  ;;  %v149_v1 = vsel %vm50_vm0, %v469_v42, 0.0 }
  0x9a   :  { %v465_v39 = vpop.f32.mrf.mxu0  ;;  %v473_v45 = vpop.f32.mrf.mxu2 }
  0x9b   :  { %v129_v40 = vsel %vm50_vm0, %v465_v39, 0.0  ;;  %v477_v47 = vpop.f32.mrf.mxu1  ;;  %v485_v55 = vpop.f32.mrf.mxu3  ;;  %v143_v59 = vsel %vm50_vm0, %v473_v45, 0.0 }
  0x9c   :  { %v130_v41 = vadd.f32 %v129_v40, %v128_v38  ;;  %v137_v51 = vsel %vm50_vm0, %v477_v47, 0.0  ;;  %v151_v4 = vsel %vm50_vm0, %v485_v55, 0.0 }
  0x9e   :  { %v132_v44 = vadd.f32 %v131_v43, %v130_v41 }
  0xa0   :  { %v134_v48 = vadd.f32 %v133_v46, %v132_v44 }
  0xa2   :  { %v136_v50 = vadd.f32 %v135_v49, %v134_v48  ;;  %v489_v58 = vpop.f32.mrf.mxu2 }
  0xa3   :  { %v145_v61 = vsel %vm50_vm0, %v489_v58, 0.0  ;;  %v499_v3 = vpop.f32.mrf.mxu3 }
  0xa4   :  { %v138_v52 = vadd.f32 %v137_v51, %v136_v50  ;;  %v153_v6 = vsel %vm50_vm0, %v499_v3, 0.0 }
  0xa6   :  { %v140_v54 = vadd.f32 %v139_v53, %v138_v52 }
  0xa8   :  { %v142_v57 = vadd.f32 %v141_v56, %v140_v54 }
  0xaa   :  { %v144_v60 = vadd.f32 %v143_v59, %v142_v57 }
  0xac   :  { %v146_v62 = vadd.f32 %v145_v61, %v144_v60 }
  0xae   :  { %v148_v0 = vadd.f32 %v147_v63, %v146_v62 }
  0xb0   :  { %v150_v2 = vadd.f32 %v149_v1, %v148_v0 }
  0xb2   :  { %v152_v5 = vadd.f32 %v151_v4, %v150_v2 }
  0xb4   :  { %v154_v7 = vadd.f32 %v153_v6, %v152_v5 }
  0xb6   :  { %v155_v8 = vrot.slane %v154_v7, 4 }
  0xb8   :  { %v156_v9 = vadd.f32 %v155_v8, %v154_v7 }
  0xba   :  { %v157_v10 = vrot.slane %v156_v9, 2 }
  0xbc   :  { %v158_v11 = vadd.f32 %v157_v10, %v156_v9 }
  0xbe   :  { %v159_v12 = vrot.slane %v158_v11, 1 }
  0xc0   :  { %v160_v13 = vadd.f32 %v159_v12, %v158_v11 }
  0xc2   :  { %v505_v14 = vmul.f32 0.0078125, %v160_v13 }
  0xc4   :  { %v162_v15 = vsub.f32 %v441_v25, %v505_v14  ;;  %v163_v16 = vsub.f32 %v445_v27, %v505_v14  ;;  %v164_v17 = vsub.f32 %v451_v30, %v505_v14  ;;  %v165_v18 = vsub.f32 %v465_v39, %v505_v14 }
  0xc5   :  { %v166_v21 = vsub.f32 %v443_v26, %v505_v14  ;;  %v167_v23 = vsub.f32 %v449_v29, %v505_v14  ;;  %v168_v37 = vsub.f32 %v459_v34, %v505_v14  ;;  %v169_v43 = vsub.f32 %v477_v47, %v505_v14 }
  0xc6   :  { %v178_v19 = vmul.f32 %v162_v15, %v162_v15  ;;  %v179_v20 = vmul.f32 %v163_v16, %v163_v16  ;;  %v180_v22 = vmul.f32 %v164_v17, %v164_v17  ;;  %v181_v24 = vmul.f32 %v165_v18, %v165_v18 }
  0xc7   :  { %v182_v38 = vmul.f32 %v166_v21, %v166_v21  ;;  %v183_v44 = vmul.f32 %v167_v23, %v167_v23  ;;  %v170_v49 = vsub.f32 %v447_v28, %v505_v14  ;;  %v184_v50 = vmul.f32 %v168_v37, %v168_v37 }
  0xc8   :  { %v194_v33 = vsel %vm50_vm0, %v178_v19, 0.0  ;;  %v195_v35 = vsel %vm50_vm0, %v179_v20, 0.0  ;;  %v197_v40 = vsel %vm50_vm0, %v180_v22, 0.0  ;;  %v199_v46 = vsel %vm50_vm0, %v181_v24, 0.0 }
  0xc9   :  { %v196_v36 = vadd.f32 %v195_v35, %v194_v33  ;;  %v201_v51 = vsel %vm50_vm0, %v182_v38, 0.0  ;;  %v171_v53 = vsub.f32 %v455_v32, %v505_v14  ;;  %v185_v54 = vmul.f32 %v169_v43, %v169_v43 }
  0xca   :  { %v203_v56 = vsel %vm50_vm0, %v183_v44, 0.0  ;;  %v172_v59 = vsub.f32 %v473_v45, %v505_v14  ;;  %v186_v60 = vmul.f32 %v170_v49, %v170_v49  ;;  %v205_v61 = vsel %vm50_vm0, %v184_v50, 0.0 }
  0xcb   :  { %v198_v41 = vadd.f32 %v197_v40, %v196_v36  ;;  %v173_v63 = vsub.f32 %v489_v58, %v505_v14  ;;  %v187_v0 = vmul.f32 %v171_v53, %v171_v53  ;;  %v207_v1 = vsel %vm50_vm0, %v185_v54, 0.0 }
  0xcc   :  { %v174_v4 = vsub.f32 %v453_v31, %v505_v14  ;;  %v188_v5 = vmul.f32 %v172_v59, %v172_v59  ;;  %v209_v6 = vsel %vm50_vm0, %v186_v60, 0.0  ;;  %v175_v8 = vsub.f32 %v469_v42, %v505_v14  ;;  %v231_v59 = vld [vmem:[%s644_s2] sm:$0x1] }
  0xcd   :  { %v200_v48 = vadd.f32 %v199_v46, %v198_v41  ;;  %v189_v9 = vmul.f32 %v173_v63, %v173_v63  ;;  %v211_v10 = vsel %vm50_vm0, %v187_v0, 0.0  ;;  %v176_v12 = vsub.f32 %v485_v55, %v505_v14  ;;  %v245_v63 = vld [vmem:[%s645_s3] sm:$0x1] }
  0xce   :  { %v190_v13 = vmul.f32 %v174_v4, %v174_v4  ;;  %v213_v15 = vsel %vm50_vm0, %v188_v5, 0.0  ;;  %v177_v17 = vsub.f32 %v499_v3, %v505_v14  ;;  %v191_v18 = vmul.f32 %v175_v8, %v175_v8 }
  0xcf   :  { %v202_v52 = vadd.f32 %v201_v51, %v200_v48  ;;  %v215_v19 = vsel %vm50_vm0, %v189_v9, 0.0  ;;  %v192_v21 = vmul.f32 %v176_v12, %v176_v12 }
  0xd0   :  { %v217_v22 = vsel %vm50_vm0, %v190_v13, 0.0  ;;  %v193_v24 = vmul.f32 %v177_v17, %v177_v17  ;;  %v219_v33 = vsel %vm50_vm0, %v191_v18, 0.0 }
  0xd1   :  { %v204_v57 = vadd.f32 %v203_v56, %v202_v52  ;;  %v221_v36 = vsel %vm50_vm0, %v192_v21, 0.0 }
  0xd2   :  { %v223_v38 = vsel %vm50_vm0, %v193_v24, 0.0 }
  0xd3   :  { %v206_v62 = vadd.f32 %v205_v61, %v204_v57 }
  0xd5   :  { %v208_v2 = vadd.f32 %v207_v1, %v206_v62 }
  0xd7   :  { %v210_v7 = vadd.f32 %v209_v6, %v208_v2 }
  0xd9   :  { %v212_v11 = vadd.f32 %v211_v10, %v210_v7 }
  0xdb   :  { %v214_v16 = vadd.f32 %v213_v15, %v212_v11 }
  0xdd   :  { %v216_v20 = vadd.f32 %v215_v19, %v214_v16 }
  0xdf   :  { %v218_v23 = vadd.f32 %v217_v22, %v216_v20 }
  0xe1   :  { %v220_v35 = vadd.f32 %v219_v33, %v218_v23 }
  0xe3   :  { %v222_v37 = vadd.f32 %v221_v36, %v220_v35 }
  0xe5   :  { %v224_v40 = vadd.f32 %v223_v38, %v222_v37 }
  0xe7   :  { %v225_v41 = vrot.slane %v224_v40, 4 }
  0xe9   :  { %v226_v43 = vadd.f32 %v225_v41, %v224_v40 }
  0xeb   :  { %v227_v44 = vrot.slane %v226_v43, 2 }
  0xed   :  { %v228_v46 = vadd.f32 %v227_v44, %v226_v43 }
  0xef   :  { %v229_v48 = vrot.slane %v228_v46, 1 }
  0xf1   :  { %v230_v49 = vadd.f32 %v229_v48, %v228_v46 }
  0xf3   :  { %v232_v50 = vmul.f32 0.0078125, %v230_v49 }
  0xf5   :  { %v233_v51 = vadd.f32 1e-05, %v232_v50 }
  0xf7   :  { %355 = vrsqrt.f32 %v233_v51  ;;  %vm240_vm2 = vweird.f32 %v233_v51 }
  0xfd   :  { %v356_v52 = vpop.eup %355 }
  0xfe   :  { %v235_v53 = vmul.f32 %v356_v52, %v233_v51  ;;  %vm241_vm1 = vweird.f32 %v356_v52 }
  0xff   :  { %vm242_vm3 = vmor %vm240_vm2, %vm241_vm1 }
 0x100   :  { %v236_v54 = vmul.f32 %v356_v52, %v235_v53 }
 0x102   :  { %v237_v56 = vmul.f32 0.5, %v236_v54 }
 0x104   :  { %v238_v57 = vsub.f32 1.5, %v237_v56 }
 0x106   :  { %v239_v60 = vmul.f32 %v356_v52, %v238_v57 }
 0x108   :  { %v243_v61 = vsel %vm242_vm3, %v356_v52, %v239_v60 }
 0x109   :  { %v244_v62 = vmul.f32 %v243_v61, %v231_v59 }
 0x10b   :  { %v246_v0 = vmul.f32 %v244_v62, %v505_v14  ;;  %v249_v2 = vperm.slane %v244_v62, 0 }
 0x10d   :  { %v247_v1 = vsub.f32 %v245_v63, %v246_v0  ;;  %v251_v4 = vmul.f32 %v249_v2, %v441_v25  ;;  %v252_v5 = vmul.f32 %v249_v2, %v445_v27  ;;  %v253_v6 = vmul.f32 %v249_v2, %v451_v30 }
 0x10e   :  { %v254_v8 = vmul.f32 %v249_v2, %v465_v39  ;;  %v255_v9 = vmul.f32 %v249_v2, %v443_v26  ;;  %v256_v13 = vmul.f32 %v249_v2, %v449_v29  ;;  %v257_v14 = vmul.f32 %v249_v2, %v459_v34 }
 0x10f   :  { %v268_v7 = vperm.slane %v247_v1, 0  ;;  %v258_v25 = vmul.f32 %v249_v2, %v477_v47  ;;  %v259_v27 = vmul.f32 %v249_v2, %v447_v28  ;;  %v260_v26 = vmul.f32 %v249_v2, %v455_v32 }
 0x110   :  { %v261_v20 = vmul.f32 %v249_v2, %v473_v45  ;;  %v262_v29 = vmul.f32 %v249_v2, %v489_v58  ;;  %v263_v47 = vmul.f32 %v249_v2, %v453_v31  ;;  %v264_v32 = vmul.f32 %v249_v2, %v469_v42 }
 0x111   :  { %v270_v10 = vadd.f32 %v268_v7, %v251_v4  ;;  %v271_v11 = vadd.f32 %v268_v7, %v252_v5  ;;  %v272_v12 = vadd.f32 %v268_v7, %v253_v6  ;;  %v273_v15 = vadd.f32 %v268_v7, %v254_v8 }
 0x112   :  { %v274_v16 = vadd.f32 %v268_v7, %v255_v9  ;;  %v275_v17 = vadd.f32 %v268_v7, %v256_v13  ;;  %v276_v30 = vadd.f32 %v268_v7, %v257_v14  ;;  %v277_v21 = vadd.f32 %v268_v7, %v258_v25 }
 0x113   :  { %v286_v18 = vmax.f32 %v270_v10, 0.0  ;;  %v287_v19 = vmax.f32 %v271_v11, 0.0  ;;  %v288_v39 = vmax.f32 %v272_v12, 0.0  ;;  %v289_v22 = vmax.f32 %v273_v15, 0.0 }
 0x114   :  { %v278_v23 = vadd.f32 %v268_v7, %v259_v27  ;;  %v290_v34 = vmax.f32 %v274_v16, 0.0  ;;  %v279_v24 = vadd.f32 %v268_v7, %v260_v26  ;;  %v280_v28 = vadd.f32 %v268_v7, %v261_v20 }
 0x115   :  { %v291_v33 = vmax.f32 %v275_v17, 0.0  ;;  %v292_v35 = vmax.f32 %v276_v30, 0.0  ;;  %v302_v36 = vpack.c.bf16 %v286_v18, %v286_v18  ;;  %v303_v37 = vpack.c.bf16 %v287_v19, %v287_v19 }
 0x116   :  { %v304_v38 = vpack.c.bf16 %v288_v39, %v288_v39  ;;  %v281_v40 = vadd.f32 %v268_v7, %v262_v29  ;;  %v293_v45 = vmax.f32 %v277_v21, 0.0  ;;  %v305_v41 = vpack.c.bf16 %v289_v22, %v289_v22 }
 0x117   :  { %v265_v43 = vmul.f32 %v249_v2, %v485_v55  ;;  %v282_v58 = vadd.f32 %v268_v7, %v263_v47  ;;  %v294_v44 = vmax.f32 %v278_v23, 0.0  ;;  %v306_v46 = vpack.c.bf16 %v290_v34, %v290_v34  ;;  %319 = vst.msk [vmem:[%s646_s4] sm:$0xf] %vm318_vm4, %v302_v36 }
 0x118   :  { %v266_v31 = vmul.f32 %v249_v2, %v499_v3  ;;  %v283_v48 = vadd.f32 %v268_v7, %v264_v32  ;;  %v295_v49 = vmax.f32 %v279_v24, 0.0  ;;  %v307_v50 = vpack.c.bf16 %v291_v33, %v291_v33  ;;  %320 = vst.msk [vmem:[%s646_s4 + $0x4] sm:$0xf] %vm318_vm4, %v303_v37 }
 0x119   :  { %v284_v42 = vadd.f32 %v268_v7, %v265_v43  ;;  %v296_v55 = vmax.f32 %v280_v28, 0.0  ;;  %v308_v51 = vpack.c.bf16 %v292_v35, %v292_v35  ;;  %321 = vst.msk [vmem:[%s646_s4 + $0x8] sm:$0xf] %vm318_vm4, %v304_v38  ;;  %v297_v53 = vmax.f32 %v281_v40, 0.0 }
 0x11a   :  { %v285_v52 = vadd.f32 %v268_v7, %v266_v31  ;;  %v309_v54 = vpack.c.bf16 %v293_v45, %v293_v45  ;;  %322 = vst.msk [vmem:[%s646_s4 + $0xc] sm:$0xf] %vm318_vm4, %v305_v41  ;;  %v298_v3 = vmax.f32 %v282_v58, 0.0  ;;  %v310_v56 = vpack.c.bf16 %v294_v44, %v294_v44 }
 0x11b   :  { %323 = vst.msk [vmem:[%s646_s4 + $0x10] sm:$0xf] %vm318_vm4, %v306_v46  ;;  %v299_v57 = vmax.f32 %v283_v48, 0.0  ;;  %v311_v59 = vpack.c.bf16 %v295_v49, %v295_v49  ;;  %v300_v60 = vmax.f32 %v284_v42, 0.0  ;;  %v312_v61 = vpack.c.bf16 %v296_v55, %v296_v55 }
 0x11c   :  { %324 = vst.msk [vmem:[%s646_s4 + $0x14] sm:$0xf] %vm318_vm4, %v307_v50  ;;  %v301_v62 = vmax.f32 %v285_v52, 0.0  ;;  %v313_v63 = vpack.c.bf16 %v297_v53, %v297_v53  ;;  %v314_v0 = vpack.c.bf16 %v298_v3, %v298_v3 }
 0x11d   :  { %325 = vst.msk [vmem:[%s646_s4 + $0x18] sm:$0xf] %vm318_vm4, %v308_v51  ;;  %v315_v1 = vpack.c.bf16 %v299_v57, %v299_v57  ;;  %v316_v2 = vpack.c.bf16 %v300_v60, %v300_v60 }
 0x11e   :  { %326 = vst.msk [vmem:[%s646_s4 + $0x1c] sm:$0xf] %vm318_vm4, %v309_v54  ;;  %v317_v4 = vpack.c.bf16 %v301_v62, %v301_v62 }
 0x11f   :  { %327 = vst.msk [vmem:[%s646_s4 + $0x20] sm:$0xf] %vm318_vm4, %v310_v56 }
 0x120   :  { %328 = vst.msk [vmem:[%s646_s4 + $0x24] sm:$0xf] %vm318_vm4, %v311_v59 }
 0x121   :  { %329 = vst.msk [vmem:[%s646_s4 + $0x28] sm:$0xf] %vm318_vm4, %v312_v61 }
 0x122   :  { %330 = vst.msk [vmem:[%s646_s4 + $0x2c] sm:$0xf] %vm318_vm4, %v313_v63 }
 0x123   :  { %331 = vst.msk [vmem:[%s646_s4 + $0x30] sm:$0xf] %vm318_vm4, %v314_v0 }
 0x124   :  { %332 = vst.msk [vmem:[%s646_s4 + $0x34] sm:$0xf] %vm318_vm4, %v315_v1 }
 0x125   :  { %333 = vst.msk [vmem:[%s646_s4 + $0x38] sm:$0xf] %vm318_vm4, %v316_v2 }
 0x126   :  { %334 = vst.msk [vmem:[%s646_s4 + $0x3c] sm:$0xf] %vm318_vm4, %v317_v4 }

// kernel: memae_forward.10
= control target key start
LH: loop header
LB: loop body
LE: loop exit
PB: predicated region body
PF: predicated region fallthrough
CT: control target
= control target key end

     0   :  { %vm207_vm0 = vcmask 261120   ;;  %vm282_vm4 = vcmask 257024   ;;  %s537_s1 = inlined_call_operand.vmem [shape: bf16[1,256,32], index: 1, kind: input, shape index: {}]   ;;  %s538_s0 = inlined_call_operand.vmem [shape: bf16[32,256], index: 0, kind: input, shape index: {}]   ;;  %s539_s2 = inlined_call_operand.vmem [shape: f32[1,32], index: 2, kind: input, shape index: {}]   ;;  %s540_s3 = inlined_call_operand.vmem [shape: f32[1,32], index: 3, kind: input, shape index: {}]   ;;  %s541_s4 = inlined_call_operand.vmem [shape: bf16[1,32,32], index: 4, kind: output, shape index: {}]  }
   0x1   :  { %v382_v0 = vld [vmem:[%s537_s1 + $0x38] sm:$0xff]  ;;  %v381_v2 = vld [vmem:[%s537_s1 + $0x30] sm:$0xff]  ;;  %v380_v4 = vld [vmem:[%s537_s1 + $0x28] sm:$0xff] }
   0x2   :  { %v390_v1 = vld [vmem:[%s537_s1 + $0x78] sm:$0xff]  ;;  %169 = vmatpush.bf16.msra.mxu0 %v382_v0  ;;  %391 = vmatpush.bf16.msra.mxu2 %v382_v0  ;;  %v389_v3 = vld [vmem:[%s537_s1 + $0x70] sm:$0xff]  ;;  %v388_v5 = vld [vmem:[%s537_s1 + $0x68] sm:$0xff] }
   0x3   :  { %188 = vmatpush.bf16.msra.mxu1 %v390_v1  ;;  %399 = vmatpush.bf16.msra.mxu3 %v390_v1  ;;  %v379_v6 = vld [vmem:[%s537_s1 + $0x20] sm:$0xff]  ;;  %v378_v8 = vld [vmem:[%s537_s1 + $0x18] sm:$0xff]  ;;  %v377_v10 = vld [vmem:[%s537_s1 + $0x10] sm:$0xff] }
   0x4   :  { %v387_v7 = vld [vmem:[%s537_s1 + $0x60] sm:$0xff]  ;;  %v386_v9 = vld [vmem:[%s537_s1 + $0x58] sm:$0xff]  ;;  %v385_v11 = vld [vmem:[%s537_s1 + $0x50] sm:$0xff] }
   0x5   :  { %v376_v12 = vld [vmem:[%s537_s1 + $0x8] sm:$0xff]  ;;  %v375_v14 = vld [vmem:[%s537_s1] sm:$0xff]  ;;  %v301_v18 = vld [vmem:[%s538_s0 + $0x10] sm:$0xf] }
   0x6   :  { %170 = vmatpush.bf16.msra.mxu0 %v381_v2  ;;  %392 = vmatpush.bf16.msra.mxu2 %v381_v2  ;;  %v384_v13 = vld [vmem:[%s537_s1 + $0x48] sm:$0xff]  ;;  %v383_v15 = vld [vmem:[%s537_s1 + $0x40] sm:$0xff]  ;;  %v374_v19 = vld [vmem:[%s538_s0 + $0x14] sm:$0xf0] }
   0x7   :  { %189 = vmatpush.bf16.msra.mxu1 %v389_v3  ;;  %400 = vmatpush.bf16.msra.mxu3 %v389_v3  ;;  %v293_v16 = vld [vmem:[%s538_s0] sm:$0xf]  ;;  %v372_v17 = vld [vmem:[%s538_s0 + $0x4] sm:$0xf0]  ;;  %v371_v20 = vld [vmem:[%s538_s0 + $0x4] sm:$0xf]  ;;  %v302_v25 = vor.u32 %v374_v19, %v301_v18 }
   0x8   :  { %v295_v21 = vld [vmem:[%s538_s0 + $0x8] sm:$0xf0]  ;;  %v373_v22 = vld [vmem:[%s538_s0 + $0x14] sm:$0xf]  ;;  %v303_v23 = vld [vmem:[%s538_s0 + $0x18] sm:$0xf0]  ;;  %v294_v24 = vor.u32 %v372_v17, %v293_v16 }
   0x9   :  { %v298_v26 = vor.u32 %v371_v20, %v295_v21  ;;  %v306_v27 = vor.u32 %v373_v22, %v303_v23  ;;  %v243_v18 = vld [vmem:[%s539_s2] sm:$0x1] }
   0xa   :  { %171 = vmatpush.bf16.msra.mxu0 %v380_v4  ;;  %393 = vmatpush.bf16.msra.mxu2 %v380_v4  ;;  %v257_v22 = vld [vmem:[%s540_s3] sm:$0x1] }
   0xb   :  { %190 = vmatpush.bf16.msra.mxu1 %v388_v5  ;;  %401 = vmatpush.bf16.msra.mxu3 %v388_v5 }
   0xe   :  { %172 = vmatpush.bf16.msra.mxu0 %v379_v6  ;;  %394 = vmatpush.bf16.msra.mxu2 %v379_v6 }
   0xf   :  { %191 = vmatpush.bf16.msra.mxu1 %v387_v7  ;;  %402 = vmatpush.bf16.msra.mxu3 %v387_v7 }
  0x12   :  { %173 = vmatpush.bf16.msra.mxu0 %v378_v8  ;;  %395 = vmatpush.bf16.msra.mxu2 %v378_v8 }
  0x13   :  { %192 = vmatpush.bf16.msra.mxu1 %v386_v9  ;;  %403 = vmatpush.bf16.msra.mxu3 %v386_v9 }
  0x16   :  { %174 = vmatpush.bf16.msra.mxu0 %v377_v10  ;;  %396 = vmatpush.bf16.msra.mxu2 %v377_v10 }
  0x17   :  { %193 = vmatpush.bf16.msra.mxu1 %v385_v11  ;;  %404 = vmatpush.bf16.msra.mxu3 %v385_v11 }
  0x1a   :  { %175 = vmatpush.bf16.msra.mxu0 %v376_v12  ;;  %397 = vmatpush.bf16.msra.mxu2 %v376_v12 }
  0x1b   :  { %194 = vmatpush.bf16.msra.mxu1 %v384_v13  ;;  %405 = vmatpush.bf16.msra.mxu3 %v384_v13 }
  0x1e   :  { %176 = vmatpush.bf16.msra.mxu0 %v375_v14  ;;  %398 = vmatpush.bf16.msra.mxu2 %v375_v14 }
  0x1f   :  { %195 = vmatpush.bf16.msra.mxu1 %v383_v15  ;;  %406 = vmatpush.bf16.msra.mxu3 %v383_v15 }
  0x21   :  { %177 = vmatmul.bf16.vlgmr.msra.gmra.mxu0 %v294_v24  ;;  %182 = vmatmul.bf16.vlgmr.msra.gmra.mxu2 %v302_v25 }
  0x22   :  { %196 = vmatmul.bf16.vlgmr.msra.gmra.mxu1 %v298_v26  ;;  %201 = vmatmul.bf16.vlgmr.msra.gmra.mxu3 %v306_v27 }
  0x9e   :  { %v178_v28 = vpop.f32.mrf.mxu0 }
  0x9f   :  { %v197_v29 = vpop.f32.mrf.mxu1 }
  0xa0   :  { %v506_v32 = vadd.f32 %v197_v29, %v178_v28 }
  0xa2   :  { %v208_v36 = vsel %vm207_vm0, %v506_v32, 0.0 }
  0xa4   :  { %v183_v30 = vpop.f32.mrf.mxu2 }
  0xa5   :  { %v202_v31 = vpop.f32.mrf.mxu3 }
  0xa6   :  { %v180_v33 = vpop.f32.mrf.mxu0  ;;  %v203_v37 = vadd.f32 %v202_v31, %v183_v30 }
  0xa7   :  { %v199_v34 = vpop.f32.mrf.mxu1 }
  0xa8   :  { %v200_v35 = vadd.f32 %v199_v34, %v180_v33  ;;  %v211_v42 = vsel %vm207_vm0, %v203_v37, 0.0 }
  0xaa   :  { %v209_v38 = vsel %vm207_vm0, %v200_v35, 0.0 }
  0xab   :  { %v210_v39 = vadd.f32 %v209_v38, %v208_v36 }
  0xac   :  { %v185_v40 = vpop.f32.mrf.mxu2 }
  0xad   :  { %v204_v41 = vpop.f32.mrf.mxu3  ;;  %v212_v44 = vadd.f32 %v211_v42, %v210_v39 }
  0xae   :  { %v205_v43 = vadd.f32 %v204_v41, %v185_v40 }
  0xb0   :  { %v213_v45 = vsel %vm207_vm0, %v205_v43, 0.0 }
  0xb1   :  { %v214_v46 = vadd.f32 %v213_v45, %v212_v44 }
  0xb3   :  { %v215_v47 = vrot.slane %v214_v46, 4 }
  0xb5   :  { %v216_v48 = vadd.f32 %v215_v47, %v214_v46 }
  0xb7   :  { %v217_v49 = vrot.slane %v216_v48, 2 }
  0xb9   :  { %v218_v50 = vadd.f32 %v217_v49, %v216_v48 }
  0xbb   :  { %v219_v51 = vrot.slane %v218_v50, 1 }
  0xbd   :  { %v220_v52 = vadd.f32 %v219_v51, %v218_v50 }
  0xbf   :  { %v221_v53 = vmul.f32 0.03125, %v220_v52 }
  0xc1   :  { %v222_v54 = vsub.f32 %v506_v32, %v221_v53  ;;  %v223_v55 = vsub.f32 %v200_v35, %v221_v53  ;;  %v224_v56 = vsub.f32 %v203_v37, %v221_v53  ;;  %v225_v57 = vsub.f32 %v205_v43, %v221_v53 }
  0xc3   :  { %v226_v58 = vmul.f32 %v222_v54, %v222_v54  ;;  %v227_v59 = vmul.f32 %v223_v55, %v223_v55  ;;  %v228_v60 = vmul.f32 %v224_v56, %v224_v56  ;;  %v229_v61 = vmul.f32 %v225_v57, %v225_v57 }
  0xc5   :  { %v230_v62 = vsel %vm207_vm0, %v226_v58, 0.0  ;;  %v231_v63 = vsel %vm207_vm0, %v227_v59, 0.0  ;;  %v233_v1 = vsel %vm207_vm0, %v228_v60, 0.0  ;;  %v235_v3 = vsel %vm207_vm0, %v229_v61, 0.0 }
  0xc6   :  { %v232_v0 = vadd.f32 %v231_v63, %v230_v62 }
  0xc8   :  { %v234_v2 = vadd.f32 %v233_v1, %v232_v0 }
  0xca   :  { %v236_v4 = vadd.f32 %v235_v3, %v234_v2 }
  0xcc   :  { %v237_v5 = vrot.slane %v236_v4, 4 }
  0xce   :  { %v238_v6 = vadd.f32 %v237_v5, %v236_v4 }
  0xd0   :  { %v239_v7 = vrot.slane %v238_v6, 2 }
  0xd2   :  { %v240_v8 = vadd.f32 %v239_v7, %v238_v6 }
  0xd4   :  { %v241_v9 = vrot.slane %v240_v8, 1 }
  0xd6   :  { %v242_v10 = vadd.f32 %v241_v9, %v240_v8 }
  0xd8   :  { %v244_v11 = vmul.f32 0.03125, %v242_v10 }
  0xda   :  { %v245_v12 = vadd.f32 1e-05, %v244_v11 }
  0xdc   :  { %407 = vrsqrt.f32 %v245_v12  ;;  %vm252_vm2 = vweird.f32 %v245_v12 }
  0xe2   :  { %v408_v13 = vpop.eup %407 }
  0xe3   :  { %v247_v14 = vmul.f32 %v408_v13, %v245_v12  ;;  %vm253_vm1 = vweird.f32 %v408_v13 }
  0xe4   :  { %vm254_vm3 = vmor %vm252_vm2, %vm253_vm1 }
  0xe5   :  { %v248_v15 = vmul.f32 %v408_v13, %v247_v14 }
  0xe7   :  { %v249_v16 = vmul.f32 0.5, %v248_v15 }
  0xe9   :  { %v250_v17 = vsub.f32 1.5, %v249_v16 }
  0xeb   :  { %v251_v19 = vmul.f32 %v408_v13, %v250_v17 }
  0xed   :  { %v255_v20 = vsel %vm254_vm3, %v408_v13, %v251_v19 }
  0xee   :  { %v256_v21 = vmul.f32 %v255_v20, %v243_v18 }
  0xf0   :  { %v258_v23 = vmul.f32 %v256_v21, %v221_v53  ;;  %v261_v24 = vperm.slane %v256_v21, 0 }
  0xf2   :  { %v259_v25 = vsub.f32 %v257_v22, %v258_v23  ;;  %v263_v26 = vmul.f32 %v261_v24, %v506_v32  ;;  %v264_v27 = vmul.f32 %v261_v24, %v200_v35  ;;  %v265_v28 = vmul.f32 %v261_v24, %v203_v37 }
  0xf3   :  { %v266_v29 = vmul.f32 %v261_v24, %v205_v43 }
  0xf4   :  { %v268_v30 = vperm.slane %v259_v25, 0 }
  0xf6   :  { %v270_v31 = vadd.f32 %v268_v30, %v263_v26  ;;  %v271_v33 = vadd.f32 %v268_v30, %v264_v27  ;;  %v272_v34 = vadd.f32 %v268_v30, %v265_v28  ;;  %v273_v36 = vadd.f32 %v268_v30, %v266_v29 }
  0xf8   :  { %v274_v38 = vmax.f32 %v270_v31, 0.0  ;;  %v275_v39 = vmax.f32 %v271_v33, 0.0  ;;  %v276_v40 = vmax.f32 %v272_v34, 0.0  ;;  %v277_v41 = vmax.f32 %v273_v36, 0.0 }
  0xfa   :  { %v278_v42 = vpack.c.bf16 %v274_v38, %v274_v38  ;;  %v279_v44 = vpack.c.bf16 %v275_v39, %v275_v39  ;;  %v280_v45 = vpack.c.bf16 %v276_v40, %v276_v40  ;;  %v281_v46 = vpack.c.bf16 %v277_v41, %v277_v41 }
  0xfc   :  { %283 = vst.msk [vmem:[%s541_s4] sm:$0xf] %vm282_vm4, %v278_v42 }
  0xfd   :  { %284 = vst.msk [vmem:[%s541_s4 + $0x4] sm:$0xf] %vm282_vm4, %v279_v44 }
  0xfe   :  { %285 = vst.msk [vmem:[%s541_s4 + $0x8] sm:$0xf] %vm282_vm4, %v280_v45 }
  0xff   :  { %286 = vst.msk [vmem:[%s541_s4 + $0xc] sm:$0xf] %vm282_vm4, %v281_v46 }

// kernel: memae_forward.11
= control target key start
LH: loop header
LB: loop body
LE: loop exit
PB: predicated region body
PF: predicated region fallthrough
CT: control target
= control target key end

     0   :  { %vm341_vm0 = vcmask 523264   ;;  %vm386_vm4 = vcmask 519168   ;;  %s690_s1 = inlined_call_operand.vmem [shape: bf16[1,512,64], index: 1, kind: input, shape index: {}]   ;;  %s691_s0 = inlined_call_operand.vmem [shape: bf16[8,512], index: 0, kind: input, shape index: {}]   ;;  %s692_s2 = inlined_call_operand.vmem [shape: f32[1,64], index: 2, kind: input, shape index: {}]   ;;  %s693_s3 = inlined_call_operand.vmem [shape: f32[1,64], index: 3, kind: input, shape index: {}]   ;;  %s694_s4 = inlined_call_operand.vmem [shape: bf16[1,8,64], index: 4, kind: output, shape index: {}]  }
   0x1   :  { %v527_v0 = vld [vmem:[%s690_s1 + $0x38] sm:$0xff]  ;;  %v526_v4 = vld [vmem:[%s690_s1 + $0x30] sm:$0xff]  ;;  %v525_v8 = vld [vmem:[%s690_s1 + $0x28] sm:$0xff] }
   0x2   :  { %v535_v1 = vld [vmem:[%s690_s1 + $0x78] sm:$0xff]  ;;  %289 = vmatpush.bf16.msra.mxu0 %v527_v0  ;;  %v534_v5 = vld [vmem:[%s690_s1 + $0x70] sm:$0xff]  ;;  %v533_v9 = vld [vmem:[%s690_s1 + $0x68] sm:$0xff] }
   0x3   :  { %v543_v2 = vld [vmem:[%s690_s1 + $0xb8] sm:$0xff]  ;;  %302 = vmatpush.bf16.msra.mxu1 %v535_v1  ;;  %v542_v6 = vld [vmem:[%s690_s1 + $0xb0] sm:$0xff]  ;;  %v541_v10 = vld [vmem:[%s690_s1 + $0xa8] sm:$0xff] }
   0x4   :  { %v551_v3 = vld [vmem:[%s690_s1 + $0xf8] sm:$0xff]  ;;  %315 = vmatpush.bf16.msra.mxu2 %v543_v2  ;;  %v550_v7 = vld [vmem:[%s690_s1 + $0xf0] sm:$0xff]  ;;  %v549_v11 = vld [vmem:[%s690_s1 + $0xe8] sm:$0xff] }
   0x5   :  { %328 = vmatpush.bf16.msra.mxu3 %v551_v3  ;;  %v524_v12 = vld [vmem:[%s690_s1 + $0x20] sm:$0xff]  ;;  %v523_v16 = vld [vmem:[%s690_s1 + $0x18] sm:$0xff]  ;;  %v522_v20 = vld [vmem:[%s690_s1 + $0x10] sm:$0xff] }
   0x6   :  { %290 = vmatpush.bf16.msra.mxu0 %v526_v4  ;;  %v532_v13 = vld [vmem:[%s690_s1 + $0x60] sm:$0xff]  ;;  %v531_v17 = vld [vmem:[%s690_s1 + $0x58] sm:$0xff]  ;;  %v530_v21 = vld [vmem:[%s690_s1 + $0x50] sm:$0xff] }
   0x7   :  { %303 = vmatpush.bf16.msra.mxu1 %v534_v5  ;;  %v540_v14 = vld [vmem:[%s690_s1 + $0xa0] sm:$0xff]  ;;  %v539_v18 = vld [vmem:[%s690_s1 + $0x98] sm:$0xff]  ;;  %v538_v22 = vld [vmem:[%s690_s1 + $0x90] sm:$0xff] }
   0x8   :  { %316 = vmatpush.bf16.msra.mxu2 %v542_v6  ;;  %v548_v15 = vld [vmem:[%s690_s1 + $0xe0] sm:$0xff]  ;;  %v547_v19 = vld [vmem:[%s690_s1 + $0xd8] sm:$0xff]  ;;  %v546_v23 = vld [vmem:[%s690_s1 + $0xd0] sm:$0xff] }
   0x9   :  { %329 = vmatpush.bf16.msra.mxu3 %v550_v7  ;;  %v521_v24 = vld [vmem:[%s690_s1 + $0x8] sm:$0xff]  ;;  %v17_v26 = vld [vmem:[%s691_s0] sm:$0xff] }
   0xa   :  { %291 = vmatpush.bf16.msra.mxu0 %v525_v8  ;;  %v529_v25 = vld [vmem:[%s690_s1 + $0x48] sm:$0xff]  ;;  %v85_v30 = vunpack.c.l.b16 %v17_v26  ;;  %v86_v31 = vunpack.c.h.b16 %v17_v26  ;;  %v520_v32 = vld [vmem:[%s690_s1] sm:$0xff] }
   0xb   :  { %304 = vmatpush.bf16.msra.mxu1 %v533_v9  ;;  %v537_v27 = vld [vmem:[%s690_s1 + $0x88] sm:$0xff]  ;;  %v528_v33 = vld [vmem:[%s690_s1 + $0x40] sm:$0xff] }
   0xc   :  { %317 = vmatpush.bf16.msra.mxu2 %v541_v10  ;;  %v545_v28 = vld [vmem:[%s690_s1 + $0xc8] sm:$0xff]  ;;  %v536_v36 = vld [vmem:[%s690_s1 + $0x80] sm:$0xff]  ;;  %v89_v38 = vpack.c.b16 %v85_v30, %v85_v30  ;;  %v90_v39 = vpack.c.b16 %v86_v31, %v86_v31 }
   0xd   :  { %330 = vmatpush.bf16.msra.mxu3 %v549_v11  ;;  %v18_v29 = vld [vmem:[%s691_s0 + $0x8] sm:$0xff]  ;;  %v544_v37 = vld [vmem:[%s690_s1 + $0xc0] sm:$0xff] }
   0xe   :  { %292 = vmatpush.bf16.msra.mxu0 %v524_v12  ;;  %v87_v34 = vunpack.c.l.b16 %v18_v29  ;;  %v88_v35 = vunpack.c.h.b16 %v18_v29 }
   0xf   :  { %305 = vmatpush.bf16.msra.mxu1 %v532_v13  ;;  %v359_v13 = vld [vmem:[%s692_s2] sm:$0x1] }
  0x10   :  { %318 = vmatpush.bf16.msra.mxu2 %v540_v14  ;;  %v91_v40 = vpack.c.b16 %v87_v34, %v87_v34  ;;  %v92_v41 = vpack.c.b16 %v88_v35, %v88_v35 }
  0x11   :  { %331 = vmatpush.bf16.msra.mxu3 %v548_v15 }
  0x12   :  { %293 = vmatpush.bf16.msra.mxu0 %v523_v16 }
  0x13   :  { %306 = vmatpush.bf16.msra.mxu1 %v531_v17  ;;  %v373_v17 = vld [vmem:[%s693_s3] sm:$0x1] }
  0x14   :  { %319 = vmatpush.bf16.msra.mxu2 %v539_v18 }
  0x15   :  { %332 = vmatpush.bf16.msra.mxu3 %v547_v19 }
  0x16   :  { %294 = vmatpush.bf16.msra.mxu0 %v522_v20 }
  0x17   :  { %307 = vmatpush.bf16.msra.mxu1 %v530_v21 }
  0x18   :  { %320 = vmatpush.bf16.msra.mxu2 %v538_v22 }
  0x19   :  { %333 = vmatpush.bf16.msra.mxu3 %v546_v23 }
  0x1a   :  { %295 = vmatpush.bf16.msra.mxu0 %v521_v24 }
  0x1b   :  { %308 = vmatpush.bf16.msra.mxu1 %v529_v25 }
  0x1c   :  { %321 = vmatpush.bf16.msra.mxu2 %v537_v27 }
  0x1d   :  { %334 = vmatpush.bf16.msra.mxu3 %v545_v28 }
  0x1e   :  { %296 = vmatpush.bf16.msra.mxu0 %v520_v32 }
  0x1f   :  { %309 = vmatpush.bf16.msra.mxu1 %v528_v33 }
  0x20   :  { %322 = vmatpush.bf16.msra.mxu2 %v536_v36 }
  0x21   :  { %335 = vmatpush.bf16.msra.mxu3 %v544_v37  ;;  %297 = vmatmul.bf16.vlgmr.msra.gmra.mxu0 %v89_v38 }
  0x22   :  { %310 = vmatmul.bf16.vlgmr.msra.gmra.mxu1 %v90_v39 }
  0x23   :  { %323 = vmatmul.bf16.vlgmr.msra.gmra.mxu2 %v91_v40 }
  0x24   :  { %336 = vmatmul.bf16.vlgmr.msra.gmra.mxu3 %v92_v41 }
  0x9e   :  { %v298_v42 = vpop.f32.mrf.mxu0 }
  0x9f   :  { %v311_v43 = vpop.f32.mrf.mxu1 }
  0xa0   :  { %v312_v44 = vadd.f32 %v311_v43, %v298_v42 }
  0xa6   :  { %v324_v45 = vpop.f32.mrf.mxu2  ;;  %v300_v48 = vpop.f32.mrf.mxu0 }
  0xa7   :  { %v337_v46 = vpop.f32.mrf.mxu3  ;;  %v325_v47 = vadd.f32 %v324_v45, %v312_v44  ;;  %v313_v49 = vpop.f32.mrf.mxu1 }
  0xa9   :  { %v338_v50 = vadd.f32 %v337_v46, %v325_v47 }
  0xab   :  { %v342_v51 = vsel %vm341_vm0, %v338_v50, 0.0 }
  0xac   :  { %v343_v52 = vrot.slane %v342_v51, 4 }
  0xae   :  { %v344_v53 = vadd.f32 %v343_v52, %v342_v51  ;;  %v326_v54 = vpop.f32.mrf.mxu2 }
  0xaf   :  { %v339_v55 = vpop.f32.mrf.mxu3 }
  0xb0   :  { %v345_v56 = vrot.slane %v344_v53, 2 }
  0xb2   :  { %v346_v57 = vadd.f32 %v345_v56, %v344_v53 }
  0xb4   :  { %v347_v58 = vrot.slane %v346_v57, 1 }
  0xb6   :  { %v348_v59 = vadd.f32 %v347_v58, %v346_v57 }
  0xb8   :  { %v349_v60 = vmul.f32 0.125, %v348_v59 }
  0xba   :  { %v350_v61 = vsub.f32 %v338_v50, %v349_v60 }
  0xbc   :  { %v351_v62 = vmul.f32 %v350_v61, %v350_v61 }
  0xbe   :  { %v352_v63 = vsel %vm341_vm0, %v351_v62, 0.0 }
  0xbf   :  { %v353_v0 = vrot.slane %v352_v63, 4 }
  0xc1   :  { %v354_v1 = vadd.f32 %v353_v0, %v352_v63 }
  0xc3   :  { %v355_v2 = vrot.slane %v354_v1, 2 }
  0xc5   :  { %v356_v3 = vadd.f32 %v355_v2, %v354_v1 }
  0xc7   :  { %v357_v4 = vrot.slane %v356_v3, 1 }
  0xc9   :  { %v358_v5 = vadd.f32 %v357_v4, %v356_v3 }
  0xcb   :  { %v360_v6 = vmul.f32 0.125, %v358_v5 }
  0xcd   :  { %v361_v7 = vadd.f32 1e-05, %v360_v6 }
  0xcf   :  { %552 = vrsqrt.f32 %v361_v7  ;;  %vm368_vm2 = vweird.f32 %v361_v7 }
  0xd5   :  { %v553_v8 = vpop.eup %552 }
  0xd6   :  { %v363_v9 = vmul.f32 %v553_v8, %v361_v7  ;;  %vm369_vm1 = vweird.f32 %v553_v8 }
  0xd7   :  { %vm370_vm3 = vmor %vm368_vm2, %vm369_vm1 }
  0xd8   :  { %v364_v10 = vmul.f32 %v553_v8, %v363_v9 }
  0xda   :  { %v365_v11 = vmul.f32 0.5, %v364_v10 }
  0xdc   :  { %v366_v12 = vsub.f32 1.5, %v365_v11 }
  0xde   :  { %v367_v14 = vmul.f32 %v553_v8, %v366_v12 }
  0xe0   :  { %v371_v15 = vsel %vm370_vm3, %v553_v8, %v367_v14 }
  0xe1   :  { %v372_v16 = vmul.f32 %v371_v15, %v359_v13 }
  0xe3   :  { %v374_v18 = vmul.f32 %v372_v16, %v349_v60  ;;  %v377_v19 = vperm.slane %v372_v16, 0 }
  0xe5   :  { %v375_v20 = vsub.f32 %v373_v17, %v374_v18  ;;  %v379_v21 = vmul.f32 %v377_v19, %v338_v50 }
  0xe7   :  { %v381_v22 = vperm.slane %v375_v20, 0 }
  0xe9   :  { %v383_v23 = vadd.f32 %v381_v22, %v379_v21 }
  0xeb   :  { %v384_v24 = vmax.f32 %v383_v23, 0.0 }
  0xed   :  { %v385_v25 = vpack.c.bf16 %v384_v24, %v384_v24 }
  0xef   :  { %387 = vst.msk [vmem:[%s694_s4] sm:$0xf] %vm386_vm4, %v385_v25 }

// kernel: memae_forward.12
= control target key start
LH: loop header
LB: loop body
LE: loop exit
PB: predicated region body
PF: predicated region fallthrough
CT: control target
= control target key end

     0   :  { %vm652_vm0 = vcmask 517120   ;;  %vm697_vm4 = vcmask 516096   ;;  %s1254_s1 = inlined_call_operand.vmem [shape: bf16[1,1024,64], index: 1, kind: input, shape index: {}]   ;;  %s1255_s0 = inlined_call_operand.vmem [shape: bf16[2,1024], index: 0, kind: input, shape index: {}]   ;;  %s1256_s2 = inlined_call_operand.vmem [shape: f32[1,64], index: 2, kind: input, shape index: {}]   ;;  %s1257_s3 = inlined_call_operand.vmem [shape: f32[1,64], index: 3, kind: input, shape index: {}]   ;;  %s1258_s4 = inlined_call_operand.vmem [shape: bf16[1,2,64], index: 4, kind: output, shape index: {}]  }
   0x1   :  { %v966_v0 = vld [vmem:[%s1254_s1 + $0x38] sm:$0xff]  ;;  %v965_v4 = vld [vmem:[%s1254_s1 + $0x30] sm:$0xff]  ;;  %v964_v8 = vld [vmem:[%s1254_s1 + $0x28] sm:$0xff] }
   0x2   :  { %v974_v1 = vld [vmem:[%s1254_s1 + $0x78] sm:$0xff]  ;;  %548 = vmatpush.bf16.msra.mxu0 %v966_v0  ;;  %v973_v5 = vld [vmem:[%s1254_s1 + $0x70] sm:$0xff]  ;;  %v972_v9 = vld [vmem:[%s1254_s1 + $0x68] sm:$0xff] }
   0x3   :  { %v982_v2 = vld [vmem:[%s1254_s1 + $0xb8] sm:$0xff]  ;;  %561 = vmatpush.bf16.msra.mxu1 %v974_v1  ;;  %v981_v6 = vld [vmem:[%s1254_s1 + $0xb0] sm:$0xff]  ;;  %v980_v10 = vld [vmem:[%s1254_s1 + $0xa8] sm:$0xff] }
   0x4   :  { %v990_v3 = vld [vmem:[%s1254_s1 + $0xf8] sm:$0xff]  ;;  %574 = vmatpush.bf16.msra.mxu2 %v982_v2  ;;  %v989_v7 = vld [vmem:[%s1254_s1 + $0xf0] sm:$0xff]  ;;  %v988_v11 = vld [vmem:[%s1254_s1 + $0xe8] sm:$0xff] }
   0x5   :  { %587 = vmatpush.bf16.msra.mxu3 %v990_v3  ;;  %v963_v12 = vld [vmem:[%s1254_s1 + $0x20] sm:$0xff]  ;;  %v962_v17 = vld [vmem:[%s1254_s1 + $0x18] sm:$0xff]  ;;  %v961_v21 = vld [vmem:[%s1254_s1 + $0x10] sm:$0xff] }
   0x6   :  { %549 = vmatpush.bf16.msra.mxu0 %v965_v4  ;;  %v971_v13 = vld [vmem:[%s1254_s1 + $0x60] sm:$0xff]  ;;  %v970_v18 = vld [vmem:[%s1254_s1 + $0x58] sm:$0xff]  ;;  %v969_v22 = vld [vmem:[%s1254_s1 + $0x50] sm:$0xff] }
   0x7   :  { %562 = vmatpush.bf16.msra.mxu1 %v973_v5  ;;  %v979_v14 = vld [vmem:[%s1254_s1 + $0xa0] sm:$0xff]  ;;  %v978_v19 = vld [vmem:[%s1254_s1 + $0x98] sm:$0xff]  ;;  %v977_v23 = vld [vmem:[%s1254_s1 + $0x90] sm:$0xff] }
   0x8   :  { %575 = vmatpush.bf16.msra.mxu2 %v981_v6  ;;  %v987_v15 = vld [vmem:[%s1254_s1 + $0xe0] sm:$0xff]  ;;  %v986_v20 = vld [vmem:[%s1254_s1 + $0xd8] sm:$0xff]  ;;  %v985_v24 = vld [vmem:[%s1254_s1 + $0xd0] sm:$0xff] }
   0x9   :  { %588 = vmatpush.bf16.msra.mxu3 %v989_v7  ;;  %v17_v16 = vld [vmem:[%s1255_s0] sm:$0xff]  ;;  %v960_v25 = vld [vmem:[%s1254_s1 + $0x8] sm:$0xff]  ;;  %v998_v33 = vld [vmem:[%s1254_s1 + $0x138] sm:$0xff] }
   0xa   :  { %550 = vmatpush.bf16.msra.mxu0 %v964_v8  ;;  %147 = vst [vmem:[#allocation1] ss:$9 sm:$0xff] %v17_v16  ;;  %v968_v26 = vld [vmem:[%s1254_s1 + $0x48] sm:$0xff]  ;;  %v959_v29 = vld [vmem:[%s1254_s1] sm:$0xff]  ;;  %v1006_v34 = vld [vmem:[%s1254_s1 + $0x178] sm:$0xff] }
   0xb   :  { %563 = vmatpush.bf16.msra.mxu1 %v972_v9  ;;  %v976_v27 = vld [vmem:[%s1254_s1 + $0x88] sm:$0xff]  ;;  %v967_v30 = vld [vmem:[%s1254_s1 + $0x40] sm:$0xff]  ;;  %v1014_v35 = vld [vmem:[%s1254_s1 + $0x1b8] sm:$0xff] }
   0xc   :  { %576 = vmatpush.bf16.msra.mxu2 %v980_v10  ;;  %v984_v28 = vld [vmem:[%s1254_s1 + $0xc8] sm:$0xff]  ;;  %v975_v31 = vld [vmem:[%s1254_s1 + $0x80] sm:$0xff]  ;;  %v1022_v36 = vld [vmem:[%s1254_s1 + $0x1f8] sm:$0xff] }
   0xd   :  { %589 = vmatpush.bf16.msra.mxu3 %v988_v11  ;;  %v983_v32 = vld [vmem:[%s1254_s1 + $0xc0] sm:$0xff]  ;;  %v997_v37 = vld [vmem:[%s1254_s1 + $0x130] sm:$0xff]  ;;  %v996_v45 = vld [vmem:[%s1254_s1 + $0x128] sm:$0xff] }
   0xe   :  { %551 = vmatpush.bf16.msra.mxu0 %v963_v12  ;;  %v1005_v40 = vld [vmem:[%s1254_s1 + $0x170] sm:$0xff]  ;;  %v1004_v46 = vld [vmem:[%s1254_s1 + $0x168] sm:$0xff]  ;;  %v995_v49 = vld [vmem:[%s1254_s1 + $0x120] sm:$0xff] }
   0xf   :  { %564 = vmatpush.bf16.msra.mxu1 %v971_v13  ;;  %v1013_v43 = vld [vmem:[%s1254_s1 + $0x1b0] sm:$0xff]  ;;  %v1012_v47 = vld [vmem:[%s1254_s1 + $0x1a8] sm:$0xff]  ;;  %v1003_v50 = vld [vmem:[%s1254_s1 + $0x160] sm:$0xff] }
  0x10   :  { %577 = vmatpush.bf16.msra.mxu2 %v979_v14  ;;  %v1021_v44 = vld [vmem:[%s1254_s1 + $0x1f0] sm:$0xff]  ;;  %v1020_v48 = vld [vmem:[%s1254_s1 + $0x1e8] sm:$0xff]  ;;  %v1011_v51 = vld [vmem:[%s1254_s1 + $0x1a0] sm:$0xff] }
  0x11   :  { %590 = vmatpush.bf16.msra.mxu3 %v987_v15  ;;  %v150_v38 = vld [vmem:[#allocation1 + $0x12] sm:$0xff]  ;;  %v148_v39 = vld [vmem:[#allocation1] sm:$0xff]  ;;  %v149_v42 = vld [vmem:[#allocation1 + $0x9] sm:$0xff] }
  0x12   :  { %552 = vmatpush.bf16.msra.mxu0 %v962_v17  ;;  %v151_v41 = vld [vmem:[#allocation1 + $0x1b] sm:$0xff]  ;;  %v993_v57 = vld [vmem:[%s1254_s1 + $0x110] sm:$0xff]  ;;  %v992_v61 = vld [vmem:[%s1254_s1 + $0x108] sm:$0xff] }
  0x13   :  { %565 = vmatpush.bf16.msra.mxu1 %v970_v18  ;;  %v1019_v52 = vld [vmem:[%s1254_s1 + $0x1e0] sm:$0xff]  ;;  %v994_v53 = vld [vmem:[%s1254_s1 + $0x118] sm:$0xff]  ;;  %v1001_v58 = vld [vmem:[%s1254_s1 + $0x150] sm:$0xff] }
  0x14   :  { %578 = vmatpush.bf16.msra.mxu2 %v978_v19  ;;  %v1002_v54 = vld [vmem:[%s1254_s1 + $0x158] sm:$0xff]  ;;  %v1009_v59 = vld [vmem:[%s1254_s1 + $0x190] sm:$0xff]  ;;  %v1000_v62 = vld [vmem:[%s1254_s1 + $0x148] sm:$0xff] }
  0x15   :  { %591 = vmatpush.bf16.msra.mxu3 %v986_v20  ;;  %v1010_v55 = vld [vmem:[%s1254_s1 + $0x198] sm:$0xff]  ;;  %v1017_v60 = vld [vmem:[%s1254_s1 + $0x1d0] sm:$0xff]  ;;  %v1008_v63 = vld [vmem:[%s1254_s1 + $0x188] sm:$0xff] }
  0x16   :  { %553 = vmatpush.bf16.msra.mxu0 %v961_v21  ;;  %v1018_v56 = vld [vmem:[%s1254_s1 + $0x1d8] sm:$0xff]  ;;  %v1016_v0 = vld [vmem:[%s1254_s1 + $0x1c8] sm:$0xff]  ;;  %v991_v1 = vld [vmem:[%s1254_s1 + $0x100] sm:$0xff] }
  0x17   :  { %566 = vmatpush.bf16.msra.mxu1 %v969_v22  ;;  %v999_v2 = vld [vmem:[%s1254_s1 + $0x140] sm:$0xff]  ;;  %v153_v6 = vld [vmem:[#allocation1 + $0x2d] sm:$0xff]  ;;  %v154_v7 = vld [vmem:[#allocation1 + $0x36] sm:$0xff] }
  0x18   :  { %579 = vmatpush.bf16.msra.mxu2 %v977_v23  ;;  %v1007_v3 = vld [vmem:[%s1254_s1 + $0x180] sm:$0xff] }
  0x19   :  { %592 = vmatpush.bf16.msra.mxu3 %v985_v24  ;;  %v1015_v4 = vld [vmem:[%s1254_s1 + $0x1c0] sm:$0xff] }
  0x1a   :  { %554 = vmatpush.bf16.msra.mxu0 %v960_v25  ;;  %v152_v5 = vld [vmem:[#allocation1 + $0x24] sm:$0xff] }
  0x1b   :  { %567 = vmatpush.bf16.msra.mxu1 %v968_v26  ;;  %v155_v8 = vld [vmem:[#allocation1 + $0x3f] sm:$0xff] }
  0x1c   :  { %580 = vmatpush.bf16.msra.mxu2 %v976_v27 }
  0x1d   :  { %593 = vmatpush.bf16.msra.mxu3 %v984_v28 }
  0x1e   :  { %555 = vmatpush.bf16.msra.mxu0 %v959_v29 }
  0x1f   :  { %568 = vmatpush.bf16.msra.mxu1 %v967_v30 }
  0x20   :  { %581 = vmatpush.bf16.msra.mxu2 %v975_v31 }
  0x21   :  { %594 = vmatpush.bf16.msra.mxu3 %v983_v32  ;;  %556 = vmatmul.bf16.vlgmr.msra.gmra.mxu0 %v148_v39 }
  0x22   :  { %600 = vmatpush.bf16.msrb.mxu0 %v998_v33  ;;  %569 = vmatmul.bf16.vlgmr.msra.gmra.mxu1 %v149_v42 }
  0x23   :  { %613 = vmatpush.bf16.msrb.mxu1 %v1006_v34  ;;  %582 = vmatmul.bf16.vlgmr.msra.gmra.mxu2 %v150_v38 }
  0x24   :  { %626 = vmatpush.bf16.msrb.mxu2 %v1014_v35  ;;  %595 = vmatmul.bf16.vlgmr.msra.gmra.mxu3 %v151_v41 }
  0x25   :  { %639 = vmatpush.bf16.msrb.mxu3 %v1022_v36 }
  0x26   :  { %601 = vmatpush.bf16.msrb.mxu0 %v997_v37 }
  0x27   :  { %614 = vmatpush.bf16.msrb.mxu1 %v1005_v40 }
  0x28   :  { %627 = vmatpush.bf16.msrb.mxu2 %v1013_v43 }
  0x29   :  { %640 = vmatpush.bf16.msrb.mxu3 %v1021_v44 }
  0x2a   :  { %602 = vmatpush.bf16.msrb.mxu0 %v996_v45 }
  0x2b   :  { %615 = vmatpush.bf16.msrb.mxu1 %v1004_v46 }
  0x2c   :  { %628 = vmatpush.bf16.msrb.mxu2 %v1012_v47 }
  0x2d   :  { %641 = vmatpush.bf16.msrb.mxu3 %v1020_v48 }
  0x2e   :  { %603 = vmatpush.bf16.msrb.mxu0 %v995_v49 }
  0x2f   :  { %616 = vmatpush.bf16.msrb.mxu1 %v1003_v50 }
  0x30   :  { %629 = vmatpush.bf16.msrb.mxu2 %v1011_v51 }
  0x31   :  { %642 = vmatpush.bf16.msrb.mxu3 %v1019_v52 }
  0x32   :  { %604 = vmatpush.bf16.msrb.mxu0 %v994_v53 }
  0x33   :  { %617 = vmatpush.bf16.msrb.mxu1 %v1002_v54 }
  0x34   :  { %630 = vmatpush.bf16.msrb.mxu2 %v1010_v55 }
  0x35   :  { %643 = vmatpush.bf16.msrb.mxu3 %v1018_v56  ;;  %v670_v56 = vld [vmem:[%s1256_s2] sm:$0x1] }
  0x36   :  { %605 = vmatpush.bf16.msrb.mxu0 %v993_v57 }
  0x37   :  { %618 = vmatpush.bf16.msrb.mxu1 %v1001_v58 }
  0x38   :  { %631 = vmatpush.bf16.msrb.mxu2 %v1009_v59 }
  0x39   :  { %644 = vmatpush.bf16.msrb.mxu3 %v1017_v60  ;;  %v684_v60 = vld [vmem:[%s1257_s3] sm:$0x1] }
  0x3a   :  { %606 = vmatpush.bf16.msrb.mxu0 %v992_v61 }
  0x3b   :  { %619 = vmatpush.bf16.msrb.mxu1 %v1000_v62 }
  0x3c   :  { %632 = vmatpush.bf16.msrb.mxu2 %v1008_v63 }
  0x3d   :  { %645 = vmatpush.bf16.msrb.mxu3 %v1016_v0 }
  0x3e   :  { %607 = vmatpush.bf16.msrb.mxu0 %v991_v1 }
  0x3f   :  { %620 = vmatpush.bf16.msrb.mxu1 %v999_v2 }
  0x40   :  { %633 = vmatpush.bf16.msrb.mxu2 %v1007_v3 }
  0x41   :  { %646 = vmatpush.bf16.msrb.mxu3 %v1015_v4  ;;  %608 = vmatmul.bf16.vlgmr.msrb.gmra.mxu0 %v152_v5 }
  0x42   :  { %621 = vmatmul.bf16.vlgmr.msrb.gmra.mxu1 %v153_v6 }
  0x43   :  { %634 = vmatmul.bf16.vlgmr.msrb.gmra.mxu2 %v154_v7 }
  0x44   :  { %647 = vmatmul.bf16.vlgmr.msrb.gmra.mxu3 %v155_v8 }
  0x9e   :  { %v557_v9 = vpop.f32.mrf.mxu0 }
  0x9f   :  { %v570_v10 = vpop.f32.mrf.mxu1 }
  0xa0   :  { %v571_v17 = vadd.f32 %v570_v10, %v557_v9 }
  0xa6   :  { %v583_v11 = vpop.f32.mrf.mxu2  ;;  %v559_v13 = vpop.f32.mrf.mxu0 }
  0xa7   :  { %v596_v12 = vpop.f32.mrf.mxu3  ;;  %v572_v14 = vpop.f32.mrf.mxu1  ;;  %v584_v18 = vadd.f32 %v583_v11, %v571_v17 }
  0xa9   :  { %v597_v19 = vadd.f32 %v596_v12, %v584_v18 }
  0xae   :  { %v585_v15 = vpop.f32.mrf.mxu2 }
  0xaf   :  { %v598_v16 = vpop.f32.mrf.mxu3 }
  0xbe   :  { %v609_v20 = vpop.f32.mrf.mxu0 }
  0xbf   :  { %v622_v21 = vpop.f32.mrf.mxu1  ;;  %v610_v22 = vadd.f32 %v609_v20, %v597_v19 }
  0xc1   :  { %v623_v23 = vadd.f32 %v622_v21, %v610_v22 }
  0xc6   :  { %v635_v24 = vpop.f32.mrf.mxu2  ;;  %v611_v27 = vpop.f32.mrf.mxu0 }
  0xc7   :  { %v648_v25 = vpop.f32.mrf.mxu3  ;;  %v636_v26 = vadd.f32 %v635_v24, %v623_v23  ;;  %v624_v28 = vpop.f32.mrf.mxu1 }
  0xc9   :  { %v649_v29 = vadd.f32 %v648_v25, %v636_v26 }
  0xcb   :  { %v653_v30 = vsel %vm652_vm0, %v649_v29, 0.0 }
  0xcc   :  { %v654_v31 = vrot.slane %v653_v30, 4 }
  0xce   :  { %v655_v32 = vadd.f32 %v654_v31, %v653_v30  ;;  %v637_v33 = vpop.f32.mrf.mxu2 }
  0xcf   :  { %v650_v34 = vpop.f32.mrf.mxu3 }
  0xd0   :  { %v656_v35 = vrot.slane %v655_v32, 2 }
  0xd2   :  { %v657_v36 = vadd.f32 %v656_v35, %v655_v32 }
  0xd4   :  { %v658_v37 = vrot.slane %v657_v36, 1 }
  0xd6   :  { %v659_v38 = vadd.f32 %v658_v37, %v657_v36 }
  0xd8   :  { %v660_v39 = vmul.f32 0.5, %v659_v38 }
  0xda   :  { %v661_v40 = vsub.f32 %v649_v29, %v660_v39 }
  0xdc   :  { %v662_v41 = vmul.f32 %v661_v40, %v661_v40 }
  0xde   :  { %v663_v42 = vsel %vm652_vm0, %v662_v41, 0.0 }
  0xdf   :  { %v664_v43 = vrot.slane %v663_v42, 4 }
  0xe1   :  { %v665_v44 = vadd.f32 %v664_v43, %v663_v42 }
  0xe3   :  { %v666_v45 = vrot.slane %v665_v44, 2 }
  0xe5   :  { %v667_v46 = vadd.f32 %v666_v45, %v665_v44 }
  0xe7   :  { %v668_v47 = vrot.slane %v667_v46, 1 }
  0xe9   :  { %v669_v48 = vadd.f32 %v668_v47, %v667_v46 }
  0xeb   :  { %v671_v49 = vmul.f32 0.5, %v669_v48 }
  0xed   :  { %v672_v50 = vadd.f32 1e-05, %v671_v49 }
  0xef   :  { %1023 = vrsqrt.f32 %v672_v50  ;;  %vm679_vm2 = vweird.f32 %v672_v50 }
  0xf5   :  { %v1024_v51 = vpop.eup %1023 }
  0xf6   :  { %v674_v52 = vmul.f32 %v1024_v51, %v672_v50  ;;  %vm680_vm1 = vweird.f32 %v1024_v51 }
  0xf7   :  { %vm681_vm3 = vmor %vm679_vm2, %vm680_vm1 }
  0xf8   :  { %v675_v53 = vmul.f32 %v1024_v51, %v674_v52 }
  0xfa   :  { %v676_v54 = vmul.f32 0.5, %v675_v53 }
  0xfc   :  { %v677_v55 = vsub.f32 1.5, %v676_v54 }
  0xfe   :  { %v678_v57 = vmul.f32 %v1024_v51, %v677_v55 }
 0x100   :  { %v682_v58 = vsel %vm681_vm3, %v1024_v51, %v678_v57 }
 0x101   :  { %v683_v59 = vmul.f32 %v682_v58, %v670_v56 }
 0x103   :  { %v685_v61 = vmul.f32 %v683_v59, %v660_v39  ;;  %v688_v62 = vperm.slane %v683_v59, 0 }
 0x105   :  { %v686_v63 = vsub.f32 %v684_v60, %v685_v61  ;;  %v690_v0 = vmul.f32 %v688_v62, %v649_v29 }
 0x107   :  { %v692_v1 = vperm.slane %v686_v63, 0 }
 0x109   :  { %v694_v2 = vadd.f32 %v692_v1, %v690_v0 }
 0x10b   :  { %v695_v3 = vmax.f32 %v694_v2, 0.0 }
 0x10d   :  { %v696_v4 = vpack.c.bf16 %v695_v3, %v695_v3 }
 0x10f   :  { %698 = vst.msk [vmem:[%s1258_s4] sm:$0x1] %vm697_vm4, %v696_v4 }

// kernel: memae_forward.14
= control target key start
LH: loop header
LB: loop body
LE: loop exit
PB: predicated region body
PF: predicated region fallthrough
CT: control target
= control target key end

     0   :  { %vm318_vm0 = vcmask 523264   ;;  %vm1484_vm1 = vcmask 517120   ;;  %vm1583_vm5 = vcmask 516096   ;;  %s3080_s1 = inlined_call_operand.vmem [shape: bf16[4,576,64], index: 1, kind: input, shape index: {}]   ;;  %s3081_s0 = inlined_call_operand.vmem [shape: bf16[2,576], index: 0, kind: input, shape index: {}]   ;;  %s3082_s2 = inlined_call_operand.vmem [shape: f32[1,64], index: 2, kind: input, shape index: {}]   ;;  %s3083_s3 = inlined_call_operand.vmem [shape: f32[1,64], index: 3, kind: input, shape index: {}]   ;;  %s3084_s4 = inlined_call_operand.vmem [shape: bf16[4,2,64], index: 4, kind: output, shape index: {}]  }
   0x1   :  { %v2413_v0 = vld [vmem:[%s3080_s1 + $0x38] sm:$0xff]  ;;  %v2412_v4 = vld [vmem:[%s3080_s1 + $0x30] sm:$0xff]  ;;  %v2411_v8 = vld [vmem:[%s3080_s1 + $0x28] sm:$0xff] }
   0x2   :  { %v2421_v1 = vld [vmem:[%s3080_s1 + $0x78] sm:$0xff]  ;;  %321 = vmatpush.bf16.msra.mxu0 %v2413_v0  ;;  %v2420_v5 = vld [vmem:[%s3080_s1 + $0x70] sm:$0xff]  ;;  %v2419_v9 = vld [vmem:[%s3080_s1 + $0x68] sm:$0xff] }
   0x3   :  { %v2429_v2 = vld [vmem:[%s3080_s1 + $0xb8] sm:$0xff]  ;;  %334 = vmatpush.bf16.msra.mxu1 %v2421_v1  ;;  %v2428_v6 = vld [vmem:[%s3080_s1 + $0xb0] sm:$0xff]  ;;  %v2427_v10 = vld [vmem:[%s3080_s1 + $0xa8] sm:$0xff] }
   0x4   :  { %v2437_v3 = vld [vmem:[%s3080_s1 + $0xf8] sm:$0xff]  ;;  %347 = vmatpush.bf16.msra.mxu2 %v2429_v2  ;;  %v2436_v7 = vld [vmem:[%s3080_s1 + $0xf0] sm:$0xff]  ;;  %v2435_v11 = vld [vmem:[%s3080_s1 + $0xe8] sm:$0xff] }
   0x5   :  { %360 = vmatpush.bf16.msra.mxu3 %v2437_v3  ;;  %v2410_v12 = vld [vmem:[%s3080_s1 + $0x20] sm:$0xff]  ;;  %v2409_v17 = vld [vmem:[%s3080_s1 + $0x18] sm:$0xff]  ;;  %v2408_v21 = vld [vmem:[%s3080_s1 + $0x10] sm:$0xff] }
   0x6   :  { %322 = vmatpush.bf16.msra.mxu0 %v2412_v4  ;;  %v2418_v13 = vld [vmem:[%s3080_s1 + $0x60] sm:$0xff]  ;;  %v2417_v18 = vld [vmem:[%s3080_s1 + $0x58] sm:$0xff]  ;;  %v2416_v22 = vld [vmem:[%s3080_s1 + $0x50] sm:$0xff] }
   0x7   :  { %335 = vmatpush.bf16.msra.mxu1 %v2420_v5  ;;  %v2426_v14 = vld [vmem:[%s3080_s1 + $0xa0] sm:$0xff]  ;;  %v2425_v19 = vld [vmem:[%s3080_s1 + $0x98] sm:$0xff]  ;;  %v2424_v23 = vld [vmem:[%s3080_s1 + $0x90] sm:$0xff] }
   0x8   :  { %348 = vmatpush.bf16.msra.mxu2 %v2428_v6  ;;  %v2434_v15 = vld [vmem:[%s3080_s1 + $0xe0] sm:$0xff]  ;;  %v2433_v20 = vld [vmem:[%s3080_s1 + $0xd8] sm:$0xff]  ;;  %v2432_v24 = vld [vmem:[%s3080_s1 + $0xd0] sm:$0xff] }
   0x9   :  { %361 = vmatpush.bf16.msra.mxu3 %v2436_v7  ;;  %v2628_v16 = vld [vmem:[%s3081_s0] sm:$0x1f]  ;;  %v2407_v30 = vld [vmem:[%s3080_s1 + $0x8] sm:$0xff]  ;;  %v2441_v38 = vld [vmem:[%s3080_s1 + $0x118] sm:$0xff] }
   0xa   :  { %323 = vmatpush.bf16.msra.mxu0 %v2411_v8  ;;  %92 = vst [vmem:[#allocation1] ss:$9 sm:$0xff] %v2628_v16  ;;  %v2415_v31 = vld [vmem:[%s3080_s1 + $0x48] sm:$0xff]  ;;  %v2406_v34 = vld [vmem:[%s3080_s1] sm:$0xff]  ;;  %v2449_v39 = vld [vmem:[%s3080_s1 + $0x158] sm:$0xff] }
   0xb   :  { %336 = vmatpush.bf16.msra.mxu1 %v2419_v9  ;;  %v2423_v32 = vld [vmem:[%s3080_s1 + $0x88] sm:$0xff]  ;;  %v2414_v35 = vld [vmem:[%s3080_s1 + $0x40] sm:$0xff]  ;;  %v2457_v40 = vld [vmem:[%s3080_s1 + $0x198] sm:$0xff] }
   0xc   :  { %349 = vmatpush.bf16.msra.mxu2 %v2427_v10  ;;  %v2431_v33 = vld [vmem:[%s3080_s1 + $0xc8] sm:$0xff]  ;;  %v2422_v36 = vld [vmem:[%s3080_s1 + $0x80] sm:$0xff]  ;;  %v2465_v41 = vld [vmem:[%s3080_s1 + $0x1d8] sm:$0xff] }
   0xd   :  { %362 = vmatpush.bf16.msra.mxu3 %v2435_v11  ;;  %v2430_v37 = vld [vmem:[%s3080_s1 + $0xc0] sm:$0xff]  ;;  %v2440_v42 = vld [vmem:[%s3080_s1 + $0x110] sm:$0xff]  ;;  %v2439_v46 = vld [vmem:[%s3080_s1 + $0x108] sm:$0xff] }
   0xe   :  { %324 = vmatpush.bf16.msra.mxu0 %v2410_v12  ;;  %v2448_v43 = vld [vmem:[%s3080_s1 + $0x150] sm:$0xff]  ;;  %v2447_v47 = vld [vmem:[%s3080_s1 + $0x148] sm:$0xff]  ;;  %v2438_v50 = vld [vmem:[%s3080_s1 + $0x100] sm:$0xff] }
   0xf   :  { %337 = vmatpush.bf16.msra.mxu1 %v2418_v13  ;;  %v2456_v44 = vld [vmem:[%s3080_s1 + $0x190] sm:$0xff]  ;;  %v2455_v48 = vld [vmem:[%s3080_s1 + $0x188] sm:$0xff]  ;;  %v2446_v51 = vld [vmem:[%s3080_s1 + $0x140] sm:$0xff] }
  0x10   :  { %350 = vmatpush.bf16.msra.mxu2 %v2426_v14  ;;  %v2464_v45 = vld [vmem:[%s3080_s1 + $0x1d0] sm:$0xff]  ;;  %v2463_v49 = vld [vmem:[%s3080_s1 + $0x1c8] sm:$0xff]  ;;  %v2454_v52 = vld [vmem:[%s3080_s1 + $0x180] sm:$0xff] }
  0x11   :  { %363 = vmatpush.bf16.msra.mxu3 %v2434_v15  ;;  %v93_v25 = vld [vmem:[#allocation1] sm:$0xff]  ;;  %v95_v26 = vld [vmem:[#allocation1 + $0x12] sm:$0xff]  ;;  %v94_v28 = vld [vmem:[#allocation1 + $0x9] sm:$0xff] }
  0x12   :  { %325 = vmatpush.bf16.msra.mxu0 %v2409_v17  ;;  %v96_v27 = vld [vmem:[#allocation1 + $0x1b] sm:$0xff]  ;;  %v2655_v29 = vld [vmem:[#allocation1 + $0x24] sm:$0xff]  ;;  %v2472_v58 = vld [vmem:[%s3080_s1 + $0x210] sm:$0xff] }
  0x13   :  { %338 = vmatpush.bf16.msra.mxu1 %v2417_v18  ;;  %459 = vst [vmem:[#allocation1] ss:$9 sm:$0xff] %v2628_v16  ;;  %v2462_v53 = vld [vmem:[%s3080_s1 + $0x1c0] sm:$0xff]  ;;  %v2473_v54 = vld [vmem:[%s3080_s1 + $0x218] sm:$0xff]  ;;  %v2444_v59 = vld [vmem:[%s3080_s1 + $0x130] sm:$0xff] }
  0x14   :  { %351 = vmatpush.bf16.msra.mxu2 %v2425_v19  ;;  %v2445_v55 = vld [vmem:[%s3080_s1 + $0x138] sm:$0xff]  ;;  %v2452_v1 = vld [vmem:[%s3080_s1 + $0x170] sm:$0xff]  ;;  %v2471_v3 = vld [vmem:[%s3080_s1 + $0x208] sm:$0xff] }
  0x15   :  { %364 = vmatpush.bf16.msra.mxu3 %v2433_v20  ;;  %v2453_v56 = vld [vmem:[%s3080_s1 + $0x178] sm:$0xff]  ;;  %v2460_v2 = vld [vmem:[%s3080_s1 + $0x1b0] sm:$0xff]  ;;  %v2443_v4 = vld [vmem:[%s3080_s1 + $0x128] sm:$0xff] }
  0x16   :  { %326 = vmatpush.bf16.msra.mxu0 %v2408_v21  ;;  %v2461_v57 = vld [vmem:[%s3080_s1 + $0x1b8] sm:$0xff]  ;;  %v2451_v5 = vld [vmem:[%s3080_s1 + $0x168] sm:$0xff]  ;;  %v2470_v7 = vld [vmem:[%s3080_s1 + $0x200] sm:$0xff] }
  0x17   :  { %339 = vmatpush.bf16.msra.mxu1 %v2416_v22  ;;  %v2459_v6 = vld [vmem:[%s3080_s1 + $0x1a8] sm:$0xff]  ;;  %v2442_v8 = vld [vmem:[%s3080_s1 + $0x120] sm:$0xff]  ;;  %v2469_v11 = vld [vmem:[%s3080_s1 + $0x1f8] sm:$0xff] }
  0x18   :  { %352 = vmatpush.bf16.msra.mxu2 %v2424_v23  ;;  %v2450_v9 = vld [vmem:[%s3080_s1 + $0x160] sm:$0xff]  ;;  %v2477_v12 = vld [vmem:[%s3080_s1 + $0x238] sm:$0xff]  ;;  %v2468_v15 = vld [vmem:[%s3080_s1 + $0x1f0] sm:$0xff] }
  0x19   :  { %365 = vmatpush.bf16.msra.mxu3 %v2432_v24  ;;  %v2458_v10 = vld [vmem:[%s3080_s1 + $0x1a0] sm:$0xff]  ;;  %v2485_v13 = vld [vmem:[%s3080_s1 + $0x278] sm:$0xff]  ;;  %v2476_v17 = vld [vmem:[%s3080_s1 + $0x230] sm:$0xff] }
  0x1a   :  { %327 = vmatpush.bf16.msra.mxu0 %v2407_v30  ;;  %v460_v60 = vld [vmem:[#allocation1] sm:$0xff]  ;;  %v461_v61 = vld [vmem:[#allocation1 + $0x9] sm:$0xff]  ;;  %v462_v62 = vld [vmem:[#allocation1 + $0x12] sm:$0xff] }
  0x1b   :  { %340 = vmatpush.bf16.msra.mxu1 %v2415_v31  ;;  %v2748_v63 = vld [vmem:[#allocation1 + $0x1b] sm:$0xff]  ;;  %v2750_v0 = vld [vmem:[#allocation1 + $0x24] sm:$0xff]  ;;  %v2484_v18 = vld [vmem:[%s3080_s1 + $0x270] sm:$0xff] }
  0x1c   :  { %353 = vmatpush.bf16.msra.mxu2 %v2423_v32  ;;  %825 = vst [vmem:[#allocation1] ss:$9 sm:$0xff] %v2628_v16  ;;  %v2493_v14 = vld [vmem:[%s3080_s1 + $0x2b8] sm:$0xff]  ;;  %v2492_v19 = vld [vmem:[%s3080_s1 + $0x2b0] sm:$0xff]  ;;  %v2467_v20 = vld [vmem:[%s3080_s1 + $0x1e8] sm:$0xff] }
  0x1d   :  { %366 = vmatpush.bf16.msra.mxu3 %v2431_v33  ;;  %v2475_v21 = vld [vmem:[%s3080_s1 + $0x228] sm:$0xff]  ;;  %v2466_v24 = vld [vmem:[%s3080_s1 + $0x1e0] sm:$0xff]  ;;  %v2481_v30 = vld [vmem:[%s3080_s1 + $0x258] sm:$0xff] }
  0x1e   :  { %328 = vmatpush.bf16.msra.mxu0 %v2406_v34  ;;  %v2483_v22 = vld [vmem:[%s3080_s1 + $0x268] sm:$0xff]  ;;  %v2489_v31 = vld [vmem:[%s3080_s1 + $0x298] sm:$0xff]  ;;  %v2500_v32 = vld [vmem:[%s3080_s1 + $0x2f0] sm:$0xff] }
  0x1f   :  { %341 = vmatpush.bf16.msra.mxu1 %v2414_v35  ;;  %v2491_v23 = vld [vmem:[%s3080_s1 + $0x2a8] sm:$0xff]  ;;  %v2508_v33 = vld [vmem:[%s3080_s1 + $0x330] sm:$0xff] }
  0x20   :  { %354 = vmatpush.bf16.msra.mxu2 %v2422_v36  ;;  %v2480_v34 = vld [vmem:[%s3080_s1 + $0x250] sm:$0xff]  ;;  %v2499_v36 = vld [vmem:[%s3080_s1 + $0x2e8] sm:$0xff] }
  0x21   :  { %367 = vmatpush.bf16.msra.mxu3 %v2430_v37  ;;  %329 = vmatmul.bf16.vlgmr.msra.gmra.mxu0 %v93_v25  ;;  %v2474_v25 = vld [vmem:[%s3080_s1 + $0x220] sm:$0xff]  ;;  %v2488_v35 = vld [vmem:[%s3080_s1 + $0x290] sm:$0xff]  ;;  %v2507_v37 = vld [vmem:[%s3080_s1 + $0x328] sm:$0xff] }
  0x22   :  { %377 = vmatpush.bf16.msrb.mxu0 %v2441_v38  ;;  %342 = vmatmul.bf16.vlgmr.msra.gmra.mxu1 %v94_v28  ;;  %v2501_v28 = vld [vmem:[%s3080_s1 + $0x2f8] sm:$0xff]  ;;  %v2479_v38 = vld [vmem:[%s3080_s1 + $0x248] sm:$0xff] }
  0x23   :  { %687 = vmatpush.bf16.msrb.mxu1 %v2449_v39  ;;  %355 = vmatmul.bf16.vlgmr.msra.gmra.mxu2 %v95_v26  ;;  %v2482_v26 = vld [vmem:[%s3080_s1 + $0x260] sm:$0xff]  ;;  %v2487_v39 = vld [vmem:[%s3080_s1 + $0x288] sm:$0xff] }
  0x24   :  { %700 = vmatpush.bf16.msrb.mxu2 %v2457_v40  ;;  %368 = vmatmul.bf16.vlgmr.msra.gmra.mxu3 %v96_v27  ;;  %v2490_v27 = vld [vmem:[%s3080_s1 + $0x2a0] sm:$0xff] }
  0x25   :  { %713 = vmatpush.bf16.msrb.mxu3 %v2465_v41  ;;  %v826_v40 = vld [vmem:[#allocation1] sm:$0xff]  ;;  %v827_v41 = vld [vmem:[#allocation1 + $0x9] sm:$0xff] }
  0x26   :  { %378 = vmatpush.bf16.msrb.mxu0 %v2440_v42  ;;  %v2872_v42 = vld [vmem:[#allocation1 + $0x24] sm:$0xff] }
  0x27   :  { %688 = vmatpush.bf16.msrb.mxu1 %v2448_v43  ;;  %v828_v43 = vld [vmem:[#allocation1 + $0x12] sm:$0xff] }
  0x28   :  { %701 = vmatpush.bf16.msrb.mxu2 %v2456_v44  ;;  %v829_v44 = vld [vmem:[#allocation1 + $0x1b] sm:$0xff] }
  0x29   :  { %714 = vmatpush.bf16.msrb.mxu3 %v2464_v45  ;;  %v2498_v45 = vld [vmem:[%s3080_s1 + $0x2e0] sm:$0xff]  ;;  %1191 = vst [vmem:[#allocation1] ss:$9 sm:$0xff] %v2628_v16  ;;  %v2505_v16 = vld [vmem:[%s3080_s1 + $0x318] sm:$0xff] }
  0x2a   :  { %379 = vmatpush.bf16.msrb.mxu0 %v2439_v46  ;;  %v2506_v46 = vld [vmem:[%s3080_s1 + $0x320] sm:$0xff] }
  0x2b   :  { %689 = vmatpush.bf16.msrb.mxu1 %v2447_v47  ;;  %v2478_v47 = vld [vmem:[%s3080_s1 + $0x240] sm:$0xff] }
  0x2c   :  { %702 = vmatpush.bf16.msrb.mxu2 %v2455_v48  ;;  %v2486_v48 = vld [vmem:[%s3080_s1 + $0x280] sm:$0xff] }
  0x2d   :  { %715 = vmatpush.bf16.msrb.mxu3 %v2463_v49  ;;  %v2497_v49 = vld [vmem:[%s3080_s1 + $0x2d8] sm:$0xff] }
  0x2e   :  { %380 = vmatpush.bf16.msrb.mxu0 %v2438_v50  ;;  %v2513_v50 = vld [vmem:[%s3080_s1 + $0x358] sm:$0xff] }
  0x2f   :  { %690 = vmatpush.bf16.msrb.mxu1 %v2446_v51  ;;  %v2521_v51 = vld [vmem:[%s3080_s1 + $0x398] sm:$0xff] }
  0x30   :  { %703 = vmatpush.bf16.msrb.mxu2 %v2454_v52  ;;  %v2496_v52 = vld [vmem:[%s3080_s1 + $0x2d0] sm:$0xff] }
  0x31   :  { %716 = vmatpush.bf16.msrb.mxu3 %v2462_v53  ;;  %1751 = vmatmul.msk.bf16.vlgmr.msrb.gmra.mxu0 %vm318_vm0, %v2655_v29  ;;  %v2509_v29 = vld [vmem:[%s3080_s1 + $0x338] sm:$0xff]  ;;  %v2504_v53 = vld [vmem:[%s3080_s1 + $0x310] sm:$0xff] }
  0x32   :  { %726 = vmatpush.bf16.msra.mxu0 %v2473_v54  ;;  %v2512_v54 = vld [vmem:[%s3080_s1 + $0x350] sm:$0xff] }
  0x33   :  { %691 = vmatpush.bf16.msrb.mxu1 %v2445_v55  ;;  %v2520_v55 = vld [vmem:[%s3080_s1 + $0x390] sm:$0xff] }
  0x34   :  { %704 = vmatpush.bf16.msrb.mxu2 %v2453_v56  ;;  %v2495_v56 = vld [vmem:[%s3080_s1 + $0x2c8] sm:$0xff] }
  0x35   :  { %717 = vmatpush.bf16.msrb.mxu3 %v2461_v57  ;;  %v2503_v57 = vld [vmem:[%s3080_s1 + $0x308] sm:$0xff] }
  0x36   :  { %727 = vmatpush.bf16.msra.mxu0 %v2472_v58  ;;  %v2511_v58 = vld [vmem:[%s3080_s1 + $0x348] sm:$0xff] }
  0x37   :  { %692 = vmatpush.bf16.msrb.mxu1 %v2444_v59  ;;  %v2519_v59 = vld [vmem:[%s3080_s1 + $0x388] sm:$0xff] }
  0x38   :  { %705 = vmatpush.bf16.msrb.mxu2 %v2452_v1  ;;  %v2537_v1 = vld [vmem:[%s3080_s1 + $0x418] sm:$0xff] }
  0x39   :  { %718 = vmatpush.bf16.msrb.mxu3 %v2460_v2  ;;  %v2545_v2 = vld [vmem:[%s3080_s1 + $0x458] sm:$0xff] }
  0x3a   :  { %728 = vmatpush.bf16.msra.mxu0 %v2471_v3  ;;  %v2517_v3 = vld [vmem:[%s3080_s1 + $0x378] sm:$0xff] }
  0x3b   :  { %693 = vmatpush.bf16.msrb.mxu1 %v2443_v4  ;;  %v2528_v4 = vld [vmem:[%s3080_s1 + $0x3d0] sm:$0xff] }
  0x3c   :  { %706 = vmatpush.bf16.msrb.mxu2 %v2451_v5  ;;  %v2536_v5 = vld [vmem:[%s3080_s1 + $0x410] sm:$0xff] }
  0x3d   :  { %719 = vmatpush.bf16.msrb.mxu3 %v2459_v6  ;;  %v2544_v6 = vld [vmem:[%s3080_s1 + $0x450] sm:$0xff] }
  0x3e   :  { %729 = vmatpush.bf16.msra.mxu0 %v2470_v7  ;;  %v2516_v7 = vld [vmem:[%s3080_s1 + $0x370] sm:$0xff] }
  0x3f   :  { %694 = vmatpush.bf16.msrb.mxu1 %v2442_v8  ;;  %v2527_v8 = vld [vmem:[%s3080_s1 + $0x3c8] sm:$0xff] }
  0x40   :  { %707 = vmatpush.bf16.msrb.mxu2 %v2450_v9  ;;  %v2535_v9 = vld [vmem:[%s3080_s1 + $0x408] sm:$0xff] }
  0x41   :  { %720 = vmatpush.bf16.msrb.mxu3 %v2458_v10  ;;  %v2543_v10 = vld [vmem:[%s3080_s1 + $0x448] sm:$0xff] }
  0x42   :  { %730 = vmatpush.bf16.msra.mxu0 %v2469_v11  ;;  %695 = vmatmul.bf16.vlgmr.msrb.gmra.mxu1 %v460_v60  ;;  %v2494_v60 = vld [vmem:[%s3080_s1 + $0x2c0] sm:$0xff]  ;;  %v2515_v11 = vld [vmem:[%s3080_s1 + $0x368] sm:$0xff] }
  0x43   :  { %743 = vmatpush.bf16.msra.mxu1 %v2477_v12  ;;  %708 = vmatmul.bf16.vlgmr.msrb.gmra.mxu2 %v461_v61  ;;  %v2502_v61 = vld [vmem:[%s3080_s1 + $0x300] sm:$0xff] }
  0x44   :  { %1053 = vmatpush.bf16.msra.mxu2 %v2485_v13  ;;  %721 = vmatmul.bf16.vlgmr.msrb.gmra.mxu3 %v462_v62  ;;  %v2510_v62 = vld [vmem:[%s3080_s1 + $0x340] sm:$0xff] }
  0x45   :  { %1066 = vmatpush.bf16.msra.mxu3 %v2493_v14  ;;  %v2526_v12 = vld [vmem:[%s3080_s1 + $0x3c0] sm:$0xff] }
  0x46   :  { %731 = vmatpush.bf16.msra.mxu0 %v2468_v15  ;;  %v2534_v13 = vld [vmem:[%s3080_s1 + $0x400] sm:$0xff] }
  0x47   :  { %744 = vmatpush.bf16.msra.mxu1 %v2476_v17  ;;  %v2542_v14 = vld [vmem:[%s3080_s1 + $0x440] sm:$0xff]  ;;  %v2525_v17 = vld [vmem:[%s3080_s1 + $0x3b8] sm:$0xff] }
  0x48   :  { %1054 = vmatpush.bf16.msra.mxu2 %v2484_v18  ;;  %v2514_v15 = vld [vmem:[%s3080_s1 + $0x360] sm:$0xff]  ;;  %v2533_v18 = vld [vmem:[%s3080_s1 + $0x3f8] sm:$0xff] }
  0x49   :  { %1067 = vmatpush.bf16.msra.mxu3 %v2492_v19  ;;  %v2541_v19 = vld [vmem:[%s3080_s1 + $0x438] sm:$0xff] }
  0x4a   :  { %732 = vmatpush.bf16.msra.mxu0 %v2467_v20  ;;  %v2549_v20 = vld [vmem:[%s3080_s1 + $0x478] sm:$0xff] }
  0x4b   :  { %745 = vmatpush.bf16.msra.mxu1 %v2475_v21  ;;  %v1192_v21 = vld [vmem:[#allocation1] sm:$0xff] }
  0x4c   :  { %1055 = vmatpush.bf16.msra.mxu2 %v2483_v22  ;;  %v2524_v22 = vld [vmem:[%s3080_s1 + $0x3b0] sm:$0xff] }
  0x4d   :  { %1068 = vmatpush.bf16.msra.mxu3 %v2491_v23  ;;  %v2532_v23 = vld [vmem:[%s3080_s1 + $0x3f0] sm:$0xff] }
  0x4e   :  { %733 = vmatpush.bf16.msra.mxu0 %v2466_v24  ;;  %v2540_v24 = vld [vmem:[%s3080_s1 + $0x430] sm:$0xff] }
  0x4f   :  { %746 = vmatpush.bf16.msra.mxu1 %v2474_v25  ;;  %v2548_v25 = vld [vmem:[%s3080_s1 + $0x470] sm:$0xff] }
  0x50   :  { %1056 = vmatpush.bf16.msra.mxu2 %v2482_v26  ;;  %v2523_v26 = vld [vmem:[%s3080_s1 + $0x3a8] sm:$0xff] }
  0x51   :  { %1069 = vmatpush.bf16.msra.mxu3 %v2490_v27  ;;  %734 = vmatmul.bf16.vlgmr.msra.gmra.mxu0 %v2748_v63  ;;  %v2518_v63 = vld [vmem:[%s3080_s1 + $0x380] sm:$0xff]  ;;  %v2531_v27 = vld [vmem:[%s3080_s1 + $0x3e8] sm:$0xff] }
  0x52   :  { %1079 = vmatpush.bf16.msrb.mxu0 %v2501_v28  ;;  %1968 = vmatmul.msk.bf16.vlgmr.msra.gmra.mxu1 %vm318_vm0, %v2750_v0  ;;  %v2529_v0 = vld [vmem:[%s3080_s1 + $0x3d8] sm:$0xff]  ;;  %v2539_v28 = vld [vmem:[%s3080_s1 + $0x428] sm:$0xff] }
  0x53   :  { %1092 = vmatpush.bf16.msrb.mxu1 %v2509_v29  ;;  %v2547_v29 = vld [vmem:[%s3080_s1 + $0x468] sm:$0xff] }
  0x54   :  { %1057 = vmatpush.bf16.msra.mxu2 %v2481_v30  ;;  %v2522_v30 = vld [vmem:[%s3080_s1 + $0x3a0] sm:$0xff] }
  0x55   :  { %1070 = vmatpush.bf16.msra.mxu3 %v2489_v31  ;;  %v2530_v31 = vld [vmem:[%s3080_s1 + $0x3e0] sm:$0xff] }
  0x56   :  { %1080 = vmatpush.bf16.msrb.mxu0 %v2500_v32  ;;  %v2538_v32 = vld [vmem:[%s3080_s1 + $0x420] sm:$0xff] }
  0x57   :  { %1093 = vmatpush.bf16.msrb.mxu1 %v2508_v33  ;;  %v2546_v33 = vld [vmem:[%s3080_s1 + $0x460] sm:$0xff] }
  0x58   :  { %1058 = vmatpush.bf16.msra.mxu2 %v2480_v34  ;;  %v1193_v34 = vld [vmem:[#allocation1 + $0x9] sm:$0xff] }
  0x59   :  { %1071 = vmatpush.bf16.msra.mxu3 %v2488_v35  ;;  %v1194_v35 = vld [vmem:[#allocation1 + $0x12] sm:$0xff] }
  0x5a   :  { %1081 = vmatpush.bf16.msrb.mxu0 %v2499_v36  ;;  %v1195_v36 = vld [vmem:[#allocation1 + $0x1b] sm:$0xff] }
  0x5b   :  { %1094 = vmatpush.bf16.msrb.mxu1 %v2507_v37  ;;  %v1196_v37 = vld [vmem:[#allocation1 + $0x24] sm:$0xff] }
  0x5c   :  { %1059 = vmatpush.bf16.msra.mxu2 %v2479_v38 }
  0x5d   :  { %1072 = vmatpush.bf16.msra.mxu3 %v2487_v39 }
  0x5e   :  { %1082 = vmatpush.bf16.msrb.mxu0 %v2498_v45 }
  0x5f   :  { %1095 = vmatpush.bf16.msrb.mxu1 %v2506_v46 }
  0x60   :  { %1060 = vmatpush.bf16.msra.mxu2 %v2478_v47 }
  0x61   :  { %1073 = vmatpush.bf16.msra.mxu3 %v2486_v48 }
  0x62   :  { %1083 = vmatpush.bf16.msrb.mxu0 %v2497_v49 }
  0x63   :  { %1096 = vmatpush.bf16.msrb.mxu1 %v2505_v16  ;;  %1061 = vmatmul.bf16.vlgmr.msra.gmra.mxu2 %v826_v40 }
  0x64   :  { %1109 = vmatpush.bf16.msrb.mxu2 %v2513_v50  ;;  %1074 = vmatmul.bf16.vlgmr.msra.gmra.mxu3 %v827_v41 }
  0x65   :  { %1419 = vmatpush.bf16.msrb.mxu3 %v2521_v51 }
  0x66   :  { %1084 = vmatpush.bf16.msrb.mxu0 %v2496_v52 }
  0x67   :  { %1097 = vmatpush.bf16.msrb.mxu1 %v2504_v53 }
  0x68   :  { %1110 = vmatpush.bf16.msrb.mxu2 %v2512_v54 }
  0x69   :  { %1420 = vmatpush.bf16.msrb.mxu3 %v2520_v55 }
  0x6a   :  { %1085 = vmatpush.bf16.msrb.mxu0 %v2495_v56 }
  0x6b   :  { %1098 = vmatpush.bf16.msrb.mxu1 %v2503_v57 }
  0x6c   :  { %1111 = vmatpush.bf16.msrb.mxu2 %v2511_v58 }
  0x6d   :  { %1421 = vmatpush.bf16.msrb.mxu3 %v2519_v59 }
  0x6e   :  { %1086 = vmatpush.bf16.msrb.mxu0 %v2494_v60 }
  0x6f   :  { %1099 = vmatpush.bf16.msrb.mxu1 %v2502_v61 }
  0x70   :  { %1112 = vmatpush.bf16.msrb.mxu2 %v2510_v62 }
  0x71   :  { %1422 = vmatpush.bf16.msrb.mxu3 %v2518_v63  ;;  %1087 = vmatmul.bf16.vlgmr.msrb.gmra.mxu0 %v828_v43 }
  0x72   :  { %1432 = vmatpush.bf16.msra.mxu0 %v2529_v0  ;;  %1100 = vmatmul.bf16.vlgmr.msrb.gmra.mxu1 %v829_v44 }
  0x73   :  { %1445 = vmatpush.bf16.msra.mxu1 %v2537_v1  ;;  %2185 = vmatmul.msk.bf16.vlgmr.msrb.gmra.mxu2 %vm318_vm0, %v2872_v42 }
  0x74   :  { %1458 = vmatpush.bf16.msra.mxu2 %v2545_v2 }
  0x75   :  { %1423 = vmatpush.bf16.msrb.mxu3 %v2517_v3 }
  0x76   :  { %1433 = vmatpush.bf16.msra.mxu0 %v2528_v4 }
  0x77   :  { %1446 = vmatpush.bf16.msra.mxu1 %v2536_v5 }
  0x78   :  { %1459 = vmatpush.bf16.msra.mxu2 %v2544_v6 }
  0x79   :  { %1424 = vmatpush.bf16.msrb.mxu3 %v2516_v7 }
  0x7a   :  { %1434 = vmatpush.bf16.msra.mxu0 %v2527_v8 }
  0x7b   :  { %1447 = vmatpush.bf16.msra.mxu1 %v2535_v9 }
  0x7c   :  { %1460 = vmatpush.bf16.msra.mxu2 %v2543_v10 }
  0x7d   :  { %1425 = vmatpush.bf16.msrb.mxu3 %v2515_v11 }
  0x7e   :  { %1435 = vmatpush.bf16.msra.mxu0 %v2526_v12 }
  0x7f   :  { %1448 = vmatpush.bf16.msra.mxu1 %v2534_v13 }
  0x80   :  { %1461 = vmatpush.bf16.msra.mxu2 %v2542_v14 }
  0x81   :  { %1426 = vmatpush.bf16.msrb.mxu3 %v2514_v15 }
  0x82   :  { %1436 = vmatpush.bf16.msra.mxu0 %v2525_v17 }
  0x83   :  { %1449 = vmatpush.bf16.msra.mxu1 %v2533_v18 }
  0x84   :  { %1462 = vmatpush.bf16.msra.mxu2 %v2541_v19  ;;  %1427 = vmatmul.bf16.vlgmr.msrb.gmra.mxu3 %v1192_v21 }
  0x85   :  { %1475 = vmatpush.bf16.msra.mxu3 %v2549_v20 }
  0x86   :  { %1437 = vmatpush.bf16.msra.mxu0 %v2524_v22 }
  0x87   :  { %1450 = vmatpush.bf16.msra.mxu1 %v2532_v23 }
  0x88   :  { %1463 = vmatpush.bf16.msra.mxu2 %v2540_v24 }
  0x89   :  { %1476 = vmatpush.bf16.msra.mxu3 %v2548_v25 }
  0x8a   :  { %1438 = vmatpush.bf16.msra.mxu0 %v2523_v26 }
  0x8b   :  { %1451 = vmatpush.bf16.msra.mxu1 %v2531_v27 }
  0x8c   :  { %1464 = vmatpush.bf16.msra.mxu2 %v2539_v28 }
  0x8d   :  { %1477 = vmatpush.bf16.msra.mxu3 %v2547_v29 }
  0x8e   :  { %1439 = vmatpush.bf16.msra.mxu0 %v2522_v30 }
  0x8f   :  { %1452 = vmatpush.bf16.msra.mxu1 %v2530_v31 }
  0x90   :  { %1465 = vmatpush.bf16.msra.mxu2 %v2538_v32 }
  0x91   :  { %1478 = vmatpush.bf16.msra.mxu3 %v2546_v33  ;;  %1440 = vmatmul.bf16.vlgmr.msra.gmra.mxu0 %v1193_v34 }
  0x92   :  { %1453 = vmatmul.bf16.vlgmr.msra.gmra.mxu1 %v1194_v35 }
  0x93   :  { %1466 = vmatmul.bf16.vlgmr.msra.gmra.mxu2 %v1195_v36 }
  0x94   :  { %2402 = vmatmul.msk.bf16.vlgmr.msra.gmra.mxu3 %vm318_vm0, %v1196_v37 }
  0x9e   :  { %v330_v38 = vpop.f32.mrf.mxu0 }
  0x9f   :  { %v343_v39 = vpop.f32.mrf.mxu1 }
  0xa0   :  { %v344_v40 = vadd.f32 %v343_v39, %v330_v38 }
  0xa6   :  { %v356_v41 = vpop.f32.mrf.mxu2  ;;  %v332_v44 = vpop.f32.mrf.mxu0 }
  0xa7   :  { %v357_v42 = vadd.f32 %v356_v41, %v344_v40  ;;  %v369_v43 = vpop.f32.mrf.mxu3  ;;  %v345_v46 = vpop.f32.mrf.mxu1 }
  0xa9   :  { %v370_v45 = vadd.f32 %v369_v43, %v357_v42 }
  0xae   :  { %v358_v47 = vpop.f32.mrf.mxu2  ;;  %v382_v49 = vpop.f32.mrf.mxu0 }
  0xaf   :  { %v371_v48 = vpop.f32.mrf.mxu3  ;;  %v3034_v16 = vadd.f32 %v382_v49, %v370_v45 }
  0xb1   :  { %v1485_v18 = vsel %vm1484_vm1, %v3034_v16, 0.0 }
  0xb2   :  { %v1486_v21 = vrot.slane %v1485_v18, 4 }
  0xb4   :  { %v1487_v28 = vadd.f32 %v1486_v21, %v1485_v18 }
  0xb6   :  { %v384_v50 = vpop.f32.mrf.mxu0  ;;  %v1488_v32 = vrot.slane %v1487_v28, 2 }
  0xb8   :  { %v1489_v41 = vadd.f32 %v1488_v32, %v1487_v28 }
  0xba   :  { %v1490_v46 = vrot.slane %v1489_v41, 1 }
  0xbf   :  { %v696_v51 = vpop.f32.mrf.mxu1 }
  0xc6   :  { %v709_v52 = vpop.f32.mrf.mxu2 }
  0xc7   :  { %v710_v53 = vadd.f32 %v709_v52, %v696_v51  ;;  %v722_v54 = vpop.f32.mrf.mxu3  ;;  %v698_v55 = vpop.f32.mrf.mxu1 }
  0xc9   :  { %v723_v56 = vadd.f32 %v722_v54, %v710_v53  ;;  %v1491_v53 = vadd.f32 %v1490_v46, %v1489_v41 }
  0xce   :  { %v735_v57 = vpop.f32.mrf.mxu0  ;;  %v711_v58 = vpop.f32.mrf.mxu2 }
  0xcf   :  { %v724_v59 = vpop.f32.mrf.mxu3  ;;  %v748_v60 = vpop.f32.mrf.mxu1  ;;  %v736_v10 = vadd.f32 %v735_v57, %v723_v56 }
  0xd1   :  { %v3036_v13 = vadd.f32 %v748_v60, %v736_v10 }
  0xd3   :  { %v1492_v17 = vsel %vm1484_vm1, %v3036_v13, 0.0 }
  0xd4   :  { %v1493_v20 = vrot.slane %v1492_v17, 4 }
  0xd6   :  { %v737_v61 = vpop.f32.mrf.mxu0  ;;  %v1494_v25 = vadd.f32 %v1493_v20, %v1492_v17 }
  0xd7   :  { %v750_v62 = vpop.f32.mrf.mxu1 }
  0xd8   :  { %v1495_v30 = vrot.slane %v1494_v25, 2 }
  0xda   :  { %v1496_v38 = vadd.f32 %v1495_v30, %v1494_v25 }
  0xdc   :  { %v1497_v44 = vrot.slane %v1496_v38, 1 }
  0xde   :  { %v1498_v50 = vadd.f32 %v1497_v44, %v1496_v38 }
  0xe0   :  { %v1499_v56 = vadd.f32 %v1498_v50, %v1491_v53 }
  0xe6   :  { %v1062_v63 = vpop.f32.mrf.mxu2 }
  0xe7   :  { %v1075_v0 = vpop.f32.mrf.mxu3 }
  0xe8   :  { %v1076_v6 = vadd.f32 %v1075_v0, %v1062_v63 }
  0xee   :  { %v1088_v1 = vpop.f32.mrf.mxu0  ;;  %v1064_v2 = vpop.f32.mrf.mxu2 }
  0xef   :  { %v1077_v3 = vpop.f32.mrf.mxu3  ;;  %v1101_v4 = vpop.f32.mrf.mxu1  ;;  %v1089_v9 = vadd.f32 %v1088_v1, %v1076_v6 }
  0xf1   :  { %v1102_v11 = vadd.f32 %v1101_v4, %v1089_v9 }
  0xf6   :  { %v1090_v5 = vpop.f32.mrf.mxu0  ;;  %v1114_v8 = vpop.f32.mrf.mxu2 }
  0xf7   :  { %v1103_v7 = vpop.f32.mrf.mxu1  ;;  %v3038_v14 = vadd.f32 %v1114_v8, %v1102_v11 }
  0xf9   :  { %v1500_v19 = vsel %vm1484_vm1, %v3038_v14, 0.0 }
  0xfa   :  { %v1501_v22 = vrot.slane %v1500_v19, 4 }
  0xfc   :  { %v1502_v29 = vadd.f32 %v1501_v22, %v1500_v19 }
  0xfe   :  { %v1116_v12 = vpop.f32.mrf.mxu2  ;;  %v1503_v33 = vrot.slane %v1502_v29, 2 }
 0x100   :  { %v1504_v42 = vadd.f32 %v1503_v33, %v1502_v29 }
 0x102   :  { %v1505_v47 = vrot.slane %v1504_v42, 1 }
 0x104   :  { %v1506_v54 = vadd.f32 %v1505_v47, %v1504_v42 }
 0x106   :  { %v1507_v58 = vadd.f32 %v1506_v54, %v1499_v56 }
 0x107   :  { %v1428_v15 = vpop.f32.mrf.mxu3 }
 0x10e   :  { %v1441_v23 = vpop.f32.mrf.mxu0 }
 0x10f   :  { %v1454_v24 = vpop.f32.mrf.mxu1  ;;  %v1430_v26 = vpop.f32.mrf.mxu3  ;;  %v1442_v27 = vadd.f32 %v1441_v23, %v1428_v15 }
 0x111   :  { %v1455_v31 = vadd.f32 %v1454_v24, %v1442_v27 }
 0x116   :  { %v1467_v34 = vpop.f32.mrf.mxu2  ;;  %v1443_v36 = vpop.f32.mrf.mxu0 }
 0x117   :  { %v1468_v35 = vadd.f32 %v1467_v34, %v1455_v31  ;;  %v1456_v37 = vpop.f32.mrf.mxu1  ;;  %v1480_v39 = vpop.f32.mrf.mxu3 }
 0x119   :  { %v3046_v40 = vadd.f32 %v1480_v39, %v1468_v35 }
 0x11b   :  { %v1508_v43 = vsel %vm1484_vm1, %v3046_v40, 0.0 }
 0x11c   :  { %v1509_v45 = vrot.slane %v1508_v43, 4 }
 0x11e   :  { %v1510_v48 = vadd.f32 %v1509_v45, %v1508_v43  ;;  %v1469_v49 = vpop.f32.mrf.mxu2 }
 0x11f   :  { %v1482_v52 = vpop.f32.mrf.mxu3 }
 0x120   :  { %v1511_v51 = vrot.slane %v1510_v48, 2  ;;  %v1570_v52 = vld [vmem:[%s3083_s3] sm:$0x1] }
 0x122   :  { %v1512_v55 = vadd.f32 %v1511_v51, %v1510_v48  ;;  %v1556_v48 = vld [vmem:[%s3082_s2] sm:$0x1] }
 0x124   :  { %v1513_v57 = vrot.slane %v1512_v55, 1 }
 0x126   :  { %v1514_v59 = vadd.f32 %v1513_v57, %v1512_v55 }
 0x128   :  { %v1515_v60 = vadd.f32 %v1514_v59, %v1507_v58 }
 0x12a   :  { %v1516_v61 = vmul.f32 0.125, %v1515_v60 }
 0x12c   :  { %v1517_v62 = vsub.f32 %v3034_v16, %v1516_v61  ;;  %v1526_v63 = vsub.f32 %v3036_v13, %v1516_v61  ;;  %v1536_v0 = vsub.f32 %v3038_v14, %v1516_v61  ;;  %v1546_v1 = vsub.f32 %v3046_v40, %v1516_v61 }
 0x12e   :  { %v1518_v2 = vmul.f32 %v1517_v62, %v1517_v62  ;;  %v1527_v3 = vmul.f32 %v1526_v63, %v1526_v63  ;;  %v1537_v4 = vmul.f32 %v1536_v0, %v1536_v0  ;;  %v1547_v5 = vmul.f32 %v1546_v1, %v1546_v1 }
 0x130   :  { %v1519_v6 = vsel %vm1484_vm1, %v1518_v2, 0.0  ;;  %v1528_v7 = vsel %vm1484_vm1, %v1527_v3, 0.0  ;;  %v1538_v8 = vsel %vm1484_vm1, %v1537_v4, 0.0  ;;  %v1548_v9 = vsel %vm1484_vm1, %v1547_v5, 0.0 }
 0x131   :  { %v1520_v10 = vrot.slane %v1519_v6, 4  ;;  %v1529_v11 = vrot.slane %v1528_v7, 4  ;;  %v1539_v12 = vrot.slane %v1538_v8, 4  ;;  %v1549_v15 = vrot.slane %v1548_v9, 4 }
 0x133   :  { %v1521_v17 = vadd.f32 %v1520_v10, %v1519_v6  ;;  %v1530_v18 = vadd.f32 %v1529_v11, %v1528_v7  ;;  %v1540_v19 = vadd.f32 %v1539_v12, %v1538_v8  ;;  %v1550_v20 = vadd.f32 %v1549_v15, %v1548_v9 }
 0x135   :  { %v1522_v21 = vrot.slane %v1521_v17, 2  ;;  %v1531_v22 = vrot.slane %v1530_v18, 2  ;;  %v1541_v23 = vrot.slane %v1540_v19, 2  ;;  %v1551_v24 = vrot.slane %v1550_v20, 2 }
 0x137   :  { %v1523_v25 = vadd.f32 %v1522_v21, %v1521_v17  ;;  %v1532_v26 = vadd.f32 %v1531_v22, %v1530_v18  ;;  %v1542_v27 = vadd.f32 %v1541_v23, %v1540_v19  ;;  %v1552_v28 = vadd.f32 %v1551_v24, %v1550_v20 }
 0x139   :  { %v1524_v29 = vrot.slane %v1523_v25, 1  ;;  %v1533_v30 = vrot.slane %v1532_v26, 1  ;;  %v1543_v31 = vrot.slane %v1542_v27, 1  ;;  %v1553_v34 = vrot.slane %v1552_v28, 1 }
 0x13b   :  { %v1525_v32 = vadd.f32 %v1524_v29, %v1523_v25  ;;  %v1534_v33 = vadd.f32 %v1533_v30, %v1532_v26  ;;  %v1544_v36 = vadd.f32 %v1543_v31, %v1542_v27  ;;  %v1554_v38 = vadd.f32 %v1553_v34, %v1552_v28 }
 0x13d   :  { %v1535_v35 = vadd.f32 %v1534_v33, %v1525_v32 }
 0x13f   :  { %v1545_v37 = vadd.f32 %v1544_v36, %v1535_v35 }
 0x141   :  { %v1555_v39 = vadd.f32 %v1554_v38, %v1545_v37 }
 0x143   :  { %v1557_v41 = vmul.f32 0.125, %v1555_v39 }
 0x145   :  { %v1558_v42 = vadd.f32 1e-05, %v1557_v41 }
 0x147   :  { %2550 = vrsqrt.f32 %v1558_v42  ;;  %vm1565_vm3 = vweird.f32 %v1558_v42 }
 0x14d   :  { %v2551_v43 = vpop.eup %2550 }
 0x14e   :  { %v1560_v44 = vmul.f32 %v2551_v43, %v1558_v42  ;;  %vm1566_vm2 = vweird.f32 %v2551_v43 }
 0x14f   :  { %vm1567_vm4 = vmor %vm1565_vm3, %vm1566_vm2 }
 0x150   :  { %v1561_v45 = vmul.f32 %v2551_v43, %v1560_v44 }
 0x152   :  { %v1562_v46 = vmul.f32 0.5, %v1561_v45 }
 0x154   :  { %v1563_v47 = vsub.f32 1.5, %v1562_v46 }
 0x156   :  { %v1564_v49 = vmul.f32 %v2551_v43, %v1563_v47 }
 0x158   :  { %v1568_v50 = vsel %vm1567_vm4, %v2551_v43, %v1564_v49 }
 0x159   :  { %v1569_v51 = vmul.f32 %v1568_v50, %v1556_v48 }
 0x15b   :  { %v1571_v53 = vmul.f32 %v1569_v51, %v1516_v61  ;;  %v1574_v54 = vperm.slane %v1569_v51, 0 }
 0x15d   :  { %v1572_v55 = vsub.f32 %v1570_v52, %v1571_v53  ;;  %v1576_v56 = vmul.f32 %v1574_v54, %v3034_v16  ;;  %v1585_v58 = vmul.f32 %v1574_v54, %v3036_v13  ;;  %v1591_v59 = vmul.f32 %v1574_v54, %v3038_v14 }
 0x15e   :  { %v1597_v60 = vmul.f32 %v1574_v54, %v3046_v40 }
 0x15f   :  { %v1578_v57 = vperm.slane %v1572_v55, 0 }
 0x161   :  { %v1580_v62 = vadd.f32 %v1578_v57, %v1576_v56  ;;  %v1586_v63 = vadd.f32 %v1585_v58, %v1578_v57  ;;  %v1592_v0 = vadd.f32 %v1591_v59, %v1578_v57  ;;  %v1598_v1 = vadd.f32 %v1597_v60, %v1578_v57 }
 0x163   :  { %v1581_v2 = vmax.f32 %v1580_v62, 0.0  ;;  %v1587_v3 = vmax.f32 %v1586_v63, 0.0  ;;  %v1593_v4 = vmax.f32 %v1592_v0, 0.0  ;;  %v1599_v5 = vmax.f32 %v1598_v1, 0.0 }
 0x165   :  { %v1582_v61 = vpack.c.bf16 %v1581_v2, %v1581_v2  ;;  %v1588_v6 = vpack.c.bf16 %v1587_v3, %v1587_v3  ;;  %v1594_v7 = vpack.c.bf16 %v1593_v4, %v1593_v4  ;;  %v1600_v16 = vpack.c.bf16 %v1599_v5, %v1599_v5 }
 0x167   :  { %1584 = vst.msk [vmem:[%s3084_s4] sm:$0x1] %vm1583_vm5, %v1582_v61 }
 0x168   :  { %2403 = vst.msk [vmem:[%s3084_s4 + $0x1] sm:$0x1] %vm1583_vm5, %v1588_v6 }
 0x169   :  { %2404 = vst.msk [vmem:[%s3084_s4 + $0x2] sm:$0x1] %vm1583_vm5, %v1594_v7 }
 0x16a   :  { %2405 = vst.msk [vmem:[%s3084_s4 + $0x3] sm:$0x1] %vm1583_vm5, %v1600_v16 }

// kernel: memae_forward.13
= control target key start
LH: loop header
LB: loop body
LE: loop exit
PB: predicated region body
PF: predicated region fallthrough
CT: control target
= control target key end

     0   :  { %vm430_vm0 = vcmask 523264   ;;  %s9018_s0 = inlined_call_operand.vmem [shape: bf16[2,64], index: 0, kind: input, shape index: {}]   ;;  %s9019_s1 = inlined_call_operand.vmem [shape: bf16[64,2048], index: 1, kind: input, shape index: {}]   ;;  %s9020_s2 = inlined_call_operand.vmem [shape: f32[1,2048], index: 2, kind: input, shape index: {}]   ;;  %s9021_s3 = inlined_call_operand.vmem [shape: f32[1,2048], index: 3, kind: input, shape index: {}]   ;;  %s9022_s4 = inlined_call_operand.vmem [shape: bf16[2048,8], index: 4, kind: input, shape index: {}]   ;;  %s9023_s5 = inlined_call_operand.vmem [shape: f32[1,8], index: 5, kind: input, shape index: {}]   ;;  %s9024_s6 = inlined_call_operand.vmem [shape: f32[16,8], index: 6, kind: input, shape index: {}]   ;;  %s9025_s7 = inlined_call_operand.vmem [shape: bf16[8,2048], index: 7, kind: input, shape index: {}]   ;;  %s9026_s8 = inlined_call_operand.vmem [shape: f32[1,2048], index: 8, kind: input, shape index: {}]   ;;  %s9027_s9 = inlined_call_operand.vmem [shape: f32[1,2048], index: 9, kind: input, shape index: {}]   ;;  %s9028_s10 = inlined_call_operand.vmem [shape: bf16[2048,64], index: 10, kind: input, shape index: {}]   ;;  %s9029_s11 = inlined_call_operand.vmem [shape: f32[1,64], index: 11, kind: input, shape index: {}]   ;;  %s9030_s12 = inlined_call_operand.vmem [shape: bf16[2,64], index: 12, kind: output, shape index: {0}]   ;;  %s9031_s13 = inlined_call_operand.hbm [shape: f32[2,16], index: 13, kind: output, shape index: {1}]  }
   0x1   :  { %v4988_v0 = vld [vmem:[%s9019_s1 + $0x180] sm:$0xf]  ;;  %v6157_v2 = vld [vmem:[%s9019_s1 + $0x184] sm:$0xf]  ;;  %v4996_v5 = vld [vmem:[%s9019_s1 + $0x188] sm:$0xf] }
   0x2   :  { %v6165_v1 = vld [vmem:[%s9019_s1 + $0x1bc] sm:$0xf0]  ;;  %v4990_v4 = vld [vmem:[%s9019_s1 + $0x1c0] sm:$0xf0]  ;;  %v6166_v6 = vld [vmem:[%s9019_s1 + $0x1c4] sm:$0xf0] }
   0x3   :  { %v4989_v3 = vor.u32 %v6165_v1, %v4988_v0  ;;  %v4993_v7 = vor.u32 %v6157_v2, %v4990_v4  ;;  %v4997_v8 = vor.u32 %v6166_v6, %v4996_v5  ;;  %v6158_v9 = vld [vmem:[%s9019_s1 + $0x18c] sm:$0xf]  ;;  %v4924_v11 = vld [vmem:[%s9019_s1 + $0x100] sm:$0xf]  ;;  %v6141_v14 = vld [vmem:[%s9019_s1 + $0x104] sm:$0xf] }
   0x4   :  { %v4998_v10 = vld [vmem:[%s9019_s1 + $0x1c8] sm:$0xf0]  ;;  %v6149_v13 = vld [vmem:[%s9019_s1 + $0x13c] sm:$0xf0]  ;;  %v4926_v15 = vld [vmem:[%s9019_s1 + $0x140] sm:$0xf0] }
   0x5   :  { %438 = vmatpush.bf16.msra.mxu0 %v4989_v3  ;;  %v5001_v12 = vor.u32 %v6158_v9, %v4998_v10  ;;  %451 = vmatpush.bf16.msra.mxu1 %v4993_v7  ;;  %v4925_v16 = vor.u32 %v6149_v13, %v4924_v11  ;;  %v4929_v17 = vor.u32 %v6141_v14, %v4926_v15  ;;  %v4932_v18 = vld [vmem:[%s9019_s1 + $0x108] sm:$0xf]  ;;  %v6142_v20 = vld [vmem:[%s9019_s1 + $0x10c] sm:$0xf]  ;;  %v4860_v23 = vld [vmem:[%s9019_s1 + $0x80] sm:$0xf] }
   0x6   :  { %464 = vmatpush.bf16.msra.mxu2 %v4997_v8  ;;  %v6150_v19 = vld [vmem:[%s9019_s1 + $0x144] sm:$0xf0]  ;;  %v4934_v22 = vld [vmem:[%s9019_s1 + $0x148] sm:$0xf0]  ;;  %v6133_v24 = vld [vmem:[%s9019_s1 + $0xbc] sm:$0xf0] }
   0x7   :  { %477 = vmatpush.bf16.msra.mxu3 %v5001_v12  ;;  %v4933_v21 = vor.u32 %v6150_v19, %v4932_v18  ;;  %v4937_v25 = vor.u32 %v6142_v20, %v4934_v22  ;;  %v6125_v26 = vld [vmem:[%s9019_s1 + $0x84] sm:$0xf]  ;;  %v4868_v28 = vld [vmem:[%s9019_s1 + $0x88] sm:$0xf]  ;;  %v4861_v29 = vor.u32 %v6133_v24, %v4860_v23  ;;  %v6126_v31 = vld [vmem:[%s9019_s1 + $0x8c] sm:$0xf] }
   0x8   :  { %v4862_v27 = vld [vmem:[%s9019_s1 + $0xc0] sm:$0xf0]  ;;  %v6134_v30 = vld [vmem:[%s9019_s1 + $0xc4] sm:$0xf0]  ;;  %v4870_v32 = vld [vmem:[%s9019_s1 + $0xc8] sm:$0xf0] }
   0x9   :  { %439 = vmatpush.bf16.msra.mxu0 %v4925_v16  ;;  %452 = vmatpush.bf16.msra.mxu1 %v4929_v17  ;;  %v4865_v33 = vor.u32 %v6125_v26, %v4862_v27  ;;  %v4869_v34 = vor.u32 %v6134_v30, %v4868_v28  ;;  %v4796_v35 = vld [vmem:[%s9019_s1] sm:$0xf]  ;;  %v6109_v37 = vld [vmem:[%s9019_s1 + $0x4] sm:$0xf]  ;;  %v4873_v38 = vor.u32 %v6126_v31, %v4870_v32  ;;  %v4804_v40 = vld [vmem:[%s9019_s1 + $0x8] sm:$0xf] }
   0xa   :  { %465 = vmatpush.bf16.msra.mxu2 %v4933_v21  ;;  %v6117_v36 = vld [vmem:[%s9019_s1 + $0x3c] sm:$0xf0]  ;;  %v4798_v39 = vld [vmem:[%s9019_s1 + $0x40] sm:$0xf0]  ;;  %v6118_v41 = vld [vmem:[%s9019_s1 + $0x44] sm:$0xf0] }
   0xb   :  { %478 = vmatpush.bf16.msra.mxu3 %v4937_v25  ;;  %v6110_v42 = vld [vmem:[%s9019_s1 + $0xc] sm:$0xf]  ;;  %v4797_v44 = vor.u32 %v6117_v36, %v4796_v35  ;;  %v5004_v45 = vld [vmem:[%s9019_s1 + $0x190] sm:$0xf]  ;;  %v4801_v47 = vor.u32 %v6109_v37, %v4798_v39  ;;  %v4805_v48 = vor.u32 %v6118_v41, %v4804_v40  ;;  %v6159_v49 = vld [vmem:[%s9019_s1 + $0x194] sm:$0xf] }
   0xc   :  { %v4806_v43 = vld [vmem:[%s9019_s1 + $0x48] sm:$0xf0]  ;;  %v6167_v46 = vld [vmem:[%s9019_s1 + $0x1cc] sm:$0xf0]  ;;  %v5006_v50 = vld [vmem:[%s9019_s1 + $0x1d0] sm:$0xf0] }
   0xd   :  { %440 = vmatpush.bf16.msra.mxu0 %v4861_v29  ;;  %453 = vmatpush.bf16.msra.mxu1 %v4865_v33  ;;  %v4809_v51 = vor.u32 %v6110_v42, %v4806_v43  ;;  %v6716_v52 = vld [vmem:[%s9018_s0] sm:$0x1]  ;;  %v5005_v53 = vor.u32 %v6167_v46, %v5004_v45  ;;  %v5012_v54 = vld [vmem:[%s9019_s1 + $0x198] sm:$0xf]  ;;  %v6160_v56 = vld [vmem:[%s9019_s1 + $0x19c] sm:$0xf]  ;;  %v5009_v57 = vor.u32 %v6159_v49, %v5006_v50 }
   0xe   :  { %466 = vmatpush.bf16.msra.mxu2 %v4869_v34  ;;  %v6168_v55 = vld [vmem:[%s9019_s1 + $0x1d4] sm:$0xf0]  ;;  %v5014_v58 = vld [vmem:[%s9019_s1 + $0x1d8] sm:$0xf0]  ;;  %v4940_v59 = vld [vmem:[%s9019_s1 + $0x110] sm:$0xf] }
   0xf   :  { %479 = vmatpush.bf16.msra.mxu3 %v4873_v38  ;;  %v6151_v60 = vld [vmem:[%s9019_s1 + $0x14c] sm:$0xf0]  ;;  %v6143_v61 = vld [vmem:[%s9019_s1 + $0x114] sm:$0xf]  ;;  %v5013_v63 = vor.u32 %v6168_v55, %v5012_v54  ;;  %v5017_v0 = vor.u32 %v6160_v56, %v5014_v58  ;;  %v4948_v2 = vld [vmem:[%s9019_s1 + $0x118] sm:$0xf] }
  0x10   :  { %v4942_v62 = vld [vmem:[%s9019_s1 + $0x150] sm:$0xf0]  ;;  %v4941_v1 = vor.u32 %v6151_v60, %v4940_v59  ;;  %v6152_v3 = vld [vmem:[%s9019_s1 + $0x154] sm:$0xf0]  ;;  %v6144_v4 = vld [vmem:[%s9019_s1 + $0x11c] sm:$0xf] }
  0x11   :  { %441 = vmatpush.bf16.msra.mxu0 %v4797_v44  ;;  %454 = vmatpush.bf16.msra.mxu1 %v4801_v47  ;;  %v4945_v5 = vor.u32 %v6143_v61, %v4942_v62  ;;  %v4950_v6 = vld [vmem:[%s9019_s1 + $0x158] sm:$0xf0]  ;;  %v4876_v7 = vld [vmem:[%s9019_s1 + $0x90] sm:$0xf]  ;;  %v6127_v9 = vld [vmem:[%s9019_s1 + $0x94] sm:$0xf]  ;;  %v4949_v11 = vor.u32 %v6152_v3, %v4948_v2 }
  0x12   :  { %467 = vmatpush.bf16.msra.mxu2 %v4805_v48  ;;  %v6135_v8 = vld [vmem:[%s9019_s1 + $0xcc] sm:$0xf0]  ;;  %v4878_v10 = vld [vmem:[%s9019_s1 + $0xd0] sm:$0xf0]  ;;  %v4884_v12 = vld [vmem:[%s9019_s1 + $0x98] sm:$0xf]  ;;  %v4953_v13 = vor.u32 %v6144_v4, %v4950_v6 }
  0x13   :  { %480 = vmatpush.bf16.msra.mxu3 %v4809_v51  ;;  %v4877_v14 = vor.u32 %v6135_v8, %v4876_v7  ;;  %v6136_v15 = vld [vmem:[%s9019_s1 + $0xd4] sm:$0xf0]  ;;  %v6128_v16 = vld [vmem:[%s9019_s1 + $0x9c] sm:$0xf]  ;;  %v4881_v18 = vor.u32 %v6127_v9, %v4878_v10  ;;  %v4812_v19 = vld [vmem:[%s9019_s1 + $0x10] sm:$0xf] }
  0x14   :  { %5050 = vmatmul.msk.bf16.vlgmr.msra.gmra.mxu0 %vm430_vm0, %v6716_v52  ;;  %5051 = vmatmul.msk.bf16.vlgmr.msra.gmra.mxu1 %vm430_vm0, %v6716_v52  ;;  %v4886_v17 = vld [vmem:[%s9019_s1 + $0xd8] sm:$0xf0]  ;;  %v6119_v20 = vld [vmem:[%s9019_s1 + $0x4c] sm:$0xf0]  ;;  %v6111_v21 = vld [vmem:[%s9019_s1 + $0x14] sm:$0xf]  ;;  %v4885_v25 = vor.u32 %v6136_v15, %v4884_v12 }
  0x15   :  { %490 = vmatpush.bf16.msrb.mxu0 %v5005_v53  ;;  %503 = vmatpush.bf16.msrb.mxu1 %v5009_v57  ;;  %v4814_v22 = vld [vmem:[%s9019_s1 + $0x50] sm:$0xf0]  ;;  %v5020_v23 = vld [vmem:[%s9019_s1 + $0x1a0] sm:$0xf]  ;;  %v6161_v26 = vld [vmem:[%s9019_s1 + $0x1a4] sm:$0xf]  ;;  %v4889_v28 = vor.u32 %v6128_v16, %v4886_v17  ;;  %v4813_v29 = vor.u32 %v6119_v20, %v4812_v19 }
  0x16   :  { %5052 = vmatmul.msk.bf16.vlgmr.msra.gmra.mxu2 %vm430_vm0, %v6716_v52  ;;  %5053 = vmatmul.msk.bf16.vlgmr.msra.gmra.mxu3 %vm430_vm0, %v6716_v52  ;;  %v6169_v24 = vld [vmem:[%s9019_s1 + $0x1dc] sm:$0xf0]  ;;  %v5022_v27 = vld [vmem:[%s9019_s1 + $0x1e0] sm:$0xf0]  ;;  %v4820_v30 = vld [vmem:[%s9019_s1 + $0x18] sm:$0xf]  ;;  %v4817_v33 = vor.u32 %v6111_v21, %v4814_v22 }
  0x17   :  { %516 = vmatpush.bf16.msrb.mxu2 %v5013_v63  ;;  %529 = vmatpush.bf16.msrb.mxu3 %v5017_v0  ;;  %v6120_v31 = vld [vmem:[%s9019_s1 + $0x54] sm:$0xf0]  ;;  %v6112_v32 = vld [vmem:[%s9019_s1 + $0x1c] sm:$0xf]  ;;  %v5021_v35 = vor.u32 %v6169_v24, %v5020_v23  ;;  %v5028_v36 = vld [vmem:[%s9019_s1 + $0x1a8] sm:$0xf]  ;;  %v5025_v38 = vor.u32 %v6161_v26, %v5022_v27 }
  0x18   :  { %v4822_v34 = vld [vmem:[%s9019_s1 + $0x58] sm:$0xf0]  ;;  %v6170_v37 = vld [vmem:[%s9019_s1 + $0x1e4] sm:$0xf0]  ;;  %v6162_v39 = vld [vmem:[%s9019_s1 + $0x1ac] sm:$0xf]  ;;  %v4821_v41 = vor.u32 %v6120_v31, %v4820_v30 }
  0x19   :  { %491 = vmatpush.bf16.msrb.mxu0 %v4941_v1  ;;  %504 = vmatpush.bf16.msrb.mxu1 %v4945_v5  ;;  %v5030_v40 = vld [vmem:[%s9019_s1 + $0x1e8] sm:$0xf0]  ;;  %v4825_v42 = vor.u32 %v6112_v32, %v4822_v34  ;;  %v5029_v43 = vor.u32 %v6170_v37, %v5028_v36  ;;  %v4956_v44 = vld [vmem:[%s9019_s1 + $0x120] sm:$0xf]  ;;  %v6145_v46 = vld [vmem:[%s9019_s1 + $0x124] sm:$0xf] }
  0x1a   :  { %v6153_v45 = vld [vmem:[%s9019_s1 + $0x15c] sm:$0xf0]  ;;  %v5033_v47 = vor.u32 %v6162_v39, %v5030_v40  ;;  %v4958_v48 = vld [vmem:[%s9019_s1 + $0x160] sm:$0xf0]  ;;  %v4964_v49 = vld [vmem:[%s9019_s1 + $0x128] sm:$0xf] }
  0x1b   :  { %517 = vmatpush.bf16.msrb.mxu2 %v4949_v11  ;;  %530 = vmatpush.bf16.msrb.mxu3 %v4953_v13  ;;  %v6154_v50 = vld [vmem:[%s9019_s1 + $0x164] sm:$0xf0]  ;;  %v6146_v51 = vld [vmem:[%s9019_s1 + $0x12c] sm:$0xf]  ;;  %v4957_v54 = vor.u32 %v6153_v45, %v4956_v44  ;;  %v4961_v55 = vor.u32 %v6145_v46, %v4958_v48  ;;  %v4892_v57 = vld [vmem:[%s9019_s1 + $0xa0] sm:$0xf] }
  0x1c   :  { %v4966_v53 = vld [vmem:[%s9019_s1 + $0x168] sm:$0xf0]  ;;  %v4965_v56 = vor.u32 %v6154_v50, %v4964_v49  ;;  %v6137_v58 = vld [vmem:[%s9019_s1 + $0xdc] sm:$0xf0]  ;;  %v6129_v59 = vld [vmem:[%s9019_s1 + $0xa4] sm:$0xf] }
  0x1d   :  { %492 = vmatpush.bf16.msrb.mxu0 %v4877_v14  ;;  %505 = vmatpush.bf16.msrb.mxu1 %v4881_v18  ;;  %v4969_v60 = vor.u32 %v6146_v51, %v4966_v53  ;;  %v4894_v61 = vld [vmem:[%s9019_s1 + $0xe0] sm:$0xf0]  ;;  %v4900_v62 = vld [vmem:[%s9019_s1 + $0xa8] sm:$0xf]  ;;  %v6130_v0 = vld [vmem:[%s9019_s1 + $0xac] sm:$0xf]  ;;  %v4893_v2 = vor.u32 %v6137_v58, %v4892_v57 }
  0x1e   :  { %v6138_v63 = vld [vmem:[%s9019_s1 + $0xe4] sm:$0xf0]  ;;  %v4902_v1 = vld [vmem:[%s9019_s1 + $0xe8] sm:$0xf0]  ;;  %v4828_v3 = vld [vmem:[%s9019_s1 + $0x20] sm:$0xf]  ;;  %v4897_v5 = vor.u32 %v6129_v59, %v4894_v61 }
  0x1f   :  { %518 = vmatpush.bf16.msrb.mxu2 %v4885_v25  ;;  %531 = vmatpush.bf16.msrb.mxu3 %v4889_v28  ;;  %v6121_v4 = vld [vmem:[%s9019_s1 + $0x5c] sm:$0xf0]  ;;  %v4901_v6 = vor.u32 %v6138_v63, %v4900_v62  ;;  %v6113_v7 = vld [vmem:[%s9019_s1 + $0x24] sm:$0xf]  ;;  %v4836_v9 = vld [vmem:[%s9019_s1 + $0x28] sm:$0xf]  ;;  %v4905_v10 = vor.u32 %v6130_v0, %v4902_v1 }
  0x20   :  { %v4830_v8 = vld [vmem:[%s9019_s1 + $0x60] sm:$0xf0]  ;;  %v6122_v11 = vld [vmem:[%s9019_s1 + $0x64] sm:$0xf0]  ;;  %v6114_v12 = vld [vmem:[%s9019_s1 + $0x2c] sm:$0xf]  ;;  %v4829_v17 = vor.u32 %v6121_v4, %v4828_v3 }
  0x21   :  { %493 = vmatpush.bf16.msrb.mxu0 %v4813_v29  ;;  %506 = vmatpush.bf16.msrb.mxu1 %v4817_v33  ;;  %v4838_v13 = vld [vmem:[%s9019_s1 + $0x68] sm:$0xf0]  ;;  %v5036_v14 = vld [vmem:[%s9019_s1 + $0x1b0] sm:$0xf]  ;;  %v6163_v16 = vld [vmem:[%s9019_s1 + $0x1b4] sm:$0xf]  ;;  %v4833_v21 = vor.u32 %v6113_v7, %v4830_v8  ;;  %v4837_v22 = vor.u32 %v6122_v11, %v4836_v9 }
  0x22   :  { %v6171_v15 = vld [vmem:[%s9019_s1 + $0x1ec] sm:$0xf0]  ;;  %v5038_v18 = vld [vmem:[%s9019_s1 + $0x1f0] sm:$0xf0]  ;;  %v5044_v19 = vld [vmem:[%s9019_s1 + $0x1b8] sm:$0xf]  ;;  %v4841_v25 = vor.u32 %v6114_v12, %v4838_v13 }
  0x23   :  { %519 = vmatpush.bf16.msrb.mxu2 %v4821_v41  ;;  %532 = vmatpush.bf16.msrb.mxu3 %v4825_v42  ;;  %v6172_v20 = vld [vmem:[%s9019_s1 + $0x1f4] sm:$0xf0]  ;;  %v6164_v23 = vld [vmem:[%s9019_s1 + $0x1bc] sm:$0xf]  ;;  %v5037_v26 = vor.u32 %v6171_v15, %v5036_v14  ;;  %v5041_v27 = vor.u32 %v6163_v16, %v5038_v18 }
  0x24   :  { %5054 = vmatmul.msk.bf16.vlgmr.msrb.gmra.mxu0 %vm430_vm0, %v6716_v52  ;;  %5055 = vmatmul.msk.bf16.vlgmr.msrb.gmra.mxu1 %vm430_vm0, %v6716_v52  ;;  %v5046_v24 = vld [vmem:[%s9019_s1 + $0x1f8] sm:$0xf0]  ;;  %v5045_v28 = vor.u32 %v6172_v20, %v5044_v19 }
  0x25   :  { %542 = vmatpush.bf16.msra.mxu0 %v5021_v35  ;;  %555 = vmatpush.bf16.msra.mxu1 %v5025_v38  ;;  %v5049_v29 = vor.u32 %v6164_v23, %v5046_v24 }
  0x26   :  { %5056 = vmatmul.msk.bf16.vlgmr.msrb.gmra.mxu2 %vm430_vm0, %v6716_v52  ;;  %5057 = vmatmul.msk.bf16.vlgmr.msrb.gmra.mxu3 %vm430_vm0, %v6716_v52 }
  0x27   :  { %568 = vmatpush.bf16.msra.mxu2 %v5029_v43  ;;  %581 = vmatpush.bf16.msra.mxu3 %v5033_v47 }
  0x29   :  { %543 = vmatpush.bf16.msra.mxu0 %v4957_v54  ;;  %556 = vmatpush.bf16.msra.mxu1 %v4961_v55 }
  0x2b   :  { %569 = vmatpush.bf16.msra.mxu2 %v4965_v56  ;;  %582 = vmatpush.bf16.msra.mxu3 %v4969_v60 }
  0x2d   :  { %544 = vmatpush.bf16.msra.mxu0 %v4893_v2  ;;  %557 = vmatpush.bf16.msra.mxu1 %v4897_v5 }
  0x2f   :  { %570 = vmatpush.bf16.msra.mxu2 %v4901_v6  ;;  %583 = vmatpush.bf16.msra.mxu3 %v4905_v10 }
  0x31   :  { %545 = vmatpush.bf16.msra.mxu0 %v4829_v17 }
  0x32   :  { %19 = vsyncpa [#allocation3], 0  ;;  %558 = vmatpush.bf16.msra.mxu1 %v4833_v21  ;;  %v4972_v30 = vld [vmem:[%s9019_s1 + $0x130] sm:$0xf]  ;;  %v6147_v32 = vld [vmem:[%s9019_s1 + $0x134] sm:$0xf] }
  0x33   :  { %571 = vmatpush.bf16.msra.mxu2 %v4837_v22  ;;  %v6155_v31 = vld [vmem:[%s9019_s1 + $0x16c] sm:$0xf0]  ;;  %584 = vmatpush.bf16.msra.mxu3 %v4841_v25  ;;  %v4974_v33 = vld [vmem:[%s9019_s1 + $0x170] sm:$0xf0]  ;;  %v4980_v34 = vld [vmem:[%s9019_s1 + $0x138] sm:$0xf] }
  0x34   :  { %v6156_v35 = vld [vmem:[%s9019_s1 + $0x174] sm:$0xf0]  ;;  %v6148_v36 = vld [vmem:[%s9019_s1 + $0x13c] sm:$0xf]  ;;  %v4973_v38 = vor.u32 %v6155_v31, %v4972_v30  ;;  %v4977_v39 = vor.u32 %v6147_v32, %v4974_v33  ;;  %v4908_v41 = vld [vmem:[%s9019_s1 + $0xb0] sm:$0xf]  ;;  %5058 = vmatmul.msk.bf16.vlgmr.msra.gmra.mxu0 %vm430_vm0, %v6716_v52 }
  0x35   :  { %594 = vmatpush.bf16.msrb.mxu0 %v5037_v26  ;;  %v4982_v37 = vld [vmem:[%s9019_s1 + $0x178] sm:$0xf0]  ;;  %v4981_v40 = vor.u32 %v6156_v35, %v4980_v34  ;;  %v6139_v42 = vld [vmem:[%s9019_s1 + $0xec] sm:$0xf0]  ;;  %v6131_v43 = vld [vmem:[%s9019_s1 + $0xb4] sm:$0xf]  ;;  %5059 = vmatmul.msk.bf16.vlgmr.msra.gmra.mxu1 %vm430_vm0, %v6716_v52 }
  0x36   :  { %607 = vmatpush.bf16.msrb.mxu1 %v5041_v27  ;;  %v4985_v44 = vor.u32 %v6148_v36, %v4982_v37  ;;  %v4910_v45 = vld [vmem:[%s9019_s1 + $0xf0] sm:$0xf0]  ;;  %v4916_v46 = vld [vmem:[%s9019_s1 + $0xb8] sm:$0xf]  ;;  %5060 = vmatmul.msk.bf16.vlgmr.msra.gmra.mxu2 %vm430_vm0, %v6716_v52  ;;  %v6132_v48 = vld [vmem:[%s9019_s1 + $0xbc] sm:$0xf]  ;;  %v4909_v50 = vor.u32 %v6139_v42, %v4908_v41 }
  0x37   :  { %620 = vmatpush.bf16.msrb.mxu2 %v5045_v28  ;;  %633 = vmatpush.bf16.msrb.mxu3 %v5049_v29  ;;  %v6140_v47 = vld [vmem:[%s9019_s1 + $0xf4] sm:$0xf0]  ;;  %v4918_v49 = vld [vmem:[%s9019_s1 + $0xf8] sm:$0xf0]  ;;  %v4913_v51 = vor.u32 %v6131_v43, %v4910_v45  ;;  %v4844_v54 = vld [vmem:[%s9019_s1 + $0x30] sm:$0xf] }
  0x38   :  { %5061 = vmatmul.msk.bf16.vlgmr.msra.gmra.mxu3 %vm430_vm0, %v6716_v52  ;;  %v4917_v53 = vor.u32 %v6140_v47, %v4916_v46  ;;  %v6123_v55 = vld [vmem:[%s9019_s1 + $0x6c] sm:$0xf0]  ;;  %v6115_v56 = vld [vmem:[%s9019_s1 + $0x34] sm:$0xf]  ;;  %v4921_v57 = vor.u32 %v6132_v48, %v4918_v49  ;;  %v4852_v59 = vld [vmem:[%s9019_s1 + $0x38] sm:$0xf] }
  0x39   :  { %595 = vmatpush.bf16.msrb.mxu0 %v4973_v38  ;;  %v4846_v58 = vld [vmem:[%s9019_s1 + $0x70] sm:$0xf0]  ;;  %v6124_v60 = vld [vmem:[%s9019_s1 + $0x74] sm:$0xf0]  ;;  %v6116_v61 = vld [vmem:[%s9019_s1 + $0x3c] sm:$0xf]  ;;  %v4845_v63 = vor.u32 %v6123_v55, %v4844_v54 }
  0x3a   :  { %608 = vmatpush.bf16.msrb.mxu1 %v4977_v39  ;;  %v4854_v62 = vld [vmem:[%s9019_s1 + $0x78] sm:$0xf0]  ;;  %v4849_v0 = vor.u32 %v6115_v56, %v4846_v58  ;;  %v4853_v1 = vor.u32 %v6124_v60, %v4852_v59  ;;  %v6179_v5 = vld [vmem:[%s9022_s4 + $0x30] sm:$0xff]  ;;  %v6178_v8 = vld [vmem:[%s9022_s4 + $0x28] sm:$0xff]  ;;  %v6533_v10 = vmov 2.0   ;;  %vm646_vm1 = vcmask 1041408  }
  0x3b   :  { %621 = vmatpush.bf16.msrb.mxu2 %v4981_v40  ;;  %634 = vmatpush.bf16.msrb.mxu3 %v4985_v44  ;;  %v4857_v2 = vor.u32 %v6116_v61, %v4854_v62  ;;  %v6180_v3 = vld [vmem:[%s9022_s4 + $0x38] sm:$0xff]  ;;  %v6187_v6 = vld [vmem:[%s9022_s4 + $0x70] sm:$0xff]  ;;  %v6186_v9 = vld [vmem:[%s9022_s4 + $0x68] sm:$0xff]  ;;  %6433 = vrcp.f32 %v6533_v10  ;;  %s4783_s23 = sshll.u32 %s9031_s13, 4  ;;  %s6534_s24 = smov [#allocation2]   ;;  %s4784_s23 = int_to_ptr.hbm [resolvable:$true] %s4783_s23 }
  0x3c   :  { %v6188_v4 = vld [vmem:[%s9022_s4 + $0x78] sm:$0xff]  ;;  %v6195_v11 = vld [vmem:[%s9022_s4 + $0xb0] sm:$0xff]  ;;  %v6177_v13 = vld [vmem:[%s9022_s4 + $0x20] sm:$0xff] }
  0x3d   :  { %596 = vmatpush.bf16.msrb.mxu0 %v4909_v50  ;;  %v6204_v7 = vld [vmem:[%s9022_s4 + $0xf8] sm:$0xff]  ;;  %v6203_v12 = vld [vmem:[%s9022_s4 + $0xf0] sm:$0xff]  ;;  %v6185_v14 = vld [vmem:[%s9022_s4 + $0x60] sm:$0xff] }
  0x3e   :  { %609 = vmatpush.bf16.msrb.mxu1 %v4913_v51  ;;  %v6194_v16 = vld [vmem:[%s9022_s4 + $0xa8] sm:$0xff]  ;;  %v6176_v60 = vld [vmem:[%s9022_s4 + $0x18] sm:$0xff] }
  0x3f   :  { %622 = vmatpush.bf16.msrb.mxu2 %v4917_v53  ;;  %635 = vmatpush.bf16.msrb.mxu3 %v4921_v57  ;;  %v6202_v17 = vld [vmem:[%s9022_s4 + $0xe8] sm:$0xff]  ;;  %v6184_v61 = vld [vmem:[%s9022_s4 + $0x58] sm:$0xff] }
  0x41   :  { %597 = vmatpush.bf16.msrb.mxu0 %v4845_v63  ;;  %v6434_v15 = vpop.eup %6433 }
  0x42   :  { %610 = vmatpush.bf16.msrb.mxu1 %v4849_v0  ;;  %v760_v18 = vmul.f32 2.0, %v6434_v15  ;;  %vm764_vm2 = vweird.f32 %v6434_v15 }
  0x43   :  { %623 = vmatpush.bf16.msrb.mxu2 %v4853_v1  ;;  %636 = vmatpush.bf16.msrb.mxu3 %v4857_v2 }
  0x44   :  { %5062 = vmatmul.msk.bf16.vlgmr.msrb.gmra.mxu0 %vm430_vm0, %v6716_v52  ;;  %v761_v19 = vsub.f32 1.0, %v760_v18 }
  0x45   :  { %5063 = vmatmul.msk.bf16.vlgmr.msrb.gmra.mxu1 %vm430_vm0, %v6716_v52  ;;  %2294 = vmatpush.bf16.msra.mxu0 %v6180_v3 }
  0x46   :  { %5064 = vmatmul.msk.bf16.vlgmr.msrb.gmra.mxu2 %vm430_vm0, %v6716_v52  ;;  %2307 = vmatpush.bf16.msra.mxu1 %v6188_v4  ;;  %v762_v25 = vmul.f32 %v6434_v15, %v761_v19 }
  0x47   :  { %2333 = vmatpush.bf16.msra.mxu3 %v6204_v7 }
  0x48   :  { %5065 = vmatmul.msk.bf16.vlgmr.msrb.gmra.mxu3 %vm430_vm0, %v6716_v52  ;;  %v6196_v52 = vld [vmem:[%s9022_s4 + $0xb8] sm:$0xff]  ;;  %v763_v30 = vadd.f32 %v6434_v15, %v762_v25 }
  0x49   :  { %2295 = vmatpush.bf16.msra.mxu0 %v6179_v5  ;;  %2320 = vmatpush.bf16.msra.mxu2 %v6196_v52  ;;  %v6201_v52 = vld [vmem:[%s9022_s4 + $0xe0] sm:$0xff] }
  0x4a   :  { %2308 = vmatpush.bf16.msra.mxu1 %v6187_v6  ;;  %v7078_v43 = vsel %vm764_vm2, %v6434_v15, %v763_v30  ;;  %v6193_v6 = vld [vmem:[%s9022_s4 + $0xa0] sm:$0xff] }
  0x4b   :  { %2334 = vmatpush.bf16.msra.mxu3 %v6203_v12 }
  0x4d   :  { %2296 = vmatpush.bf16.msra.mxu0 %v6178_v8  ;;  %2321 = vmatpush.bf16.msra.mxu2 %v6195_v11 }
  0x4e   :  { %2309 = vmatpush.bf16.msra.mxu1 %v6186_v9 }
  0x4f   :  { %2335 = vmatpush.bf16.msra.mxu3 %v6202_v17 }
  0x51   :  { %2297 = vmatpush.bf16.msra.mxu0 %v6177_v13  ;;  %2322 = vmatpush.bf16.msra.mxu2 %v6194_v16  ;;  %v6175_v13 = vld [vmem:[%s9022_s4 + $0x10] sm:$0xff] }
  0x52   :  { %2310 = vmatpush.bf16.msra.mxu1 %v6185_v14  ;;  %v6183_v14 = vld [vmem:[%s9022_s4 + $0x50] sm:$0xff] }
  0x53   :  { %2336 = vmatpush.bf16.msra.mxu3 %v6201_v52 }
  0x55   :  { %2298 = vmatpush.bf16.msra.mxu0 %v6176_v60  ;;  %2323 = vmatpush.bf16.msra.mxu2 %v6193_v6 }
  0x56   :  { %2311 = vmatpush.bf16.msra.mxu1 %v6184_v61 }
  0x59   :  { %2299 = vmatpush.bf16.msra.mxu0 %v6175_v13  ;;  %v6173_v13 = vld [vmem:[%s9022_s4] sm:$0xff] }
  0x5a   :  { %2312 = vmatpush.bf16.msra.mxu1 %v6183_v14 }
  0x91   :  { %v443_v20 = vpop.f32.mrf.mxu0  ;;  %v456_v22 = vpop.f32.mrf.mxu1 }
  0x92   :  { %v647_v21 = vsel %vm646_vm1, %v443_v20, 0.0  ;;  %v654_v24 = vsel %vm646_vm1, %v456_v22, 0.0 }
  0x93   :  { %v648_v23 = vrot.slane %v647_v21, 4  ;;  %v655_v26 = vrot.slane %v654_v24, 4 }
  0x95   :  { %v649_v27 = vadd.f32 %v648_v23, %v647_v21  ;;  %v656_v28 = vadd.f32 %v655_v26, %v654_v24  ;;  %v6200_v23 = vld [vmem:[%s9022_s4 + $0xd8] sm:$0xff] }
  0x96   :  { %2337 = vmatpush.bf16.msra.mxu3 %v6200_v23  ;;  %v6190_v23 = vld [vmem:[%s9022_s4 + $0x88] sm:$0xff] }
  0x97   :  { %v650_v29 = vrot.slane %v649_v27, 2  ;;  %v657_v31 = vrot.slane %v656_v28, 2 }
  0x99   :  { %v7070_v32 = vpop.f32.mrf.mxu2  ;;  %v651_v33 = vadd.f32 %v650_v29, %v649_v27  ;;  %v7074_v35 = vpop.f32.mrf.mxu3  ;;  %v658_v37 = vadd.f32 %v657_v31, %v656_v28 }
  0x9a   :  { %v661_v34 = vsel %vm646_vm1, %v7070_v32, 0.0  ;;  %v445_v36 = vpop.f32.mrf.mxu0  ;;  %v668_v39 = vsel %vm646_vm1, %v7074_v35, 0.0  ;;  %v458_v40 = vpop.f32.mrf.mxu1 }
  0x9b   :  { %v662_v38 = vrot.slane %v661_v34, 4  ;;  %v652_v41 = vrot.slane %v651_v33, 1  ;;  %v669_v42 = vrot.slane %v668_v39, 4  ;;  %v659_v44 = vrot.slane %v658_v37, 1  ;;  %v6182_v36 = vld [vmem:[%s9022_s4 + $0x48] sm:$0xff] }
  0x9c   :  { %2313 = vmatpush.bf16.msra.mxu1 %v6182_v36 }
  0x9d   :  { %v663_v45 = vadd.f32 %v662_v38, %v661_v34  ;;  %v653_v46 = vadd.f32 %v652_v41, %v651_v33  ;;  %v670_v47 = vadd.f32 %v669_v42, %v668_v39  ;;  %v660_v48 = vadd.f32 %v659_v44, %v658_v37 }
  0x9f   :  { %v664_v49 = vrot.slane %v663_v45, 2  ;;  %v766_v50 = vmul.f32 %v7078_v43, %v653_v46  ;;  %v671_v51 = vrot.slane %v670_v47, 2  ;;  %v767_v53 = vmul.f32 %v7078_v43, %v660_v48 }
  0xa1   :  { %v665_v54 = vadd.f32 %v664_v49, %v663_v45  ;;  %v471_v55 = vpop.f32.mrf.mxu2  ;;  %v7082_v56 = vsub.f32 %v443_v20, %v766_v50  ;;  %v672_v57 = vadd.f32 %v671_v51, %v670_v47  ;;  %v484_v58 = vpop.f32.mrf.mxu3  ;;  %v7092_v62 = vsub.f32 %v456_v22, %v767_v53  ;;  %v6192_v22 = vld [vmem:[%s9022_s4 + $0x98] sm:$0xff] }
  0xa2   :  { %v7084_v59 = vpop.f32.mrf.mxu0  ;;  %v7096_v1 = vpop.f32.mrf.mxu1  ;;  %2324 = vmatpush.bf16.msra.mxu2 %v6192_v22 }
  0xa3   :  { %v666_v63 = vrot.slane %v665_v54, 1  ;;  %v675_v0 = vsel %vm646_vm1, %v7084_v59, 0.0  ;;  %v798_v2 = vmul.f32 %v7082_v56, %v7082_v56  ;;  %v673_v3 = vrot.slane %v672_v57, 1 }
  0xa4   :  { %v676_v4 = vrot.slane %v675_v0, 4  ;;  %v682_v5 = vsel %vm646_vm1, %v7096_v1, 0.0  ;;  %v799_v7 = vmul.f32 %v7092_v62, %v7092_v62 }
  0xa5   :  { %v667_v8 = vadd.f32 %v666_v63, %v665_v54  ;;  %v683_v9 = vrot.slane %v682_v5, 4  ;;  %v814_v10 = vsel %vm646_vm1, %v798_v2, 0.0  ;;  %v674_v11 = vadd.f32 %v673_v3, %v672_v57  ;;  %v6191_v3 = vld [vmem:[%s9022_s4 + $0x90] sm:$0xff] }
  0xa6   :  { %v677_v12 = vadd.f32 %v676_v4, %v675_v0  ;;  %v815_v15 = vrot.slane %v814_v10, 4  ;;  %v821_v16 = vsel %vm646_vm1, %v799_v7, 0.0  ;;  %v6199_v4 = vld [vmem:[%s9022_s4 + $0xd0] sm:$0xff]  ;;  %2325 = vmatpush.bf16.msra.mxu2 %v6191_v3 }
  0xa7   :  { %v768_v17 = vmul.f32 %v7078_v43, %v667_v8  ;;  %v684_v18 = vadd.f32 %v683_v9, %v682_v5  ;;  %v822_v19 = vrot.slane %v821_v16, 4  ;;  %v769_v20 = vmul.f32 %v7078_v43, %v674_v11  ;;  %2338 = vmatpush.bf16.msra.mxu3 %v6199_v4  ;;  %v6228_v4 = vld [vmem:[%s9022_s4 + $0x1b8] sm:$0xff] }
  0xa8   :  { %v678_v21 = vrot.slane %v677_v12, 2  ;;  %v816_v24 = vadd.f32 %v815_v15, %v814_v10 }
  0xa9   :  { %v7127_v25 = vsub.f32 %v7070_v32, %v768_v17  ;;  %v685_v26 = vrot.slane %v684_v18, 2  ;;  %v7129_v27 = vpop.f32.mrf.mxu2  ;;  %v823_v28 = vadd.f32 %v822_v19, %v821_v16  ;;  %v7132_v29 = vsub.f32 %v7074_v35, %v769_v20  ;;  %v7136_v33 = vpop.f32.mrf.mxu3  ;;  %v6174_v32 = vld [vmem:[%s9022_s4 + $0x8] sm:$0xff]  ;;  %v6220_v19 = vld [vmem:[%s9022_s4 + $0x178] sm:$0xff] }
  0xaa   :  { %v679_v30 = vadd.f32 %v678_v21, %v677_v12  ;;  %v689_v31 = vsel %vm646_vm1, %v7129_v27, 0.0  ;;  %v497_v34 = vpop.f32.mrf.mxu0  ;;  %v817_v37 = vrot.slane %v816_v24, 2  ;;  %v510_v38 = vpop.f32.mrf.mxu1  ;;  %2300 = vmatpush.bf16.msra.mxu0 %v6174_v32  ;;  %2326 = vmatpush.bf16.msra.mxu2 %v6190_v23  ;;  %v696_v32 = vsel %vm646_vm1, %v7136_v33, 0.0  ;;  %v6235_v23 = vld [vmem:[%s9022_s4 + $0x1f0] sm:$0xff] }
  0xab   :  { %v800_v35 = vmul.f32 %v7127_v25, %v7127_v25  ;;  %v824_v39 = vrot.slane %v823_v28, 2  ;;  %v801_v40 = vmul.f32 %v7132_v29, %v7132_v29  ;;  %v686_v42 = vadd.f32 %v685_v26, %v684_v18  ;;  %v6212_v18 = vld [vmem:[%s9022_s4 + $0x138] sm:$0xff] }
  0xac   :  { %v680_v41 = vrot.slane %v679_v30, 1  ;;  %v818_v44 = vadd.f32 %v817_v37, %v816_v24  ;;  %v690_v46 = vrot.slane %v689_v31, 4  ;;  %v6198_v24 = vld [vmem:[%s9022_s4 + $0xc8] sm:$0xff] }
  0xad   :  { %v828_v45 = vsel %vm646_vm1, %v800_v35, 0.0  ;;  %v825_v47 = vadd.f32 %v824_v39, %v823_v28  ;;  %v835_v49 = vsel %vm646_vm1, %v801_v40, 0.0  ;;  %v687_v54 = vrot.slane %v686_v42, 1  ;;  %2339 = vmatpush.bf16.msra.mxu3 %v6198_v24 }
  0xae   :  { %v829_v48 = vrot.slane %v828_v45, 4  ;;  %v681_v50 = vadd.f32 %v680_v41, %v679_v30  ;;  %v819_v51 = vrot.slane %v818_v44, 1  ;;  %v836_v53 = vrot.slane %v835_v49, 4  ;;  %2301 = vmatpush.bf16.msra.mxu0 %v6173_v13  ;;  %v6218_v13 = vld [vmem:[%s9022_s4 + $0x168] sm:$0xff] }
  0xaf   :  { %v826_v55 = vrot.slane %v825_v47, 1  ;;  %v691_v60 = vadd.f32 %v690_v46, %v689_v31  ;;  %v688_v0 = vadd.f32 %v687_v54, %v686_v42  ;;  %v6211_v54 = vld [vmem:[%s9022_s4 + $0x130] sm:$0xff] }
  0xb0   :  { %v830_v57 = vadd.f32 %v829_v48, %v828_v45  ;;  %v770_v58 = vmul.f32 %v7078_v43, %v681_v50  ;;  %v820_v61 = vadd.f32 %v819_v51, %v818_v44  ;;  %v837_v63 = vadd.f32 %v836_v53, %v835_v49 }
  0xb1   :  { %v523_v2 = vpop.f32.mrf.mxu2  ;;  %v827_v5 = vadd.f32 %v826_v55, %v825_v47  ;;  %v536_v7 = vpop.f32.mrf.mxu3  ;;  %v771_v11 = vmul.f32 %v7078_v43, %v688_v0  ;;  %v692_v17 = vrot.slane %v691_v60, 2  ;;  %v697_v45 = vrot.slane %v696_v32, 4  ;;  %v6219_v55 = vld [vmem:[%s9022_s4 + $0x170] sm:$0xff] }
  0xb2   :  { %v831_v6 = vrot.slane %v830_v57, 2  ;;  %v7158_v52 = vsub.f32 %v7084_v59, %v770_v58  ;;  %v7160_v8 = vpop.f32.mrf.mxu0  ;;  %v926_v9 = vmul.f32 %v820_v61, %v7078_v43  ;;  %v838_v10 = vrot.slane %v837_v63, 2  ;;  %v7164_v12 = vpop.f32.mrf.mxu1  ;;  %v6181_v59 = vld [vmem:[%s9022_s4 + $0x40] sm:$0xff]  ;;  %2346 = vmatpush.bf16.msrb.mxu0 %v6212_v18 }
  0xb3   :  { %v927_v14 = vmul.f32 %v827_v5, %v7078_v43  ;;  %v7184_v22 = vsub.f32 %v7096_v1, %v771_v11  ;;  %2314 = vmatpush.bf16.msra.mxu1 %v6181_v59  ;;  %v693_v31 = vadd.f32 %v692_v17, %v691_v60  ;;  %v6189_v58 = vld [vmem:[%s9022_s4 + $0x80] sm:$0xff]  ;;  %v703_v3 = vsel %vm646_vm1, %v7160_v8, 0.0  ;;  %v6236_v5 = vld [vmem:[%s9022_s4 + $0x1f8] sm:$0xff]  ;;  %v6210_v11 = vld [vmem:[%s9022_s4 + $0x128] sm:$0xff] }
  0xb4   :  { %v832_v15 = vadd.f32 %v831_v6, %v830_v57  ;;  %v802_v16 = vmul.f32 %v7158_v52, %v7158_v52  ;;  %v7181_v20 = vadd.f32 1e-05, %v926_v9  ;;  %v839_v21 = vadd.f32 %v838_v10, %v837_v63  ;;  %v6197_v60 = vld [vmem:[%s9022_s4 + $0xc0] sm:$0xff]  ;;  %2327 = vmatpush.bf16.msra.mxu2 %v6189_v58 }
  0xb5   :  { %v7192_v26 = vadd.f32 1e-05, %v927_v14  ;;  %v803_v34 = vmul.f32 %v7184_v22, %v7184_v22  ;;  %v694_v35 = vrot.slane %v693_v31, 1  ;;  %v698_v57 = vadd.f32 %v697_v45, %v696_v32  ;;  %2340 = vmatpush.bf16.msra.mxu3 %v6197_v60 }
  0xb6   :  { %v833_v28 = vrot.slane %v832_v15, 1  ;;  %v842_v30 = vsel %vm646_vm1, %v802_v16, 0.0  ;;  %6435 = vrsqrt.f32 %v7181_v20  ;;  %v840_v36 = vrot.slane %v839_v21, 1  ;;  %2347 = vmatpush.bf16.msrb.mxu0 %v6211_v54 }
  0xb7   :  { %2359 = vmatpush.bf16.msrb.mxu1 %v6220_v19  ;;  %v843_v1 = vrot.slane %v842_v30, 4  ;;  %6437 = vrsqrt.f32 %v7192_v26  ;;  %v849_v40 = vsel %vm646_vm1, %v803_v34, 0.0  ;;  %v695_v44 = vadd.f32 %v694_v35, %v693_v31  ;;  %v7269_v31 = vld [vmem:[%s9021_s3] sm:$0xff] }
  0xb8   :  { %v834_v39 = vadd.f32 %v833_v28, %v832_v15  ;;  %v850_v48 = vrot.slane %v849_v40, 4  ;;  %v841_v50 = vadd.f32 %v840_v36, %v839_v21  ;;  %2372 = vmatpush.bf16.msrb.mxu2 %v6228_v4  ;;  %v699_v15 = vrot.slane %v698_v57, 2  ;;  %v6227_v21 = vld [vmem:[%s9022_s4 + $0x1b0] sm:$0xff] }
  0xb9   :  { %v844_v37 = vadd.f32 %v843_v1, %v842_v30  ;;  %v7200_v38 = vpop.f32.mrf.mxu2  ;;  %v772_v51 = vmul.f32 %v7078_v43, %v695_v44  ;;  %2385 = vmatpush.bf16.msrb.mxu3 %v6236_v5  ;;  %v704_v16 = vrot.slane %v703_v3, 4  ;;  %v7263_v30 = vld [vmem:[%s9020_s2] sm:$0xff]  ;;  %v1186_v45 = vperm.slane %v7269_v31, 0 }
  0xba   :  { %v549_v42 = vpop.f32.mrf.mxu0  ;;  %v562_v46 = vpop.f32.mrf.mxu1  ;;  %v928_v53 = vmul.f32 %v834_v39, %v7078_v43  ;;  %v851_v2 = vadd.f32 %v850_v48, %v849_v40  ;;  %v929_v6 = vmul.f32 %v841_v50, %v7078_v43  ;;  %2348 = vmatpush.bf16.msrb.mxu0 %v6210_v11  ;;  %v700_v32 = vadd.f32 %v699_v15, %v698_v57  ;;  %v6217_v57 = vld [vmem:[%s9022_s4 + $0x160] sm:$0xff] }
  0xbb   :  { %v7204_v41 = vpop.f32.mrf.mxu3  ;;  %v845_v47 = vrot.slane %v844_v37, 2  ;;  %2360 = vmatpush.bf16.msrb.mxu1 %v6219_v55  ;;  %v7236_v7 = vsub.f32 %v7129_v27, %v772_v51  ;;  %v705_v36 = vadd.f32 %v704_v16, %v703_v3  ;;  %v1136_v44 = vperm.slane %v7263_v30, 0  ;;  %v6209_v55 = vld [vmem:[%s9022_s4 + $0x120] sm:$0xff] }
  0xbc   :  { %v7206_v49 = vpop.eup %6435  ;;  %v7238_v10 = vadd.f32 1e-05, %v928_v53  ;;  %v852_v19 = vrot.slane %v851_v2, 2  ;;  %v7257_v24 = vadd.f32 1e-05, %v929_v6  ;;  %2373 = vmatpush.bf16.msrb.mxu2 %v6227_v21  ;;  %v1137_v46 = vperm.slane %v7263_v30, 1 }
  0xbd   :  { %v7222_v61 = vpop.eup %6437  ;;  %v959_v63 = vmul.f32 %v7206_v49, %v7181_v20  ;;  %v846_v0 = vadd.f32 %v845_v47, %v844_v37  ;;  %v804_v14 = vmul.f32 %v7236_v7, %v7236_v7  ;;  %2386 = vmatpush.bf16.msrb.mxu3 %v6235_v23  ;;  %v1187_v47 = vperm.slane %v7269_v31, 1  ;;  %v6226_v6 = vld [vmem:[%s9022_s4 + $0x1a8] sm:$0xff] }
  0xbe   :  { %v969_v27 = vmul.f32 %v7222_v61, %v7192_v26  ;;  %6439 = vrsqrt.f32 %v7238_v10  ;;  %v853_v39 = vadd.f32 %v852_v19, %v851_v2  ;;  %v1138_v51 = vperm.slane %v7263_v30, 2  ;;  %2349 = vmatpush.bf16.msrb.mxu0 %v6209_v55 }
  0xbf   :  { %v960_v17 = vmul.f32 %v7206_v49, %v959_v63  ;;  %v847_v18 = vrot.slane %v846_v0, 1  ;;  %2361 = vmatpush.bf16.msrb.mxu1 %v6218_v13  ;;  %v856_v28 = vsel %vm646_vm1, %v804_v14, 0.0  ;;  %6441 = vrsqrt.f32 %v7257_v24 }
  0xc0   :  { %v970_v1 = vmul.f32 %v7222_v61, %v969_v27  ;;  %v857_v34 = vrot.slane %v856_v28, 4  ;;  %v701_v53 = vrot.slane %v700_v32, 1  ;;  %v706_v54 = vrot.slane %v705_v36, 2  ;;  %2374 = vmatpush.bf16.msrb.mxu2 %v6226_v6 }
  0xc1   :  { %v575_v9 = vpop.f32.mrf.mxu2  ;;  %v961_v37 = vmul.f32 0.5, %v960_v17  ;;  %v848_v35 = vadd.f32 %v847_v18, %v846_v0  ;;  %v854_v0 = vrot.slane %v853_v39, 1  ;;  %vm964_vm3 = vweird.f32 %v7181_v20  ;;  %v6208_v17 = vld [vmem:[%s9022_s4 + $0x118] sm:$0xff] }
  0xc2   :  { %v7272_v40 = vpop.f32.mrf.mxu0  ;;  %v7274_v42 = vpop.f32.mrf.mxu1  ;;  %v858_v48 = vadd.f32 %v857_v34, %v856_v28  ;;  %v971_v50 = vmul.f32 0.5, %v970_v1  ;;  %v1188_v3 = vperm.slane %v7269_v31, 2  ;;  %v1139_v4 = vperm.slane %v7263_v30, 3  ;;  %v6234_v9 = vld [vmem:[%s9022_s4 + $0x1e8] sm:$0xff]  ;;  %v6216_v18 = vld [vmem:[%s9022_s4 + $0x158] sm:$0xff]  ;;  %2350 = vmatpush.bf16.msrb.mxu0 %v6208_v17 }
  0xc3   :  { %v588_v59 = vpop.f32.mrf.mxu3  ;;  %v962_v60 = vsub.f32 1.5, %v961_v37  ;;  %v930_v63 = vmul.f32 %v848_v35, %v7078_v43  ;;  %v1189_v5 = vperm.slane %v7269_v31, 3  ;;  %2362 = vmatpush.bf16.msrb.mxu1 %v6217_v57  ;;  %vm974_vm4 = vweird.f32 %v7192_v26  ;;  %2387 = vmatpush.bf16.msrb.mxu3 %v6234_v9 }
  0xc4   :  { %v7288_v58 = vpop.eup %6439  ;;  %v859_v2 = vrot.slane %v858_v48, 2  ;;  %v702_v13 = vadd.f32 %v701_v53, %v700_v32  ;;  %v710_v59 = vsel %vm646_vm1, %v7164_v12, 0.0  ;;  %vm965_vm5 = vweird.f32 %v7206_v49 }
  0xc5   :  { %v7304_v27 = vpop.eup %6441  ;;  %v972_v14 = vsub.f32 1.5, %v971_v50  ;;  %v979_v15 = vmul.f32 %v7288_v58, %v7238_v10  ;;  %v707_v16 = vadd.f32 %v706_v54, %v705_v36  ;;  %v963_v19 = vmul.f32 %v7206_v49, %v962_v60  ;;  %vm7331_vm7 = vmor %vm964_vm3, %vm965_vm5 }
  0xc6   :  { %v860_v11 = vadd.f32 %v859_v2, %v858_v48  ;;  %v7316_v21 = vadd.f32 1e-05, %v930_v63  ;;  %v855_v23 = vadd.f32 %v854_v0, %v853_v39  ;;  %v773_v28 = vmul.f32 %v7078_v43, %v702_v13 }
  0xc7   :  { %v1140_v32 = vperm.slane %v7263_v30, 4  ;;  %v1190_v36 = vperm.slane %v7269_v31, 4  ;;  %v708_v37 = vrot.slane %v707_v16, 1  ;;  %v711_v35 = vrot.slane %v710_v59, 4  ;;  %2363 = vmatpush.bf16.msrb.mxu1 %v6216_v18 }
  0xc8   :  { %vm975_vm6 = vweird.f32 %v7222_v61  ;;  %v989_v48 = vmul.f32 %v7304_v27, %v7257_v24  ;;  %v861_v50 = vrot.slane %v860_v11, 1  ;;  %v7325_v39 = vsub.f32 %v7136_v33, %v773_v28 }
  0xc9   :  { %v973_v54 = vmul.f32 %v7222_v61, %v972_v14  ;;  %v709_v55 = vadd.f32 %v708_v37, %v707_v16  ;;  %v712_v57 = vadd.f32 %v711_v35, %v710_v59  ;;  %v717_v60 = vsel %vm646_vm1, %v7200_v38, 0.0  ;;  %v7338_v63 = vpop.f32.mrf.mxu2  ;;  %vm7355_vm8 = vmor %vm974_vm4, %vm975_vm6 }
  0xca   :  { %v601_v1 = vpop.f32.mrf.mxu0  ;;  %v614_v34 = vpop.f32.mrf.mxu1  ;;  %v967_v33 = vsel %vm7331_vm7, %v7206_v49, %v963_v19  ;;  %v980_v0 = vmul.f32 %v7288_v58, %v979_v15  ;;  %6443 = vrsqrt.f32 %v7316_v21  ;;  %v931_v20 = vmul.f32 %v855_v23, %v7078_v43 }
  0xcb   :  { %v1141_v2 = vperm.slane %v7263_v30, 5  ;;  %v1191_v6 = vperm.slane %v7269_v31, 5  ;;  %v805_v9 = vmul.f32 %v7325_v39, %v7325_v39  ;;  %v774_v13 = vmul.f32 %v7078_v43, %v709_v55 }
  0xcc   :  { %v990_v59 = vmul.f32 %v7304_v27, %v989_v48  ;;  %v862_v14 = vadd.f32 %v861_v50, %v860_v11  ;;  %v713_v15 = vrot.slane %v712_v57, 2  ;;  %v718_v16 = vrot.slane %v717_v60, 4 }
  0xcd   :  { %v1118_v17 = vmul.f32 %v967_v33, %v7082_v56  ;;  %v977_v18 = vsel %vm7355_vm8, %v7222_v61, %v973_v54  ;;  %v863_v19 = vsel %vm646_vm1, %v805_v9, 0.0  ;;  %v7366_v23 = vsub.f32 %v7160_v8, %v774_v13 }
  0xce   :  { %v981_v26 = vmul.f32 0.5, %v980_v0  ;;  %v7368_v28 = vadd.f32 1e-05, %v931_v20  ;;  %v864_v1 = vrot.slane %v863_v19, 4  ;;  %v724_v11 = vsel %vm646_vm1, %v7204_v41, 0.0 }
  0xcf   :  { %vm985_vm9 = vweird.f32 %v7288_v58  ;;  %v806_v56 = vmul.f32 %v7366_v23, %v7366_v23  ;;  %v714_v34 = vadd.f32 %v713_v15, %v712_v57  ;;  %v719_v37 = vadd.f32 %v718_v16, %v717_v60  ;;  %v7392_v16 = vpop.f32.mrf.mxu3 }
  0xd0   :  { %v7375_v61 = vpop.eup %6443  ;;  %v1119_v35 = vmul.f32 %v977_v18, %v7092_v62  ;;  %v991_v8 = vmul.f32 0.5, %v990_v59  ;;  %v932_v48 = vmul.f32 %v862_v14, %v7078_v43  ;;  %v865_v50 = vadd.f32 %v864_v1, %v863_v19  ;;  %v6225_v1 = vld [vmem:[%s9022_s4 + $0x1a0] sm:$0xff] }
  0xd1   :  { %vm984_vm10 = vweird.f32 %v7238_v10  ;;  %v870_v53 = vsel %vm646_vm1, %v806_v56, 0.0  ;;  %v715_v54 = vrot.slane %v714_v34, 1  ;;  %v720_v55 = vrot.slane %v719_v37, 2  ;;  %v627_v0 = vpop.f32.mrf.mxu2  ;;  %2375 = vmatpush.bf16.msrb.mxu2 %v6225_v1  ;;  %v6206_v10 = vld [vmem:[%s9022_s4 + $0x108] sm:$0xff] }
  0xd2   :  { %v725_v33 = vrot.slane %v724_v11, 4  ;;  %v1168_v57 = vmul.f32 %v1136_v44, %v1118_v17  ;;  %v982_v60 = vsub.f32 1.5, %v981_v26  ;;  %6445 = vrsqrt.f32 %v7368_v28  ;;  %vm7438_vm13 = vmor %vm984_vm10, %vm985_vm9 }
  0xd3   :  { %v866_v20 = vrot.slane %v865_v50, 2  ;;  %vm995_vm11 = vweird.f32 %v7304_v27  ;;  %v999_v62 = vmul.f32 %v7375_v61, %v7316_v21  ;;  %v871_v9 = vrot.slane %v870_v53, 4 }
  0xd4   :  { %v716_v13 = vadd.f32 %v715_v54, %v714_v34  ;;  %v721_v49 = vadd.f32 %v720_v55, %v719_v37  ;;  %v7389_v59 = vmul.f32 %v1137_v46, %v1119_v35  ;;  %v1142_v14 = vperm.slane %v7263_v30, 6  ;;  %v6233_v46 = vld [vmem:[%s9022_s4 + $0x1e0] sm:$0xff]  ;;  %v6215_v54 = vld [vmem:[%s9022_s4 + $0x150] sm:$0xff] }
  0xd5   :  { %v867_v15 = vadd.f32 %v866_v20, %v865_v50  ;;  %v726_v44 = vadd.f32 %v725_v33, %v724_v11  ;;  %v992_v17 = vsub.f32 1.5, %v991_v8  ;;  %vm994_vm12 = vweird.f32 %v7257_v24  ;;  %2388 = vmatpush.bf16.msrb.mxu3 %v6233_v46  ;;  %2364 = vmatpush.bf16.msrb.mxu1 %v6215_v54 }
  0xd6   :  { %v7395_v18 = vadd.f32 1e-05, %v932_v48  ;;  %v1192_v19 = vperm.slane %v7269_v31, 6  ;;  %v872_v26 = vadd.f32 %v871_v9, %v870_v53  ;;  %v775_v11 = vmul.f32 %v7078_v43, %v716_v13  ;;  %v6207_v53 = vld [vmem:[%s9022_s4 + $0x110] sm:$0xff]  ;;  %v6224_v9 = vld [vmem:[%s9022_s4 + $0x198] sm:$0xff]  ;;  %vm7479_vm14 = vmor %vm994_vm12, %vm995_vm11 }
  0xd7   :  { %v868_v56 = vrot.slane %v867_v15, 1  ;;  %v722_v34 = vrot.slane %v721_v49, 1  ;;  %v731_v37 = vsel %vm646_vm1, %v7272_v40, 0.0  ;;  %v7409_v35 = vadd.f32 %v1186_v45, %v1168_v57  ;;  %2351 = vmatpush.bf16.msrb.mxu0 %v6207_v53  ;;  %2376 = vmatpush.bf16.msrb.mxu2 %v6224_v9 }
  0xd8   :  { %v983_v8 = vmul.f32 %v7288_v58, %v982_v60  ;;  %v1000_v48 = vmul.f32 %v7375_v61, %v999_v62  ;;  %v873_v50 = vrot.slane %v872_v26, 2  ;;  %v7419_v55 = vpop.eup %6445  ;;  %v7422_v45 = vsub.f32 %v7164_v12, %v775_v11  ;;  %v6232_v12 = vld [vmem:[%s9022_s4 + $0x1d8] sm:$0xff] }
  0xd9   :  { %v869_v33 = vadd.f32 %v868_v56, %v867_v15  ;;  %v723_v0 = vadd.f32 %v722_v34, %v721_v49  ;;  %v727_v57 = vrot.slane %v726_v44, 2  ;;  %v7425_v60 = vmul.f32 %v7304_v27, %v992_v17  ;;  %2389 = vmatpush.bf16.msrb.mxu3 %v6232_v12  ;;  %v6214_v34 = vld [vmem:[%s9022_s4 + $0x148] sm:$0xff] }
  0xda   :  { %6447 = vrsqrt.f32 %v7395_v18  ;;  %v874_v20 = vadd.f32 %v873_v50, %v872_v26  ;;  %v732_v62 = vrot.slane %v731_v37, 4  ;;  %v807_v15 = vmul.f32 %v7422_v45, %v7422_v45  ;;  %2365 = vmatpush.bf16.msrb.mxu1 %v6214_v34 }
  0xdb   :  { %v933_v49 = vmul.f32 %v869_v33, %v7078_v43  ;;  %v776_v17 = vmul.f32 %v7078_v43, %v723_v0  ;;  %v728_v26 = vadd.f32 %v727_v57, %v726_v44  ;;  %v987_v1 = vsel %vm7438_vm13, %v7288_v58, %v983_v8  ;;  %2352 = vmatpush.bf16.msrb.mxu0 %v6206_v10  ;;  %v6223_v0 = vld [vmem:[%s9022_s4 + $0x190] sm:$0xff] }
  0xdc   :  { %v1001_v46 = vmul.f32 0.5, %v1000_v48  ;;  %v875_v56 = vrot.slane %v874_v20, 1  ;;  %v733_v11 = vadd.f32 %v732_v62, %v731_v37  ;;  %v1009_v44 = vmul.f32 %v7419_v55, %v7368_v28  ;;  %v640_v37 = vpop.f32.mrf.mxu3  ;;  %v6231_v57 = vld [vmem:[%s9022_s4 + $0x1d0] sm:$0xff]  ;;  %2377 = vmatpush.bf16.msrb.mxu2 %v6223_v0 }
  0xdd   :  { %v877_v50 = vsel %vm646_vm1, %v807_v15, 0.0  ;;  %v7459_v58 = vsub.f32 %v7200_v38, %v776_v17  ;;  %v729_v8 = vrot.slane %v728_v26, 1  ;;  %v7461_v48 = vadd.f32 1e-05, %v933_v49  ;;  %2390 = vmatpush.bf16.msrb.mxu3 %v6231_v57  ;;  %v6205_v49 = vld [vmem:[%s9022_s4 + $0x100] sm:$0xff] }
  0xde   :  { %v876_v53 = vadd.f32 %v875_v56, %v874_v20  ;;  %v878_v54 = vrot.slane %v877_v50, 4  ;;  %v734_v33 = vrot.slane %v733_v11, 2  ;;  %v7472_v38 = vadd.f32 %v1187_v47, %v7389_v59  ;;  %v6213_v15 = vld [vmem:[%s9022_s4 + $0x140] sm:$0xff] }
  0xdf   :  { %v1120_v62 = vmul.f32 %v987_v1, %v7127_v25  ;;  %vm1004_vm15 = vweird.f32 %v7316_v21  ;;  %v808_v9 = vmul.f32 %v7459_v58, %v7459_v58  ;;  %v730_v12 = vadd.f32 %v729_v8, %v728_v26  ;;  %2353 = vmatpush.bf16.msrb.mxu0 %v6205_v49  ;;  %2366 = vmatpush.bf16.msrb.mxu1 %v6213_v15 }
  0xe0   :  { %v7486_v13 = vpop.eup %6447  ;;  %v997_v25 = vsel %vm7479_vm14, %v7304_v27, %v7425_v60  ;;  %v934_v47 = vmul.f32 %v876_v53, %v7078_v43  ;;  %v879_v24 = vadd.f32 %v878_v54, %v877_v50  ;;  %v738_v59 = vsel %vm646_vm1, %v7274_v42, 0.0  ;;  %v6222_v53 = vld [vmem:[%s9022_s4 + $0x188] sm:$0xff] }
  0xe1   :  { %v1002_v17 = vsub.f32 1.5, %v1001_v46  ;;  %v884_v26 = vsel %vm646_vm1, %v808_v9, 0.0  ;;  %v777_v27 = vmul.f32 %v7078_v43, %v730_v12  ;;  %v735_v60 = vadd.f32 %v734_v33, %v733_v11  ;;  %v6230_v54 = vld [vmem:[%s9022_s4 + $0x1c8] sm:$0xff]  ;;  %2378 = vmatpush.bf16.msrb.mxu2 %v6222_v53 }
  0xe2   :  { %v1010_v1 = vmul.f32 %v7419_v55, %v1009_v44  ;;  %6449 = vrsqrt.f32 %v7461_v48  ;;  %v880_v56 = vrot.slane %v879_v24, 2  ;;  %v885_v10 = vrot.slane %v884_v26, 4  ;;  %2391 = vmatpush.bf16.msrb.mxu3 %v6230_v54 }
  0xe3   :  { %v1019_v34 = vmul.f32 %v7486_v13, %v7395_v18  ;;  %v7508_v50 = vsub.f32 %v7204_v41, %v777_v27  ;;  %v736_v46 = vrot.slane %v735_v60, 1  ;;  %v739_v8 = vrot.slane %v738_v59, 4  ;;  %v6229_v27 = vld [vmem:[%s9022_s4 + $0x1c0] sm:$0xff] }
  0xe4   :  { %vm1005_vm0 = vweird.f32 %v7375_v61  ;;  %v7511_v37 = vadd.f32 1e-05, %v934_v47  ;;  %v881_v11 = vadd.f32 %v880_v56, %v879_v24  ;;  %v886_v44 = vadd.f32 %v885_v10, %v884_v26 }
  0xe5   :  { %v1121_v33 = vmul.f32 %v997_v25, %v7132_v29  ;;  %v1003_v41 = vmul.f32 %v7375_v61, %v1002_v17  ;;  %v809_v0 = vmul.f32 %v7508_v50, %v7508_v50  ;;  %v737_v57 = vadd.f32 %v736_v46, %v735_v60  ;;  %vm7534_vm2 = vmor %vm1004_vm15, %vm1005_vm0 }
  0xe6   :  { %v1170_v20 = vmul.f32 %v1138_v51, %v1120_v62  ;;  %v1011_v9 = vmul.f32 0.5, %v1010_v1  ;;  %v882_v12 = vrot.slane %v881_v11, 1  ;;  %v887_v47 = vrot.slane %v886_v44, 2  ;;  %2392 = vmatpush.bf16.msrb.mxu3 %v6229_v27 }
  0xe7   :  { %v1020_v24 = vmul.f32 %v7486_v13, %v1019_v34  ;;  %v891_v49 = vsel %vm646_vm1, %v809_v0, 0.0  ;;  %v778_v29 = vmul.f32 %v7078_v43, %v737_v57  ;;  %v740_v25 = vadd.f32 %v739_v8, %v738_v59  ;;  %v6221_v59 = vld [vmem:[%s9022_s4 + $0x180] sm:$0xff] }
  0xe8   :  { %v7528_v15 = vpop.eup %6449  ;;  %vm1014_vm3 = vweird.f32 %v7368_v28  ;;  %6451 = vrsqrt.f32 %v7511_v37  ;;  %v883_v62 = vadd.f32 %v882_v12, %v881_v11  ;;  %v888_v17 = vadd.f32 %v887_v47, %v886_v44  ;;  %2379 = vmatpush.bf16.msrb.mxu2 %v6221_v59 }
  0xe9   :  { %v892_v26 = vrot.slane %v891_v49, 4  ;;  %v1171_v21 = vmul.f32 %v1139_v4, %v1121_v33  ;;  %v1007_v60 = vsel %vm7534_vm2, %v7375_v61, %v1003_v41  ;;  %v7552_v1 = vsub.f32 %v7272_v40, %v778_v29 }
  0xea   :  { %v741_v56 = vrot.slane %v740_v25, 2  ;;  %v1012_v10 = vsub.f32 1.5, %v1011_v9  ;;  %v935_v34 = vmul.f32 %v883_v62, %v7078_v43  ;;  %v889_v46 = vrot.slane %v888_v17, 1 }
  0xeb   :  { %v893_v8 = vadd.f32 %v892_v26, %v891_v49  ;;  %v1021_v11 = vmul.f32 0.5, %v1020_v24  ;;  %v1029_v44 = vmul.f32 %v7528_v15, %v7461_v48  ;;  %v810_v4 = vmul.f32 %v7552_v1, %v7552_v1 }
  0xec   :  { %v742_v53 = vadd.f32 %v741_v56, %v740_v25  ;;  %v7561_v40 = vadd.f32 %v1188_v3, %v1170_v20  ;;  %v7563_v61 = vadd.f32 1e-05, %v935_v34  ;;  %v890_v54 = vadd.f32 %v889_v46, %v888_v17 }
  0xed   :  { %v894_v33 = vrot.slane %v893_v8, 2  ;;  %vm1015_vm4 = vweird.f32 %v7419_v55  ;;  %v898_v41 = vsel %vm646_vm1, %v810_v4, 0.0  ;;  %v745_v57 = vsel %vm646_vm1, %v7338_v63, 0.0 }
  0xee   :  { %v743_v0 = vrot.slane %v742_v53, 1  ;;  %v7569_v9 = vpop.eup %6451  ;;  %v7573_v12 = vadd.f32 %v1189_v5, %v1171_v21  ;;  %v1122_v3 = vmul.f32 %v1007_v60, %v7158_v52  ;;  %v1013_v20 = vmul.f32 %v7419_v55, %v1012_v10  ;;  %vm7586_vm5 = vmor %vm1014_vm3, %vm1015_vm4 }
  0xef   :  { %v936_v47 = vmul.f32 %v890_v54, %v7078_v43  ;;  %v1022_v24 = vsub.f32 1.5, %v1021_v11  ;;  %v1030_v49 = vmul.f32 %v7528_v15, %v1029_v44  ;;  %v895_v29 = vadd.f32 %v894_v33, %v893_v8 }
  0xf0   :  { %v899_v25 = vrot.slane %v898_v41, 4  ;;  %6453 = vrsqrt.f32 %v7563_v61  ;;  %v744_v62 = vadd.f32 %v743_v0, %v742_v53  ;;  %v746_v17 = vrot.slane %v745_v57, 4 }
  0xf1   :  { %v7580_v51 = vadd.f32 1e-05, %v936_v47  ;;  %v1039_v5 = vmul.f32 %v7569_v9, %v7511_v37  ;;  %v896_v26 = vrot.slane %v895_v29, 1  ;;  %v752_v27 = vsel %vm646_vm1, %v7392_v16, 0.0 }
  0xf2   :  { %v900_v59 = vadd.f32 %v899_v25, %v898_v41  ;;  %v1017_v21 = vsel %vm7586_vm5, %v7419_v55, %v1013_v20  ;;  %vm1025_vm6 = vweird.f32 %v7486_v13  ;;  %v779_v28 = vmul.f32 %v7078_v43, %v744_v62 }
  0xf3   :  { %6455 = vrsqrt.f32 %v7580_v51  ;;  %v1023_v60 = vmul.f32 %v7486_v13, %v1022_v24  ;;  %v1031_v56 = vmul.f32 0.5, %v1030_v49  ;;  %v897_v10 = vadd.f32 %v896_v26, %v895_v29 }
  0xf4   :  { %v901_v34 = vrot.slane %v900_v59, 2  ;;  %vm1024_vm7 = vweird.f32 %v7395_v18  ;;  %v7603_v46 = vsub.f32 %v7274_v42, %v779_v28  ;;  %v747_v8 = vadd.f32 %v746_v17, %v745_v57 }
  0xf5   :  { %v753_v11 = vrot.slane %v752_v27, 4  ;;  %v1172_v55 = vmul.f32 %v1140_v32, %v1122_v3  ;;  %v1143_v44 = vperm.slane %v7263_v30, 7  ;;  %v1193_v4 = vperm.slane %v7269_v31, 7  ;;  %vm7615_vm8 = vmor %vm1024_vm7, %vm1025_vm6 }
  0xf6   :  { %v1040_v53 = vmul.f32 %v7569_v9, %v1039_v5  ;;  %v7610_v54 = vpop.eup %6453  ;;  %v1123_v33 = vmul.f32 %v1017_v21, %v7184_v22  ;;  %v937_v18 = vmul.f32 %v897_v10, %v7078_v43  ;;  %v902_v41 = vadd.f32 %v901_v34, %v900_v59  ;;  %v7628_v22 = vld [vmem:[%s9020_s2 + $0x8] sm:$0xff]  ;;  %v6244_v21 = vld [vmem:[%s9022_s4 + $0x238] sm:$0xff] }
  0xf7   :  { %v811_v32 = vmul.f32 %v7603_v46, %v7603_v46  ;;  %v1027_v0 = vsel %vm7615_vm8, %v7486_v13, %v1023_v60  ;;  %v1032_v57 = vsub.f32 1.5, %v1031_v56  ;;  %v748_v3 = vrot.slane %v747_v8, 2 }
  0xf8   :  { %v754_v20 = vadd.f32 %v753_v11, %v752_v27  ;;  %v7632_v24 = vadd.f32 1e-05, %v937_v18  ;;  %v903_v49 = vrot.slane %v902_v41, 1  ;;  %v1234_v25 = vmax.f32 %v7409_v35, 0.0  ;;  %v6243_v18 = vld [vmem:[%s9022_s4 + $0x230] sm:$0xff] }
  0xf9   :  { %v7630_v47 = vpop.eup %6455  ;;  %v905_v29 = vsel %vm646_vm1, %v811_v32, 0.0  ;;  %v7638_v13 = vadd.f32 %v1190_v36, %v1172_v55  ;;  %v1041_v62 = vmul.f32 0.5, %v1040_v53  ;;  %v1049_v17 = vmul.f32 %v7610_v54, %v7563_v61 }
  0xfa   :  { %v906_v52 = vrot.slane %v905_v29, 4  ;;  %v1173_v5 = vmul.f32 %v1141_v2, %v1123_v33  ;;  %v1144_v26 = vperm.slane %v7628_v22, 0  ;;  %v1059_v59 = vmul.f32 %v7630_v47, %v7580_v51 }
  0xfb   :  { %6457 = vrsqrt.f32 %v7632_v24  ;;  %v1124_v35 = vmul.f32 %v1027_v0, %v7236_v7  ;;  %v1033_v36 = vmul.f32 %v7528_v15, %v1032_v57  ;;  %vm1035_vm9 = vweird.f32 %v7528_v15  ;;  %v7681_v57 = vld [vmem:[%s9021_s3 + $0x8] sm:$0xff] }
  0xfc   :  { %v907_v27 = vadd.f32 %v906_v52, %v905_v29  ;;  %v904_v28 = vadd.f32 %v903_v49, %v902_v41  ;;  %v749_v2 = vadd.f32 %v748_v3, %v747_v8  ;;  %v755_v60 = vrot.slane %v754_v20, 2  ;;  %v6260_v52 = vld [vmem:[%s9022_s4 + $0x2b8] sm:$0xff] }
  0xfd   :  { %v1250_v56 = vpack.c.bf16 %v1234_v25, %v1234_v25  ;;  %vm1034_vm10 = vweird.f32 %v7461_v48  ;;  %v1042_v10 = vsub.f32 1.5, %v1041_v62  ;;  %v1050_v34 = vmul.f32 %v7610_v54, %v1049_v17 }
  0xfe   :  { %v908_v11 = vrot.slane %v907_v27, 2  ;;  %v1060_v7 = vmul.f32 %v7630_v47, %v1059_v59  ;;  %v750_v55 = vrot.slane %v749_v2, 1  ;;  %v756_v53 = vadd.f32 %v755_v60, %v754_v20  ;;  %vm7662_vm11 = vmor %vm1034_vm10, %vm1035_vm9 }
  0xff   :  { %2302 = vmatmul.bf16.vlgmr.msra.gmra.mxu0 %v1250_v56  ;;  %v1235_v33 = vmax.f32 %v7472_v38, 0.0  ;;  %v1174_v42 = vmul.f32 %v1142_v14, %v1124_v35  ;;  %vm1044_vm12 = vweird.f32 %v7511_v37  ;;  %v1236_v41 = vmax.f32 %v7561_v40, 0.0 }
 0x100   :  { %v909_v48 = vadd.f32 %v908_v11, %v907_v27  ;;  %2398 = vmatpush.bf16.msra.mxu0 %v6244_v21  ;;  %v1037_v14 = vsel %vm7662_vm11, %v7528_v15, %v1033_v36  ;;  %vm1045_vm13 = vweird.f32 %v7569_v9  ;;  %v938_v32 = vmul.f32 %v904_v28, %v7078_v43  ;;  %v6252_v15 = vld [vmem:[%s9022_s4 + $0x278] sm:$0xff]  ;;  %v6242_v21 = vld [vmem:[%s9022_s4 + $0x228] sm:$0xff]  ;;  %v6251_v11 = vld [vmem:[%s9022_s4 + $0x270] sm:$0xff] }
 0x101   :  { %v7671_v38 = vpop.eup %6457  ;;  %v751_v0 = vadd.f32 %v750_v55, %v749_v2  ;;  %v1043_v3 = vmul.f32 %v7569_v9, %v1042_v10  ;;  %v1051_v20 = vmul.f32 0.5, %v1050_v34  ;;  %v1061_v29 = vmul.f32 0.5, %v1060_v7  ;;  %vm7702_vm14 = vmor %vm1044_vm12, %vm1045_vm13 }
 0x102   :  { %v1069_v40 = vmul.f32 %v7671_v38, %v7632_v24  ;;  %v910_v49 = vrot.slane %v909_v48, 1  ;;  %v757_v62 = vrot.slane %v756_v53, 1  ;;  %v1251_v17 = vpack.c.bf16 %v1235_v33, %v1235_v33 }
 0x103   :  { %v780_v25 = vmul.f32 %v7078_v43, %v751_v0  ;;  %v1125_v59 = vmul.f32 %v1037_v14, %v7325_v39  ;;  %v1252_v27 = vpack.c.bf16 %v1236_v41, %v1236_v41  ;;  %v1194_v2 = vperm.slane %v7681_v57, 0  ;;  %v6250_v41 = vld [vmem:[%s9022_s4 + $0x268] sm:$0xff] }
 0x104   :  { %v1070_v35 = vmul.f32 %v7671_v38, %v1069_v40  ;;  %v911_v36 = vadd.f32 %v910_v49, %v909_v48  ;;  %2399 = vmatpush.bf16.msra.mxu0 %v6243_v18  ;;  %v7707_v39 = vadd.f32 1e-05, %v938_v32  ;;  %v758_v56 = vadd.f32 %v757_v62, %v756_v53  ;;  %2315 = vmatmul.bf16.vlgmr.msra.gmra.mxu1 %v1251_v17  ;;  %v6268_v48 = vld [vmem:[%s9022_s4 + $0x2f8] sm:$0xff]  ;;  %v6241_v18 = vld [vmem:[%s9022_s4 + $0x220] sm:$0xff]  ;;  %v6267_v49 = vld [vmem:[%s9022_s4 + $0x2f0] sm:$0xff] }
 0x105   :  { %v7710_v60 = vsub.f32 %v7338_v63, %v780_v25  ;;  %v7714_v10 = vadd.f32 %v1191_v6, %v1173_v5  ;;  %v1047_v37 = vsel %vm7702_vm14, %v7569_v9, %v1043_v3  ;;  %v1052_v34 = vsub.f32 1.5, %v1051_v20  ;;  %2411 = vmatpush.bf16.msra.mxu1 %v6252_v15  ;;  %2328 = vmatmul.bf16.vlgmr.msra.gmra.mxu2 %v1252_v27  ;;  %v6259_v9 = vld [vmem:[%s9022_s4 + $0x2b0] sm:$0xff]  ;;  %v6240_v15 = vld [vmem:[%s9022_s4 + $0x218] sm:$0xff] }
 0x106   :  { %v1237_v63 = vmax.f32 %v7573_v12, 0.0  ;;  %v1062_v7 = vsub.f32 1.5, %v1061_v29  ;;  %v781_v6 = vmul.f32 %v7078_v43, %v758_v56  ;;  %2424 = vmatpush.bf16.msra.mxu2 %v6260_v52  ;;  %v1238_v5 = vmax.f32 %v7638_v13, 0.0 }
 0x107   :  { %v812_v55 = vmul.f32 %v7710_v60, %v7710_v60  ;;  %v7732_v53 = vadd.f32 %v1192_v19, %v1174_v42  ;;  %v1175_v12 = vmul.f32 %v1143_v44, %v1125_v59  ;;  %v1071_v33 = vmul.f32 0.5, %v1070_v35 }
 0x108   :  { %v939_v8 = vmul.f32 %v911_v36, %v7078_v43  ;;  %2400 = vmatpush.bf16.msra.mxu0 %v6242_v21  ;;  %6459 = vrsqrt.f32 %v7707_v39  ;;  %v7746_v13 = vsub.f32 %v7392_v16, %v781_v6  ;;  %v1253_v30 = vpack.c.bf16 %v1237_v63, %v1237_v63  ;;  %v6248_v6 = vld [vmem:[%s9022_s4 + $0x258] sm:$0xff] }
 0x109   :  { %v912_v19 = vsel %vm646_vm1, %v812_v55, 0.0  ;;  %v1126_v44 = vmul.f32 %v1047_v37, %v7366_v23  ;;  %v1053_v42 = vmul.f32 %v7610_v54, %v1052_v34  ;;  %vm1055_vm15 = vweird.f32 %v7610_v54  ;;  %2412 = vmatpush.bf16.msra.mxu1 %v6251_v11  ;;  %v6258_v23 = vld [vmem:[%s9022_s4 + $0x2a8] sm:$0xff] }
 0x10a   :  { %vm1065_vm0 = vweird.f32 %v7630_v47  ;;  %v1063_v14 = vmul.f32 %v7630_v47, %v1062_v7  ;;  %v913_v32 = vrot.slane %v912_v19, 4  ;;  %v813_v16 = vmul.f32 %v7746_v13, %v7746_v13  ;;  %2341 = vmatmul.bf16.vlgmr.msra.gmra.mxu3 %v1253_v30  ;;  %2425 = vmatpush.bf16.msra.mxu2 %v6259_v9 }
 0x10b   :  { %v1254_v0 = vpack.c.bf16 %v1238_v5, %v1238_v5  ;;  %vm1054_vm2 = vweird.f32 %v7563_v61  ;;  %v1145_v3 = vperm.slane %v7628_v22, 1  ;;  %v1072_v20 = vsub.f32 1.5, %v1071_v33  ;;  %2437 = vmatpush.bf16.msra.mxu3 %v6268_v48 }
 0x10c   :  { %v7763_v40 = vadd.f32 1e-05, %v939_v8  ;;  %2401 = vmatpush.bf16.msra.mxu0 %v6241_v18  ;;  %vm7773_vm3 = vmor %vm1054_vm2, %vm1055_vm15  ;;  %vm1064_vm4 = vweird.f32 %v7580_v51  ;;  %v914_v61 = vadd.f32 %v913_v32, %v912_v19  ;;  %v919_v25 = vsel %vm646_vm1, %v813_v16, 0.0  ;;  %v6249_v51 = vld [vmem:[%s9022_s4 + $0x260] sm:$0xff]  ;;  %v6238_v8 = vld [vmem:[%s9022_s4 + $0x208] sm:$0xff] }
 0x10d   :  { %v1239_v62 = vmax.f32 %v7714_v10, 0.0  ;;  %v1057_v17 = vsel %vm7773_vm3, %v7610_v54, %v1053_v42  ;;  %vm7785_vm5 = vmor %vm1064_vm4, %vm1065_vm0  ;;  %v1146_v59 = vperm.slane %v7628_v22, 2  ;;  %v920_v35 = vrot.slane %v919_v25, 4  ;;  %2413 = vmatpush.bf16.msra.mxu1 %v6250_v41  ;;  %v6257_v10 = vld [vmem:[%s9022_s4 + $0x2a0] sm:$0xff]  ;;  %v6247_v32 = vld [vmem:[%s9022_s4 + $0x250] sm:$0xff] }
 0x10e   :  { %v1240_v36 = vmax.f32 %v7732_v53, 0.0  ;;  %v7794_v27 = vpop.eup %6459  ;;  %v1225_v54 = vadd.f32 %v1193_v4, %v1175_v12  ;;  %v1176_v21 = vmul.f32 %v1144_v26, %v1126_v44  ;;  %v1067_v28 = vsel %vm7785_vm5, %v7630_v47, %v1063_v14  ;;  %2426 = vmatpush.bf16.msra.mxu2 %v6258_v23  ;;  %v6266_v4 = vld [vmem:[%s9022_s4 + $0x2e8] sm:$0xff]  ;;  %v6239_v47 = vld [vmem:[%s9022_s4 + $0x210] sm:$0xff]  ;;  %v6256_v53 = vld [vmem:[%s9022_s4 + $0x298] sm:$0xff] }
 0x10f   :  { %v915_v56 = vrot.slane %v914_v61, 2  ;;  %2354 = vmatmul.bf16.vlgmr.msrb.gmra.mxu0 %v1254_v0  ;;  %v1073_v37 = vmul.f32 %v7671_v38, %v1072_v20  ;;  %vm1075_vm6 = vweird.f32 %v7671_v38  ;;  %6461 = vrsqrt.f32 %v7763_v40  ;;  %2438 = vmatpush.bf16.msra.mxu3 %v6267_v49 }
 0x110   :  { %v921_v31 = vadd.f32 %v920_v35, %v919_v25  ;;  %2402 = vmatpush.bf16.msra.mxu0 %v6240_v15  ;;  %v1127_v26 = vmul.f32 %v1057_v17, %v7422_v45  ;;  %vm1074_vm7 = vweird.f32 %v7632_v24  ;;  %v1255_v11 = vpack.c.bf16 %v1239_v62, %v1239_v62  ;;  %v6264_v15 = vld [vmem:[%s9022_s4 + $0x2d8] sm:$0xff]  ;;  %v6246_v35 = vld [vmem:[%s9022_s4 + $0x248] sm:$0xff] }
 0x111   :  { %v916_v34 = vadd.f32 %v915_v56, %v914_v61  ;;  %v1128_v63 = vmul.f32 %v1067_v28, %v7459_v58  ;;  %v1079_v7 = vmul.f32 %v7794_v27, %v7707_v39  ;;  %2414 = vmatpush.bf16.msra.mxu1 %v6249_v51  ;;  %v1256_v9 = vpack.c.bf16 %v1240_v36, %v1240_v36  ;;  %vm7827_vm8 = vmor %vm1074_vm7, %vm1075_vm6  ;;  %v6276_v62 = vld [vmem:[%s9022_s4 + $0x338] sm:$0xff]  ;;  %v6263_v56 = vld [vmem:[%s9022_s4 + $0x2d0] sm:$0xff] }
 0x112   :  { %v922_v55 = vrot.slane %v921_v31, 2  ;;  %v1226_v5 = vadd.f32 %v1194_v2, %v1176_v21  ;;  %2427 = vmatpush.bf16.msra.mxu2 %v6257_v10  ;;  %v1241_v24 = vmax.f32 %v1225_v54, 0.0  ;;  %v1077_v12 = vsel %vm7827_vm8, %v7671_v38, %v1073_v37  ;;  %v6265_v2 = vld [vmem:[%s9022_s4 + $0x2e0] sm:$0xff]  ;;  %v6254_v54 = vld [vmem:[%s9022_s4 + $0x288] sm:$0xff] }
 0x113   :  { %v917_v58 = vrot.slane %v916_v34, 1  ;;  %2439 = vmatpush.bf16.msra.mxu3 %v6266_v4  ;;  %v1177_v48 = vmul.f32 %v1145_v3, %v1127_v26  ;;  %v1195_v18 = vperm.slane %v7681_v57, 1  ;;  %v1196_v19 = vperm.slane %v7681_v57, 2  ;;  %v6255_v3 = vld [vmem:[%s9022_s4 + $0x290] sm:$0xff]  ;;  %v6245_v4 = vld [vmem:[%s9022_s4 + $0x240] sm:$0xff]  ;;  %v6274_v45 = vld [vmem:[%s9022_s4 + $0x328] sm:$0xff] }
 0x114   :  { %v923_v33 = vadd.f32 %v922_v55, %v921_v31  ;;  %2403 = vmatpush.bf16.msra.mxu0 %v6239_v47  ;;  %2367 = vmatmul.bf16.vlgmr.msrb.gmra.mxu1 %v1255_v11  ;;  %v1178_v38 = vmul.f32 %v1146_v59, %v1128_v63  ;;  %v1147_v42 = vperm.slane %v7628_v22, 3  ;;  %v1080_v41 = vmul.f32 %v7794_v27, %v1079_v7  ;;  %v6275_v31 = vld [vmem:[%s9022_s4 + $0x330] sm:$0xff]  ;;  %v6284_v11 = vld [vmem:[%s9022_s4 + $0x378] sm:$0xff]  ;;  %v6253_v63 = vld [vmem:[%s9022_s4 + $0x280] sm:$0xff] }
 0x115   :  { %v918_v30 = vadd.f32 %v917_v58, %v916_v34  ;;  %v7845_v44 = vpop.eup %6461  ;;  %2415 = vmatpush.bf16.msra.mxu1 %v6248_v6  ;;  %2380 = vmatmul.bf16.vlgmr.msrb.gmra.mxu2 %v1256_v9  ;;  %v1129_v16 = vmul.f32 %v1077_v12, %v7508_v50  ;;  %v1257_v0 = vpack.c.bf16 %v1241_v24, %v1241_v24  ;;  %v1242_v20 = vmax.f32 %v1226_v5, 0.0  ;;  %v6237_v50 = vld [vmem:[%s9022_s4 + $0x200] sm:$0xff]  ;;  %v6262_v7 = vld [vmem:[%s9022_s4 + $0x2c8] sm:$0xff]  ;;  %v6292_v55 = vld [vmem:[%s9022_s4 + $0x3b8] sm:$0xff] }
 0x116   :  { %v924_v14 = vrot.slane %v923_v33, 1  ;;  %2428 = vmatpush.bf16.msra.mxu2 %v6256_v53  ;;  %v1227_v29 = vadd.f32 %v1195_v18, %v1177_v48  ;;  %v1089_v61 = vmul.f32 %v7845_v44, %v7763_v40  ;;  %v1228_v17 = vadd.f32 %v1196_v19, %v1178_v38  ;;  %v6283_v12 = vld [vmem:[%s9022_s4 + $0x370] sm:$0xff]  ;;  %v6261_v48 = vld [vmem:[%s9022_s4 + $0x2c0] sm:$0xff]  ;;  %v6300_v38 = vld [vmem:[%s9022_s4 + $0x3f8] sm:$0xff] }
 0x117   :  { %v940_v23 = vmul.f32 %v918_v30, %v7078_v43  ;;  %2440 = vmatpush.bf16.msra.mxu3 %v6265_v2  ;;  %v1197_v52 = vperm.slane %v7681_v57, 3  ;;  %v1179_v51 = vmul.f32 %v1147_v42, %v1129_v16  ;;  %v1081_v36 = vmul.f32 0.5, %v1080_v41  ;;  %v6291_v18 = vld [vmem:[%s9022_s4 + $0x3b0] sm:$0xff]  ;;  %v6273_v42 = vld [vmem:[%s9022_s4 + $0x320] sm:$0xff]  ;;  %v6282_v16 = vld [vmem:[%s9022_s4 + $0x368] sm:$0xff] }
 0x118   :  { %v925_v49 = vadd.f32 %v924_v14, %v923_v33  ;;  %2404 = vmatpush.bf16.msra.mxu0 %v6238_v8  ;;  %v1258_v21 = vpack.c.bf16 %v1242_v20, %v1242_v20  ;;  %v1090_v10 = vmul.f32 %v7845_v44, %v1089_v61  ;;  %v1243_v37 = vmax.f32 %v1227_v29, 0.0  ;;  %v6293_v41 = vld [vmem:[%s9022_s4 + $0x3c0] sm:$0xff] }
 0x119   :  { %v7865_v25 = vadd.f32 1e-05, %v940_v23  ;;  %2416 = vmatpush.bf16.msra.mxu1 %v6247_v32  ;;  %v1244_v47 = vmax.f32 %v1228_v17, 0.0  ;;  %v1229_v26 = vadd.f32 %v1197_v52, %v1179_v51  ;;  %v1082_v34 = vsub.f32 1.5, %v1081_v36  ;;  %v6281_v17 = vld [vmem:[%s9022_s4 + $0x360] sm:$0xff] }
 0x11a   :  { %v941_v59 = vmul.f32 %v925_v49, %v7078_v43  ;;  %2393 = vmatmul.bf16.vlgmr.msrb.gmra.mxu3 %v1257_v0  ;;  %2429 = vmatpush.bf16.msra.mxu2 %v6255_v3  ;;  %v1091_v9 = vmul.f32 0.5, %v1090_v10  ;;  %v1259_v5 = vpack.c.bf16 %v1243_v37, %v1243_v37  ;;  %vm1085_vm9 = vweird.f32 %v7794_v27  ;;  %v6290_v3 = vld [vmem:[%s9022_s4 + $0x3a8] sm:$0xff]  ;;  %v6299_v49 = vld [vmem:[%s9022_s4 + $0x3f0] sm:$0xff]  ;;  %v6288_v37 = vld [vmem:[%s9022_s4 + $0x398] sm:$0xff] }
 0x11b   :  { %6463 = vrsqrt.f32 %v7865_v25  ;;  %2441 = vmatpush.bf16.msra.mxu3 %v6264_v15  ;;  %v1260_v24 = vpack.c.bf16 %v1244_v47, %v1244_v47  ;;  %v1083_v53 = vmul.f32 %v7794_v27, %v1082_v34  ;;  %v1245_v33 = vmax.f32 %v1229_v26, 0.0  ;;  %v6272_v15 = vld [vmem:[%s9022_s4 + $0x318] sm:$0xff]  ;;  %v6297_v47 = vld [vmem:[%s9022_s4 + $0x3e0] sm:$0xff] }
 0x11c   :  { %v7879_v28 = vadd.f32 1e-05, %v941_v59  ;;  %2405 = vmatpush.bf16.msra.mxu0 %v6237_v50  ;;  %vm1084_vm10 = vweird.f32 %v7707_v39  ;;  %v1092_v19 = vsub.f32 1.5, %v1091_v9  ;;  %vm1095_vm12 = vweird.f32 %v7845_v44  ;;  %v6269_v9 = vld [vmem:[%s9022_s4 + $0x300] sm:$0xff] }
 0x11d   :  { %2417 = vmatpush.bf16.msra.mxu1 %v6246_v35  ;;  %vm7936_vm11 = vmor %vm1084_vm10, %vm1085_vm9  ;;  %v1261_v23 = vpack.c.bf16 %v1245_v33, %v1245_v33  ;;  %v1148_v29 = vperm.slane %v7628_v22, 4  ;;  %vm1094_vm14 = vweird.f32 %v7763_v40  ;;  %vm1104_vm0 = vweird.f32 %v7865_v25  ;;  %v6298_v35 = vld [vmem:[%s9022_s4 + $0x3e8] sm:$0xff] }
 0x11e   :  { %6465 = vrsqrt.f32 %v7879_v28  ;;  %2430 = vmatpush.bf16.msra.mxu2 %v6254_v54  ;;  %v1087_v14 = vsel %vm7936_vm11, %v7794_v27, %v1083_v53  ;;  %v1093_v20 = vmul.f32 %v7845_v44, %v1092_v19  ;;  %vm7968_vm15 = vmor %vm1094_vm14, %vm1095_vm12  ;;  %v1198_v36 = vperm.slane %v7681_v57, 4  ;;  %v6285_v19 = vld [vmem:[%s9022_s4 + $0x380] sm:$0xff] }
 0x11f   :  { %2406 = vmatmul.bf16.vlgmr.msra.gmra.mxu0 %v1258_v21  ;;  %2442 = vmatpush.bf16.msra.mxu3 %v6263_v56  ;;  %v1130_v50 = vmul.f32 %v1087_v14, %v7552_v1  ;;  %v6289_v1 = vld [vmem:[%s9022_s4 + $0x3a0] sm:$0xff]  ;;  %v6280_v21 = vld [vmem:[%s9022_s4 + $0x358] sm:$0xff]  ;;  %v1149_v10 = vperm.slane %v7628_v22, 5  ;;  %vm1114_vm4 = vweird.f32 %v7879_v28  ;;  %vm2506_vm6 = vcmask 64512  }
 0x120   :  { %2450 = vmatpush.bf16.msrb.mxu0 %v6276_v62  ;;  %v1097_v40 = vsel %vm7968_vm15, %v7845_v44, %v1093_v20  ;;  %vm2526_vm7 = vcmask 123904  }
 0x121   :  { %v7904_v6 = vpop.eup %6463  ;;  %2418 = vmatpush.bf16.msra.mxu1 %v6245_v4  ;;  %v1180_v51 = vmul.f32 %v1148_v29, %v1130_v50  ;;  %v1131_v56 = vmul.f32 %v1097_v40, %v7603_v46  ;;  %v1150_v4 = vperm.slane %v7628_v22, 6  ;;  %v6270_v46 = vld [vmem:[%s9022_s4 + $0x308] sm:$0xff] }
 0x122   :  { %v1099_v58 = vmul.f32 %v7904_v6, %v7865_v25  ;;  %2431 = vmatpush.bf16.msra.mxu2 %v6253_v63  ;;  %vm1105_vm13 = vweird.f32 %v7904_v6  ;;  %v6271_v25 = vld [vmem:[%s9022_s4 + $0x310] sm:$0xff] }
 0x123   :  { %2443 = vmatpush.bf16.msra.mxu3 %v6262_v7  ;;  %vm7979_vm2 = vmor %vm1104_vm0, %vm1105_vm13  ;;  %v1230_v26 = vadd.f32 %v1198_v36, %v1180_v51  ;;  %v1181_v34 = vmul.f32 %v1149_v10, %v1131_v56  ;;  %v6287_v63 = vld [vmem:[%s9022_s4 + $0x390] sm:$0xff]  ;;  %v2502_v56 = vld [vmem:[%s9024_s6] sm:$0xff]  ;;  %vm2661_vm0 = vcmask 1043456  }
 0x124   :  { %2451 = vmatpush.bf16.msrb.mxu0 %v6275_v31  ;;  %v7916_v2 = vpop.eup %6465  ;;  %v1100_v8 = vmul.f32 %v7904_v6, %v1099_v58  ;;  %2419 = vmatmul.bf16.vlgmr.msra.gmra.mxu1 %v1259_v5  ;;  %v2503_v10 = vld [vmem:[%s9024_s6 + $0x8] sm:$0xff] }
 0x125   :  { %2463 = vmatpush.bf16.msrb.mxu1 %v6284_v11  ;;  %v1109_v30 = vmul.f32 %v7916_v2, %v7879_v28  ;;  %2432 = vmatmul.bf16.vlgmr.msra.gmra.mxu2 %v1260_v24  ;;  %vm1115_vm3 = vweird.f32 %v7916_v2  ;;  %v6279_v28 = vld [vmem:[%s9022_s4 + $0x350] sm:$0xff]  ;;  %v1199_v11 = vperm.slane %v7681_v57, 5  ;;  %v1246_v58 = vmax.f32 %v1230_v26, 0.0  ;;  %v6278_v24 = vld [vmem:[%s9022_s4 + $0x348] sm:$0xff] }
 0x126   :  { %2476 = vmatpush.bf16.msrb.mxu2 %v6292_v55  ;;  %v1101_v39 = vmul.f32 0.5, %v1100_v8  ;;  %vm1116_vm5 = vmor %vm1114_vm4, %vm1115_vm3  ;;  %v1200_v55 = vperm.slane %v7681_v57, 6 }
 0x127   :  { %v1110_v32 = vmul.f32 %v7916_v2, %v1109_v30  ;;  %2444 = vmatpush.bf16.msra.mxu3 %v6261_v48  ;;  %v1231_v53 = vadd.f32 %v1199_v11, %v1181_v34  ;;  %v1262_v8 = vpack.c.bf16 %v1246_v58, %v1246_v58  ;;  %v6277_v48 = vld [vmem:[%s9022_s4 + $0x340] sm:$0xff]  ;;  %v6294_v30 = vld [vmem:[%s9022_s4 + $0x3c8] sm:$0xff] }
 0x128   :  { %2452 = vmatpush.bf16.msrb.mxu0 %v6274_v45  ;;  %v1102_v0 = vsub.f32 1.5, %v1101_v39  ;;  %v1151_v45 = vperm.slane %v7628_v22, 7 }
 0x129   :  { %2464 = vmatpush.bf16.msrb.mxu1 %v6283_v12  ;;  %v1111_v27 = vmul.f32 0.5, %v1110_v32  ;;  %v6286_v12 = vld [vmem:[%s9022_s4 + $0x388] sm:$0xff] }
 0x12a   :  { %2477 = vmatpush.bf16.msrb.mxu2 %v6291_v18  ;;  %v1103_v61 = vmul.f32 %v7904_v6, %v1102_v0  ;;  %2445 = vmatmul.bf16.vlgmr.msra.gmra.mxu3 %v1261_v23  ;;  %v1247_v18 = vmax.f32 %v1231_v53, 0.0 }
 0x12b   :  { %2489 = vmatpush.bf16.msrb.mxu3 %v6300_v38  ;;  %v1112_v62 = vsub.f32 1.5, %v1111_v27 }
 0x12c   :  { %2453 = vmatpush.bf16.msrb.mxu0 %v6273_v42  ;;  %v1107_v44 = vsel %vm7979_vm2, %v7904_v6, %v1103_v61  ;;  %v6296_v6 = vld [vmem:[%s9022_s4 + $0x3d8] sm:$0xff]  ;;  %v1263_v42 = vpack.c.bf16 %v1247_v18, %v1247_v18  ;;  %v6431_v61 = vld [vmem:[%s9023_s5] ss:$0 sm:$0xff]  ;;  %s4781_s5 = sshll.u32 %s6534_s24, 4  ;;  %s4782_s5 = int_to_ptr.vmem [resolvable:$true] %s4781_s5 }
 0x12d   :  { %2465 = vmatpush.bf16.msrb.mxu1 %v6282_v16  ;;  %v1113_v54 = vmul.f32 %v7916_v2, %v1112_v62  ;;  %v1132_v31 = vmul.f32 %v1107_v44, %v7710_v60 }
 0x12e   :  { %2478 = vmatpush.bf16.msrb.mxu2 %v6290_v3 }
 0x12f   :  { %2490 = vmatpush.bf16.msrb.mxu3 %v6299_v49  ;;  %v1117_v60 = vsel %vm1116_vm5, %v7916_v2, %v1113_v54  ;;  %v1182_v7 = vmul.f32 %v1150_v4, %v1132_v31  ;;  %v1201_v2 = vperm.slane %v7681_v57, 7  ;;  %v2504_v31 = vpack.c.bf16 %v2503_v10, %v2502_v56 }
 0x130   :  { %2454 = vmatpush.bf16.msrb.mxu0 %v6272_v15  ;;  %v1133_v5 = vmul.f32 %v1117_v60, %v7746_v13  ;;  %v6295_v13 = vld [vmem:[%s9022_s4 + $0x3d0] sm:$0xff] }
 0x131   :  { %2466 = vmatpush.bf16.msrb.mxu1 %v6281_v17  ;;  %v1232_v33 = vadd.f32 %v1200_v55, %v1182_v7 }
 0x132   :  { %2479 = vmatpush.bf16.msrb.mxu2 %v6289_v1  ;;  %v1183_v22 = vmul.f32 %v1151_v45, %v1133_v5 }
 0x133   :  { %2491 = vmatpush.bf16.msrb.mxu3 %v6298_v35  ;;  %v1248_v38 = vmax.f32 %v1232_v33, 0.0 }
 0x134   :  { %2455 = vmatpush.bf16.msrb.mxu0 %v6271_v25  ;;  %v1233_v57 = vadd.f32 %v1201_v2, %v1183_v22 }
 0x135   :  { %2467 = vmatpush.bf16.msrb.mxu1 %v6280_v21  ;;  %v1264_v39 = vpack.c.bf16 %v1248_v38, %v1248_v38 }
 0x136   :  { %2480 = vmatpush.bf16.msrb.mxu2 %v6288_v37  ;;  %v1249_v14 = vmax.f32 %v1233_v57, 0.0 }
 0x137   :  { %2492 = vmatpush.bf16.msrb.mxu3 %v6297_v47 }
 0x138   :  { %2456 = vmatpush.bf16.msrb.mxu0 %v6270_v46  ;;  %v1265_v32 = vpack.c.bf16 %v1249_v14, %v1249_v14  ;;  %v2511_v46 = vsel %vm2506_vm6, %v2504_v31, 0 }
 0x139   :  { %2468 = vmatpush.bf16.msrb.mxu1 %v6279_v28 }
 0x13a   :  { %2481 = vmatpush.bf16.msrb.mxu2 %v6287_v63 }
 0x13b   :  { %2493 = vmatpush.bf16.msrb.mxu3 %v6296_v6 }
 0x13c   :  { %2457 = vmatpush.bf16.msrb.mxu0 %v6269_v9 }
 0x13d   :  { %2469 = vmatpush.bf16.msrb.mxu1 %v6278_v24 }
 0x13e   :  { %2482 = vmatpush.bf16.msrb.mxu2 %v6286_v12 }
 0x13f   :  { %2458 = vmatmul.bf16.vlgmr.msrb.gmra.mxu0 %v1262_v8  ;;  %2494 = vmatpush.bf16.msrb.mxu3 %v6295_v13 }
 0x140   :  { %2520 = vmatpush.bf16.xpose.msra.mxu0 %v2511_v46 }
 0x141   :  { %2470 = vmatpush.bf16.msrb.mxu1 %v6277_v48 }
 0x142   :  { %2483 = vmatpush.bf16.msrb.mxu2 %v6285_v19 }
 0x143   :  { %2495 = vmatpush.bf16.msrb.mxu3 %v6294_v30 }
 0x144   :  { %2471 = vmatmul.bf16.vlgmr.msrb.gmra.mxu1 %v1263_v42 }
 0x145   :  { %2484 = vmatmul.bf16.vlgmr.msrb.gmra.mxu2 %v1264_v39  ;;  %2603 = vmatpush.bf16.msra.mxu1 %v2504_v31 }
 0x147   :  { %2496 = vmatpush.bf16.msrb.mxu3 %v6293_v41 }
 0x14a   :  { %2497 = vmatmul.bf16.vlgmr.msrb.gmra.mxu3 %v1265_v32 }
 0x17c   :  { %v2303_v16 = vpop.f32.mrf.mxu0 }
 0x17d   :  { %v2304_v52 = vadd.f32 %v6431_v61, %v2303_v16 }
 0x181   :  { %v2316_v23 = vpop.f32.mrf.mxu1 }
 0x182   :  { %v2317_v59 = vadd.f32 %v2316_v23, %v2304_v52 }
 0x184   :  { %v2305_v0 = vpop.f32.mrf.mxu0 }
 0x188   :  { %v2329_v3 = vpop.f32.mrf.mxu2 }
 0x189   :  { %v2318_v20 = vpop.f32.mrf.mxu1  ;;  %v2330_v25 = vadd.f32 %v2329_v3, %v2317_v59 }
 0x18c   :  { %v2355_v27 = vpop.f32.mrf.mxu0 }
 0x18d   :  { %v2342_v49 = vpop.f32.mrf.mxu3 }
 0x18e   :  { %v2343_v44 = vadd.f32 %v2342_v49, %v2330_v25 }
 0x190   :  { %v2331_v15 = vpop.f32.mrf.mxu2  ;;  %v2356_v37 = vadd.f32 %v2355_v27, %v2343_v44 }
 0x191   :  { %v2368_v50 = vpop.f32.mrf.mxu1 }
 0x192   :  { %v2369_v26 = vadd.f32 %v2368_v50, %v2356_v37 }
 0x194   :  { %v2357_v29 = vpop.f32.mrf.mxu0 }
 0x195   :  { %v2344_v62 = vpop.f32.mrf.mxu3 }
 0x198   :  { %v2381_v17 = vpop.f32.mrf.mxu2 }
 0x199   :  { %v2370_v1 = vpop.f32.mrf.mxu1  ;;  %v2382_v60 = vadd.f32 %v2381_v17, %v2369_v26 }
 0x19c   :  { %v2407_v40 = vpop.f32.mrf.mxu0 }
 0x19d   :  { %v2394_v35 = vpop.f32.mrf.mxu3 }
 0x19e   :  { %v2395_v11 = vadd.f32 %v2394_v35, %v2382_v60 }
 0x1a0   :  { %v2383_v51 = vpop.f32.mrf.mxu2  ;;  %v2408_v63 = vadd.f32 %v2407_v40, %v2395_v11 }
 0x1a1   :  { %v2420_v36 = vpop.f32.mrf.mxu1 }
 0x1a2   :  { %v2421_v6 = vadd.f32 %v2420_v36, %v2408_v63 }
 0x1a4   :  { %v2409_v54 = vpop.f32.mrf.mxu0 }
 0x1a5   :  { %v2396_v21 = vpop.f32.mrf.mxu3 }
 0x1a8   :  { %v2433_v4 = vpop.f32.mrf.mxu2 }
 0x1a9   :  { %v2422_v47 = vpop.f32.mrf.mxu1  ;;  %v2434_v9 = vadd.f32 %v2433_v4, %v2421_v6 }
 0x1aa   :  { %v2610_v47 = vld [vmem:[%s9025_s7] sm:$0xff] }
 0x1ab   :  { %v2626_v46 = vunpack.c.l.b16 %v2610_v47 }
 0x1ad   :  { %v2446_v28 = vpop.f32.mrf.mxu3  ;;  %v2642_v26 = vpack.c.b16 %v2626_v46, %v2626_v46 }
 0x1ae   :  { %v2447_v45 = vadd.f32 %v2446_v28, %v2434_v9 }
 0x1af   :  { %v2663_v60 = vsel %vm2661_vm0, %v2642_v26, 0 }
 0x1b0   :  { %v2435_v34 = vpop.f32.mrf.mxu2  ;;  %2717 = vmatpush.bf16.msra.mxu2 %v2663_v60 }
 0x1b5   :  { %v2448_v7 = vpop.f32.mrf.mxu3 }
 0x1bc   :  { %v2459_v55 = vpop.f32.mrf.mxu0 }
 0x1bd   :  { %v2460_v24 = vadd.f32 %v2459_v55, %v2447_v45 }
 0x1c1   :  { %v2472_v5 = vpop.f32.mrf.mxu1 }
 0x1c2   :  { %v2473_v53 = vadd.f32 %v2472_v5, %v2460_v24 }
 0x1c4   :  { %v2461_v58 = vpop.f32.mrf.mxu0 }
 0x1c8   :  { %v2485_v12 = vpop.f32.mrf.mxu2 }
 0x1c9   :  { %v2474_v33 = vpop.f32.mrf.mxu1  ;;  %v2486_v13 = vadd.f32 %v2485_v12, %v2473_v53 }
 0x1ca   :  { %v2611_v33 = vld [vmem:[%s9025_s7 + $0x8] sm:$0xff] }
 0x1cd   :  { %v2498_v22 = vpop.f32.mrf.mxu3 }
 0x1ce   :  { %v2499_v2 = vadd.f32 %v2498_v22, %v2486_v13  ;;  %v2627_v13 = vunpack.c.h.b16 %v2610_v47  ;;  %v2628_v22 = vunpack.c.l.b16 %v2611_v33 }
 0x1d0   :  { %v2505_v8 = vpack.c.bf16 %v2499_v2, %v2499_v2  ;;  %v2487_v48 = vpop.f32.mrf.mxu2  ;;  %v2629_v2 = vunpack.c.h.b16 %v2611_v33  ;;  %v6307_v33 = vld [vmem:[%s9028_s10 + $0x30] sm:$0xff] }
 0x1d1   :  { %v2644_v48 = vpack.c.b16 %v2628_v22, %v2628_v22  ;;  %v6321_v22 = vld [vmem:[%s9028_s10 + $0xa0] sm:$0xff] }
 0x1d2   :  { %5578 = vmatmul.msk.bf16.vlgmr.msra.gmra.mxu0 %vm2506_vm6, %v2505_v8  ;;  %v2643_v8 = vpack.c.b16 %v2627_v13, %v2627_v13  ;;  %v6315_v13 = vld [vmem:[%s9028_s10 + $0x70] sm:$0xff] }
 0x1d5   :  { %v2500_v18 = vpop.f32.mrf.mxu3 }
 0x1d6   :  { %v2645_v18 = vpack.c.b16 %v2629_v2, %v2629_v2  ;;  %v6329_v2 = vld [vmem:[%s9028_s10 + $0xe0] sm:$0xff] }
 0x24f   :  { %v2522_v19 = vpop.f32.mrf.mxu0 }
 0x250   :  { %v2527_v30 = vsel %vm2526_vm7, %v2522_v19, -inf }
 0x251   :  { %2528 = vmax.xlane.f32.xlu0 %v2527_v30  ;;  %v2669_v30 = vsel %vm2661_vm0, %v2644_v48, 0  ;;  %v6314_v48 = vld [vmem:[%s9028_s10 + $0x68] sm:$0xff] }
 0x252   :  { %2743 = vmatpush.bf16.msrb.mxu0 %v2669_v30 }
 0x257   :  { %v2524_v38 = vpop.f32.mrf.mxu0 }
 0x258   :  { %v2672_v38 = vsel %vm2661_vm0, %v2645_v18, 0 }
 0x259   :  { %2756 = vmatpush.bf16.msrb.mxu1 %v2672_v38 }
 0x2c4   :  { %v2529_v57 = vpop.xlane.xlu0 %2528 }
 0x2c5   :  { %v2530_v42 = vsub.f32 %v2522_v19, %v2529_v57  ;;  %v2666_v19 = vsel %vm2661_vm0, %v2643_v8, 0  ;;  %v2612_v57 = vld [vmem:[%s9025_s7 + $0x10] sm:$0xff]  ;;  %v6306_v8 = vld [vmem:[%s9028_s10 + $0x28] sm:$0xff] }
 0x2c6   :  { %2730 = vmatpush.bf16.msra.mxu3 %v2666_v19 }
 0x2c7   :  { %v2531_v41 = vmul.f32 1.442695, %v2530_v42  ;;  %v2613_v42 = vld [vmem:[%s9025_s7 + $0x18] sm:$0xff] }
 0x2c9   :  { %6467 = vpow2.f32 %v2531_v41  ;;  %v2630_v41 = vunpack.c.l.b16 %v2612_v57 }
 0x2cf   :  { %v6468_v39 = vpop.eup %6467 }
 0x2d0   :  { %v2533_v14 = vsel %vm2526_vm7, %v6468_v39, 0.0 }
 0x2d1   :  { %2534 = vadd.xlane.f32.xlu0 %v2533_v14  ;;  %v2632_v14 = vunpack.c.l.b16 %v2613_v42 }
 0x344   :  { %v2535_v32 = vpop.xlane.xlu0 %2534 }
 0x345   :  { %6469 = vrcp.f32 %v2535_v32  ;;  %v2547_v3 = vand.u32 2147483648, %v2535_v32  ;;  %v2545_v27 = vand.u32 2147483647, %v2535_v32  ;;  %vm2541_vm9 = vweird.f32 %v2535_v32 }
 0x347   :  { %v2548_v15 = vor.u32 1.1754944e-38, %v2547_v3  ;;  %vm2546_vm11 = vcmp.eq.f32.partialorder %v2545_v27, 8.507059e+37 }
 0x34b   :  { %v6470_v16 = vpop.eup %6469 }
 0x34c   :  { %v2537_v23 = vmul.f32 %v6470_v16, %v2535_v32  ;;  %vm2542_vm8 = vweird.f32 %v6470_v16  ;;  %v2633_v32 = vunpack.c.h.b16 %v2613_v42 }
 0x34d   :  { %vm2543_vm10 = vmor %vm2541_vm9, %vm2542_vm8  ;;  %vm2592_vm8 = vcmask 130048  }
 0x34e   :  { %v2538_v0 = vsub.f32 1.0, %v2537_v23  ;;  %v2649_v3 = vpack.c.b16 %v2633_v32, %v2633_v32 }
 0x350   :  { %v2539_v20 = vmul.f32 %v6470_v16, %v2538_v0  ;;  %v2648_v0 = vpack.c.b16 %v2632_v14, %v2632_v14 }
 0x352   :  { %v2540_v49 = vadd.f32 %v6470_v16, %v2539_v20 }
 0x354   :  { %v2544_v50 = vsel %vm2543_vm10, %v6470_v16, %v2540_v49  ;;  %v2646_v16 = vpack.c.b16 %v2630_v41, %v2630_v41  ;;  %v2681_v49 = vsel %vm2661_vm0, %v2648_v0, 0 }
 0x355   :  { %v2549_v29 = vsel %vm2546_vm11, %v2548_v15, %v2544_v50  ;;  %v2684_v15 = vsel %vm2661_vm0, %v2649_v3, 0  ;;  %2795 = vmatpush.bf16.msra.mxu0 %v2681_v49  ;;  %v2614_v50 = vld [vmem:[%s9025_s7 + $0x20] sm:$0xff] }
 0x356   :  { %v2550_v61 = vmul.f32 %v6468_v39, %v2549_v29  ;;  %v2631_v39 = vunpack.c.h.b16 %v2612_v57  ;;  %v2675_v20 = vsel %vm2661_vm0, %v2646_v16, 0  ;;  %v2615_v29 = vld [vmem:[%s9025_s7 + $0x28] sm:$0xff] }
 0x357   :  { %2769 = vmatpush.bf16.msrb.mxu2 %v2675_v20 }
 0x358   :  { %v5579_v62 = vadd.f32 -0.0025, %v2550_v61  ;;  %v2647_v23 = vpack.c.b16 %v2631_v39, %v2631_v39 }
 0x35a   :  { %v2554_v17 = vand.u32 2147483647, %v5579_v62  ;;  %v2552_v25 = vmax.f32 %v5579_v62, 0.0  ;;  %v2678_v27 = vsel %vm2661_vm0, %v2647_v23, 0  ;;  %v2635_v62 = vunpack.c.h.b16 %v2614_v50 }
 0x35b   :  { %2782 = vmatpush.bf16.msrb.mxu3 %v2678_v27 }
 0x35c   :  { %v2555_v52 = vadd.f32 1e-12, %v2554_v17  ;;  %v2553_v21 = vmul.f32 %v2552_v25, %v2550_v61  ;;  %v2634_v61 = vunpack.c.l.b16 %v2614_v50  ;;  %v2636_v17 = vunpack.c.l.b16 %v2615_v29 }
 0x35e   :  { %6471 = vrcp.f32 %v2555_v52  ;;  %v2567_v35 = vand.u32 2147483648, %v2555_v52  ;;  %v2565_v36 = vand.u32 2147483647, %v2555_v52  ;;  %vm2561_vm13 = vweird.f32 %v2555_v52 }
 0x360   :  { %v2568_v54 = vor.u32 1.1754944e-38, %v2567_v35  ;;  %vm2566_vm15 = vcmp.eq.f32.partialorder %v2565_v36, 8.507059e+37 }
 0x364   :  { %v6472_v1 = vpop.eup %6471 }
 0x365   :  { %v2557_v40 = vmul.f32 %v6472_v1, %v2555_v52  ;;  %vm2562_vm12 = vweird.f32 %v6472_v1  ;;  %v2637_v52 = vunpack.c.h.b16 %v2615_v29 }
 0x366   :  { %vm2563_vm14 = vmor %vm2561_vm13, %vm2562_vm12 }
 0x367   :  { %v2558_v59 = vsub.f32 1.0, %v2557_v40  ;;  %v2651_v40 = vpack.c.b16 %v2635_v62, %v2635_v62  ;;  %v2653_v35 = vpack.c.b16 %v2637_v52, %v2637_v52 }
 0x369   :  { %v2559_v51 = vmul.f32 %v6472_v1, %v2558_v59  ;;  %v2652_v59 = vpack.c.b16 %v2636_v17, %v2636_v17 }
 0x36b   :  { %v2560_v44 = vadd.f32 %v6472_v1, %v2559_v51 }
 0x36d   :  { %v2564_v56 = vsel %vm2563_vm14, %v6472_v1, %v2560_v44  ;;  %v2650_v1 = vpack.c.b16 %v2634_v61, %v2634_v61  ;;  %v2690_v44 = vsel %vm2661_vm0, %v2651_v40, 0  ;;  %v6328_v40 = vld [vmem:[%s9028_s10 + $0xd8] sm:$0xff] }
 0x36e   :  { %v2569_v10 = vsel %vm2566_vm15, %v2568_v54, %v2564_v56  ;;  %v2693_v54 = vsel %vm2661_vm0, %v2652_v59, 0  ;;  %v2616_v56 = vld [vmem:[%s9025_s7 + $0x30] sm:$0xff] }
 0x36f   :  { %v2570_v37 = vmul.f32 %v2569_v10, %v2553_v21  ;;  %v2687_v36 = vsel %vm2661_vm0, %v2650_v1, 0  ;;  %v2696_v21 = vsel %vm2661_vm0, %v2653_v35, 0  ;;  %v6320_v1 = vld [vmem:[%s9028_s10 + $0x98] sm:$0xff] }
 0x371   :  { %v2571_v31 = vand.u32 2147483647, %v2570_v37 }
 0x373   :  { %v2572_v4 = vsel %vm2526_vm7, %v2571_v31, 0.0  ;;  %v2638_v31 = vunpack.c.l.b16 %v2616_v56 }
 0x374   :  { %2573 = vadd.xlane.f32.xlu1 %v2572_v4  ;;  %v2639_v4 = vunpack.c.h.b16 %v2616_v56 }
 0x375   :  { %v2654_v26 = vpack.c.b16 %v2638_v31, %v2638_v31 }
 0x376   :  { %v2655_v60 = vpack.c.b16 %v2639_v4, %v2639_v4  ;;  %v6319_v4 = vld [vmem:[%s9028_s10 + $0x90] sm:$0xff] }
 0x3e7   :  { %v2574_v28 = vpop.xlane.xlu1 %2573 }
 0x3e8   :  { %v2575_v34 = vmax.f32 %v2574_v28, 1e-12 }
 0x3ea   :  { %6473 = vrcp.f32 %v2575_v34  ;;  %v2587_v55 = vand.u32 2147483648, %v2575_v34  ;;  %v2585_v9 = vand.u32 2147483647, %v2575_v34  ;;  %vm2581_vm3 = vweird.f32 %v2575_v34 }
 0x3ec   :  { %v2588_v45 = vor.u32 1.1754944e-38, %v2587_v55  ;;  %vm2586_vm5 = vcmp.eq.f32.partialorder %v2585_v9, 8.507059e+37  ;;  %v6332_v9 = vld [vmem:[%s9028_s10 + $0xf8] sm:$0xff] }
 0x3f0   :  { %v6474_v11 = vpop.eup %6473 }
 0x3f1   :  { %v2577_v63 = vmul.f32 %v6474_v11, %v2575_v34  ;;  %vm2582_vm2 = vweird.f32 %v6474_v11 }
 0x3f2   :  { %vm2583_vm4 = vmor %vm2581_vm3, %vm2582_vm2 }
 0x3f3   :  { %v2578_v7 = vsub.f32 1.0, %v2577_v63  ;;  %v2702_v63 = vsel %vm2661_vm0, %v2655_v60, 0 }
 0x3f5   :  { %v2579_v6 = vmul.f32 %v6474_v11, %v2578_v7 }
 0x3f7   :  { %v2580_v5 = vadd.f32 %v6474_v11, %v2579_v6  ;;  %v6324_v6 = vld [vmem:[%s9028_s10 + $0xb8] sm:$0xff] }
 0x3f9   :  { %v2584_v58 = vsel %vm2583_vm4, %v6474_v11, %v2580_v5  ;;  %v2699_v11 = vsel %vm2661_vm0, %v2654_v26, 0  ;;  %v6323_v5 = vld [vmem:[%s9028_s10 + $0xb0] sm:$0xff] }
 0x3fa   :  { %v2589_v24 = vsel %vm2586_vm5, %v2588_v45, %v2584_v58  ;;  %v6331_v45 = vld [vmem:[%s9028_s10 + $0xf0] sm:$0xff]  ;;  %v6308_v58 = vld [vmem:[%s9028_s10 + $0x38] sm:$0xff] }
 0x3fb   :  { %v2590_v53 = vmul.f32 %v2589_v24, %v2570_v37  ;;  %v2617_v37 = vld [vmem:[%s9025_s7 + $0x38] sm:$0xff] }
 0x3fc   :  { %v2640_v47 = vunpack.c.l.b16 %v2617_v37  ;;  %v2641_v46 = vunpack.c.h.b16 %v2617_v37  ;;  %v6316_v24 = vld [vmem:[%s9028_s10 + $0x78] sm:$0xff] }
 0x3fd   :  { %v2591_v12 = vpack.c.bf16 %v2590_v53, %v2590_v53  ;;  %4773 = vst.msk [vmem:[#allocation2] sm:$0x3] %vm2526_vm7, %v2590_v53  ;;  %v6322_v53 = vld [vmem:[%s9028_s10 + $0xa8] sm:$0xff] }
 0x3fe   :  { %v2656_v28 = vpack.c.b16 %v2640_v47, %v2640_v47  ;;  %v2657_v34 = vpack.c.b16 %v2641_v46, %v2641_v46  ;;  %v6327_v47 = vld [vmem:[%s9028_s10 + $0xd0] sm:$0xff]  ;;  %4786 = dma.vmem_to_hbm [thread:$0]  %s4782_s5, 32, %s4784_s23, [#allocation3]  }
 0x3ff   :  { %5580 = vmatmul.msk.bf16.vlgmr.msra.gmra.mxu1 %vm2592_vm8, %v2591_v12  ;;  %v6330_v12 = vld [vmem:[%s9028_s10 + $0xe8] sm:$0xff] }
 0x400   :  { %2808 = vmatpush.bf16.msra.mxu1 %v2684_v15  ;;  %v2705_v7 = vsel %vm2661_vm0, %v2656_v28, 0  ;;  %v2708_v55 = vsel %vm2661_vm0, %v2657_v34, 0 }
 0x47c   :  { %v2605_v25 = vpop.f32.mrf.mxu1 }
 0x47d   :  { %v2609_v51 = vpack.c.bf16 %v2605_v25, %v2605_v25 }
 0x47f   :  { %5581 = vmatmul.msk.bf16.vlgmr.msra.gmra.mxu2 %vm2506_vm6, %v2609_v51  ;;  %5582 = vmatmul.msk.bf16.vlgmr.msra.gmra.mxu3 %vm2506_vm6, %v2609_v51 }
 0x480   :  { %5583 = vmatmul.msk.bf16.vlgmr.msrb.gmra.mxu0 %vm2506_vm6, %v2609_v51  ;;  %5584 = vmatmul.msk.bf16.vlgmr.msrb.gmra.mxu1 %vm2506_vm6, %v2609_v51 }
 0x481   :  { %2821 = vmatpush.bf16.msra.mxu2 %v2687_v36  ;;  %2834 = vmatpush.bf16.msra.mxu3 %v2690_v44  ;;  %v6305_v36 = vld [vmem:[%s9028_s10 + $0x20] sm:$0xff] }
 0x482   :  { %2847 = vmatpush.bf16.msrb.mxu0 %v2693_v54  ;;  %2860 = vmatpush.bf16.msrb.mxu1 %v2696_v21  ;;  %v6313_v44 = vld [vmem:[%s9028_s10 + $0x60] sm:$0xff] }
 0x484   :  { %v2607_v10 = vpop.f32.mrf.mxu1 }
 0x48f   :  { %5585 = vmatmul.msk.bf16.vlgmr.msrb.gmra.mxu2 %vm2506_vm6, %v2609_v51  ;;  %5586 = vmatmul.msk.bf16.vlgmr.msrb.gmra.mxu3 %vm2506_vm6, %v2609_v51 }
 0x490   :  { %5587 = vmatmul.msk.bf16.vlgmr.msra.gmra.mxu0 %vm2506_vm6, %v2609_v51  ;;  %5588 = vmatmul.msk.bf16.vlgmr.msra.gmra.mxu1 %vm2506_vm6, %v2609_v51 }
 0x491   :  { %2873 = vmatpush.bf16.msrb.mxu2 %v2699_v11  ;;  %2886 = vmatpush.bf16.msrb.mxu3 %v2702_v63  ;;  %v6304_v63 = vld [vmem:[%s9028_s10 + $0x18] sm:$0xff] }
 0x492   :  { %2899 = vmatpush.bf16.msra.mxu0 %v2705_v7  ;;  %2912 = vmatpush.bf16.msra.mxu1 %v2708_v55  ;;  %v6312_v7 = vld [vmem:[%s9028_s10 + $0x58] sm:$0xff] }
 0x49f   :  { %5589 = vmatmul.msk.bf16.vlgmr.msra.gmra.mxu2 %vm2506_vm6, %v2609_v51  ;;  %5590 = vmatmul.msk.bf16.vlgmr.msra.gmra.mxu3 %vm2506_vm6, %v2609_v51 }
 0x4a0   :  { %5591 = vmatmul.msk.bf16.vlgmr.msrb.gmra.mxu0 %vm2506_vm6, %v2609_v51  ;;  %5592 = vmatmul.msk.bf16.vlgmr.msrb.gmra.mxu1 %vm2506_vm6, %v2609_v51 }
 0x4a1   :  { %4588 = vmatpush.bf16.msrb.mxu0 %v6324_v6  ;;  %4601 = vmatpush.bf16.msrb.mxu1 %v6332_v9 }
 0x4a2   :  { %4562 = vmatpush.bf16.msra.mxu2 %v6308_v58  ;;  %4575 = vmatpush.bf16.msra.mxu3 %v6316_v24 }
 0x4a5   :  { %4589 = vmatpush.bf16.msrb.mxu0 %v6323_v5  ;;  %4602 = vmatpush.bf16.msrb.mxu1 %v6331_v45 }
 0x4a6   :  { %4563 = vmatpush.bf16.msra.mxu2 %v6307_v33  ;;  %4576 = vmatpush.bf16.msra.mxu3 %v6315_v13  ;;  %v6326_v33 = vld [vmem:[%s9028_s10 + $0xc8] sm:$0xff] }
 0x4a9   :  { %4590 = vmatpush.bf16.msrb.mxu0 %v6322_v53  ;;  %4603 = vmatpush.bf16.msrb.mxu1 %v6330_v12  ;;  %v6318_v12 = vld [vmem:[%s9028_s10 + $0x88] sm:$0xff] }
 0x4aa   :  { %4564 = vmatpush.bf16.msra.mxu2 %v6306_v8  ;;  %4577 = vmatpush.bf16.msra.mxu3 %v6314_v48 }
 0x4ad   :  { %4591 = vmatpush.bf16.msrb.mxu0 %v6321_v22  ;;  %4604 = vmatpush.bf16.msrb.mxu1 %v6329_v2 }
 0x4ae   :  { %4565 = vmatpush.bf16.msra.mxu2 %v6305_v36  ;;  %4578 = vmatpush.bf16.msra.mxu3 %v6313_v44 }
 0x4af   :  { %5593 = vmatmul.msk.bf16.vlgmr.msrb.gmra.mxu2 %vm2506_vm6, %v2609_v51  ;;  %5594 = vmatmul.msk.bf16.vlgmr.msrb.gmra.mxu3 %vm2506_vm6, %v2609_v51 }
 0x4b0   :  { %5595 = vmatmul.msk.bf16.vlgmr.msra.gmra.mxu0 %vm2506_vm6, %v2609_v51  ;;  %5596 = vmatmul.msk.bf16.vlgmr.msra.gmra.mxu1 %vm2506_vm6, %v2609_v51 }
 0x4b1   :  { %4592 = vmatpush.bf16.msrb.mxu0 %v6320_v1  ;;  %4605 = vmatpush.bf16.msrb.mxu1 %v6328_v40 }
 0x4b2   :  { %4566 = vmatpush.bf16.msra.mxu2 %v6304_v63  ;;  %4579 = vmatpush.bf16.msra.mxu3 %v6312_v7 }
 0x4b5   :  { %4593 = vmatpush.bf16.msrb.mxu0 %v6319_v4  ;;  %4606 = vmatpush.bf16.msrb.mxu1 %v6327_v47 }
 0x4b9   :  { %4594 = vmatpush.bf16.msrb.mxu0 %v6318_v12  ;;  %4607 = vmatpush.bf16.msrb.mxu1 %v6326_v33  ;;  %v8265_v33 = vld [vmem:[%s9026_s8] sm:$0xff] }
 0x4fd   :  { %v2745_v18 = vpop.f32.mrf.mxu0  ;;  %v2758_v19 = vpop.f32.mrf.mxu1 }
 0x4fe   :  { %v2936_v30 = vsel %vm646_vm1, %v2745_v18, 0.0  ;;  %v2943_v38 = vsel %vm646_vm1, %v2758_v19, 0.0 }
 0x4ff   :  { %v2937_v57 = vrot.slane %v2936_v30, 4  ;;  %v2944_v42 = vrot.slane %v2943_v38, 4 }
 0x501   :  { %v2938_v41 = vadd.f32 %v2937_v57, %v2936_v30  ;;  %v2945_v39 = vadd.f32 %v2944_v42, %v2943_v38 }
 0x502   :  { %v8168_v14 = vpop.f32.mrf.mxu2  ;;  %v8170_v32 = vpop.f32.mrf.mxu3 }
 0x503   :  { %v2939_v16 = vrot.slane %v2938_v41, 2  ;;  %v2946_v23 = vrot.slane %v2945_v39, 2  ;;  %v2922_v0 = vsel %vm646_vm1, %v8168_v14, 0.0  ;;  %v2929_v3 = vsel %vm646_vm1, %v8170_v32, 0.0 }
 0x504   :  { %v2923_v20 = vrot.slane %v2922_v0, 4  ;;  %v2930_v27 = vrot.slane %v2929_v3, 4 }
 0x505   :  { %v2940_v49 = vadd.f32 %v2939_v16, %v2938_v41  ;;  %v2947_v15 = vadd.f32 %v2946_v23, %v2945_v39  ;;  %v2747_v50 = vpop.f32.mrf.mxu0  ;;  %v2760_v29 = vpop.f32.mrf.mxu1 }
 0x506   :  { %v2924_v61 = vadd.f32 %v2923_v20, %v2922_v0  ;;  %v2931_v62 = vadd.f32 %v2930_v27, %v2929_v3 }
 0x507   :  { %v2941_v17 = vrot.slane %v2940_v49, 1  ;;  %v2948_v52 = vrot.slane %v2947_v15, 1 }
 0x508   :  { %v2925_v59 = vrot.slane %v2924_v61, 2  ;;  %v2932_v35 = vrot.slane %v2931_v62, 2 }
 0x509   :  { %v2942_v25 = vadd.f32 %v2941_v17, %v2940_v49  ;;  %v2949_v51 = vadd.f32 %v2948_v52, %v2947_v15 }
 0x50a   :  { %v2926_v54 = vadd.f32 %v2925_v59, %v2924_v61  ;;  %v2933_v21 = vadd.f32 %v2932_v35, %v2931_v62  ;;  %v2721_v56 = vpop.f32.mrf.mxu2  ;;  %v2734_v10 = vpop.f32.mrf.mxu3 }
 0x50b   :  { %v3036_v37 = vmul.f32 %v2942_v25, %v7078_v43  ;;  %v3037_v31 = vmul.f32 %v2949_v51, %v7078_v43 }
 0x50c   :  { %v2927_v46 = vrot.slane %v2926_v54, 1  ;;  %v2934_v26 = vrot.slane %v2933_v21, 1 }
 0x50d   :  { %v8196_v60 = vsub.f32 %v2745_v18, %v3036_v37  ;;  %v8198_v28 = vsub.f32 %v2758_v19, %v3037_v31  ;;  %v8200_v34 = vpop.f32.mrf.mxu0  ;;  %v8202_v11 = vpop.f32.mrf.mxu1 }
 0x50e   :  { %v2928_v55 = vadd.f32 %v2927_v46, %v2926_v54  ;;  %v2935_v6 = vadd.f32 %v2934_v26, %v2933_v21  ;;  %v2964_v9 = vsel %vm646_vm1, %v8200_v34, 0.0  ;;  %v2971_v5 = vsel %vm646_vm1, %v8202_v11, 0.0 }
 0x50f   :  { %v3068_v45 = vmul.f32 %v8196_v60, %v8196_v60  ;;  %v3069_v58 = vmul.f32 %v8198_v28, %v8198_v28  ;;  %v2965_v24 = vrot.slane %v2964_v9, 4  ;;  %v2972_v53 = vrot.slane %v2971_v5, 4 }
 0x510   :  { %v3034_v13 = vmul.f32 %v2928_v55, %v7078_v43  ;;  %v3035_v22 = vmul.f32 %v2935_v6, %v7078_v43 }
 0x511   :  { %v3096_v2 = vsel %vm646_vm1, %v3068_v45, 0.0  ;;  %v3103_v8 = vsel %vm646_vm1, %v3069_v58, 0.0  ;;  %v2966_v48 = vadd.f32 %v2965_v24, %v2964_v9  ;;  %v2973_v18 = vadd.f32 %v2972_v53, %v2971_v5 }
 0x512   :  { %v3097_v19 = vrot.slane %v3096_v2, 4  ;;  %v3104_v30 = vrot.slane %v3103_v8, 4  ;;  %v8229_v38 = vsub.f32 %v8168_v14, %v3034_v13  ;;  %v8232_v57 = vsub.f32 %v8170_v32, %v3035_v22  ;;  %v8234_v42 = vpop.f32.mrf.mxu2  ;;  %v8236_v41 = vpop.f32.mrf.mxu3 }
 0x513   :  { %v2967_v39 = vrot.slane %v2966_v48, 2  ;;  %v2974_v16 = vrot.slane %v2973_v18, 2  ;;  %v2950_v61 = vsel %vm646_vm1, %v8234_v42, 0.0  ;;  %v2957_v1 = vsel %vm646_vm1, %v8236_v41, 0.0 }
 0x514   :  { %v3098_v23 = vadd.f32 %v3097_v19, %v3096_v2  ;;  %v3105_v0 = vadd.f32 %v3104_v30, %v3103_v8  ;;  %v3066_v3 = vmul.f32 %v8229_v38, %v8229_v38  ;;  %v3067_v20 = vmul.f32 %v8232_v57, %v8232_v57  ;;  %v6303_v8 = vld [vmem:[%s9028_s10 + $0x10] sm:$0xff] }
 0x515   :  { %v2968_v27 = vadd.f32 %v2967_v39, %v2966_v48  ;;  %v2975_v14 = vadd.f32 %v2974_v16, %v2973_v18  ;;  %v2799_v49 = vpop.f32.mrf.mxu0  ;;  %v2812_v15 = vpop.f32.mrf.mxu1  ;;  %v2951_v47 = vrot.slane %v2950_v61, 4  ;;  %v2958_v46 = vrot.slane %v2957_v1, 4  ;;  %4567 = vmatpush.bf16.msra.mxu2 %v6303_v8 }
 0x516   :  { %v3099_v32 = vrot.slane %v3098_v23, 2  ;;  %v3106_v50 = vrot.slane %v3105_v0, 2  ;;  %v3082_v29 = vsel %vm646_vm1, %v3066_v3, 0.0  ;;  %v3089_v17 = vsel %vm646_vm1, %v3067_v20, 0.0  ;;  %v6317_v3 = vld [vmem:[%s9028_s10 + $0x80] sm:$0xff] }
 0x517   :  { %v3083_v62 = vrot.slane %v3082_v29, 4  ;;  %v2969_v52 = vrot.slane %v2968_v27, 1  ;;  %v3090_v35 = vrot.slane %v3089_v17, 4  ;;  %v2976_v25 = vrot.slane %v2975_v14, 1  ;;  %v6325_v20 = vld [vmem:[%s9028_s10 + $0xc0] sm:$0xff]  ;;  %4595 = vmatpush.bf16.msrb.mxu0 %v6317_v3 }
 0x518   :  { %v3100_v40 = vadd.f32 %v3099_v32, %v3098_v23  ;;  %v3107_v59 = vadd.f32 %v3106_v50, %v3105_v0  ;;  %v2952_v22 = vadd.f32 %v2951_v47, %v2950_v61  ;;  %v2959_v2 = vadd.f32 %v2958_v46, %v2957_v1  ;;  %v6356_v32 = vld [vmem:[%s9028_s10 + $0x1b8] sm:$0xff]  ;;  %4608 = vmatpush.bf16.msrb.mxu1 %v6325_v20  ;;  %v6301_v3 = vld [vmem:[%s9028_s10] sm:$0xff] }
 0x519   :  { %v3084_v51 = vadd.f32 %v3083_v62, %v3082_v29  ;;  %v2970_v36 = vadd.f32 %v2969_v52, %v2968_v27  ;;  %v3091_v21 = vadd.f32 %v3090_v35, %v3089_v17  ;;  %v2977_v56 = vadd.f32 %v2976_v25, %v2975_v14  ;;  %v8291_v27 = vld [vmem:[%s9027_s9] sm:$0xff]  ;;  %v6364_v50 = vld [vmem:[%s9028_s10 + $0x1f8] sm:$0xff]  ;;  %v6302_v17 = vld [vmem:[%s9028_s10 + $0x8] sm:$0xff] }
 0x51a   :  { %v3101_v44 = vrot.slane %v3100_v40, 1  ;;  %v3108_v54 = vrot.slane %v3107_v59, 1  ;;  %v2773_v10 = vpop.f32.mrf.mxu2  ;;  %v2786_v37 = vpop.f32.mrf.mxu3  ;;  %v2953_v23 = vrot.slane %v2952_v22, 2  ;;  %v2960_v0 = vrot.slane %v2959_v2, 2  ;;  %v6310_v52 = vld [vmem:[%s9028_s10 + $0x48] sm:$0xff]  ;;  %4568 = vmatpush.bf16.msra.mxu2 %v6302_v17  ;;  %v6309_v20 = vld [vmem:[%s9028_s10 + $0x40] sm:$0xff] }
 0x51b   :  { %v3085_v31 = vrot.slane %v3084_v51, 2  ;;  %v3040_v4 = vmul.f32 %v2970_v36, %v7078_v43  ;;  %v3092_v7 = vrot.slane %v3091_v21, 2  ;;  %v3041_v55 = vmul.f32 %v2977_v56, %v7078_v43  ;;  %4640 = vmatpush.bf16.msra.mxu0 %v6356_v32 }
 0x51c   :  { %v3102_v26 = vadd.f32 %v3101_v44, %v3100_v40  ;;  %v3109_v63 = vadd.f32 %v3108_v54, %v3107_v59  ;;  %v3406_v14 = vperm.slane %v8265_v33, 2  ;;  %v3407_v49 = vperm.slane %v8265_v33, 3  ;;  %4653 = vmatpush.bf16.msra.mxu1 %v6364_v50 }
 0x51d   :  { %v3086_v6 = vadd.f32 %v3085_v31, %v3084_v51  ;;  %v8251_v9 = vsub.f32 %v8200_v34, %v3040_v4  ;;  %v8253_v5 = vpop.f32.mrf.mxu0  ;;  %v8255_v45 = vpop.f32.mrf.mxu1  ;;  %v3093_v53 = vadd.f32 %v3092_v7, %v3091_v21  ;;  %v8260_v12 = vsub.f32 %v8202_v11, %v3041_v55  ;;  %v6311_v11 = vld [vmem:[%s9028_s10 + $0x50] sm:$0xff] }
 0x51e   :  { %v3196_v58 = vmul.f32 %v3102_v26, %v7078_v43  ;;  %v3197_v24 = vmul.f32 %v3109_v63, %v7078_v43  ;;  %4580 = vmatpush.bf16.msra.mxu3 %v6311_v11  ;;  %v2954_v59 = vadd.f32 %v2953_v23, %v2952_v22  ;;  %v2961_v35 = vadd.f32 %v2960_v0, %v2959_v2 }
 0x51f   :  { %v3087_v13 = vrot.slane %v3086_v6, 1  ;;  %v3072_v34 = vmul.f32 %v8251_v9, %v8251_v9  ;;  %v3094_v19 = vrot.slane %v3093_v53, 1  ;;  %v3073_v30 = vmul.f32 %v8260_v12, %v8260_v12  ;;  %4569 = vmatpush.bf16.msra.mxu2 %v6301_v3 }
 0x520   :  { %v8275_v48 = vadd.f32 1e-05, %v3196_v58  ;;  %v8277_v18 = vadd.f32 1e-05, %v3197_v24  ;;  %v3456_v25 = vperm.slane %v8291_v27, 2  ;;  %v3457_v51 = vperm.slane %v8291_v27, 3 }
 0x521   :  { %v3088_v39 = vadd.f32 %v3087_v13, %v3086_v6  ;;  %v3124_v16 = vsel %vm646_vm1, %v3072_v34, 0.0  ;;  %v3095_v15 = vadd.f32 %v3094_v19, %v3093_v53  ;;  %v3131_v62 = vsel %vm646_vm1, %v3073_v30, 0.0  ;;  %v6355_v19 = vld [vmem:[%s9028_s10 + $0x1b0] sm:$0xff] }
 0x522   :  { %6475 = vrsqrt.f32 %v8275_v48  ;;  %v3125_v61 = vrot.slane %v3124_v16, 4  ;;  %v3132_v40 = vrot.slane %v3131_v62, 4  ;;  %4581 = vmatpush.bf16.msra.mxu3 %v6310_v52  ;;  %v3404_v56 = vperm.slane %v8265_v33, 0  ;;  %v8319_v4 = vpop.f32.mrf.mxu2  ;;  %v8321_v47 = vpop.f32.mrf.mxu3  ;;  %v6363_v30 = vld [vmem:[%s9028_s10 + $0x1f0] sm:$0xff]  ;;  %4641 = vmatpush.bf16.msra.mxu0 %v6355_v19 }
 0x523   :  { %6477 = vrsqrt.f32 %v8277_v18  ;;  %v3194_v29 = vmul.f32 %v3088_v39, %v7078_v43  ;;  %v3195_v1 = vmul.f32 %v3095_v15, %v7078_v43  ;;  %v2955_v31 = vrot.slane %v2954_v59, 1  ;;  %4654 = vmatpush.bf16.msra.mxu1 %v6363_v30  ;;  %v6339_v30 = vld [vmem:[%s9028_s10 + $0x130] sm:$0xff] }
 0x524   :  { %v3126_v44 = vadd.f32 %v3125_v61, %v3124_v16  ;;  %v3133_v37 = vadd.f32 %v3132_v40, %v3131_v62  ;;  %v3405_v46 = vperm.slane %v8265_v33, 1  ;;  %v2962_v63 = vrot.slane %v2961_v35, 1  ;;  %v6340_v61 = vld [vmem:[%s9028_s10 + $0x138] sm:$0xff] }
 0x525   :  { %v8314_v36 = vadd.f32 1e-05, %v3194_v29  ;;  %v2851_v54 = vpop.f32.mrf.mxu0  ;;  %v2864_v21 = vpop.f32.mrf.mxu1  ;;  %v8317_v10 = vadd.f32 1e-05, %v3195_v1  ;;  %v3454_v55 = vperm.slane %v8291_v27, 0  ;;  %v2992_v58 = vsel %vm646_vm1, %v8253_v5, 0.0  ;;  %4614 = vmatpush.bf16.msrb.mxu2 %v6340_v61 }
 0x526   :  { %v3127_v26 = vrot.slane %v3126_v44, 2  ;;  %v3134_v6 = vrot.slane %v3133_v37, 2  ;;  %vm3252_vm6 = vweird.f32 %v8275_v48  ;;  %v3455_v13 = vperm.slane %v8291_v27, 1  ;;  %v6348_v62 = vld [vmem:[%s9028_s10 + $0x178] sm:$0xff]  ;;  %4582 = vmatpush.bf16.msra.mxu3 %v6309_v20  ;;  %v6354_v21 = vld [vmem:[%s9028_s10 + $0x1a8] sm:$0xff] }
 0x527   :  { %6479 = vrsqrt.f32 %v8314_v36  ;;  %vm3262_vm7 = vweird.f32 %v8277_v18  ;;  %v3410_v2 = vperm.slane %v8265_v33, 6  ;;  %v2956_v11 = vadd.f32 %v2955_v31, %v2954_v59  ;;  %4642 = vmatpush.bf16.msra.mxu0 %v6354_v21 }
 0x528   :  { %v8325_v7 = vpop.eup %6475  ;;  %6481 = vrsqrt.f32 %v8317_v10  ;;  %v3128_v34 = vadd.f32 %v3127_v26, %v3126_v44  ;;  %v3135_v8 = vadd.f32 %v3134_v6, %v3133_v37  ;;  %v2963_v23 = vadd.f32 %v2962_v63, %v2961_v35  ;;  %v6362_v37 = vld [vmem:[%s9028_s10 + $0x1e8] sm:$0xff] }
 0x529   :  { %v8331_v24 = vpop.eup %6477  ;;  %v3247_v53 = vmul.f32 %v8325_v7, %v8275_v48  ;;  %v2993_v0 = vrot.slane %v2992_v58, 4  ;;  %v3460_v32 = vperm.slane %v8291_v27, 6  ;;  %v3038_v29 = vmul.f32 %v2956_v11, %v7078_v43  ;;  %4655 = vmatpush.bf16.msra.mxu1 %v6362_v37  ;;  %4615 = vmatpush.bf16.msrb.mxu2 %v6339_v30 }
 0x52a   :  { %v3257_v22 = vmul.f32 %v8331_v24, %v8277_v18  ;;  %v3129_v16 = vrot.slane %v3128_v34, 1  ;;  %v3136_v50 = vrot.slane %v3135_v8, 1  ;;  %vm3253_vm9 = vweird.f32 %v8325_v7  ;;  %4627 = vmatpush.bf16.msrb.mxu3 %v6348_v62  ;;  %v2825_v31 = vpop.f32.mrf.mxu2  ;;  %v2838_v26 = vpop.f32.mrf.mxu3 }
 0x52b   :  { %v3248_v39 = vmul.f32 %v8325_v7, %v3247_v53  ;;  %v3039_v40 = vmul.f32 %v2963_v23, %v7078_v43  ;;  %vm3263_vm10 = vweird.f32 %v8331_v24  ;;  %vm3232_vm11 = vweird.f32 %v8314_v36  ;;  %vm3254_vm12 = vmor %vm3252_vm6, %vm3253_vm9 }
 0x52c   :  { %v3258_v15 = vmul.f32 %v8331_v24, %v3257_v22  ;;  %v3130_v1 = vadd.f32 %v3129_v16, %v3128_v34  ;;  %v3137_v54 = vadd.f32 %v3136_v50, %v3135_v8  ;;  %v8382_v34 = vadd.f32 %v2993_v0, %v2992_v58  ;;  %vm3264_vm13 = vmor %vm3262_vm7, %vm3263_vm10 }
 0x52d   :  { %v8363_v17 = vpop.eup %6479  ;;  %v3249_v52 = vmul.f32 0.5, %v3248_v39  ;;  %v8387_v19 = vsub.f32 %v8234_v42, %v3038_v29  ;;  %v6347_v39 = vld [vmem:[%s9028_s10 + $0x170] sm:$0xff]  ;;  %v8400_v0 = vsub.f32 %v8236_v41, %v3039_v40  ;;  %v8421_v62 = vpop.f32.mrf.mxu0  ;;  %vm3242_vm2 = vweird.f32 %v8317_v10 }
 0x52e   :  { %v8367_v59 = vpop.eup %6481  ;;  %v3259_v35 = vmul.f32 0.5, %v3258_v15  ;;  %v3227_v44 = vmul.f32 %v8363_v17, %v8314_v36  ;;  %v3200_v53 = vmul.f32 %v3130_v1, %v7078_v43  ;;  %v3201_v11 = vmul.f32 %v3137_v54, %v7078_v43  ;;  %4628 = vmatpush.bf16.msrb.mxu3 %v6347_v39 }
 0x52f   :  { %v3250_v63 = vsub.f32 1.5, %v3249_v52  ;;  %v3237_v6 = vmul.f32 %v8367_v59, %v8317_v10  ;;  %v3070_v15 = vmul.f32 %v8387_v19, %v8387_v19  ;;  %vm3233_vm14 = vweird.f32 %v8363_v17 }
 0x530   :  { %v3260_v22 = vsub.f32 1.5, %v3259_v35  ;;  %v3228_v8 = vmul.f32 %v8363_v17, %v3227_v44  ;;  %v8397_v23 = vadd.f32 1e-05, %v3200_v53  ;;  %v8407_v20 = vadd.f32 1e-05, %v3201_v11  ;;  %vm3234_vm0 = vmor %vm3232_vm11, %vm3233_vm14 }
 0x531   :  { %v3251_v58 = vmul.f32 %v8325_v7, %v3250_v63  ;;  %v3238_v16 = vmul.f32 %v8367_v59, %v3237_v6  ;;  %vm3243_vm15 = vweird.f32 %v8367_v59  ;;  %v3110_v1 = vsel %vm646_vm1, %v3070_v15, 0.0 }
 0x532   :  { %v3261_v42 = vmul.f32 %v8331_v24, %v3260_v22  ;;  %v3229_v3 = vmul.f32 0.5, %v3228_v8  ;;  %6483 = vrsqrt.f32 %v8397_v23  ;;  %v3071_v35 = vmul.f32 %v8400_v0, %v8400_v0  ;;  %vm3244_vm3 = vmor %vm3242_vm2, %vm3243_vm15 }
 0x533   :  { %v3255_v50 = vsel %vm3254_vm12, %v8325_v7, %v3251_v58  ;;  %v3239_v41 = vmul.f32 0.5, %v3238_v16  ;;  %6485 = vrsqrt.f32 %v8407_v20  ;;  %v8423_v7 = vpop.f32.mrf.mxu1  ;;  %v2999_v63 = vsel %vm646_vm1, %v8255_v45, 0.0 }
 0x534   :  { %v3388_v48 = vmul.f32 %v3255_v50, %v8196_v60  ;;  %v3265_v29 = vsel %vm3264_vm13, %v8331_v24, %v3261_v42  ;;  %v3230_v61 = vsub.f32 1.5, %v3229_v3  ;;  %v3111_v24 = vrot.slane %v3110_v1, 4  ;;  %v6338_v42 = vld [vmem:[%s9028_s10 + $0x128] sm:$0xff] }
 0x535   :  { %v3389_v52 = vmul.f32 %v3265_v29, %v8198_v28  ;;  %v3240_v18 = vsub.f32 1.5, %v3239_v41  ;;  %vm3292_vm4 = vweird.f32 %v8397_v23  ;;  %v2995_v22 = vrot.slane %v8382_v34, 2  ;;  %v2903_v3 = vpop.f32.mrf.mxu0  ;;  %4616 = vmatpush.bf16.msrb.mxu2 %v6338_v42 }
 0x536   :  { %v3438_v40 = vmul.f32 %v3406_v14, %v3388_v48  ;;  %v3231_v60 = vmul.f32 %v8363_v17, %v3230_v61  ;;  %v3411_v14 = vperm.slane %v8265_v33, 7  ;;  %v3112_v37 = vadd.f32 %v3111_v24, %v3110_v1 }
 0x537   :  { %v3439_v44 = vmul.f32 %v3407_v49, %v3389_v52  ;;  %v3241_v28 = vmul.f32 %v8367_v59, %v3240_v18  ;;  %v3117_v49 = vsel %vm646_vm1, %v3071_v35, 0.0  ;;  %vm3302_vm5 = vweird.f32 %v8407_v20  ;;  %v6352_v18 = vld [vmem:[%s9028_s10 + $0x198] sm:$0xff] }
 0x538   :  { %v3488_v54 = vadd.f32 %v3456_v25, %v3438_v40  ;;  %v3235_v21 = vsel %vm3234_vm0, %v8363_v17, %v3231_v60  ;;  %v8446_v31 = vpop.eup %6483  ;;  %v3118_v11 = vrot.slane %v3117_v49, 4  ;;  %v3113_v16 = vrot.slane %v3112_v37, 2 }
 0x539   :  { %v3489_v36 = vadd.f32 %v3457_v51, %v3439_v44  ;;  %v3386_v26 = vmul.f32 %v3235_v21, %v8229_v38  ;;  %v3245_v10 = vsel %vm3244_vm3, %v8367_v59, %v3241_v28  ;;  %v8454_v6 = vpop.eup %6485  ;;  %v3287_v53 = vmul.f32 %v8446_v31, %v8397_v23  ;;  %v6353_v38 = vld [vmem:[%s9028_s10 + $0x1a0] sm:$0xff] }
 0x53a   :  { %v3504_v25 = vmax.f32 %v3488_v54, 0.0  ;;  %v3387_v17 = vmul.f32 %v3245_v10, %v8232_v57  ;;  %v6361_v51 = vld [vmem:[%s9028_s10 + $0x1e0] sm:$0xff]  ;;  %v3297_v57 = vmul.f32 %v8454_v6, %v8407_v20  ;;  %4643 = vmatpush.bf16.msra.mxu0 %v6353_v38  ;;  %v3114_v61 = vadd.f32 %v3113_v16, %v3112_v37 }
 0x53b   :  { %v3505_v59 = vmax.f32 %v3489_v36, 0.0  ;;  %v3436_v8 = vmul.f32 %v3404_v56, %v3386_v26  ;;  %v3288_v58 = vmul.f32 %v8446_v31, %v3287_v53  ;;  %4656 = vmatpush.bf16.msra.mxu1 %v6361_v51  ;;  %v6346_v56 = vld [vmem:[%s9028_s10 + $0x168] sm:$0xff]  ;;  %v2916_v15 = vpop.f32.mrf.mxu1  ;;  %v3000_v52 = vrot.slane %v2999_v63, 4 }
 0x53c   :  { %v3520_v30 = vpack.c.bf16 %v3504_v25, %v3504_v25  ;;  %v3437_v39 = vmul.f32 %v3405_v46, %v3387_v17  ;;  %v3298_v46 = vmul.f32 %v8454_v6, %v3297_v57  ;;  %4629 = vmatpush.bf16.msrb.mxu3 %v6346_v56  ;;  %vm3293_vm8 = vweird.f32 %v8446_v31 }
 0x53d   :  { %v3521_v50 = vpack.c.bf16 %v3505_v59, %v3505_v59  ;;  %v3486_v41 = vadd.f32 %v3454_v55, %v3436_v8  ;;  %v3289_v29 = vmul.f32 0.5, %v3288_v58  ;;  %v6360_v55 = vld [vmem:[%s9028_s10 + $0x1d8] sm:$0xff]  ;;  %v3119_v60 = vadd.f32 %v3118_v11, %v3117_v49  ;;  %v8496_v49 = vpop.f32.mrf.mxu2  ;;  %vm3294_vm7 = vmor %vm3292_vm4, %vm3293_vm8 }
 0x53e   :  { %v3487_v48 = vadd.f32 %v3455_v13, %v3437_v39  ;;  %v3299_v40 = vmul.f32 0.5, %v3298_v46  ;;  %4596 = vmatmul.bf16.vlgmr.msrb.gmra.mxu0 %v3520_v30  ;;  %v3115_v35 = vrot.slane %v3114_v61, 1  ;;  %v2996_v44 = vadd.f32 %v2995_v22, %v8382_v34 }
 0x53f   :  { %v3502_v1 = vmax.f32 %v3486_v41, 0.0  ;;  %4609 = vmatmul.bf16.vlgmr.msrb.gmra.mxu1 %v3521_v50  ;;  %v3290_v24 = vsub.f32 1.5, %v3289_v29  ;;  %4644 = vmatpush.bf16.msra.mxu0 %v6352_v18  ;;  %vm3303_vm6 = vweird.f32 %v8454_v6  ;;  %v3120_v21 = vrot.slane %v3119_v60, 2 }
 0x540   :  { %v3503_v13 = vmax.f32 %v3487_v48, 0.0  ;;  %4657 = vmatpush.bf16.msra.mxu1 %v6360_v55  ;;  %v3300_v54 = vsub.f32 1.5, %v3299_v40  ;;  %v3116_v26 = vadd.f32 %v3115_v35, %v3114_v61  ;;  %v2997_v10 = vrot.slane %v2996_v44, 1  ;;  %vm3304_vm9 = vmor %vm3302_vm5, %vm3303_vm6 }
 0x541   :  { %v3518_v28 = vpack.c.bf16 %v3502_v1, %v3502_v1  ;;  %v3291_v36 = vmul.f32 %v8446_v31, %v3290_v24  ;;  %v3121_v25 = vadd.f32 %v3120_v21, %v3119_v60  ;;  %v3001_v17 = vadd.f32 %v3000_v52, %v2999_v63 }
 0x542   :  { %v3519_v37 = vpack.c.bf16 %v3503_v13, %v3503_v13  ;;  %v3301_v34 = vmul.f32 %v8454_v6, %v3300_v54  ;;  %v2978_v53 = vsel %vm646_vm1, %v8319_v4, 0.0  ;;  %v3198_v38 = vmul.f32 %v3116_v26, %v7078_v43  ;;  %v6345_v54 = vld [vmem:[%s9028_s10 + $0x160] sm:$0xff] }
 0x543   :  { %4570 = vmatmul.bf16.vlgmr.msra.gmra.mxu2 %v3518_v28  ;;  %v3295_v22 = vsel %vm3294_vm7, %v8446_v31, %v3291_v36  ;;  %v2998_v51 = vadd.f32 %v2997_v10, %v2996_v44  ;;  %v2979_v59 = vrot.slane %v2978_v53, 4  ;;  %v3122_v57 = vrot.slane %v3121_v25, 1  ;;  %v6337_v28 = vld [vmem:[%s9028_s10 + $0x120] sm:$0xff]  ;;  %4630 = vmatpush.bf16.msrb.mxu3 %v6345_v54 }
 0x544   :  { %4583 = vmatmul.bf16.vlgmr.msra.gmra.mxu3 %v3519_v37  ;;  %v3392_v23 = vmul.f32 %v3295_v22, %v8251_v9  ;;  %v3305_v8 = vsel %vm3304_vm9, %v8454_v6, %v3301_v34  ;;  %v3002_v63 = vrot.slane %v3001_v17, 2  ;;  %v8512_v30 = vadd.f32 1e-05, %v3198_v38  ;;  %4617 = vmatpush.bf16.msrb.mxu2 %v6337_v28 }
 0x545   :  { %v3393_v11 = vmul.f32 %v3305_v8, %v8260_v12  ;;  %v3044_v31 = vmul.f32 %v2998_v51, %v7078_v43  ;;  %v2980_v39 = vadd.f32 %v2979_v59, %v2978_v53  ;;  %v3123_v58 = vadd.f32 %v3122_v57, %v3121_v25  ;;  %v8524_v12 = vpop.f32.mrf.mxu3  ;;  %v2877_v48 = vpop.f32.mrf.mxu2  ;;  %v6359_v53 = vld [vmem:[%s9028_s10 + $0x1d0] sm:$0xff] }
 0x546   :  { %v3442_v20 = vmul.f32 %v3410_v2, %v3392_v23  ;;  %v3003_v16 = vadd.f32 %v3002_v63, %v3001_v17  ;;  %v2985_v42 = vsel %vm646_vm1, %v8321_v47, 0.0  ;;  %v3461_v9 = vperm.slane %v8291_v27, 7  ;;  %v6351_v17 = vld [vmem:[%s9028_s10 + $0x190] sm:$0xff]  ;;  %4658 = vmatpush.bf16.msra.mxu1 %v6359_v53 }
 0x547   :  { %6487 = vrsqrt.f32 %v8512_v30  ;;  %v8522_v6 = vsub.f32 %v8253_v5, %v3044_v31  ;;  %v3443_v56 = vmul.f32 %v3411_v14, %v3393_v11  ;;  %v3199_v3 = vmul.f32 %v3123_v58, %v7078_v43  ;;  %4645 = vmatpush.bf16.msra.mxu0 %v6351_v17  ;;  %v6336_v11 = vld [vmem:[%s9028_s10 + $0x118] sm:$0xff] }
 0x548   :  { %v3004_v2 = vrot.slane %v3003_v16, 1  ;;  %v2981_v15 = vrot.slane %v2980_v39, 2  ;;  %v2986_v41 = vrot.slane %v2985_v42, 4  ;;  %v3020_v46 = vsel %vm646_vm1, %v8421_v62, 0.0  ;;  %v6344_v31 = vld [vmem:[%s9028_s10 + $0x158] sm:$0xff]  ;;  %4618 = vmatpush.bf16.msrb.mxu2 %v6336_v11 }
 0x549   :  { %v3076_v50 = vmul.f32 %v8522_v6, %v8522_v6  ;;  %v3492_v5 = vadd.f32 %v3460_v32, %v3442_v20  ;;  %v8535_v29 = vadd.f32 1e-05, %v3199_v3  ;;  %v3021_v55 = vrot.slane %v3020_v46, 4  ;;  %4631 = vmatpush.bf16.msrb.mxu3 %v6344_v31 }
 0x54a   :  { %v3005_v61 = vadd.f32 %v3004_v2, %v3003_v16  ;;  %v2982_v52 = vadd.f32 %v2981_v15, %v2980_v39  ;;  %v2987_v18 = vadd.f32 %v2986_v41, %v2985_v42  ;;  %v3493_v1 = vadd.f32 %v3461_v9, %v3443_v56  ;;  %v6350_v2 = vld [vmem:[%s9028_s10 + $0x188] sm:$0xff] }
 0x54b   :  { %v3152_v14 = vsel %vm646_vm1, %v3076_v50, 0.0  ;;  %v3408_v40 = vperm.slane %v8265_v33, 4  ;;  %6489 = vrsqrt.f32 %v8535_v29  ;;  %v3458_v24 = vperm.slane %v8291_v27, 4  ;;  %v6358_v15 = vld [vmem:[%s9028_s10 + $0x1c8] sm:$0xff]  ;;  %4646 = vmatpush.bf16.msra.mxu0 %v6350_v2  ;;  %v6341_v2 = vld [vmem:[%s9028_s10 + $0x140] sm:$0xff] }
 0x54c   :  { %v3153_v60 = vrot.slane %v3152_v14, 4  ;;  %v3045_v32 = vmul.f32 %v3005_v61, %v7078_v43  ;;  %v2983_v35 = vrot.slane %v2982_v52, 1  ;;  %v2988_v44 = vrot.slane %v2987_v18, 2  ;;  %4659 = vmatpush.bf16.msra.mxu1 %v6358_v15 }
 0x54d   :  { %v8540_v13 = vpop.eup %6487  ;;  %v3508_v21 = vmax.f32 %v3492_v5, 0.0  ;;  %vm3272_vm10 = vweird.f32 %v8512_v30  ;;  %v3022_v25 = vadd.f32 %v3021_v55, %v3020_v46  ;;  %v2890_v22 = vpop.f32.mrf.mxu3  ;;  %v3509_v38 = vmax.f32 %v3493_v1, 0.0 }
 0x54e   :  { %v3267_v37 = vmul.f32 %v8540_v13, %v8512_v30  ;;  %v3154_v36 = vadd.f32 %v3153_v60, %v3152_v14  ;;  %v8554_v26 = vsub.f32 %v8255_v45, %v3045_v32  ;;  %v2984_v10 = vadd.f32 %v2983_v35, %v2982_v52  ;;  %v6335_v14 = vld [vmem:[%s9028_s10 + $0x110] sm:$0xff] }
 0x54f   :  { %v2989_v34 = vadd.f32 %v2988_v44, %v2987_v18  ;;  %v3027_v45 = vsel %vm646_vm1, %v8423_v7, 0.0  ;;  %v3023_v63 = vrot.slane %v3022_v25, 2  ;;  %v8576_v20 = vpack.c.bf16 %v3508_v21, %v3508_v21  ;;  %v6343_v18 = vld [vmem:[%s9028_s10 + $0x150] sm:$0xff]  ;;  %4619 = vmatpush.bf16.msrb.mxu2 %v6335_v14  ;;  %v6349_v21 = vld [vmem:[%s9028_s10 + $0x180] sm:$0xff]  ;;  %v6394_v14 = vld [vmem:[%s9028_s10 + $0x2e8] sm:$0xff] }
 0x550   :  { %v3268_v51 = vmul.f32 %v8540_v13, %v3267_v37  ;;  %v3155_v59 = vrot.slane %v3154_v36, 2  ;;  %v3077_v23 = vmul.f32 %v8554_v26, %v8554_v26  ;;  %v3042_v8 = vmul.f32 %v2984_v10, %v7078_v43  ;;  %v6357_v37 = vld [vmem:[%s9028_s10 + $0x1c0] sm:$0xff]  ;;  %4632 = vmatpush.bf16.msrb.mxu3 %v6343_v18  ;;  %4647 = vmatpush.bf16.msra.mxu0 %v6349_v21  ;;  %v6379_v21 = vld [vmem:[%s9028_s10 + $0x270] sm:$0xff] }
 0x551   :  { %v2990_v57 = vrot.slane %v2989_v34, 1  ;;  %v8574_v39 = vpop.eup %6489  ;;  %v3028_v42 = vrot.slane %v3027_v45, 4  ;;  %vm3273_vm11 = vweird.f32 %v8540_v13  ;;  %vm3282_vm12 = vweird.f32 %v8535_v29  ;;  %4660 = vmatpush.bf16.msra.mxu1 %v6357_v37 }
 0x552   :  { %v3269_v58 = vmul.f32 0.5, %v3268_v51  ;;  %v3156_v16 = vadd.f32 %v3155_v59, %v3154_v36  ;;  %v3277_v9 = vmul.f32 %v8574_v39, %v8535_v29  ;;  %v3159_v56 = vsel %vm646_vm1, %v3077_v23, 0.0  ;;  %vm3274_vm13 = vmor %vm3272_vm10, %vm3273_vm11  ;;  %v6342_v51 = vld [vmem:[%s9028_s10 + $0x148] sm:$0xff] }
 0x553   :  { %v8584_v3 = vsub.f32 %v8319_v4, %v3042_v8  ;;  %v3160_v46 = vrot.slane %v3159_v56, 4  ;;  %v2991_v48 = vadd.f32 %v2990_v57, %v2989_v34  ;;  %v3525_v5 = vpack.c.bf16 %v3509_v38, %v3509_v38  ;;  %v6388_v34 = vld [vmem:[%s9028_s10 + $0x2b8] sm:$0xff]  ;;  %v6334_v38 = vld [vmem:[%s9028_s10 + $0x108] sm:$0xff]  ;;  %4648 = vmatmul.bf16.vlgmr.msra.gmra.mxu0 %v8576_v20 }
 0x554   :  { %v3270_v50 = vsub.f32 1.5, %v3269_v58  ;;  %v3157_v41 = vrot.slane %v3156_v16, 1  ;;  %v3278_v61 = vmul.f32 %v8574_v39, %v3277_v9  ;;  %v3024_v52 = vadd.f32 %v3023_v63, %v3022_v25  ;;  %v6396_v25 = vld [vmem:[%s9028_s10 + $0x2f8] sm:$0xff]  ;;  %4692 = vmatpush.bf16.msrb.mxu0 %v6388_v34  ;;  %4620 = vmatpush.bf16.msrb.mxu2 %v6334_v38  ;;  %v6387_v58 = vld [vmem:[%s9028_s10 + $0x2b0] sm:$0xff] }
 0x555   :  { %v3074_v4 = vmul.f32 %v8584_v3, %v8584_v3  ;;  %v3161_v60 = vadd.f32 %v3160_v46, %v3159_v56  ;;  %v3029_v32 = vadd.f32 %v3028_v42, %v3027_v45  ;;  %v3043_v28 = vmul.f32 %v2991_v48, %v7078_v43  ;;  %4705 = vmatpush.bf16.msrb.mxu1 %v6396_v25  ;;  %v6333_v56 = vld [vmem:[%s9028_s10 + $0x100] sm:$0xff]  ;;  %v6380_v46 = vld [vmem:[%s9028_s10 + $0x278] sm:$0xff] }
 0x556   :  { %v3271_v55 = vmul.f32 %v8540_v13, %v3270_v50  ;;  %v3158_v1 = vadd.f32 %v3157_v41, %v3156_v16  ;;  %v3279_v35 = vmul.f32 0.5, %v3278_v61  ;;  %v3025_v54 = vrot.slane %v3024_v52, 1  ;;  %4633 = vmatpush.bf16.msrb.mxu3 %v6342_v51  ;;  %v6395_v16 = vld [vmem:[%s9028_s10 + $0x2f0] sm:$0xff]  ;;  %4661 = vmatmul.bf16.vlgmr.msra.gmra.mxu1 %v3525_v5  ;;  %v6372_v41 = vld [vmem:[%s9028_s10 + $0x238] sm:$0xff]  ;;  %v6385_v25 = vld [vmem:[%s9028_s10 + $0x2a0] sm:$0xff] }
 0x557   :  { %v3138_v44 = vsel %vm646_vm1, %v3074_v4, 0.0  ;;  %vm3283_vm14 = vweird.f32 %v8574_v39  ;;  %v3162_v10 = vrot.slane %v3161_v60, 2  ;;  %v3030_v8 = vrot.slane %v3029_v32, 2 }
 0x558   :  { %v3275_v36 = vsel %vm3274_vm13, %v8540_v13, %v3271_v55  ;;  %v3204_v30 = vmul.f32 %v3158_v1, %v7078_v43  ;;  %v3280_v53 = vsub.f32 1.5, %v3279_v35  ;;  %v3139_v22 = vrot.slane %v3138_v44, 4  ;;  %vm8644_vm15 = vmor %vm3282_vm12, %vm3283_vm14  ;;  %4693 = vmatpush.bf16.msrb.mxu0 %v6387_v58  ;;  %4621 = vmatpush.bf16.msrb.mxu2 %v6333_v56 }
 0x559   :  { %v3390_v17 = vmul.f32 %v3275_v36, %v8387_v19  ;;  %v8625_v13 = vsub.f32 %v8321_v47, %v3043_v28  ;;  %v3163_v45 = vadd.f32 %v3162_v10, %v3161_v60  ;;  %v3026_v23 = vadd.f32 %v3025_v54, %v3024_v52  ;;  %4706 = vmatpush.bf16.msrb.mxu1 %v6395_v16  ;;  %v6386_v52 = vld [vmem:[%s9028_s10 + $0x2a8] sm:$0xff]  ;;  %v6371_v54 = vld [vmem:[%s9028_s10 + $0x230] sm:$0xff] }
 0x55a   :  { %v8633_v59 = vadd.f32 1e-05, %v3204_v30  ;;  %v3281_v19 = vmul.f32 %v8574_v39, %v3280_v53  ;;  %v3140_v57 = vadd.f32 %v3139_v22, %v3138_v44  ;;  %v3409_v31 = vperm.slane %v8265_v33, 5  ;;  %4634 = vmatpush.bf16.msrb.mxu3 %v6341_v2 }
 0x55b   :  { %v3440_v47 = vmul.f32 %v3408_v40, %v3390_v17  ;;  %v3075_v63 = vmul.f32 %v8625_v13, %v8625_v13  ;;  %v3164_v40 = vrot.slane %v3163_v45, 1  ;;  %v3459_v15 = vperm.slane %v8291_v27, 5  ;;  %v6393_v17 = vld [vmem:[%s9028_s10 + $0x2e0] sm:$0xff] }
 0x55c   :  { %6491 = vrsqrt.f32 %v8633_v59  ;;  %v3285_v33 = vsel %vm8644_vm15, %v8574_v39, %v3281_v19  ;;  %v3141_v42 = vrot.slane %v3140_v57, 2  ;;  %v3048_v20 = vmul.f32 %v3026_v23, %v7078_v43  ;;  %4666 = vmatpush.bf16.msra.mxu2 %v6372_v41  ;;  %4694 = vmatpush.bf16.msrb.mxu0 %v6386_v52  ;;  %v6370_v19 = vld [vmem:[%s9028_s10 + $0x228] sm:$0xff] }
 0x55d   :  { %v3490_v29 = vadd.f32 %v3458_v24, %v3440_v47  ;;  %v3145_v9 = vsel %vm646_vm1, %v3075_v63, 0.0  ;;  %v3391_v24 = vmul.f32 %v3285_v33, %v8400_v0  ;;  %v3165_v50 = vadd.f32 %v3164_v40, %v3163_v45  ;;  %4707 = vmatpush.bf16.msrb.mxu1 %v6394_v14  ;;  %v8723_v63 = vld [vmem:[%s9026_s8 + $0x8] sm:$0xff]  ;;  %v6384_v33 = vld [vmem:[%s9028_s10 + $0x298] sm:$0xff]  ;;  %v6383_v14 = vld [vmem:[%s9028_s10 + $0x290] sm:$0xff] }
 0x55e   :  { %v3146_v39 = vrot.slane %v3145_v9, 4  ;;  %v3142_v61 = vadd.f32 %v3141_v42, %v3140_v57  ;;  %v3031_v5 = vadd.f32 %v3030_v8, %v3029_v32  ;;  %v8686_v1 = vsub.f32 %v8421_v62, %v3048_v20  ;;  %4679 = vmatpush.bf16.msra.mxu3 %v6380_v46  ;;  %v6378_v57 = vld [vmem:[%s9028_s10 + $0x268] sm:$0xff]  ;;  %v6392_v42 = vld [vmem:[%s9028_s10 + $0x2d8] sm:$0xff] }
 0x55f   :  { %v3506_v48 = vmax.f32 %v3490_v29, 0.0  ;;  %v3441_v0 = vmul.f32 %v3409_v31, %v3391_v24  ;;  %v3205_v27 = vmul.f32 %v3165_v50, %v7078_v43  ;;  %v3006_v30 = vsel %vm646_vm1, %v8496_v49, 0.0 }
 0x560   :  { %v3147_v4 = vadd.f32 %v3146_v39, %v3145_v9  ;;  %v3143_v55 = vrot.slane %v3142_v61, 1  ;;  %v3032_v60 = vrot.slane %v3031_v5, 1  ;;  %v3080_v36 = vmul.f32 %v8686_v1, %v8686_v1  ;;  %4667 = vmatpush.bf16.msra.mxu2 %v6371_v54  ;;  %4695 = vmatpush.bf16.msrb.mxu0 %v6385_v25 }
 0x561   :  { %v3522_v18 = vpack.c.bf16 %v3506_v48, %v3506_v48  ;;  %v3491_v35 = vadd.f32 %v3459_v15, %v3441_v0  ;;  %v8690_v44 = vadd.f32 1e-05, %v3205_v27  ;;  %v3007_v47 = vrot.slane %v3006_v30, 4  ;;  %4708 = vmatpush.bf16.msrb.mxu1 %v6393_v17  ;;  %v8746_v15 = vld [vmem:[%s9027_s9 + $0x8] sm:$0xff]  ;;  %v6377_v48 = vld [vmem:[%s9028_s10 + $0x260] sm:$0xff] }
 0x562   :  { %v8688_v32 = vpop.eup %6491  ;;  %v3148_v28 = vrot.slane %v3147_v4, 2  ;;  %v3144_v37 = vadd.f32 %v3143_v55, %v3142_v61  ;;  %v3180_v38 = vsel %vm646_vm1, %v3080_v36, 0.0  ;;  %v3033_v51 = vadd.f32 %v3032_v60, %v3031_v5  ;;  %4680 = vmatpush.bf16.msra.mxu3 %v6379_v21 }
 0x563   :  { %v3327_v62 = vmul.f32 %v8688_v32, %v8633_v59  ;;  %4622 = vmatmul.bf16.vlgmr.msrb.gmra.mxu2 %v3522_v18  ;;  %v3507_v10 = vmax.f32 %v3491_v35, 0.0  ;;  %6493 = vrsqrt.f32 %v8690_v44  ;;  %v3181_v8 = vrot.slane %v3180_v38, 4 }
 0x564   :  { %v3149_v34 = vadd.f32 %v3148_v28, %v3147_v4  ;;  %v3202_v22 = vmul.f32 %v3144_v37, %v7078_v43  ;;  %v3049_v40 = vmul.f32 %v3033_v51, %v7078_v43  ;;  %vm3333_vm0 = vweird.f32 %v8688_v32  ;;  %4668 = vmatpush.bf16.msra.mxu2 %v6370_v19  ;;  %4696 = vmatpush.bf16.msrb.mxu0 %v6384_v33 }
 0x565   :  { %v3328_v53 = vmul.f32 %v8688_v32, %v3327_v62  ;;  %v3523_v45 = vpack.c.bf16 %v3507_v10, %v3507_v10  ;;  %v3182_v16 = vadd.f32 %v3181_v8, %v3180_v38  ;;  %v3008_v29 = vadd.f32 %v3007_v47, %v3006_v30  ;;  %4709 = vmatpush.bf16.msrb.mxu1 %v6392_v42  ;;  %v6376_v62 = vld [vmem:[%s9028_s10 + $0x258] sm:$0xff] }
 0x566   :  { %v3150_v23 = vrot.slane %v3149_v34, 1  ;;  %v8725_v31 = vadd.f32 1e-05, %v3202_v22  ;;  %v8737_v56 = vsub.f32 %v8423_v7, %v3049_v40  ;;  %v3013_v2 = vsel %vm646_vm1, %v8524_v12, 0.0  ;;  %4681 = vmatpush.bf16.msra.mxu3 %v6378_v57  ;;  %v6369_v7 = vld [vmem:[%s9028_s10 + $0x220] sm:$0xff]  ;;  %v6390_v22 = vld [vmem:[%s9028_s10 + $0x2c8] sm:$0xff] }
 0x567   :  { %v3329_v11 = vmul.f32 0.5, %v3328_v53  ;;  %4635 = vmatmul.bf16.vlgmr.msrb.gmra.mxu3 %v3523_v45  ;;  %v3414_v50 = vperm.slane %v8723_v63, 2  ;;  %v3183_v41 = vrot.slane %v3182_v16, 2  ;;  %v3009_v46 = vrot.slane %v3008_v29, 2  ;;  %v6382_v53 = vld [vmem:[%s9028_s10 + $0x288] sm:$0xff]  ;;  %v6375_v40 = vld [vmem:[%s9028_s10 + $0x250] sm:$0xff] }
 0x568   :  { %v3151_v58 = vadd.f32 %v3150_v23, %v3149_v34  ;;  %6495 = vrsqrt.f32 %v8725_v31  ;;  %vm3332_vm2 = vweird.f32 %v8633_v59  ;;  %v3081_v5 = vmul.f32 %v8737_v56, %v8737_v56  ;;  %v6391_v59 = vld [vmem:[%s9028_s10 + $0x2d0] sm:$0xff]  ;;  %4669 = vmatpush.bf16.msra.mxu2 %v6369_v7  ;;  %4697 = vmatpush.bf16.msrb.mxu0 %v6383_v14  ;;  %v6389_v7 = vld [vmem:[%s9028_s10 + $0x2c0] sm:$0xff] }
 0x569   :  { %v3330_v9 = vsub.f32 1.5, %v3329_v11  ;;  %v8741_v24 = vpop.eup %6493  ;;  %vm3334_vm3 = vmor %vm3332_vm2, %vm3333_vm0  ;;  %v3184_v27 = vadd.f32 %v3183_v41, %v3182_v16  ;;  %v3010_v4 = vadd.f32 %v3009_v46, %v3008_v29  ;;  %v3014_v52 = vrot.slane %v3013_v2, 4  ;;  %4710 = vmatpush.bf16.msrb.mxu1 %v6391_v59  ;;  %v6367_v11 = vld [vmem:[%s9028_s10 + $0x210] sm:$0xff] }
 0x56a   :  { %v3203_v39 = vmul.f32 %v3151_v58, %v7078_v43  ;;  %v3337_v20 = vmul.f32 %v8741_v24, %v8690_v44  ;;  %v3464_v55 = vperm.slane %v8746_v15, 2  ;;  %v3187_v35 = vsel %vm646_vm1, %v3081_v5, 0.0  ;;  %4682 = vmatpush.bf16.msra.mxu3 %v6377_v48  ;;  %v6420_v48 = vld [vmem:[%s9028_s10 + $0x3b8] sm:$0xff] }
 0x56b   :  { %v3331_v61 = vmul.f32 %v8688_v32, %v3330_v9  ;;  %v3415_v54 = vperm.slane %v8723_v63, 3  ;;  %v3185_v21 = vrot.slane %v3184_v27, 1  ;;  %v3188_v30 = vrot.slane %v3187_v35, 4 }
 0x56c   :  { %v8764_v0 = vadd.f32 1e-05, %v3203_v39  ;;  %v3338_v60 = vmul.f32 %v8741_v24, %v3337_v20  ;;  %v3011_v10 = vrot.slane %v3010_v4, 1  ;;  %vm3343_vm4 = vweird.f32 %v8741_v24  ;;  %4698 = vmatpush.bf16.msrb.mxu0 %v6382_v53  ;;  %v6381_v39 = vld [vmem:[%s9028_s10 + $0x280] sm:$0xff] }
 0x56d   :  { %v3335_v18 = vsel %vm3334_vm3, %v8688_v32, %v3331_v61  ;;  %v6368_v32 = vld [vmem:[%s9028_s10 + $0x218] sm:$0xff]  ;;  %v3186_v17 = vadd.f32 %v3185_v21, %v3184_v27  ;;  %v3189_v51 = vadd.f32 %v3188_v30, %v3187_v35  ;;  %v3465_v47 = vperm.slane %v8746_v15, 3  ;;  %4711 = vmatpush.bf16.msrb.mxu1 %v6390_v22  ;;  %v6366_v27 = vld [vmem:[%s9028_s10 + $0x208] sm:$0xff] }
 0x56e   :  { %v3396_v28 = vmul.f32 %v3335_v18, %v8522_v6  ;;  %6497 = vrsqrt.f32 %v8764_v0  ;;  %v8785_v37 = vpop.eup %6495  ;;  %v3339_v36 = vmul.f32 0.5, %v3338_v60  ;;  %v3015_v6 = vadd.f32 %v3014_v52, %v3013_v2  ;;  %4670 = vmatpush.bf16.msra.mxu2 %v6368_v32  ;;  %4683 = vmatpush.bf16.msra.mxu3 %v6376_v62  ;;  %v6412_v22 = vld [vmem:[%s9028_s10 + $0x378] sm:$0xff] }
 0x56f   :  { %v3307_v25 = vmul.f32 %v8785_v37, %v8725_v31  ;;  %v3012_v45 = vadd.f32 %v3011_v10, %v3010_v4  ;;  %v3208_v57 = vmul.f32 %v3186_v17, %v7078_v43  ;;  %vm3342_vm5 = vweird.f32 %v8690_v44  ;;  %v6374_v4 = vld [vmem:[%s9028_s10 + $0x248] sm:$0xff]  ;;  %v6365_v10 = vld [vmem:[%s9028_s10 + $0x200] sm:$0xff]  ;;  %v6424_v35 = vld [vmem:[%s9028_s10 + $0x3d8] sm:$0xff] }
 0x570   :  { %v3446_v34 = vmul.f32 %v3414_v50, %v3396_v28  ;;  %v3340_v38 = vsub.f32 1.5, %v3339_v36  ;;  %v3016_v23 = vrot.slane %v3015_v6, 2  ;;  %v3190_v16 = vrot.slane %v3189_v51, 2  ;;  %vm3344_vm8 = vmor %vm3342_vm5, %vm3343_vm4  ;;  %4699 = vmatpush.bf16.msrb.mxu0 %v6381_v39  ;;  %v6411_v39 = vld [vmem:[%s9028_s10 + $0x370] sm:$0xff] }
 0x571   :  { %v3308_v19 = vmul.f32 %v8785_v37, %v3307_v25  ;;  %v3046_v29 = vmul.f32 %v3012_v45, %v7078_v43  ;;  %v8812_v2 = vadd.f32 1e-05, %v3208_v57  ;;  %vm3313_vm6 = vweird.f32 %v8785_v37  ;;  %4712 = vmatpush.bf16.msrb.mxu1 %v6389_v7  ;;  %v6426_v57 = vld [vmem:[%s9028_s10 + $0x3e8] sm:$0xff] }
 0x572   :  { %v3496_v8 = vadd.f32 %v3464_v55, %v3446_v34  ;;  %v3341_v58 = vmul.f32 %v8741_v24, %v3340_v38  ;;  %v3017_v50 = vadd.f32 %v3016_v23, %v3015_v6  ;;  %v3191_v46 = vadd.f32 %v3190_v16, %v3189_v51  ;;  %4671 = vmatpush.bf16.msra.mxu2 %v6367_v11  ;;  %v6373_v6 = vld [vmem:[%s9028_s10 + $0x240] sm:$0xff] }
 0x573   :  { %v3309_v9 = vmul.f32 0.5, %v3308_v19  ;;  %4684 = vmatpush.bf16.msra.mxu3 %v6375_v40  ;;  %6499 = vrsqrt.f32 %v8812_v2  ;;  %v3412_v52 = vperm.slane %v8723_v63, 0  ;;  %v8841_v18 = vsub.f32 %v8496_v49, %v3046_v29  ;;  %v6418_v19 = vld [vmem:[%s9028_s10 + $0x3a8] sm:$0xff] }
 0x574   :  { %v8808_v33 = vpop.eup %6497  ;;  %v3512_v42 = vmax.f32 %v3496_v8, 0.0  ;;  %v3345_v44 = vsel %vm3344_vm8, %v8741_v24, %v3341_v58  ;;  %v6428_v24 = vld [vmem:[%s9028_s10 + $0x3f8] sm:$0xff]  ;;  %v3192_v59 = vrot.slane %v3191_v46, 1  ;;  %4744 = vmatpush.bf16.msra.mxu0 %v6420_v48  ;;  %vm3312_vm7 = vweird.f32 %v8725_v31  ;;  %v6419_v31 = vld [vmem:[%s9028_s10 + $0x3b0] sm:$0xff]  ;;  %v6417_v48 = vld [vmem:[%s9028_s10 + $0x3a0] sm:$0xff] }
 0x575   :  { %v3317_v41 = vmul.f32 %v8808_v33, %v8764_v0  ;;  %v3397_v20 = vmul.f32 %v3345_v44, %v8554_v26  ;;  %v3310_v5 = vsub.f32 1.5, %v3309_v9  ;;  %v3018_v60 = vrot.slane %v3017_v50, 1  ;;  %4757 = vmatpush.bf16.msra.mxu1 %v6428_v24  ;;  %vm8849_vm9 = vmor %vm3312_vm7, %vm3313_vm6 }
 0x576   :  { %v3528_v61 = vpack.c.bf16 %v3512_v42, %v3512_v42  ;;  %v3462_v49 = vperm.slane %v8746_v15, 0  ;;  %v3193_v21 = vadd.f32 %v3192_v59, %v3191_v46  ;;  %v3078_v32 = vmul.f32 %v8841_v18, %v8841_v18  ;;  %4672 = vmatpush.bf16.msra.mxu2 %v6366_v27 }
 0x577   :  { %v3318_v14 = vmul.f32 %v8808_v33, %v3317_v41  ;;  %v3447_v26 = vmul.f32 %v3415_v54, %v3397_v20  ;;  %v3311_v55 = vmul.f32 %v8785_v37, %v3310_v5  ;;  %4685 = vmatpush.bf16.msra.mxu3 %v6374_v4  ;;  %v6427_v54 = vld [vmem:[%s9028_s10 + $0x3f0] sm:$0xff]  ;;  %vm3323_vm10 = vweird.f32 %v8808_v33  ;;  %v6402_v4 = vld [vmem:[%s9028_s10 + $0x328] sm:$0xff] }
 0x578   :  { %v3019_v30 = vadd.f32 %v3018_v60, %v3017_v50  ;;  %4700 = vmatmul.bf16.vlgmr.msrb.gmra.mxu0 %v3528_v61  ;;  %v3209_v17 = vmul.f32 %v3193_v21, %v7078_v43  ;;  %v3166_v53 = vsel %vm646_vm1, %v3078_v32, 0.0  ;;  %vm3322_vm11 = vweird.f32 %v8764_v0  ;;  %v6403_v50 = vld [vmem:[%s9028_s10 + $0x330] sm:$0xff]  ;;  %v6416_v60 = vld [vmem:[%s9028_s10 + $0x398] sm:$0xff] }
 0x579   :  { %v3319_v28 = vmul.f32 0.5, %v3318_v14  ;;  %v3497_v62 = vadd.f32 %v3465_v47, %v3447_v26  ;;  %v3315_v36 = vsel %vm8849_vm9, %v8785_v37, %v3311_v55  ;;  %4745 = vmatpush.bf16.msra.mxu0 %v6419_v31  ;;  %v6404_v37 = vld [vmem:[%s9028_s10 + $0x338] sm:$0xff]  ;;  %v8881_v38 = vpop.eup %6499  ;;  %v3167_v45 = vrot.slane %v3166_v53, 4  ;;  %4758 = vmatpush.bf16.msra.mxu1 %v6427_v54  ;;  %vm3324_vm12 = vmor %vm3322_vm11, %vm3323_vm10 }
 0x57a   :  { %v3394_v34 = vmul.f32 %v3315_v36, %v8584_v3  ;;  %v3047_v3 = vmul.f32 %v3019_v30, %v7078_v43  ;;  %v3367_v47 = vmul.f32 %v8881_v38, %v8812_v2  ;;  %4673 = vmatpush.bf16.msra.mxu2 %v6365_v10  ;;  %v3413_v40 = vperm.slane %v8723_v63, 1  ;;  %v6401_v36 = vld [vmem:[%s9028_s10 + $0x320] sm:$0xff] }
 0x57b   :  { %v3320_v25 = vsub.f32 1.5, %v3319_v28  ;;  %v3513_v51 = vmax.f32 %v3497_v62, 0.0  ;;  %4686 = vmatpush.bf16.msra.mxu3 %v6373_v6  ;;  %v8897_v0 = vadd.f32 1e-05, %v3209_v17  ;;  %v3168_v58 = vadd.f32 %v3167_v45, %v3166_v53  ;;  %v6409_v30 = vld [vmem:[%s9028_s10 + $0x360] sm:$0xff]  ;;  %v6415_v53 = vld [vmem:[%s9028_s10 + $0x390] sm:$0xff] }
 0x57c   :  { %v3444_v23 = vmul.f32 %v3412_v52, %v3394_v34  ;;  %v3368_v42 = vmul.f32 %v8881_v38, %v3367_v47  ;;  %v8902_v9 = vsub.f32 %v8524_v12, %v3047_v3  ;;  %v3463_v41 = vperm.slane %v8746_v15, 1  ;;  %v6410_v52 = vld [vmem:[%s9028_s10 + $0x368] sm:$0xff]  ;;  %v6400_v45 = vld [vmem:[%s9028_s10 + $0x318] sm:$0xff] }
 0x57d   :  { %v3321_v8 = vmul.f32 %v8808_v33, %v3320_v25  ;;  %v3529_v11 = vpack.c.bf16 %v3513_v51, %v3513_v51  ;;  %4746 = vmatpush.bf16.msra.mxu0 %v6418_v19  ;;  %6501 = vrsqrt.f32 %v8897_v0  ;;  %4759 = vmatpush.bf16.msra.mxu1 %v6426_v57  ;;  %vm3373_vm13 = vweird.f32 %v8881_v38  ;;  %v6408_v3 = vld [vmem:[%s9028_s10 + $0x358] sm:$0xff]  ;;  %v6414_v19 = vld [vmem:[%s9028_s10 + $0x388] sm:$0xff] }
 0x57e   :  { %4718 = vmatpush.bf16.msrb.mxu2 %v6404_v37  ;;  %v3494_v16 = vadd.f32 %v3462_v49, %v3444_v23  ;;  %v3369_v12 = vmul.f32 0.5, %v3368_v42  ;;  %v3079_v7 = vmul.f32 %v8902_v9, %v8902_v9  ;;  %vm3372_vm14 = vweird.f32 %v8812_v2  ;;  %v6423_v37 = vld [vmem:[%s9028_s10 + $0x3d0] sm:$0xff]  ;;  %v6422_v57 = vld [vmem:[%s9028_s10 + $0x3c8] sm:$0xff] }
 0x57f   :  { %4731 = vmatpush.bf16.msrb.mxu3 %v6412_v22  ;;  %v3325_v29 = vsel %vm3324_vm12, %v8808_v33, %v3321_v8  ;;  %v3169_v33 = vrot.slane %v3168_v58, 2  ;;  %4713 = vmatmul.bf16.vlgmr.msrb.gmra.mxu1 %v3529_v11  ;;  %v3418_v21 = vperm.slane %v8723_v63, 6  ;;  %v3468_v54 = vperm.slane %v8746_v15, 6 }
 0x580   :  { %v3395_v44 = vmul.f32 %v3325_v29, %v8625_v13  ;;  %v3510_v46 = vmax.f32 %v3494_v16, 0.0  ;;  %v6425_v13 = vld [vmem:[%s9028_s10 + $0x3e0] sm:$0xff]  ;;  %v3370_v5 = vsub.f32 1.5, %v3369_v12  ;;  %v3173_v27 = vsel %vm646_vm1, %v3079_v7, 0.0  ;;  %vm3374_vm1 = vmor %vm3372_vm14, %vm3373_vm13  ;;  %v6407_v16 = vld [vmem:[%s9028_s10 + $0x350] sm:$0xff] }
 0x581   :  { %v3170_v61 = vadd.f32 %v3169_v33, %v3168_v58  ;;  %4747 = vmatpush.bf16.msra.mxu0 %v6417_v48  ;;  %v3174_v26 = vrot.slane %v3173_v27, 4  ;;  %4760 = vmatpush.bf16.msra.mxu1 %v6425_v13  ;;  %vm3382_vm0 = vweird.f32 %v8897_v0  ;;  %v6413_v29 = vld [vmem:[%s9028_s10 + $0x380] sm:$0xff]  ;;  %v6398_v7 = vld [vmem:[%s9028_s10 + $0x308] sm:$0xff]  ;;  %vm4771_vm9 = vcmask 516096  }
 0x582   :  { %v3445_v24 = vmul.f32 %v3413_v40, %v3395_v44  ;;  %4719 = vmatpush.bf16.msrb.mxu2 %v6403_v50  ;;  %v3526_v20 = vpack.c.bf16 %v3510_v46, %v3510_v46  ;;  %v3371_v55 = vmul.f32 %v8881_v38, %v3370_v5  ;;  %v6399_v40 = vld [vmem:[%s9028_s10 + $0x310] sm:$0xff]  ;;  %v3419_v50 = vperm.slane %v8723_v63, 7 }
 0x583   :  { %4732 = vmatpush.bf16.msrb.mxu3 %v6411_v39  ;;  %v3171_v59 = vrot.slane %v3170_v61, 1  ;;  %v6502_v49 = vpop.eup %6501  ;;  %v3175_v31 = vadd.f32 %v3174_v26, %v3173_v27  ;;  %v3469_v46 = vperm.slane %v8746_v15, 7  ;;  %v6405_v27 = vld [vmem:[%s9028_s10 + $0x340] sm:$0xff] }
 0x584   :  { %v3495_v14 = vadd.f32 %v3463_v41, %v3445_v24  ;;  %4674 = vmatmul.bf16.vlgmr.msra.gmra.mxu2 %v3526_v20  ;;  %v3375_v2 = vsel %vm3374_vm1, %v8881_v38, %v3371_v55  ;;  %v3377_v62 = vmul.f32 %v6502_v49, %v8897_v0  ;;  %vm3383_vm15 = vweird.f32 %v6502_v49  ;;  %v6421_v0 = vld [vmem:[%s9028_s10 + $0x3c0] sm:$0xff] }
 0x585   :  { %v3172_v32 = vadd.f32 %v3171_v59, %v3170_v61  ;;  %4748 = vmatpush.bf16.msra.mxu0 %v6416_v60  ;;  %v3400_v6 = vmul.f32 %v3375_v2, %v8686_v1  ;;  %v3176_v25 = vrot.slane %v3175_v31, 2  ;;  %4761 = vmatpush.bf16.msra.mxu1 %v6424_v35  ;;  %vm3384_vm2 = vmor %vm3382_vm0, %vm3383_vm15  ;;  %v6397_v20 = vld [vmem:[%s9028_s10 + $0x300] sm:$0xff]  ;;  %v3416_v60 = vperm.slane %v8723_v63, 4 }
 0x586   :  { %v3511_v28 = vmax.f32 %v3495_v14, 0.0  ;;  %4720 = vmatpush.bf16.msrb.mxu2 %v6402_v4  ;;  %v3378_v17 = vmul.f32 %v6502_v49, %v3377_v62 }
 0x587   :  { %4733 = vmatpush.bf16.msrb.mxu3 %v6410_v52  ;;  %v3206_v34 = vmul.f32 %v3172_v32, %v7078_v43  ;;  %v3450_v22 = vmul.f32 %v3418_v21, %v3400_v6  ;;  %v3177_v51 = vadd.f32 %v3176_v25, %v3175_v31  ;;  %v3466_v21 = vperm.slane %v8746_v15, 4 }
 0x588   :  { %v3527_v10 = vpack.c.bf16 %v3511_v28, %v3511_v28  ;;  %v3379_v1 = vmul.f32 0.5, %v3378_v17  ;;  %v3467_v25 = vperm.slane %v8746_v15, 5 }
 0x589   :  { %v8957_v38 = vadd.f32 1e-05, %v3206_v34  ;;  %4749 = vmatpush.bf16.msra.mxu0 %v6415_v53  ;;  %v3500_v23 = vadd.f32 %v3468_v54, %v3450_v22  ;;  %v3178_v8 = vrot.slane %v3177_v51, 1  ;;  %4762 = vmatpush.bf16.msra.mxu1 %v6423_v37 }
 0x58a   :  { %4687 = vmatmul.bf16.vlgmr.msra.gmra.mxu3 %v3527_v10  ;;  %4721 = vmatpush.bf16.msrb.mxu2 %v6401_v36  ;;  %v3380_v47 = vsub.f32 1.5, %v3379_v1 }
 0x58b   :  { %4734 = vmatpush.bf16.msrb.mxu3 %v6409_v30  ;;  %6503 = vrsqrt.f32 %v8957_v38  ;;  %v3179_v11 = vadd.f32 %v3178_v8, %v3177_v51  ;;  %v3516_v42 = vmax.f32 %v3500_v23, 0.0  ;;  %vm3352_vm4 = vweird.f32 %v8957_v38 }
 0x58c   :  { %v3381_v58 = vmul.f32 %v6502_v49, %v3380_v47  ;;  %v3417_v30 = vperm.slane %v8723_v63, 5  ;;  %v6432_v63 = vld [vmem:[%s9029_s11] ss:$0 sm:$0xff] }
 0x58d   :  { %4750 = vmatpush.bf16.msra.mxu0 %v6414_v19  ;;  %v3207_v39 = vmul.f32 %v3179_v11, %v7078_v43  ;;  %4763 = vmatpush.bf16.msra.mxu1 %v6422_v57  ;;  %v6406_v43 = vld [vmem:[%s9028_s10 + $0x348] sm:$0xff]  ;;  %v3532_v13 = vpack.c.bf16 %v3516_v42, %v3516_v42 }
 0x58e   :  { %4722 = vmatpush.bf16.msrb.mxu2 %v6400_v45  ;;  %v3385_v44 = vsel %vm3384_vm2, %v6502_v49, %v3381_v58 }
 0x58f   :  { %4735 = vmatpush.bf16.msrb.mxu3 %v6408_v3  ;;  %v3401_v33 = vmul.f32 %v3385_v44, %v8737_v56  ;;  %v3223_v12 = vadd.f32 1e-05, %v3207_v39 }
 0x591   :  { %v6504_v41 = vpop.eup %6503  ;;  %4751 = vmatpush.bf16.msra.mxu0 %v6413_v29  ;;  %v3451_v24 = vmul.f32 %v3419_v50, %v3401_v33  ;;  %6505 = vrsqrt.f32 %v3223_v12  ;;  %4764 = vmatpush.bf16.msra.mxu1 %v6421_v0  ;;  %vm3362_vm6 = vweird.f32 %v3223_v12 }
 0x592   :  { %4723 = vmatpush.bf16.msrb.mxu2 %v6399_v40  ;;  %v3347_v48 = vmul.f32 %v6504_v41, %v8957_v38  ;;  %vm3353_vm3 = vweird.f32 %v6504_v41 }
 0x593   :  { %4736 = vmatpush.bf16.msrb.mxu3 %v6407_v16  ;;  %v3501_v61 = vadd.f32 %v3469_v46, %v3451_v24  ;;  %vm3354_vm5 = vmor %vm3352_vm4, %vm3353_vm3 }
 0x594   :  { %v3348_v56 = vmul.f32 %v6504_v41, %v3347_v48  ;;  %4752 = vmatmul.bf16.vlgmr.msra.gmra.mxu0 %v3532_v13 }
 0x595   :  { %v3517_v4 = vmax.f32 %v3501_v61, 0.0 }
 0x596   :  { %4724 = vmatpush.bf16.msrb.mxu2 %v6398_v7  ;;  %v3349_v5 = vmul.f32 0.5, %v3348_v56 }
 0x597   :  { %4737 = vmatpush.bf16.msrb.mxu3 %v6406_v43  ;;  %v6506_v14 = vpop.eup %6505  ;;  %v3533_v59 = vpack.c.bf16 %v3517_v4, %v3517_v4 }
 0x598   :  { %v3350_v52 = vsub.f32 1.5, %v3349_v5  ;;  %v3357_v55 = vmul.f32 %v6506_v14, %v3223_v12  ;;  %vm3363_vm8 = vweird.f32 %v6506_v14 }
 0x599   :  { %4765 = vmatmul.bf16.vlgmr.msra.gmra.mxu1 %v3533_v59  ;;  %vm3364_vm7 = vmor %vm3362_vm6, %vm3363_vm8 }
 0x59a   :  { %4725 = vmatpush.bf16.msrb.mxu2 %v6397_v20  ;;  %v3351_v26 = vmul.f32 %v6504_v41, %v3350_v52  ;;  %v3358_v49 = vmul.f32 %v6506_v14, %v3357_v55 }
 0x59b   :  { %4738 = vmatpush.bf16.msrb.mxu3 %v6405_v27 }
 0x59c   :  { %v3355_v35 = vsel %vm3354_vm5, %v6504_v41, %v3351_v26  ;;  %v3359_v32 = vmul.f32 0.5, %v3358_v49 }
 0x59d   :  { %v3398_v28 = vmul.f32 %v3355_v35, %v8841_v18 }
 0x59e   :  { %v3360_v2 = vsub.f32 1.5, %v3359_v32 }
 0x59f   :  { %v3448_v31 = vmul.f32 %v3416_v60, %v3398_v28 }
 0x5a0   :  { %v3361_v62 = vmul.f32 %v6506_v14, %v3360_v2 }
 0x5a1   :  { %v3498_v54 = vadd.f32 %v3466_v21, %v3448_v31 }
 0x5a2   :  { %v3365_v10 = vsel %vm3364_vm7, %v6506_v14, %v3361_v62 }
 0x5a3   :  { %v3514_v36 = vmax.f32 %v3498_v54, 0.0  ;;  %v3399_v34 = vmul.f32 %v3365_v10, %v8902_v9 }
 0x5a5   :  { %v3530_v6 = vpack.c.bf16 %v3514_v36, %v3514_v36  ;;  %v3449_v18 = vmul.f32 %v3417_v30, %v3399_v34 }
 0x5a7   :  { %4726 = vmatmul.bf16.vlgmr.msrb.gmra.mxu2 %v3530_v6  ;;  %v3499_v17 = vadd.f32 %v3467_v25, %v3449_v18 }
 0x5a9   :  { %v3515_v53 = vmax.f32 %v3499_v17, 0.0 }
 0x5ab   :  { %v3531_v37 = vpack.c.bf16 %v3515_v53, %v3515_v53 }
 0x5ad   :  { %4739 = vmatmul.bf16.vlgmr.msrb.gmra.mxu3 %v3531_v37 }
 0x5bb   :  { %v4597_v22 = vpop.f32.mrf.mxu0 }
 0x5bc   :  { %v4610_v38 = vpop.f32.mrf.mxu1 }
 0x5c3   :  { %v4599_v15 = vpop.f32.mrf.mxu0 }
 0x5c4   :  { %v4612_v9 = vpop.f32.mrf.mxu1 }
 0x5c6   :  { %v4571_v51 = vpop.f32.mrf.mxu2 }
 0x5c7   :  { %v4572_v1 = vadd.f32 %v6432_v63, %v4571_v51  ;;  %v4584_v45 = vpop.f32.mrf.mxu3 }
 0x5c9   :  { %v4585_v3 = vadd.f32 %v4584_v45, %v4572_v1 }
 0x5cb   :  { %v4598_v23 = vadd.f32 %v4597_v22, %v4585_v3 }
 0x5cd   :  { %v4611_v8 = vadd.f32 %v4610_v38, %v4598_v23 }
 0x5ce   :  { %v4573_v47 = vpop.f32.mrf.mxu2 }
 0x5cf   :  { %v4586_v19 = vpop.f32.mrf.mxu3 }
 0x5d0   :  { %v4649_v57 = vpop.f32.mrf.mxu0 }
 0x5d3   :  { %v4662_v11 = vpop.f32.mrf.mxu1 }
 0x5d8   :  { %v4651_v40 = vpop.f32.mrf.mxu0 }
 0x5db   :  { %v4664_v58 = vpop.f32.mrf.mxu1 }
 0x5e6   :  { %v4623_v16 = vpop.f32.mrf.mxu2 }
 0x5e7   :  { %v4624_v29 = vadd.f32 %v4623_v16, %v4611_v8 }
 0x5ea   :  { %v4636_v42 = vpop.f32.mrf.mxu3 }
 0x5eb   :  { %v4637_v50 = vadd.f32 %v4636_v42, %v4624_v29 }
 0x5ed   :  { %v4650_v39 = vadd.f32 %v4649_v57, %v4637_v50 }
 0x5ee   :  { %v4625_v44 = vpop.f32.mrf.mxu2 }
 0x5ef   :  { %v4663_v0 = vadd.f32 %v4662_v11, %v4650_v39 }
 0x5f2   :  { %v4638_v41 = vpop.f32.mrf.mxu3 }
 0x5f5   :  { %v4701_v33 = vpop.f32.mrf.mxu0 }
 0x5fc   :  { %v4714_v46 = vpop.f32.mrf.mxu1 }
 0x5fd   :  { %v4703_v12 = vpop.f32.mrf.mxu0 }
 0x604   :  { %v4716_v7 = vpop.f32.mrf.mxu1 }
 0x607   :  { %v4675_v48 = vpop.f32.mrf.mxu2 }
 0x608   :  { %v4676_v27 = vadd.f32 %v4675_v48, %v4663_v0 }
 0x60d   :  { %v4688_v43 = vpop.f32.mrf.mxu3 }
 0x60e   :  { %v4689_v4 = vadd.f32 %v4688_v43, %v4676_v27 }
 0x60f   :  { %v4677_v13 = vpop.f32.mrf.mxu2 }
 0x610   :  { %v4702_v52 = vadd.f32 %v4701_v33, %v4689_v4 }
 0x611   :  { %v4753_v24 = vpop.f32.mrf.mxu0 }
 0x612   :  { %v4715_v59 = vadd.f32 %v4714_v46, %v4702_v52 }
 0x615   :  { %v4690_v56 = vpop.f32.mrf.mxu3 }
 0x616   :  { %v4766_v61 = vpop.f32.mrf.mxu1 }
 0x619   :  { %v4755_v20 = vpop.f32.mrf.mxu0 }
 0x61e   :  { %v4768_v5 = vpop.f32.mrf.mxu1 }
 0x62a   :  { %v4727_v14 = vpop.f32.mrf.mxu2 }
 0x62b   :  { %v4728_v26 = vadd.f32 %v4727_v14, %v4715_v59 }
 0x630   :  { %v4740_v55 = vpop.f32.mrf.mxu3 }
 0x631   :  { %v4741_v35 = vadd.f32 %v4740_v55, %v4728_v26 }
 0x632   :  { %v4729_v60 = vpop.f32.mrf.mxu2 }
 0x633   :  { %v4754_v49 = vadd.f32 %v4753_v24, %v4741_v35 }
 0x635   :  { %v4767_v28 = vadd.f32 %v4766_v61, %v4754_v49 }
 0x637   :  { %v4770_v21 = vpack.c.bf16 %v4767_v28, %v4767_v28 }
 0x638   :  { %v4742_v32 = vpop.f32.mrf.mxu3 }
 0x639   :  { %4772 = vst.msk [vmem:[%s9030_s12] sm:$0x1] %vm4771_vm9, %v4770_v21 }
 0x63a   :  { %6531 = dma.done.wait [#allocation3], 32  }
 0x63b   :  { %6532 = vsyncadd [#allocation3], 4294967264 }
 0x63c   :  { %4793 = vsyncpa [#allocation3], 1 }

// kernel: memae_forward.15
= control target key start
LH: loop header
LB: loop body
LE: loop exit
PB: predicated region body
PF: predicated region fallthrough
CT: control target
= control target key end

     0   :  { %vm326_vm0 = vcmask 523264   ;;  %vm1457_vm1 = vcmask 261120   ;;  %vm1556_vm5 = vcmask 257024   ;;  %s3071_s1 = inlined_call_operand.vmem [shape: bf16[4,576,32], index: 1, kind: input, shape index: {}]   ;;  %s3072_s0 = inlined_call_operand.vmem [shape: bf16[8,576], index: 0, kind: input, shape index: {}]   ;;  %s3073_s2 = inlined_call_operand.vmem [shape: f32[1,32], index: 2, kind: input, shape index: {}]   ;;  %s3074_s3 = inlined_call_operand.vmem [shape: f32[1,32], index: 3, kind: input, shape index: {}]   ;;  %s3075_s4 = inlined_call_operand.vmem [shape: bf16[4,8,32], index: 4, kind: output, shape index: {}]  }
   0x1   :  { %v2386_v0 = vld [vmem:[%s3071_s1 + $0x38] sm:$0xff]  ;;  %v2385_v4 = vld [vmem:[%s3071_s1 + $0x30] sm:$0xff]  ;;  %v2384_v8 = vld [vmem:[%s3071_s1 + $0x28] sm:$0xff] }
   0x2   :  { %v2394_v1 = vld [vmem:[%s3071_s1 + $0x78] sm:$0xff]  ;;  %330 = vmatpush.bf16.msra.mxu0 %v2386_v0  ;;  %v2393_v5 = vld [vmem:[%s3071_s1 + $0x70] sm:$0xff]  ;;  %v2392_v9 = vld [vmem:[%s3071_s1 + $0x68] sm:$0xff] }
   0x3   :  { %v2402_v2 = vld [vmem:[%s3071_s1 + $0xb8] sm:$0xff]  ;;  %343 = vmatpush.bf16.msra.mxu1 %v2394_v1  ;;  %v2401_v6 = vld [vmem:[%s3071_s1 + $0xb0] sm:$0xff]  ;;  %v2400_v10 = vld [vmem:[%s3071_s1 + $0xa8] sm:$0xff] }
   0x4   :  { %v2410_v3 = vld [vmem:[%s3071_s1 + $0xf8] sm:$0xff]  ;;  %356 = vmatpush.bf16.msra.mxu2 %v2402_v2  ;;  %v2409_v7 = vld [vmem:[%s3071_s1 + $0xf0] sm:$0xff]  ;;  %v2408_v11 = vld [vmem:[%s3071_s1 + $0xe8] sm:$0xff] }
   0x5   :  { %369 = vmatpush.bf16.msra.mxu3 %v2410_v3  ;;  %v2383_v12 = vld [vmem:[%s3071_s1 + $0x20] sm:$0xff]  ;;  %v2382_v16 = vld [vmem:[%s3071_s1 + $0x18] sm:$0xff]  ;;  %v2381_v20 = vld [vmem:[%s3071_s1 + $0x10] sm:$0xff] }
   0x6   :  { %331 = vmatpush.bf16.msra.mxu0 %v2385_v4  ;;  %v2391_v13 = vld [vmem:[%s3071_s1 + $0x60] sm:$0xff]  ;;  %v2390_v17 = vld [vmem:[%s3071_s1 + $0x58] sm:$0xff]  ;;  %v2389_v21 = vld [vmem:[%s3071_s1 + $0x50] sm:$0xff] }
   0x7   :  { %344 = vmatpush.bf16.msra.mxu1 %v2393_v5  ;;  %v2399_v14 = vld [vmem:[%s3071_s1 + $0xa0] sm:$0xff]  ;;  %v2398_v18 = vld [vmem:[%s3071_s1 + $0x98] sm:$0xff]  ;;  %v2397_v22 = vld [vmem:[%s3071_s1 + $0x90] sm:$0xff] }
   0x8   :  { %357 = vmatpush.bf16.msra.mxu2 %v2401_v6  ;;  %v2407_v15 = vld [vmem:[%s3071_s1 + $0xe0] sm:$0xff]  ;;  %v2406_v19 = vld [vmem:[%s3071_s1 + $0xd8] sm:$0xff]  ;;  %v2405_v23 = vld [vmem:[%s3071_s1 + $0xd0] sm:$0xff] }
   0x9   :  { %370 = vmatpush.bf16.msra.mxu3 %v2409_v7  ;;  %v2380_v24 = vld [vmem:[%s3071_s1 + $0x8] sm:$0xff]  ;;  %v18_v28 = vld [vmem:[%s3072_s0] sm:$0xff]  ;;  %v2414_v38 = vld [vmem:[%s3071_s1 + $0x118] sm:$0xff] }
   0xa   :  { %332 = vmatpush.bf16.msra.mxu0 %v2384_v8  ;;  %v2388_v25 = vld [vmem:[%s3071_s1 + $0x48] sm:$0xff]  ;;  %v2379_v30 = vld [vmem:[%s3071_s1] sm:$0xff]  ;;  %v96_v32 = vunpack.c.l.b16 %v18_v28  ;;  %v97_v37 = vunpack.c.h.b16 %v18_v28  ;;  %v2422_v39 = vld [vmem:[%s3071_s1 + $0x158] sm:$0xff] }
   0xb   :  { %345 = vmatpush.bf16.msra.mxu1 %v2392_v9  ;;  %v2396_v26 = vld [vmem:[%s3071_s1 + $0x88] sm:$0xff]  ;;  %v2387_v31 = vld [vmem:[%s3071_s1 + $0x40] sm:$0xff]  ;;  %v2430_v40 = vld [vmem:[%s3071_s1 + $0x198] sm:$0xff] }
   0xc   :  { %358 = vmatpush.bf16.msra.mxu2 %v2400_v10  ;;  %v2404_v27 = vld [vmem:[%s3071_s1 + $0xc8] sm:$0xff]  ;;  %v2395_v34 = vld [vmem:[%s3071_s1 + $0x80] sm:$0xff]  ;;  %v2438_v41 = vld [vmem:[%s3071_s1 + $0x1d8] sm:$0xff]  ;;  %v2664_v42 = vpack.c.b16 %v96_v32, %v96_v32  ;;  %v2670_v45 = vpack.c.b16 %v97_v37, %v97_v37 }
   0xd   :  { %371 = vmatpush.bf16.msra.mxu3 %v2408_v11  ;;  %v19_v29 = vld [vmem:[%s3072_s0 + $0x8] sm:$0xff]  ;;  %v2403_v35 = vld [vmem:[%s3071_s1 + $0xc0] sm:$0xff]  ;;  %v2413_v46 = vld [vmem:[%s3071_s1 + $0x110] sm:$0xff] }
   0xe   :  { %333 = vmatpush.bf16.msra.mxu0 %v2383_v12  ;;  %v98_v33 = vunpack.c.l.b16 %v19_v29  ;;  %v99_v36 = vunpack.c.h.b16 %v19_v29  ;;  %v2421_v47 = vld [vmem:[%s3071_s1 + $0x150] sm:$0xff]  ;;  %v2412_v50 = vld [vmem:[%s3071_s1 + $0x108] sm:$0xff]  ;;  %v2411_v54 = vld [vmem:[%s3071_s1 + $0x100] sm:$0xff] }
   0xf   :  { %346 = vmatpush.bf16.msra.mxu1 %v2391_v13  ;;  %v2429_v48 = vld [vmem:[%s3071_s1 + $0x190] sm:$0xff]  ;;  %v2420_v51 = vld [vmem:[%s3071_s1 + $0x148] sm:$0xff]  ;;  %v2419_v55 = vld [vmem:[%s3071_s1 + $0x140] sm:$0xff] }
  0x10   :  { %359 = vmatpush.bf16.msra.mxu2 %v2399_v14  ;;  %v2666_v43 = vpack.c.b16 %v98_v33, %v98_v33  ;;  %v2668_v44 = vpack.c.b16 %v99_v36, %v99_v36  ;;  %v2437_v49 = vld [vmem:[%s3071_s1 + $0x1d0] sm:$0xff]  ;;  %v2428_v52 = vld [vmem:[%s3071_s1 + $0x188] sm:$0xff]  ;;  %v2427_v57 = vld [vmem:[%s3071_s1 + $0x180] sm:$0xff] }
  0x11   :  { %372 = vmatpush.bf16.msra.mxu3 %v2407_v15  ;;  %v2436_v53 = vld [vmem:[%s3071_s1 + $0x1c8] sm:$0xff]  ;;  %v20_v56 = vld [vmem:[%s3072_s0 + $0x10] sm:$0xf]  ;;  %v2435_v58 = vld [vmem:[%s3071_s1 + $0x1c0] sm:$0xff] }
  0x12   :  { %334 = vmatpush.bf16.msra.mxu0 %v2382_v16  ;;  %v2446_v59 = vld [vmem:[%s3071_s1 + $0x218] sm:$0xff]  ;;  %v100_v60 = vunpack.c.l.b16 %v20_v56  ;;  %v2445_v0 = vld [vmem:[%s3071_s1 + $0x210] sm:$0xff]  ;;  %v2444_v5 = vld [vmem:[%s3071_s1 + $0x208] sm:$0xff] }
  0x13   :  { %347 = vmatpush.bf16.msra.mxu1 %v2390_v17  ;;  %v2418_v61 = vld [vmem:[%s3071_s1 + $0x138] sm:$0xff]  ;;  %v2417_v2 = vld [vmem:[%s3071_s1 + $0x130] sm:$0xff]  ;;  %v2416_v6 = vld [vmem:[%s3071_s1 + $0x128] sm:$0xff] }
  0x14   :  { %360 = vmatpush.bf16.msra.mxu2 %v2398_v18  ;;  %v2426_v62 = vld [vmem:[%s3071_s1 + $0x178] sm:$0xff]  ;;  %v2730_v1 = vpack.c.b16 %v100_v60, %v100_v60  ;;  %v2425_v3 = vld [vmem:[%s3071_s1 + $0x170] sm:$0xff]  ;;  %v2424_v7 = vld [vmem:[%s3071_s1 + $0x168] sm:$0xff] }
  0x15   :  { %373 = vmatpush.bf16.msra.mxu3 %v2406_v19  ;;  %v2434_v63 = vld [vmem:[%s3071_s1 + $0x1b8] sm:$0xff]  ;;  %v2433_v4 = vld [vmem:[%s3071_s1 + $0x1b0] sm:$0xff]  ;;  %v2432_v8 = vld [vmem:[%s3071_s1 + $0x1a8] sm:$0xff] }
  0x16   :  { %335 = vmatpush.bf16.msra.mxu0 %v2381_v20  ;;  %v2443_v9 = vld [vmem:[%s3071_s1 + $0x200] sm:$0xff]  ;;  %v2442_v13 = vld [vmem:[%s3071_s1 + $0x1f8] sm:$0xff]  ;;  %v2441_v17 = vld [vmem:[%s3071_s1 + $0x1f0] sm:$0xff] }
  0x17   :  { %348 = vmatpush.bf16.msra.mxu1 %v2389_v21  ;;  %v2415_v10 = vld [vmem:[%s3071_s1 + $0x120] sm:$0xff]  ;;  %v2450_v14 = vld [vmem:[%s3071_s1 + $0x238] sm:$0xff]  ;;  %v2449_v18 = vld [vmem:[%s3071_s1 + $0x230] sm:$0xff] }
  0x18   :  { %361 = vmatpush.bf16.msra.mxu2 %v2397_v22  ;;  %v2423_v11 = vld [vmem:[%s3071_s1 + $0x160] sm:$0xff]  ;;  %v2458_v15 = vld [vmem:[%s3071_s1 + $0x278] sm:$0xff]  ;;  %v2457_v19 = vld [vmem:[%s3071_s1 + $0x270] sm:$0xff] }
  0x19   :  { %374 = vmatpush.bf16.msra.mxu3 %v2405_v23  ;;  %v2431_v12 = vld [vmem:[%s3071_s1 + $0x1a0] sm:$0xff]  ;;  %v2466_v16 = vld [vmem:[%s3071_s1 + $0x2b8] sm:$0xff]  ;;  %v2465_v20 = vld [vmem:[%s3071_s1 + $0x2b0] sm:$0xff] }
  0x1a   :  { %336 = vmatpush.bf16.msra.mxu0 %v2380_v24  ;;  %v2440_v21 = vld [vmem:[%s3071_s1 + $0x1e8] sm:$0xff]  ;;  %v2463_v28 = vld [vmem:[%s3071_s1 + $0x2a0] sm:$0xff]  ;;  %v2474_v29 = vld [vmem:[%s3071_s1 + $0x2f8] sm:$0xff] }
  0x1b   :  { %349 = vmatpush.bf16.msra.mxu1 %v2388_v25  ;;  %v2448_v22 = vld [vmem:[%s3071_s1 + $0x228] sm:$0xff]  ;;  %v2439_v25 = vld [vmem:[%s3071_s1 + $0x1e0] sm:$0xff]  ;;  %v2462_v32 = vld [vmem:[%s3071_s1 + $0x298] sm:$0xff] }
  0x1c   :  { %362 = vmatpush.bf16.msra.mxu2 %v2396_v26  ;;  %v2456_v23 = vld [vmem:[%s3071_s1 + $0x268] sm:$0xff]  ;;  %v2447_v26 = vld [vmem:[%s3071_s1 + $0x220] sm:$0xff]  ;;  %v2473_v33 = vld [vmem:[%s3071_s1 + $0x2f0] sm:$0xff] }
  0x1d   :  { %375 = vmatpush.bf16.msra.mxu3 %v2404_v27  ;;  %v2464_v24 = vld [vmem:[%s3071_s1 + $0x2a8] sm:$0xff]  ;;  %v2455_v27 = vld [vmem:[%s3071_s1 + $0x260] sm:$0xff]  ;;  %v2461_v36 = vld [vmem:[%s3071_s1 + $0x290] sm:$0xff] }
  0x1e   :  { %337 = vmatpush.bf16.msra.mxu0 %v2379_v30  ;;  %v2482_v30 = vld [vmem:[%s3071_s1 + $0x338] sm:$0xff]  ;;  %v2472_v37 = vld [vmem:[%s3071_s1 + $0x2e8] sm:$0xff]  ;;  %v2493_v56 = vld [vmem:[%s3071_s1 + $0x390] sm:$0xff] }
  0x1f   :  { %350 = vmatpush.bf16.msra.mxu1 %v2387_v31  ;;  %v2454_v31 = vld [vmem:[%s3071_s1 + $0x258] sm:$0xff]  ;;  %v2492_v60 = vld [vmem:[%s3071_s1 + $0x388] sm:$0xff] }
  0x20   :  { %363 = vmatpush.bf16.msra.mxu2 %v2395_v34  ;;  %v2481_v34 = vld [vmem:[%s3071_s1 + $0x330] sm:$0xff] }
  0x21   :  { %376 = vmatpush.bf16.msra.mxu3 %v2403_v35  ;;  %338 = vmatmul.bf16.vlgmr.msra.gmra.mxu0 %v2664_v42  ;;  %v2453_v35 = vld [vmem:[%s3071_s1 + $0x250] sm:$0xff] }
  0x22   :  { %386 = vmatpush.bf16.msrb.mxu0 %v2414_v38  ;;  %351 = vmatmul.bf16.vlgmr.msra.gmra.mxu1 %v2670_v45  ;;  %v2480_v38 = vld [vmem:[%s3071_s1 + $0x328] sm:$0xff] }
  0x23   :  { %684 = vmatpush.bf16.msrb.mxu1 %v2422_v39  ;;  %364 = vmatmul.bf16.vlgmr.msra.gmra.mxu2 %v2666_v43  ;;  %v2452_v39 = vld [vmem:[%s3071_s1 + $0x248] sm:$0xff] }
  0x24   :  { %697 = vmatpush.bf16.msrb.mxu2 %v2430_v40  ;;  %377 = vmatmul.bf16.vlgmr.msra.gmra.mxu3 %v2668_v44  ;;  %v2460_v40 = vld [vmem:[%s3071_s1 + $0x288] sm:$0xff] }
  0x25   :  { %710 = vmatpush.bf16.msrb.mxu3 %v2438_v41  ;;  %v2471_v41 = vld [vmem:[%s3071_s1 + $0x2e0] sm:$0xff] }
  0x26   :  { %387 = vmatpush.bf16.msrb.mxu0 %v2413_v46  ;;  %v2479_v46 = vld [vmem:[%s3071_s1 + $0x320] sm:$0xff] }
  0x27   :  { %685 = vmatpush.bf16.msrb.mxu1 %v2421_v47  ;;  %v2451_v47 = vld [vmem:[%s3071_s1 + $0x240] sm:$0xff] }
  0x28   :  { %698 = vmatpush.bf16.msrb.mxu2 %v2429_v48  ;;  %v2459_v48 = vld [vmem:[%s3071_s1 + $0x280] sm:$0xff] }
  0x29   :  { %711 = vmatpush.bf16.msrb.mxu3 %v2437_v49  ;;  %v2470_v49 = vld [vmem:[%s3071_s1 + $0x2d8] sm:$0xff] }
  0x2a   :  { %388 = vmatpush.bf16.msrb.mxu0 %v2412_v50  ;;  %v2478_v50 = vld [vmem:[%s3071_s1 + $0x318] sm:$0xff] }
  0x2b   :  { %686 = vmatpush.bf16.msrb.mxu1 %v2420_v51  ;;  %v2486_v51 = vld [vmem:[%s3071_s1 + $0x358] sm:$0xff] }
  0x2c   :  { %699 = vmatpush.bf16.msrb.mxu2 %v2428_v52  ;;  %v2494_v52 = vld [vmem:[%s3071_s1 + $0x398] sm:$0xff] }
  0x2d   :  { %712 = vmatpush.bf16.msrb.mxu3 %v2436_v53  ;;  %v2469_v53 = vld [vmem:[%s3071_s1 + $0x2d0] sm:$0xff] }
  0x2e   :  { %389 = vmatpush.bf16.msrb.mxu0 %v2411_v54  ;;  %v2477_v54 = vld [vmem:[%s3071_s1 + $0x310] sm:$0xff] }
  0x2f   :  { %687 = vmatpush.bf16.msrb.mxu1 %v2419_v55  ;;  %v2485_v55 = vld [vmem:[%s3071_s1 + $0x350] sm:$0xff] }
  0x30   :  { %700 = vmatpush.bf16.msrb.mxu2 %v2427_v57  ;;  %v2468_v57 = vld [vmem:[%s3071_s1 + $0x2c8] sm:$0xff] }
  0x31   :  { %713 = vmatpush.bf16.msrb.mxu3 %v2435_v58  ;;  %1724 = vmatmul.msk.bf16.vlgmr.msrb.gmra.mxu0 %vm326_vm0, %v2730_v1  ;;  %v2476_v58 = vld [vmem:[%s3071_s1 + $0x308] sm:$0xff] }
  0x32   :  { %723 = vmatpush.bf16.msra.mxu0 %v2446_v59  ;;  %v2484_v59 = vld [vmem:[%s3071_s1 + $0x348] sm:$0xff] }
  0x33   :  { %688 = vmatpush.bf16.msrb.mxu1 %v2418_v61  ;;  %v2467_v61 = vld [vmem:[%s3071_s1 + $0x2c0] sm:$0xff] }
  0x34   :  { %701 = vmatpush.bf16.msrb.mxu2 %v2426_v62  ;;  %v2475_v62 = vld [vmem:[%s3071_s1 + $0x300] sm:$0xff] }
  0x35   :  { %714 = vmatpush.bf16.msrb.mxu3 %v2434_v63  ;;  %v2483_v63 = vld [vmem:[%s3071_s1 + $0x340] sm:$0xff] }
  0x36   :  { %724 = vmatpush.bf16.msra.mxu0 %v2445_v0  ;;  %v2491_v0 = vld [vmem:[%s3071_s1 + $0x380] sm:$0xff] }
  0x37   :  { %689 = vmatpush.bf16.msrb.mxu1 %v2417_v2  ;;  %v2502_v2 = vld [vmem:[%s3071_s1 + $0x3d8] sm:$0xff] }
  0x38   :  { %702 = vmatpush.bf16.msrb.mxu2 %v2425_v3  ;;  %v2510_v3 = vld [vmem:[%s3071_s1 + $0x418] sm:$0xff] }
  0x39   :  { %715 = vmatpush.bf16.msrb.mxu3 %v2433_v4  ;;  %v2518_v4 = vld [vmem:[%s3071_s1 + $0x458] sm:$0xff] }
  0x3a   :  { %725 = vmatpush.bf16.msra.mxu0 %v2444_v5  ;;  %v2490_v5 = vld [vmem:[%s3071_s1 + $0x378] sm:$0xff] }
  0x3b   :  { %690 = vmatpush.bf16.msrb.mxu1 %v2416_v6  ;;  %v2501_v6 = vld [vmem:[%s3071_s1 + $0x3d0] sm:$0xff] }
  0x3c   :  { %703 = vmatpush.bf16.msrb.mxu2 %v2424_v7  ;;  %v2509_v7 = vld [vmem:[%s3071_s1 + $0x410] sm:$0xff] }
  0x3d   :  { %716 = vmatpush.bf16.msrb.mxu3 %v2432_v8  ;;  %v2517_v8 = vld [vmem:[%s3071_s1 + $0x450] sm:$0xff] }
  0x3e   :  { %726 = vmatpush.bf16.msra.mxu0 %v2443_v9  ;;  %v2489_v9 = vld [vmem:[%s3071_s1 + $0x370] sm:$0xff] }
  0x3f   :  { %691 = vmatpush.bf16.msrb.mxu1 %v2415_v10  ;;  %v2500_v10 = vld [vmem:[%s3071_s1 + $0x3c8] sm:$0xff] }
  0x40   :  { %704 = vmatpush.bf16.msrb.mxu2 %v2423_v11  ;;  %v2508_v11 = vld [vmem:[%s3071_s1 + $0x408] sm:$0xff] }
  0x41   :  { %717 = vmatpush.bf16.msrb.mxu3 %v2431_v12  ;;  %v2516_v12 = vld [vmem:[%s3071_s1 + $0x448] sm:$0xff] }
  0x42   :  { %727 = vmatpush.bf16.msra.mxu0 %v2442_v13  ;;  %692 = vmatmul.bf16.vlgmr.msrb.gmra.mxu1 %v2664_v42  ;;  %v2488_v13 = vld [vmem:[%s3071_s1 + $0x368] sm:$0xff] }
  0x43   :  { %740 = vmatpush.bf16.msra.mxu1 %v2450_v14  ;;  %705 = vmatmul.bf16.vlgmr.msrb.gmra.mxu2 %v2670_v45  ;;  %v2499_v14 = vld [vmem:[%s3071_s1 + $0x3c0] sm:$0xff] }
  0x44   :  { %1038 = vmatpush.bf16.msra.mxu2 %v2458_v15  ;;  %718 = vmatmul.bf16.vlgmr.msrb.gmra.mxu3 %v2666_v43  ;;  %v2507_v15 = vld [vmem:[%s3071_s1 + $0x400] sm:$0xff] }
  0x45   :  { %1051 = vmatpush.bf16.msra.mxu3 %v2466_v16  ;;  %v2515_v16 = vld [vmem:[%s3071_s1 + $0x440] sm:$0xff] }
  0x46   :  { %728 = vmatpush.bf16.msra.mxu0 %v2441_v17  ;;  %v2487_v17 = vld [vmem:[%s3071_s1 + $0x360] sm:$0xff] }
  0x47   :  { %741 = vmatpush.bf16.msra.mxu1 %v2449_v18  ;;  %v2498_v18 = vld [vmem:[%s3071_s1 + $0x3b8] sm:$0xff] }
  0x48   :  { %1039 = vmatpush.bf16.msra.mxu2 %v2457_v19  ;;  %v2506_v19 = vld [vmem:[%s3071_s1 + $0x3f8] sm:$0xff] }
  0x49   :  { %1052 = vmatpush.bf16.msra.mxu3 %v2465_v20  ;;  %v2514_v20 = vld [vmem:[%s3071_s1 + $0x438] sm:$0xff] }
  0x4a   :  { %729 = vmatpush.bf16.msra.mxu0 %v2440_v21  ;;  %v2522_v21 = vld [vmem:[%s3071_s1 + $0x478] sm:$0xff] }
  0x4b   :  { %742 = vmatpush.bf16.msra.mxu1 %v2448_v22  ;;  %v2497_v22 = vld [vmem:[%s3071_s1 + $0x3b0] sm:$0xff] }
  0x4c   :  { %1040 = vmatpush.bf16.msra.mxu2 %v2456_v23  ;;  %v2505_v23 = vld [vmem:[%s3071_s1 + $0x3f0] sm:$0xff] }
  0x4d   :  { %1053 = vmatpush.bf16.msra.mxu3 %v2464_v24  ;;  %v2513_v24 = vld [vmem:[%s3071_s1 + $0x430] sm:$0xff] }
  0x4e   :  { %730 = vmatpush.bf16.msra.mxu0 %v2439_v25  ;;  %v2521_v25 = vld [vmem:[%s3071_s1 + $0x470] sm:$0xff] }
  0x4f   :  { %743 = vmatpush.bf16.msra.mxu1 %v2447_v26  ;;  %v2496_v26 = vld [vmem:[%s3071_s1 + $0x3a8] sm:$0xff] }
  0x50   :  { %1041 = vmatpush.bf16.msra.mxu2 %v2455_v27  ;;  %v2504_v27 = vld [vmem:[%s3071_s1 + $0x3e8] sm:$0xff] }
  0x51   :  { %1054 = vmatpush.bf16.msra.mxu3 %v2463_v28  ;;  %731 = vmatmul.bf16.vlgmr.msra.gmra.mxu0 %v2668_v44  ;;  %v2512_v28 = vld [vmem:[%s3071_s1 + $0x428] sm:$0xff] }
  0x52   :  { %1064 = vmatpush.bf16.msrb.mxu0 %v2474_v29  ;;  %1941 = vmatmul.msk.bf16.vlgmr.msra.gmra.mxu1 %vm326_vm0, %v2730_v1  ;;  %v2495_v29 = vld [vmem:[%s3071_s1 + $0x3a0] sm:$0xff] }
  0x53   :  { %1077 = vmatpush.bf16.msrb.mxu1 %v2482_v30  ;;  %v2503_v30 = vld [vmem:[%s3071_s1 + $0x3e0] sm:$0xff] }
  0x54   :  { %1042 = vmatpush.bf16.msra.mxu2 %v2454_v31  ;;  %v2511_v31 = vld [vmem:[%s3071_s1 + $0x420] sm:$0xff] }
  0x55   :  { %1055 = vmatpush.bf16.msra.mxu3 %v2462_v32  ;;  %v2519_v32 = vld [vmem:[%s3071_s1 + $0x460] sm:$0xff] }
  0x56   :  { %1065 = vmatpush.bf16.msrb.mxu0 %v2473_v33 }
  0x57   :  { %1078 = vmatpush.bf16.msrb.mxu1 %v2481_v34 }
  0x58   :  { %1043 = vmatpush.bf16.msra.mxu2 %v2453_v35 }
  0x59   :  { %1056 = vmatpush.bf16.msra.mxu3 %v2461_v36 }
  0x5a   :  { %1066 = vmatpush.bf16.msrb.mxu0 %v2472_v37 }
  0x5b   :  { %1079 = vmatpush.bf16.msrb.mxu1 %v2480_v38 }
  0x5c   :  { %1044 = vmatpush.bf16.msra.mxu2 %v2452_v39 }
  0x5d   :  { %1057 = vmatpush.bf16.msra.mxu3 %v2460_v40 }
  0x5e   :  { %1067 = vmatpush.bf16.msrb.mxu0 %v2471_v41 }
  0x5f   :  { %1080 = vmatpush.bf16.msrb.mxu1 %v2479_v46 }
  0x60   :  { %1045 = vmatpush.bf16.msra.mxu2 %v2451_v47 }
  0x61   :  { %1058 = vmatpush.bf16.msra.mxu3 %v2459_v48 }
  0x62   :  { %1068 = vmatpush.bf16.msrb.mxu0 %v2470_v49 }
  0x63   :  { %1081 = vmatpush.bf16.msrb.mxu1 %v2478_v50  ;;  %1046 = vmatmul.bf16.vlgmr.msra.gmra.mxu2 %v2664_v42 }
  0x64   :  { %1094 = vmatpush.bf16.msrb.mxu2 %v2486_v51  ;;  %1059 = vmatmul.bf16.vlgmr.msra.gmra.mxu3 %v2670_v45 }
  0x65   :  { %1392 = vmatpush.bf16.msrb.mxu3 %v2494_v52 }
  0x66   :  { %1069 = vmatpush.bf16.msrb.mxu0 %v2469_v53 }
  0x67   :  { %1082 = vmatpush.bf16.msrb.mxu1 %v2477_v54 }
  0x68   :  { %1095 = vmatpush.bf16.msrb.mxu2 %v2485_v55 }
  0x69   :  { %1393 = vmatpush.bf16.msrb.mxu3 %v2493_v56 }
  0x6a   :  { %1070 = vmatpush.bf16.msrb.mxu0 %v2468_v57 }
  0x6b   :  { %1083 = vmatpush.bf16.msrb.mxu1 %v2476_v58 }
  0x6c   :  { %1096 = vmatpush.bf16.msrb.mxu2 %v2484_v59 }
  0x6d   :  { %1394 = vmatpush.bf16.msrb.mxu3 %v2492_v60 }
  0x6e   :  { %1071 = vmatpush.bf16.msrb.mxu0 %v2467_v61 }
  0x6f   :  { %1084 = vmatpush.bf16.msrb.mxu1 %v2475_v62 }
  0x70   :  { %1097 = vmatpush.bf16.msrb.mxu2 %v2483_v63 }
  0x71   :  { %1395 = vmatpush.bf16.msrb.mxu3 %v2491_v0  ;;  %1072 = vmatmul.bf16.vlgmr.msrb.gmra.mxu0 %v2666_v43 }
  0x72   :  { %1405 = vmatpush.bf16.msra.mxu0 %v2502_v2  ;;  %1085 = vmatmul.bf16.vlgmr.msrb.gmra.mxu1 %v2668_v44 }
  0x73   :  { %1418 = vmatpush.bf16.msra.mxu1 %v2510_v3  ;;  %2158 = vmatmul.msk.bf16.vlgmr.msrb.gmra.mxu2 %vm326_vm0, %v2730_v1 }
  0x74   :  { %1431 = vmatpush.bf16.msra.mxu2 %v2518_v4 }
  0x75   :  { %1396 = vmatpush.bf16.msrb.mxu3 %v2490_v5 }
  0x76   :  { %1406 = vmatpush.bf16.msra.mxu0 %v2501_v6 }
  0x77   :  { %1419 = vmatpush.bf16.msra.mxu1 %v2509_v7 }
  0x78   :  { %1432 = vmatpush.bf16.msra.mxu2 %v2517_v8 }
  0x79   :  { %1397 = vmatpush.bf16.msrb.mxu3 %v2489_v9 }
  0x7a   :  { %1407 = vmatpush.bf16.msra.mxu0 %v2500_v10 }
  0x7b   :  { %1420 = vmatpush.bf16.msra.mxu1 %v2508_v11 }
  0x7c   :  { %1433 = vmatpush.bf16.msra.mxu2 %v2516_v12 }
  0x7d   :  { %1398 = vmatpush.bf16.msrb.mxu3 %v2488_v13 }
  0x7e   :  { %1408 = vmatpush.bf16.msra.mxu0 %v2499_v14 }
  0x7f   :  { %1421 = vmatpush.bf16.msra.mxu1 %v2507_v15 }
  0x80   :  { %1434 = vmatpush.bf16.msra.mxu2 %v2515_v16 }
  0x81   :  { %1399 = vmatpush.bf16.msrb.mxu3 %v2487_v17 }
  0x82   :  { %1409 = vmatpush.bf16.msra.mxu0 %v2498_v18 }
  0x83   :  { %1422 = vmatpush.bf16.msra.mxu1 %v2506_v19 }
  0x84   :  { %1435 = vmatpush.bf16.msra.mxu2 %v2514_v20  ;;  %1400 = vmatmul.bf16.vlgmr.msrb.gmra.mxu3 %v2664_v42  ;;  %v2520_v42 = vld [vmem:[%s3071_s1 + $0x468] sm:$0xff] }
  0x85   :  { %1448 = vmatpush.bf16.msra.mxu3 %v2522_v21 }
  0x86   :  { %1410 = vmatpush.bf16.msra.mxu0 %v2497_v22 }
  0x87   :  { %1423 = vmatpush.bf16.msra.mxu1 %v2505_v23 }
  0x88   :  { %1436 = vmatpush.bf16.msra.mxu2 %v2513_v24 }
  0x89   :  { %1449 = vmatpush.bf16.msra.mxu3 %v2521_v25 }
  0x8a   :  { %1411 = vmatpush.bf16.msra.mxu0 %v2496_v26 }
  0x8b   :  { %1424 = vmatpush.bf16.msra.mxu1 %v2504_v27 }
  0x8c   :  { %1437 = vmatpush.bf16.msra.mxu2 %v2512_v28 }
  0x8d   :  { %1450 = vmatpush.bf16.msra.mxu3 %v2520_v42 }
  0x8e   :  { %1412 = vmatpush.bf16.msra.mxu0 %v2495_v29 }
  0x8f   :  { %1425 = vmatpush.bf16.msra.mxu1 %v2503_v30 }
  0x90   :  { %1438 = vmatpush.bf16.msra.mxu2 %v2511_v31 }
  0x91   :  { %1451 = vmatpush.bf16.msra.mxu3 %v2519_v32  ;;  %1413 = vmatmul.bf16.vlgmr.msra.gmra.mxu0 %v2670_v45 }
  0x92   :  { %1426 = vmatmul.bf16.vlgmr.msra.gmra.mxu1 %v2666_v43 }
  0x93   :  { %1439 = vmatmul.bf16.vlgmr.msra.gmra.mxu2 %v2668_v44 }
  0x94   :  { %2375 = vmatmul.msk.bf16.vlgmr.msra.gmra.mxu3 %vm326_vm0, %v2730_v1 }
  0x9e   :  { %v339_v33 = vpop.f32.mrf.mxu0 }
  0x9f   :  { %v352_v34 = vpop.f32.mrf.mxu1 }
  0xa0   :  { %v353_v35 = vadd.f32 %v352_v34, %v339_v33 }
  0xa6   :  { %v365_v36 = vpop.f32.mrf.mxu2  ;;  %v341_v39 = vpop.f32.mrf.mxu0 }
  0xa7   :  { %v366_v37 = vadd.f32 %v365_v36, %v353_v35  ;;  %v378_v38 = vpop.f32.mrf.mxu3  ;;  %v354_v41 = vpop.f32.mrf.mxu1 }
  0xa9   :  { %v379_v40 = vadd.f32 %v378_v38, %v366_v37 }
  0xae   :  { %v367_v46 = vpop.f32.mrf.mxu2  ;;  %v391_v48 = vpop.f32.mrf.mxu0 }
  0xaf   :  { %v380_v47 = vpop.f32.mrf.mxu3  ;;  %v3025_v45 = vadd.f32 %v391_v48, %v379_v40 }
  0xb1   :  { %v1458_v14 = vsel %vm1457_vm1, %v3025_v45, 0.0 }
  0xb2   :  { %v1459_v17 = vrot.slane %v1458_v14, 4 }
  0xb4   :  { %v1460_v24 = vadd.f32 %v1459_v17, %v1458_v14 }
  0xb6   :  { %v393_v43 = vpop.f32.mrf.mxu0  ;;  %v1461_v28 = vrot.slane %v1460_v24, 2 }
  0xb8   :  { %v1462_v36 = vadd.f32 %v1461_v28, %v1460_v24 }
  0xba   :  { %v1463_v41 = vrot.slane %v1462_v36, 1 }
  0xbf   :  { %v693_v49 = vpop.f32.mrf.mxu1 }
  0xc6   :  { %v706_v44 = vpop.f32.mrf.mxu2 }
  0xc7   :  { %v707_v50 = vadd.f32 %v706_v44, %v693_v49  ;;  %v719_v51 = vpop.f32.mrf.mxu3  ;;  %v695_v1 = vpop.f32.mrf.mxu1 }
  0xc9   :  { %v720_v52 = vadd.f32 %v719_v51, %v707_v50  ;;  %v1464_v50 = vadd.f32 %v1463_v41, %v1462_v36 }
  0xce   :  { %v732_v53 = vpop.f32.mrf.mxu0  ;;  %v708_v54 = vpop.f32.mrf.mxu2 }
  0xcf   :  { %v721_v55 = vpop.f32.mrf.mxu3  ;;  %v745_v56 = vpop.f32.mrf.mxu1  ;;  %v733_v7 = vadd.f32 %v732_v53, %v720_v52 }
  0xd1   :  { %v3027_v10 = vadd.f32 %v745_v56, %v733_v7 }
  0xd3   :  { %v1465_v13 = vsel %vm1457_vm1, %v3027_v10, 0.0 }
  0xd4   :  { %v1466_v16 = vrot.slane %v1465_v13, 4 }
  0xd6   :  { %v734_v57 = vpop.f32.mrf.mxu0  ;;  %v1467_v21 = vadd.f32 %v1466_v16, %v1465_v13 }
  0xd7   :  { %v747_v58 = vpop.f32.mrf.mxu1 }
  0xd8   :  { %v1468_v26 = vrot.slane %v1467_v21, 2 }
  0xda   :  { %v1469_v33 = vadd.f32 %v1468_v26, %v1467_v21 }
  0xdc   :  { %v1470_v39 = vrot.slane %v1469_v33, 1 }
  0xde   :  { %v1471_v43 = vadd.f32 %v1470_v39, %v1469_v33 }
  0xe0   :  { %v1472_v52 = vadd.f32 %v1471_v43, %v1464_v50 }
  0xe6   :  { %v1047_v59 = vpop.f32.mrf.mxu2 }
  0xe7   :  { %v1060_v60 = vpop.f32.mrf.mxu3 }
  0xe8   :  { %v1061_v3 = vadd.f32 %v1060_v60, %v1047_v59 }
  0xee   :  { %v1073_v61 = vpop.f32.mrf.mxu0  ;;  %v1049_v62 = vpop.f32.mrf.mxu2 }
  0xef   :  { %v1062_v63 = vpop.f32.mrf.mxu3  ;;  %v1086_v0 = vpop.f32.mrf.mxu1  ;;  %v1074_v6 = vadd.f32 %v1073_v61, %v1061_v3 }
  0xf1   :  { %v1087_v8 = vadd.f32 %v1086_v0, %v1074_v6 }
  0xf6   :  { %v1075_v2 = vpop.f32.mrf.mxu0  ;;  %v1099_v5 = vpop.f32.mrf.mxu2 }
  0xf7   :  { %v1088_v4 = vpop.f32.mrf.mxu1  ;;  %v3029_v11 = vadd.f32 %v1099_v5, %v1087_v8 }
  0xf9   :  { %v1473_v15 = vsel %vm1457_vm1, %v3029_v11, 0.0 }
  0xfa   :  { %v1474_v18 = vrot.slane %v1473_v15, 4 }
  0xfc   :  { %v1475_v25 = vadd.f32 %v1474_v18, %v1473_v15 }
  0xfe   :  { %v1101_v9 = vpop.f32.mrf.mxu2  ;;  %v1476_v42 = vrot.slane %v1475_v25, 2 }
 0x100   :  { %v1477_v37 = vadd.f32 %v1476_v42, %v1475_v25 }
 0x102   :  { %v1478_v46 = vrot.slane %v1477_v37, 1 }
 0x104   :  { %v1479_v51 = vadd.f32 %v1478_v46, %v1477_v37 }
 0x106   :  { %v1480_v54 = vadd.f32 %v1479_v51, %v1472_v52 }
 0x107   :  { %v1401_v12 = vpop.f32.mrf.mxu3 }
 0x10e   :  { %v1414_v19 = vpop.f32.mrf.mxu0 }
 0x10f   :  { %v1427_v20 = vpop.f32.mrf.mxu1  ;;  %v1403_v22 = vpop.f32.mrf.mxu3  ;;  %v1415_v23 = vadd.f32 %v1414_v19, %v1401_v12 }
 0x111   :  { %v1428_v27 = vadd.f32 %v1427_v20, %v1415_v23 }
 0x116   :  { %v1440_v29 = vpop.f32.mrf.mxu2  ;;  %v1416_v31 = vpop.f32.mrf.mxu0 }
 0x117   :  { %v1441_v30 = vadd.f32 %v1440_v29, %v1428_v27  ;;  %v1429_v32 = vpop.f32.mrf.mxu1  ;;  %v1453_v34 = vpop.f32.mrf.mxu3 }
 0x119   :  { %v3037_v35 = vadd.f32 %v1453_v34, %v1441_v30 }
 0x11b   :  { %v1481_v38 = vsel %vm1457_vm1, %v3037_v35, 0.0 }
 0x11c   :  { %v1482_v40 = vrot.slane %v1481_v38, 4 }
 0x11e   :  { %v1483_v47 = vadd.f32 %v1482_v40, %v1481_v38  ;;  %v1442_v48 = vpop.f32.mrf.mxu2 }
 0x11f   :  { %v1455_v44 = vpop.f32.mrf.mxu3 }
 0x120   :  { %v1484_v49 = vrot.slane %v1483_v47, 2  ;;  %v1543_v44 = vld [vmem:[%s3074_s3] sm:$0x1] }
 0x122   :  { %v1485_v1 = vadd.f32 %v1484_v49, %v1483_v47  ;;  %v1529_v47 = vld [vmem:[%s3073_s2] sm:$0x1] }
 0x124   :  { %v1486_v53 = vrot.slane %v1485_v1, 1 }
 0x126   :  { %v1487_v55 = vadd.f32 %v1486_v53, %v1485_v1 }
 0x128   :  { %v1488_v56 = vadd.f32 %v1487_v55, %v1480_v54 }
 0x12a   :  { %v1489_v57 = vmul.f32 0.03125, %v1488_v56 }
 0x12c   :  { %v1490_v58 = vsub.f32 %v3025_v45, %v1489_v57  ;;  %v1499_v59 = vsub.f32 %v3027_v10, %v1489_v57  ;;  %v1509_v60 = vsub.f32 %v3029_v11, %v1489_v57  ;;  %v1519_v61 = vsub.f32 %v3037_v35, %v1489_v57 }
 0x12e   :  { %v1491_v62 = vmul.f32 %v1490_v58, %v1490_v58  ;;  %v1500_v63 = vmul.f32 %v1499_v59, %v1499_v59  ;;  %v1510_v0 = vmul.f32 %v1509_v60, %v1509_v60  ;;  %v1520_v2 = vmul.f32 %v1519_v61, %v1519_v61 }
 0x130   :  { %v1492_v3 = vsel %vm1457_vm1, %v1491_v62, 0.0  ;;  %v1501_v4 = vsel %vm1457_vm1, %v1500_v63, 0.0  ;;  %v1511_v5 = vsel %vm1457_vm1, %v1510_v0, 0.0  ;;  %v1521_v6 = vsel %vm1457_vm1, %v1520_v2, 0.0 }
 0x131   :  { %v1493_v7 = vrot.slane %v1492_v3, 4  ;;  %v1502_v8 = vrot.slane %v1501_v4, 4  ;;  %v1512_v9 = vrot.slane %v1511_v5, 4  ;;  %v1522_v12 = vrot.slane %v1521_v6, 4 }
 0x133   :  { %v1494_v13 = vadd.f32 %v1493_v7, %v1492_v3  ;;  %v1503_v14 = vadd.f32 %v1502_v8, %v1501_v4  ;;  %v1513_v15 = vadd.f32 %v1512_v9, %v1511_v5  ;;  %v1523_v16 = vadd.f32 %v1522_v12, %v1521_v6 }
 0x135   :  { %v1495_v17 = vrot.slane %v1494_v13, 2  ;;  %v1504_v18 = vrot.slane %v1503_v14, 2  ;;  %v1514_v19 = vrot.slane %v1513_v15, 2  ;;  %v1524_v20 = vrot.slane %v1523_v16, 2 }
 0x137   :  { %v1496_v21 = vadd.f32 %v1495_v17, %v1494_v13  ;;  %v1505_v22 = vadd.f32 %v1504_v18, %v1503_v14  ;;  %v1515_v23 = vadd.f32 %v1514_v19, %v1513_v15  ;;  %v1525_v24 = vadd.f32 %v1524_v20, %v1523_v16 }
 0x139   :  { %v1497_v25 = vrot.slane %v1496_v21, 1  ;;  %v1506_v26 = vrot.slane %v1505_v22, 1  ;;  %v1516_v27 = vrot.slane %v1515_v23, 1  ;;  %v1526_v29 = vrot.slane %v1525_v24, 1 }
 0x13b   :  { %v1498_v28 = vadd.f32 %v1497_v25, %v1496_v21  ;;  %v1507_v42 = vadd.f32 %v1506_v26, %v1505_v22  ;;  %v1517_v31 = vadd.f32 %v1516_v27, %v1515_v23  ;;  %v1527_v33 = vadd.f32 %v1526_v29, %v1525_v24 }
 0x13d   :  { %v1508_v30 = vadd.f32 %v1507_v42, %v1498_v28 }
 0x13f   :  { %v1518_v32 = vadd.f32 %v1517_v31, %v1508_v30 }
 0x141   :  { %v1528_v34 = vadd.f32 %v1527_v33, %v1518_v32 }
 0x143   :  { %v1530_v36 = vmul.f32 0.03125, %v1528_v34 }
 0x145   :  { %v1531_v37 = vadd.f32 1e-05, %v1530_v36 }
 0x147   :  { %2523 = vrsqrt.f32 %v1531_v37  ;;  %vm1538_vm3 = vweird.f32 %v1531_v37 }
 0x14d   :  { %v2524_v38 = vpop.eup %2523 }
 0x14e   :  { %v1533_v39 = vmul.f32 %v2524_v38, %v1531_v37  ;;  %vm1539_vm2 = vweird.f32 %v2524_v38 }
 0x14f   :  { %vm1540_vm4 = vmor %vm1538_vm3, %vm1539_vm2 }
 0x150   :  { %v1534_v40 = vmul.f32 %v2524_v38, %v1533_v39 }
 0x152   :  { %v1535_v41 = vmul.f32 0.5, %v1534_v40 }
 0x154   :  { %v1536_v46 = vsub.f32 1.5, %v1535_v41 }
 0x156   :  { %v1537_v48 = vmul.f32 %v2524_v38, %v1536_v46 }
 0x158   :  { %v1541_v43 = vsel %vm1540_vm4, %v2524_v38, %v1537_v48 }
 0x159   :  { %v1542_v49 = vmul.f32 %v1541_v43, %v1529_v47 }
 0x15b   :  { %v1544_v50 = vmul.f32 %v1542_v49, %v1489_v57  ;;  %v1547_v51 = vperm.slane %v1542_v49, 0 }
 0x15d   :  { %v1545_v1 = vsub.f32 %v1543_v44, %v1544_v50  ;;  %v1549_v52 = vmul.f32 %v1547_v51, %v3025_v45  ;;  %v1558_v54 = vmul.f32 %v1547_v51, %v3027_v10  ;;  %v1564_v55 = vmul.f32 %v1547_v51, %v3029_v11 }
 0x15e   :  { %v1570_v56 = vmul.f32 %v1547_v51, %v3037_v35 }
 0x15f   :  { %v1551_v53 = vperm.slane %v1545_v1, 0 }
 0x161   :  { %v1553_v58 = vadd.f32 %v1551_v53, %v1549_v52  ;;  %v1559_v59 = vadd.f32 %v1558_v54, %v1551_v53  ;;  %v1565_v60 = vadd.f32 %v1564_v55, %v1551_v53  ;;  %v1571_v61 = vadd.f32 %v1570_v56, %v1551_v53 }
 0x163   :  { %v1554_v62 = vmax.f32 %v1553_v58, 0.0  ;;  %v1560_v63 = vmax.f32 %v1559_v59, 0.0  ;;  %v1566_v0 = vmax.f32 %v1565_v60, 0.0  ;;  %v1572_v2 = vmax.f32 %v1571_v61, 0.0 }
 0x165   :  { %v1555_v57 = vpack.c.bf16 %v1554_v62, %v1554_v62  ;;  %v1561_v3 = vpack.c.bf16 %v1560_v63, %v1560_v63  ;;  %v1567_v4 = vpack.c.bf16 %v1566_v0, %v1566_v0  ;;  %v1573_v45 = vpack.c.bf16 %v1572_v2, %v1572_v2 }
 0x167   :  { %1557 = vst.msk [vmem:[%s3075_s4] sm:$0xf] %vm1556_vm5, %v1555_v57 }
 0x168   :  { %2376 = vst.msk [vmem:[%s3075_s4 + $0x4] sm:$0xf] %vm1556_vm5, %v1561_v3 }
 0x169   :  { %2377 = vst.msk [vmem:[%s3075_s4 + $0x8] sm:$0xf] %vm1556_vm5, %v1567_v4 }
 0x16a   :  { %2378 = vst.msk [vmem:[%s3075_s4 + $0xc] sm:$0xf] %vm1556_vm5, %v1573_v45 }

// kernel: memae_forward.16
= control target key start
LH: loop header
LB: loop body
LE: loop exit
PB: predicated region body
PF: predicated region fallthrough
CT: control target
= control target key end

     0   :  { %vm200_vm0 = vcmask 261120   ;;  %vm870_vm1 = vcmask 130048   ;;  %vm1053_vm5 = vcmask 125952   ;;  %s2175_s1 = inlined_call_operand.vmem [shape: bf16[4,288,16], index: 1, kind: input, shape index: {}]   ;;  %s2176_s0 = inlined_call_operand.vmem [shape: bf16[32,288], index: 0, kind: input, shape index: {}]   ;;  %s2177_s2 = inlined_call_operand.vmem [shape: f32[1,16], index: 2, kind: input, shape index: {}]   ;;  %s2178_s3 = inlined_call_operand.vmem [shape: f32[1,16], index: 3, kind: input, shape index: {}]   ;;  %s2179_s4 = inlined_call_operand.vmem [shape: bf16[4,32,16], index: 4, kind: output, shape index: {}]  }
   0x1   :  { %v1578_v0 = vld [vmem:[%s2175_s1 + $0x38] sm:$0xff]  ;;  %v1588_v2 = vld [vmem:[%s2175_s1 + $0x88] sm:$0xff]  ;;  %v1577_v4 = vld [vmem:[%s2175_s1 + $0x30] sm:$0xff] }
   0x2   :  { %v1586_v1 = vld [vmem:[%s2175_s1 + $0x78] sm:$0xff]  ;;  %v1596_v3 = vld [vmem:[%s2175_s1 + $0xc8] sm:$0xff]  ;;  %207 = vmatpush.bf16.msra.mxu0 %v1578_v0  ;;  %v1585_v5 = vld [vmem:[%s2175_s1 + $0x70] sm:$0xff]  ;;  %251 = vmatpush.bf16.msra.mxu2 %v1588_v2 }
   0x3   :  { %226 = vmatpush.bf16.msra.mxu1 %v1586_v1  ;;  %v1587_v6 = vld [vmem:[%s2175_s1 + $0x80] sm:$0xff]  ;;  %409 = vmatpush.bf16.msra.mxu3 %v1596_v3  ;;  %v1135_v8 = vld [vmem:[%s2176_s0 + $0x8] sm:$0xf]  ;;  %v1567_v9 = vld [vmem:[%s2176_s0 + $0x10] sm:$0xf0] }
   0x4   :  { %v1595_v7 = vld [vmem:[%s2175_s1 + $0xc0] sm:$0xff]  ;;  %v1604_v10 = vld [vmem:[%s2175_s1 + $0x108] sm:$0xff]  ;;  %v1711_v11 = vor.u32 %v1567_v9, %v1135_v8  ;;  %v1594_v14 = vld [vmem:[%s2175_s1 + $0xb8] sm:$0xff] }
   0x5   :  { %v1576_v12 = vld [vmem:[%s2175_s1 + $0x28] sm:$0xff]  ;;  %v1603_v15 = vld [vmem:[%s2175_s1 + $0x100] sm:$0xff]  ;;  %v1593_v18 = vld [vmem:[%s2175_s1 + $0xb0] sm:$0xff] }
   0x6   :  { %208 = vmatpush.bf16.msra.mxu0 %v1577_v4  ;;  %252 = vmatpush.bf16.msra.mxu2 %v1587_v6  ;;  %v1584_v13 = vld [vmem:[%s2175_s1 + $0x68] sm:$0xff]  ;;  %v1575_v16 = vld [vmem:[%s2175_s1 + $0x20] sm:$0xff]  ;;  %v1602_v19 = vld [vmem:[%s2175_s1 + $0xf8] sm:$0xff] }
   0x7   :  { %227 = vmatpush.bf16.msra.mxu1 %v1585_v5  ;;  %410 = vmatpush.bf16.msra.mxu3 %v1595_v7  ;;  %v1583_v17 = vld [vmem:[%s2175_s1 + $0x60] sm:$0xff]  ;;  %v1574_v20 = vld [vmem:[%s2175_s1 + $0x18] sm:$0xff]  ;;  %v1592_v22 = vld [vmem:[%s2175_s1 + $0xa8] sm:$0xff] }
   0x8   :  { %v1582_v21 = vld [vmem:[%s2175_s1 + $0x58] sm:$0xff]  ;;  %v1601_v23 = vld [vmem:[%s2175_s1 + $0xf0] sm:$0xff]  ;;  %v1591_v26 = vld [vmem:[%s2175_s1 + $0xa0] sm:$0xff] }
   0x9   :  { %1221 = vmatmul.msk.bf16.vlgmr.msra.gmra.mxu2 %vm200_vm0, %v1711_v11  ;;  %v1573_v24 = vld [vmem:[%s2175_s1 + $0x10] sm:$0xff]  ;;  %v1147_v27 = vld [vmem:[%s2176_s0 + $0x20] sm:$0xf]  ;;  %v1570_v28 = vld [vmem:[%s2176_s0 + $0x28] sm:$0xf0] }
   0xa   :  { %428 = vmatpush.bf16.msrb.mxu2 %v1604_v10  ;;  %209 = vmatpush.bf16.msra.mxu0 %v1576_v12  ;;  %v1581_v25 = vld [vmem:[%s2175_s1 + $0x50] sm:$0xff]  ;;  %v1600_v29 = vld [vmem:[%s2175_s1 + $0xe8] sm:$0xff]  ;;  %v1769_v30 = vor.u32 %v1570_v28, %v1147_v27  ;;  %v1590_v33 = vld [vmem:[%s2175_s1 + $0x98] sm:$0xff] }
   0xb   :  { %228 = vmatpush.bf16.msra.mxu1 %v1584_v13  ;;  %411 = vmatpush.bf16.msra.mxu3 %v1594_v14  ;;  %v1572_v31 = vld [vmem:[%s2175_s1 + $0x8] sm:$0xff]  ;;  %v1599_v34 = vld [vmem:[%s2175_s1 + $0xe0] sm:$0xff]  ;;  %v1589_v39 = vld [vmem:[%s2175_s1 + $0x90] sm:$0xff] }
   0xc   :  { %v1580_v32 = vld [vmem:[%s2175_s1 + $0x48] sm:$0xff]  ;;  %v1571_v35 = vld [vmem:[%s2175_s1] sm:$0xff]  ;;  %v1129_v41 = vld [vmem:[%s2176_s0 + $0xc] sm:$0xf0] }
   0xd   :  { %v1579_v36 = vld [vmem:[%s2175_s1 + $0x40] sm:$0xff]  ;;  %v1566_v38 = vld [vmem:[%s2176_s0 + $0x8] sm:$0xf0]  ;;  %v1622_v42 = vld [vmem:[%s2175_s1 + $0x198] sm:$0xff] }
   0xe   :  { %429 = vmatpush.bf16.msrb.mxu2 %v1603_v15  ;;  %210 = vmatpush.bf16.msra.mxu0 %v1575_v16  ;;  %v1127_v37 = vld [vmem:[%s2176_s0] sm:$0xf]  ;;  %v1565_v40 = vld [vmem:[%s2176_s0 + $0x4] sm:$0xf]  ;;  %v1598_v43 = vld [vmem:[%s2175_s1 + $0xd8] sm:$0xff] }
   0xf   :  { %229 = vmatpush.bf16.msra.mxu1 %v1583_v17  ;;  %412 = vmatpush.bf16.msra.mxu3 %v1593_v18  ;;  %v1812_v44 = vor.u32 %v1566_v38, %v1127_v37  ;;  %v1614_v45 = vld [vmem:[%s2175_s1 + $0x158] sm:$0xff]  ;;  %v1817_v46 = vor.u32 %v1565_v40, %v1129_v41  ;;  %v1621_v48 = vld [vmem:[%s2175_s1 + $0x190] sm:$0xff]  ;;  %v1624_v51 = vld [vmem:[%s2175_s1 + $0x1a8] sm:$0xff] }
  0x10   :  { %v1606_v47 = vld [vmem:[%s2175_s1 + $0x118] sm:$0xff]  ;;  %v1597_v49 = vld [vmem:[%s2175_s1 + $0xd0] sm:$0xff]  ;;  %v1620_v53 = vld [vmem:[%s2175_s1 + $0x188] sm:$0xff] }
  0x11   :  { %v1613_v50 = vld [vmem:[%s2175_s1 + $0x150] sm:$0xff]  ;;  %v1632_v54 = vld [vmem:[%s2175_s1 + $0x1e8] sm:$0xff]  ;;  %v1623_v56 = vld [vmem:[%s2175_s1 + $0x1a0] sm:$0xff] }
  0x12   :  { %430 = vmatpush.bf16.msrb.mxu2 %v1602_v19  ;;  %211 = vmatpush.bf16.msra.mxu0 %v1574_v20  ;;  %v1605_v52 = vld [vmem:[%s2175_s1 + $0x110] sm:$0xff]  ;;  %v1612_v55 = vld [vmem:[%s2175_s1 + $0x148] sm:$0xff]  ;;  %v1619_v57 = vld [vmem:[%s2175_s1 + $0x180] sm:$0xff] }
  0x13   :  { %230 = vmatpush.bf16.msra.mxu1 %v1582_v21  ;;  %413 = vmatpush.bf16.msra.mxu3 %v1592_v22  ;;  %v1631_v58 = vld [vmem:[%s2175_s1 + $0x1e0] sm:$0xff]  ;;  %v1139_v60 = vld [vmem:[%s2176_s0 + $0x18] sm:$0xf]  ;;  %v1568_v62 = vld [vmem:[%s2176_s0 + $0x1c] sm:$0xf] }
  0x14   :  { %v1611_v59 = vld [vmem:[%s2175_s1 + $0x140] sm:$0xff]  ;;  %v1141_v63 = vld [vmem:[%s2176_s0 + $0x24] sm:$0xf0]  ;;  %v1618_v0 = vld [vmem:[%s2175_s1 + $0x178] sm:$0xff] }
  0x15   :  { %v1569_v61 = vld [vmem:[%s2176_s0 + $0x20] sm:$0xf0]  ;;  %v1630_v1 = vld [vmem:[%s2175_s1 + $0x1d8] sm:$0xff]  ;;  %v1885_v4 = vor.u32 %v1568_v62, %v1141_v63  ;;  %v1617_v5 = vld [vmem:[%s2175_s1 + $0x170] sm:$0xff] }
  0x16   :  { %431 = vmatpush.bf16.msrb.mxu2 %v1601_v23  ;;  %212 = vmatpush.bf16.msra.mxu0 %v1573_v24  ;;  %v1880_v2 = vor.u32 %v1569_v61, %v1139_v60  ;;  %v1610_v3 = vld [vmem:[%s2175_s1 + $0x138] sm:$0xff]  ;;  %v1629_v6 = vld [vmem:[%s2175_s1 + $0x1d0] sm:$0xff]  ;;  %v1616_v8 = vld [vmem:[%s2175_s1 + $0x168] sm:$0xff] }
  0x17   :  { %231 = vmatpush.bf16.msra.mxu1 %v1581_v25  ;;  %414 = vmatpush.bf16.msra.mxu3 %v1591_v26  ;;  %v1609_v7 = vld [vmem:[%s2175_s1 + $0x130] sm:$0xff]  ;;  %v1628_v9 = vld [vmem:[%s2175_s1 + $0x1c8] sm:$0xff]  ;;  %v1615_v12 = vld [vmem:[%s2175_s1 + $0x160] sm:$0xff] }
  0x18   :  { %v1608_v10 = vld [vmem:[%s2175_s1 + $0x128] sm:$0xff]  ;;  %v1627_v13 = vld [vmem:[%s2175_s1 + $0x1c0] sm:$0xff]  ;;  %v1642_v15 = vld [vmem:[%s2175_s1 + $0x238] sm:$0xff] }
  0x19   :  { %1222 = vmatmul.msk.bf16.gmra.mxu2 %vm200_vm0, %v1769_v30  ;;  %v1607_v14 = vld [vmem:[%s2175_s1 + $0x120] sm:$0xff]  ;;  %v1640_v16 = vld [vmem:[%s2175_s1 + $0x228] sm:$0xff]  ;;  %v1626_v17 = vld [vmem:[%s2175_s1 + $0x1b8] sm:$0xff] }
  0x1a   :  { %432 = vmatpush.bf16.msrb.mxu2 %v1600_v29  ;;  %213 = vmatpush.bf16.msra.mxu0 %v1572_v31  ;;  %v1641_v18 = vld [vmem:[%s2175_s1 + $0x230] sm:$0xff]  ;;  %v1639_v19 = vld [vmem:[%s2175_s1 + $0x220] sm:$0xff]  ;;  %v1638_v21 = vld [vmem:[%s2175_s1 + $0x218] sm:$0xff] }
  0x1b   :  { %232 = vmatpush.bf16.msra.mxu1 %v1580_v32  ;;  %415 = vmatpush.bf16.msra.mxu3 %v1590_v33  ;;  %v1625_v20 = vld [vmem:[%s2175_s1 + $0x1b0] sm:$0xff]  ;;  %v1636_v23 = vld [vmem:[%s2175_s1 + $0x208] sm:$0xff]  ;;  %v1635_v24 = vld [vmem:[%s2175_s1 + $0x200] sm:$0xff] }
  0x1c   :  { %v1637_v22 = vld [vmem:[%s2175_s1 + $0x210] sm:$0xff]  ;;  %v1634_v25 = vld [vmem:[%s2175_s1 + $0x1f8] sm:$0xff] }
  0x1d   :  { %v1633_v26 = vld [vmem:[%s2175_s1 + $0x1f0] sm:$0xff] }
  0x1e   :  { %433 = vmatpush.bf16.msrb.mxu2 %v1599_v34  ;;  %214 = vmatpush.bf16.msra.mxu0 %v1571_v35 }
  0x1f   :  { %233 = vmatpush.bf16.msra.mxu1 %v1579_v36  ;;  %416 = vmatpush.bf16.msra.mxu3 %v1589_v39 }
  0x21   :  { %215 = vmatmul.bf16.vlgmr.msra.gmra.mxu0 %v1812_v44 }
  0x22   :  { %434 = vmatpush.bf16.msrb.mxu2 %v1598_v43  ;;  %234 = vmatmul.bf16.vlgmr.msra.gmra.mxu1 %v1817_v46 }
  0x23   :  { %630 = vmatpush.bf16.msrb.mxu3 %v1622_v42  ;;  %611 = vmatpush.bf16.msrb.mxu1 %v1614_v45 }
  0x24   :  { %417 = vmatmul.bf16.vlgmr.msra.gmra.mxu3 %v1812_v44  ;;  %453 = vmatpush.bf16.msrb.mxu0 %v1606_v47 }
  0x26   :  { %435 = vmatpush.bf16.msrb.mxu2 %v1597_v49 }
  0x27   :  { %631 = vmatpush.bf16.msrb.mxu3 %v1621_v48  ;;  %612 = vmatpush.bf16.msrb.mxu1 %v1613_v50 }
  0x28   :  { %454 = vmatpush.bf16.msrb.mxu0 %v1605_v52 }
  0x29   :  { %436 = vmatmul.bf16.vlgmr.msrb.gmra.mxu2 %v1817_v46 }
  0x2a   :  { %655 = vmatpush.bf16.msra.mxu2 %v1624_v51 }
  0x2b   :  { %632 = vmatpush.bf16.msrb.mxu3 %v1620_v53  ;;  %613 = vmatpush.bf16.msrb.mxu1 %v1612_v55 }
  0x2c   :  { %813 = vmatpush.bf16.msra.mxu0 %v1632_v54 }
  0x2e   :  { %656 = vmatpush.bf16.msra.mxu2 %v1623_v56 }
  0x2f   :  { %633 = vmatpush.bf16.msrb.mxu3 %v1619_v57  ;;  %614 = vmatpush.bf16.msrb.mxu1 %v1611_v59 }
  0x30   :  { %814 = vmatpush.bf16.msra.mxu0 %v1631_v58 }
  0x31   :  { %220 = vmatmul.bf16.gmra.mxu0 %v1880_v2 }
  0x32   :  { %1643 = vmatpush.bf16.msrb.mxu2 %v1632_v54  ;;  %239 = vmatmul.bf16.gmra.mxu1 %v1885_v4 }
  0x33   :  { %634 = vmatpush.bf16.msrb.mxu3 %v1618_v0  ;;  %615 = vmatpush.bf16.msrb.mxu1 %v1610_v3 }
  0x34   :  { %815 = vmatpush.bf16.msra.mxu0 %v1630_v1  ;;  %422 = vmatmul.bf16.gmra.mxu3 %v1880_v2 }
  0x36   :  { %1644 = vmatpush.bf16.msrb.mxu2 %v1631_v58 }
  0x37   :  { %635 = vmatpush.bf16.msrb.mxu3 %v1617_v5  ;;  %616 = vmatpush.bf16.msrb.mxu1 %v1609_v7 }
  0x38   :  { %816 = vmatpush.bf16.msra.mxu0 %v1629_v6 }
  0x39   :  { %441 = vmatmul.bf16.gmra.mxu2 %v1885_v4 }
  0x3a   :  { %1645 = vmatpush.bf16.msrb.mxu2 %v1630_v1 }
  0x3b   :  { %636 = vmatpush.bf16.msrb.mxu3 %v1616_v8  ;;  %617 = vmatpush.bf16.msrb.mxu1 %v1608_v10 }
  0x3c   :  { %817 = vmatpush.bf16.msra.mxu0 %v1628_v9 }
  0x3e   :  { %1646 = vmatpush.bf16.msrb.mxu2 %v1629_v6 }
  0x3f   :  { %637 = vmatpush.bf16.msrb.mxu3 %v1615_v12  ;;  %618 = vmatpush.bf16.msrb.mxu1 %v1607_v14 }
  0x40   :  { %818 = vmatpush.bf16.msra.mxu0 %v1627_v13 }
  0x41   :  { %1331 = vmatmul.msk.bf16.vlgmr.msrb.gmra.mxu0 %vm200_vm0, %v1711_v11 }
  0x42   :  { %1647 = vmatpush.bf16.msrb.mxu2 %v1628_v9  ;;  %619 = vmatmul.bf16.vlgmr.msrb.gmra.mxu1 %v1812_v44 }
  0x43   :  { %857 = vmatpush.bf16.msra.mxu3 %v1642_v15  ;;  %832 = vmatpush.bf16.msra.mxu1 %v1640_v16 }
  0x44   :  { %819 = vmatpush.bf16.msra.mxu0 %v1626_v17  ;;  %638 = vmatmul.bf16.vlgmr.msrb.gmra.mxu3 %v1817_v46 }
  0x46   :  { %1648 = vmatpush.bf16.msrb.mxu2 %v1627_v13 }
  0x47   :  { %858 = vmatpush.bf16.msra.mxu3 %v1641_v18  ;;  %833 = vmatpush.bf16.msra.mxu1 %v1639_v19 }
  0x48   :  { %820 = vmatpush.bf16.msra.mxu0 %v1625_v20 }
  0x49   :  { %1441 = vmatmul.msk.bf16.vlgmr.msra.gmra.mxu2 %vm200_vm0, %v1711_v11 }
  0x4a   :  { %1649 = vmatpush.bf16.msrb.mxu2 %v1626_v17 }
  0x4b   :  { %834 = vmatpush.bf16.msra.mxu1 %v1638_v21 }
  0x4e   :  { %1650 = vmatpush.bf16.msrb.mxu2 %v1625_v20 }
  0x4f   :  { %835 = vmatpush.bf16.msra.mxu1 %v1637_v22 }
  0x51   :  { %1332 = vmatmul.msk.bf16.gmra.mxu0 %vm200_vm0, %v1769_v30 }
  0x52   :  { %624 = vmatmul.bf16.gmra.mxu1 %v1880_v2 }
  0x53   :  { %836 = vmatpush.bf16.msra.mxu1 %v1636_v23 }
  0x54   :  { %643 = vmatmul.bf16.gmra.mxu3 %v1885_v4 }
  0x57   :  { %837 = vmatpush.bf16.msra.mxu1 %v1635_v24 }
  0x59   :  { %1442 = vmatmul.msk.bf16.gmra.mxu2 %vm200_vm0, %v1769_v30 }
  0x5b   :  { %838 = vmatpush.bf16.msra.mxu1 %v1634_v25 }
  0x5f   :  { %839 = vmatpush.bf16.msra.mxu1 %v1633_v26 }
  0x61   :  { %821 = vmatmul.bf16.vlgmr.msra.gmra.mxu0 %v1812_v44 }
  0x62   :  { %840 = vmatmul.bf16.vlgmr.msra.gmra.mxu1 %v1817_v46 }
  0x64   :  { %1551 = vmatmul.msk.bf16.vlgmr.msra.gmra.mxu3 %vm200_vm0, %v1711_v11 }
  0x69   :  { %826 = vmatmul.bf16.vlgmr.msrb.gmra.mxu2 %v1880_v2 }
  0x72   :  { %845 = vmatmul.bf16.gmra.mxu1 %v1885_v4 }
  0x74   :  { %1552 = vmatmul.msk.bf16.gmra.mxu3 %vm200_vm0, %v1769_v30 }
  0x8c   :  { %v254_v27 = vpop.f32.mrf.mxu2 }
  0x94   :  { %v256_v28 = vpop.f32.mrf.mxu2 }
  0x9c   :  { %v259_v29 = vpop.f32.mrf.mxu2 }
  0x9e   :  { %v216_v31 = vpop.f32.mrf.mxu0 }
  0x9f   :  { %v235_v32 = vpop.f32.mrf.mxu1 }
  0xa0   :  { %v236_v33 = vadd.f32 %v235_v32, %v216_v31 }
  0xa2   :  { %v1974_v34 = vadd.f32 %v254_v27, %v236_v33 }
  0xa4   :  { %v261_v35 = vpop.f32.mrf.mxu2  ;;  %v871_v33 = vsel %vm870_vm1, %v1974_v34, 0.0 }
  0xa6   :  { %v218_v37 = vpop.f32.mrf.mxu0 }
  0xa7   :  { %v418_v36 = vpop.f32.mrf.mxu3  ;;  %v237_v38 = vpop.f32.mrf.mxu1 }
  0xa8   :  { %v238_v11 = vadd.f32 %v237_v38, %v218_v37 }
  0xaa   :  { %v1976_v39 = vadd.f32 %v256_v28, %v238_v11 }
  0xac   :  { %v437_v41 = vpop.f32.mrf.mxu2  ;;  %v872_v26 = vsel %vm870_vm1, %v1976_v39, 0.0 }
  0xad   :  { %v438_v42 = vadd.f32 %v437_v41, %v418_v36 }
  0xae   :  { %v221_v43 = vpop.f32.mrf.mxu0 }
  0xaf   :  { %v420_v40 = vpop.f32.mrf.mxu3  ;;  %v240_v30 = vpop.f32.mrf.mxu1 }
  0xb0   :  { %v241_v44 = vadd.f32 %v240_v30, %v221_v43 }
  0xb2   :  { %v1978_v45 = vadd.f32 %v259_v29, %v241_v44 }
  0xb4   :  { %v439_v47 = vpop.f32.mrf.mxu2  ;;  %v874_v37 = vsel %vm870_vm1, %v1978_v45, 0.0 }
  0xb5   :  { %v440_v5 = vadd.f32 %v439_v47, %v420_v40  ;;  %v873_v40 = vadd.f32 %v872_v26, %v871_v33 }
  0xb6   :  { %v223_v48 = vpop.f32.mrf.mxu0 }
  0xb7   :  { %v423_v46 = vpop.f32.mrf.mxu3  ;;  %v242_v49 = vpop.f32.mrf.mxu1 }
  0xb8   :  { %v243_v9 = vadd.f32 %v242_v49, %v223_v48 }
  0xba   :  { %v1998_v27 = vadd.f32 %v261_v35, %v243_v9 }
  0xbc   :  { %v442_v51 = vpop.f32.mrf.mxu2  ;;  %v876_v30 = vsel %vm870_vm1, %v1998_v27, 0.0 }
  0xbd   :  { %v443_v7 = vadd.f32 %v442_v51, %v423_v46  ;;  %v875_v46 = vadd.f32 %v874_v37, %v873_v40 }
  0xbe   :  { %v456_v52 = vpop.f32.mrf.mxu0 }
  0xbf   :  { %v425_v50 = vpop.f32.mrf.mxu3  ;;  %v620_v53 = vpop.f32.mrf.mxu1  ;;  %v1982_v10 = vadd.f32 %v456_v52, %v438_v42 }
  0xc1   :  { %v884_v28 = vsel %vm870_vm1, %v1982_v10, 0.0 }
  0xc4   :  { %v444_v54 = vpop.f32.mrf.mxu2 }
  0xc5   :  { %v445_v12 = vadd.f32 %v444_v54, %v425_v50  ;;  %v877_v50 = vadd.f32 %v876_v30, %v875_v46 }
  0xc6   :  { %v458_v57 = vpop.f32.mrf.mxu0 }
  0xc7   :  { %v639_v55 = vpop.f32.mrf.mxu3  ;;  %v622_v56 = vpop.f32.mrf.mxu1  ;;  %v1980_v6 = vadd.f32 %v458_v57, %v440_v5 }
  0xc8   :  { %v640_v14 = vadd.f32 %v639_v55, %v620_v53 }
  0xc9   :  { %v885_v19 = vsel %vm870_vm1, %v1980_v6, 0.0 }
  0xca   :  { %v886_v36 = vadd.f32 %v885_v19, %v884_v28 }
  0xcc   :  { %v658_v59 = vpop.f32.mrf.mxu2 }
  0xcd   :  { %v1990_v22 = vadd.f32 %v658_v59, %v640_v14 }
  0xce   :  { %v461_v61 = vpop.f32.mrf.mxu0 }
  0xcf   :  { %v641_v58 = vpop.f32.mrf.mxu3  ;;  %v625_v60 = vpop.f32.mrf.mxu1  ;;  %v1984_v15 = vadd.f32 %v461_v61, %v443_v7  ;;  %v898_v35 = vsel %vm870_vm1, %v1990_v22, 0.0 }
  0xd0   :  { %v642_v8 = vadd.f32 %v641_v58, %v622_v56  ;;  %v878_v58 = vrot.slane %v877_v50, 4 }
  0xd1   :  { %v887_v29 = vsel %vm870_vm1, %v1984_v15, 0.0 }
  0xd2   :  { %v888_v41 = vadd.f32 %v887_v29, %v886_v36 }
  0xd4   :  { %v660_v63 = vpop.f32.mrf.mxu2 }
  0xd5   :  { %v1986_v17 = vadd.f32 %v660_v63, %v642_v8 }
  0xd6   :  { %v463_v1 = vpop.f32.mrf.mxu0 }
  0xd7   :  { %v644_v62 = vpop.f32.mrf.mxu3  ;;  %v627_v0 = vpop.f32.mrf.mxu1  ;;  %v1992_v23 = vadd.f32 %v463_v1, %v445_v12  ;;  %v899_v31 = vsel %vm870_vm1, %v1986_v17, 0.0  ;;  %v879_v1 = vadd.f32 %v878_v58, %v877_v50 }
  0xd8   :  { %v645_v16 = vadd.f32 %v644_v62, %v625_v60  ;;  %v900_v42 = vadd.f32 %v899_v31, %v898_v35 }
  0xd9   :  { %v889_v38 = vsel %vm870_vm1, %v1992_v23, 0.0  ;;  %v880_v14 = vrot.slane %v879_v1, 2 }
  0xda   :  { %v890_v47 = vadd.f32 %v889_v38, %v888_v41 }
  0xdb   :  { %v881_v26 = vadd.f32 %v880_v14, %v879_v1 }
  0xdc   :  { %v663_v3 = vpop.f32.mrf.mxu2  ;;  %v891_v54 = vrot.slane %v890_v47, 4 }
  0xdd   :  { %v1994_v25 = vadd.f32 %v663_v3, %v645_v16  ;;  %v882_v36 = vrot.slane %v881_v26, 1 }
  0xde   :  { %v822_v18 = vpop.f32.mrf.mxu0  ;;  %v892_v62 = vadd.f32 %v891_v54, %v890_v47 }
  0xdf   :  { %v646_v2 = vpop.f32.mrf.mxu3  ;;  %v841_v4 = vpop.f32.mrf.mxu1  ;;  %v901_v11 = vsel %vm870_vm1, %v1994_v25, 0.0  ;;  %v883_v40 = vadd.f32 %v882_v36, %v881_v26 }
  0xe0   :  { %v647_v24 = vadd.f32 %v646_v2, %v627_v0  ;;  %v902_v48 = vadd.f32 %v901_v11, %v900_v42  ;;  %v842_v55 = vadd.f32 %v841_v4, %v822_v18  ;;  %v893_v7 = vrot.slane %v892_v62, 2 }
  0xe4   :  { %v665_v20 = vpop.f32.mrf.mxu2 }
  0xe5   :  { %v2006_v32 = vadd.f32 %v665_v20, %v647_v24  ;;  %v894_v20 = vadd.f32 %v893_v7, %v892_v62 }
  0xe6   :  { %v824_v52 = vpop.f32.mrf.mxu0 }
  0xe7   :  { %v860_v13 = vpop.f32.mrf.mxu3  ;;  %v843_v21 = vpop.f32.mrf.mxu1  ;;  %v903_v44 = vsel %vm870_vm1, %v2006_v32, 0.0  ;;  %v895_v31 = vrot.slane %v894_v20, 1 }
  0xe8   :  { %v904_v51 = vadd.f32 %v903_v44, %v902_v48  ;;  %v844_v56 = vadd.f32 %v843_v21, %v824_v52  ;;  %v2024_v63 = vadd.f32 %v860_v13, %v842_v55 }
  0xe9   :  { %v896_v38 = vadd.f32 %v895_v31, %v894_v20 }
  0xea   :  { %v905_v59 = vrot.slane %v904_v51, 4  ;;  %v912_v8 = vsel %vm870_vm1, %v2024_v63, 0.0 }
  0xec   :  { %v827_v53 = vpop.f32.mrf.mxu2  ;;  %v906_v2 = vadd.f32 %v905_v59, %v904_v51 }
  0xee   :  { %v907_v13 = vrot.slane %v906_v2, 2 }
  0xef   :  { %v862_v43 = vpop.f32.mrf.mxu3  ;;  %v846_v49 = vpop.f32.mrf.mxu1 }
  0xf0   :  { %v847_v57 = vadd.f32 %v846_v49, %v827_v53  ;;  %v2022_v61 = vadd.f32 %v862_v43, %v844_v56  ;;  %v908_v28 = vadd.f32 %v907_v13, %v906_v2  ;;  %v897_v43 = vadd.f32 %v896_v38, %v883_v40 }
  0xf2   :  { %v913_v5 = vsel %vm870_vm1, %v2022_v61, 0.0  ;;  %v909_v37 = vrot.slane %v908_v28, 1 }
  0xf3   :  { %v914_v16 = vadd.f32 %v913_v5, %v912_v8 }
  0xf4   :  { %v829_v4 = vpop.f32.mrf.mxu2  ;;  %v910_v41 = vadd.f32 %v909_v37, %v908_v28 }
  0xf6   :  { %v911_v44 = vadd.f32 %v910_v41, %v897_v43 }
  0xf7   :  { %v865_v60 = vpop.f32.mrf.mxu3  ;;  %v848_v3 = vpop.f32.mrf.mxu1 }
  0xf8   :  { %v2026_v0 = vadd.f32 %v865_v60, %v847_v57  ;;  %v849_v12 = vadd.f32 %v848_v3, %v829_v4 }
  0xfa   :  { %v915_v9 = vsel %vm870_vm1, %v2026_v0, 0.0 }
  0xfb   :  { %v916_v21 = vadd.f32 %v915_v9, %v914_v16 }
  0xff   :  { %v867_v18 = vpop.f32.mrf.mxu3 }
 0x100   :  { %v2034_v19 = vadd.f32 %v867_v18, %v849_v12 }
 0x102   :  { %v917_v24 = vsel %vm870_vm1, %v2034_v19, 0.0 }
 0x103   :  { %v918_v29 = vadd.f32 %v917_v24, %v916_v21 }
 0x105   :  { %v919_v33 = vrot.slane %v918_v29, 4 }
 0x107   :  { %v920_v35 = vadd.f32 %v919_v33, %v918_v29 }
 0x109   :  { %v921_v11 = vrot.slane %v920_v35, 2 }
 0x10b   :  { %v922_v42 = vadd.f32 %v921_v11, %v920_v35 }
 0x10d   :  { %v923_v30 = vrot.slane %v922_v42, 1 }
 0x10f   :  { %v924_v46 = vadd.f32 %v923_v30, %v922_v42 }
 0x111   :  { %v925_v47 = vadd.f32 %v924_v46, %v911_v44 }
 0x113   :  { %v2038_v48 = vmul.f32 0.0078125, %v925_v47 }
 0x115   :  { %v927_v49 = vsub.f32 %v1974_v34, %v2038_v48  ;;  %v928_v50 = vsub.f32 %v1976_v39, %v2038_v48  ;;  %v929_v51 = vsub.f32 %v1978_v45, %v2038_v48  ;;  %v930_v52 = vsub.f32 %v1998_v27, %v2038_v48 }
 0x116   :  { %v948_v53 = vsub.f32 %v1982_v10, %v2038_v48  ;;  %v949_v54 = vsub.f32 %v1980_v6, %v2038_v48  ;;  %v950_v55 = vsub.f32 %v1984_v15, %v2038_v48  ;;  %v951_v56 = vsub.f32 %v1992_v23, %v2038_v48 }
 0x117   :  { %v931_v57 = vmul.f32 %v927_v49, %v927_v49  ;;  %v932_v58 = vmul.f32 %v928_v50, %v928_v50  ;;  %v933_v59 = vmul.f32 %v929_v51, %v929_v51  ;;  %v934_v60 = vmul.f32 %v930_v52, %v930_v52 }
 0x118   :  { %v952_v62 = vmul.f32 %v948_v53, %v948_v53  ;;  %v953_v1 = vmul.f32 %v949_v54, %v949_v54  ;;  %v954_v2 = vmul.f32 %v950_v55, %v950_v55  ;;  %v955_v3 = vmul.f32 %v951_v56, %v951_v56 }
 0x119   :  { %v935_v5 = vsel %vm870_vm1, %v931_v57, 0.0  ;;  %v936_v7 = vsel %vm870_vm1, %v932_v58, 0.0  ;;  %v938_v4 = vsel %vm870_vm1, %v933_v59, 0.0  ;;  %v940_v8 = vsel %vm870_vm1, %v934_v60, 0.0 }
 0x11a   :  { %v937_v9 = vadd.f32 %v936_v7, %v935_v5  ;;  %v956_v12 = vsel %vm870_vm1, %v952_v62, 0.0  ;;  %v957_v14 = vsel %vm870_vm1, %v953_v1, 0.0  ;;  %v959_v13 = vsel %vm870_vm1, %v954_v2, 0.0 }
 0x11b   :  { %v958_v16 = vadd.f32 %v957_v14, %v956_v12  ;;  %v961_v18 = vsel %vm870_vm1, %v955_v3, 0.0  ;;  %v970_v20 = vsub.f32 %v1990_v22, %v2038_v48  ;;  %v971_v21 = vsub.f32 %v1986_v17, %v2038_v48 }
 0x11c   :  { %v939_v24 = vadd.f32 %v938_v4, %v937_v9  ;;  %v972_v26 = vsub.f32 %v1994_v25, %v2038_v48  ;;  %v973_v28 = vsub.f32 %v2006_v32, %v2038_v48  ;;  %v992_v29 = vsub.f32 %v2024_v63, %v2038_v48 }
 0x11d   :  { %v960_v31 = vadd.f32 %v959_v13, %v958_v16  ;;  %v974_v33 = vmul.f32 %v970_v20, %v970_v20  ;;  %v975_v36 = vmul.f32 %v971_v21, %v971_v21  ;;  %v993_v37 = vsub.f32 %v2022_v61, %v2038_v48 }
 0x11e   :  { %v941_v35 = vadd.f32 %v940_v8, %v939_v24  ;;  %v976_v38 = vmul.f32 %v972_v26, %v972_v26  ;;  %v977_v11 = vmul.f32 %v973_v28, %v973_v28  ;;  %v994_v40 = vsub.f32 %v2026_v0, %v2038_v48 }
 0x11f   :  { %v962_v41 = vadd.f32 %v961_v18, %v960_v31  ;;  %v978_v42 = vsel %vm870_vm1, %v974_v33, 0.0  ;;  %v979_v43 = vsel %vm870_vm1, %v975_v36, 0.0  ;;  %v995_v30 = vsub.f32 %v2034_v19, %v2038_v48 }
 0x120   :  { %v942_v44 = vrot.slane %v941_v35, 4  ;;  %v980_v46 = vadd.f32 %v979_v43, %v978_v42  ;;  %v981_v47 = vsel %vm870_vm1, %v976_v38, 0.0  ;;  %v996_v50 = vmul.f32 %v992_v29, %v992_v29 }
 0x121   :  { %v963_v49 = vrot.slane %v962_v41, 4  ;;  %v997_v51 = vmul.f32 %v993_v37, %v993_v37  ;;  %v998_v52 = vmul.f32 %v994_v40, %v994_v40  ;;  %v983_v55 = vsel %vm870_vm1, %v977_v11, 0.0 }
 0x122   :  { %v943_v53 = vadd.f32 %v942_v44, %v941_v35  ;;  %v982_v54 = vadd.f32 %v981_v47, %v980_v46  ;;  %v999_v57 = vmul.f32 %v995_v30, %v995_v30  ;;  %v1000_v58 = vsel %vm870_vm1, %v996_v50, 0.0 }
 0x123   :  { %v964_v56 = vadd.f32 %v963_v49, %v962_v41  ;;  %v1001_v59 = vsel %vm870_vm1, %v997_v51, 0.0  ;;  %v1003_v3 = vsel %vm870_vm1, %v998_v52, 0.0  ;;  %v1014_v49 = vld [vmem:[%s2177_s2] sm:$0x1] }
 0x124   :  { %v944_v60 = vrot.slane %v943_v53, 2  ;;  %v984_v62 = vadd.f32 %v983_v55, %v982_v54  ;;  %v1002_v1 = vadd.f32 %v1001_v59, %v1000_v58  ;;  %v1005_v9 = vsel %vm870_vm1, %v999_v57, 0.0 }
 0x125   :  { %v965_v2 = vrot.slane %v964_v56, 2 }
 0x126   :  { %v945_v5 = vadd.f32 %v944_v60, %v943_v53  ;;  %v985_v7 = vrot.slane %v984_v62, 4  ;;  %v1004_v4 = vadd.f32 %v1003_v3, %v1002_v1  ;;  %v1028_v53 = vld [vmem:[%s2178_s3] sm:$0x1] }
 0x127   :  { %v966_v8 = vadd.f32 %v965_v2, %v964_v56 }
 0x128   :  { %v946_v12 = vrot.slane %v945_v5, 1  ;;  %v986_v14 = vadd.f32 %v985_v7, %v984_v62  ;;  %v1006_v13 = vadd.f32 %v1005_v9, %v1004_v4 }
 0x129   :  { %v967_v16 = vrot.slane %v966_v8, 1 }
 0x12a   :  { %v947_v18 = vadd.f32 %v946_v12, %v945_v5  ;;  %v987_v20 = vrot.slane %v986_v14, 2  ;;  %v1007_v21 = vrot.slane %v1006_v13, 4 }
 0x12b   :  { %v968_v24 = vadd.f32 %v967_v16, %v966_v8 }
 0x12c   :  { %v988_v26 = vadd.f32 %v987_v20, %v986_v14  ;;  %v1008_v28 = vadd.f32 %v1007_v21, %v1006_v13 }
 0x12d   :  { %v969_v29 = vadd.f32 %v968_v24, %v947_v18 }
 0x12e   :  { %v989_v31 = vrot.slane %v988_v26, 1  ;;  %v1009_v33 = vrot.slane %v1008_v28, 2 }
 0x130   :  { %v990_v36 = vadd.f32 %v989_v31, %v988_v26  ;;  %v1010_v37 = vadd.f32 %v1009_v33, %v1008_v28 }
 0x132   :  { %v991_v35 = vadd.f32 %v990_v36, %v969_v29  ;;  %v1011_v38 = vrot.slane %v1010_v37, 1 }
 0x134   :  { %v1012_v11 = vadd.f32 %v1011_v38, %v1010_v37 }
 0x136   :  { %v1013_v40 = vadd.f32 %v1012_v11, %v991_v35 }
 0x138   :  { %v1015_v41 = vmul.f32 0.0078125, %v1013_v40 }
 0x13a   :  { %v1016_v42 = vadd.f32 1e-05, %v1015_v41 }
 0x13c   :  { %1651 = vrsqrt.f32 %v1016_v42  ;;  %vm1023_vm3 = vweird.f32 %v1016_v42 }
 0x142   :  { %v1652_v43 = vpop.eup %1651 }
 0x143   :  { %v1018_v30 = vmul.f32 %v1652_v43, %v1016_v42  ;;  %vm1024_vm2 = vweird.f32 %v1652_v43 }
 0x144   :  { %vm1025_vm4 = vmor %vm1023_vm3, %vm1024_vm2 }
 0x145   :  { %v1019_v44 = vmul.f32 %v1652_v43, %v1018_v30 }
 0x147   :  { %v1020_v46 = vmul.f32 0.5, %v1019_v44 }
 0x149   :  { %v1021_v47 = vsub.f32 1.5, %v1020_v46 }
 0x14b   :  { %v1022_v50 = vmul.f32 %v1652_v43, %v1021_v47 }
 0x14d   :  { %v1026_v51 = vsel %vm1025_vm4, %v1652_v43, %v1022_v50 }
 0x14e   :  { %v1027_v52 = vmul.f32 %v1026_v51, %v1014_v49 }
 0x150   :  { %v1029_v54 = vmul.f32 %v1027_v52, %v2038_v48  ;;  %v1032_v55 = vperm.slane %v1027_v52, 0 }
 0x152   :  { %v1030_v56 = vsub.f32 %v1028_v53, %v1029_v54  ;;  %v1034_v57 = vmul.f32 %v1032_v55, %v1974_v34  ;;  %v1035_v58 = vmul.f32 %v1032_v55, %v1976_v39  ;;  %v1036_v59 = vmul.f32 %v1032_v55, %v1978_v45 }
 0x153   :  { %v1037_v60 = vmul.f32 %v1032_v55, %v1998_v27  ;;  %v1058_v62 = vmul.f32 %v1032_v55, %v1982_v10  ;;  %v1059_v2 = vmul.f32 %v1032_v55, %v1980_v6  ;;  %v1060_v3 = vmul.f32 %v1032_v55, %v1984_v15 }
 0x154   :  { %v1039_v1 = vperm.slane %v1030_v56, 0  ;;  %v1061_v48 = vmul.f32 %v1032_v55, %v1992_v23  ;;  %v1079_v5 = vmul.f32 %v1032_v55, %v1990_v22  ;;  %v1080_v34 = vmul.f32 %v1032_v55, %v1986_v17 }
 0x155   :  { %v1081_v7 = vmul.f32 %v1032_v55, %v1994_v25  ;;  %v1082_v39 = vmul.f32 %v1032_v55, %v2006_v32  ;;  %v1100_v17 = vmul.f32 %v1032_v55, %v2024_v63  ;;  %v1101_v25 = vmul.f32 %v1032_v55, %v2022_v61 }
 0x156   :  { %v1041_v45 = vadd.f32 %v1039_v1, %v1034_v57  ;;  %v1042_v4 = vadd.f32 %v1039_v1, %v1035_v58  ;;  %v1043_v27 = vadd.f32 %v1039_v1, %v1036_v59  ;;  %v1044_v8 = vadd.f32 %v1039_v1, %v1037_v60 }
 0x157   :  { %v1062_v10 = vadd.f32 %v1058_v62, %v1039_v1  ;;  %v1063_v9 = vadd.f32 %v1059_v2, %v1039_v1  ;;  %v1064_v12 = vadd.f32 %v1060_v3, %v1039_v1  ;;  %v1065_v6 = vadd.f32 %v1061_v48, %v1039_v1 }
 0x158   :  { %v1045_v14 = vmax.f32 %v1041_v45, 0.0  ;;  %v1046_v15 = vmax.f32 %v1042_v4, 0.0  ;;  %v1047_v13 = vmax.f32 %v1043_v27, 0.0  ;;  %v1048_v23 = vmax.f32 %v1044_v8, 0.0 }
 0x159   :  { %v1066_v16 = vmax.f32 %v1062_v10, 0.0  ;;  %v1067_v22 = vmax.f32 %v1063_v9, 0.0  ;;  %v1068_v21 = vmax.f32 %v1064_v12, 0.0  ;;  %v1069_v26 = vmax.f32 %v1065_v6, 0.0 }
 0x15a   :  { %v1049_v18 = vpack.c.bf16 %v1045_v14, %v1045_v14  ;;  %v1050_v32 = vpack.c.bf16 %v1046_v15, %v1046_v15  ;;  %v1051_v20 = vpack.c.bf16 %v1047_v13, %v1047_v13  ;;  %v1052_v24 = vpack.c.bf16 %v1048_v23, %v1048_v23 }
 0x15b   :  { %v1070_v28 = vpack.c.bf16 %v1066_v16, %v1066_v16  ;;  %v1071_v29 = vpack.c.bf16 %v1067_v22, %v1067_v22  ;;  %v1083_v31 = vadd.f32 %v1079_v5, %v1039_v1  ;;  %v1084_v33 = vadd.f32 %v1080_v34, %v1039_v1 }
 0x15c   :  { %1054 = vst.msk [vmem:[%s2179_s4] sm:$0xf] %vm1053_vm5, %v1049_v18  ;;  %v1085_v36 = vadd.f32 %v1081_v7, %v1039_v1  ;;  %v1086_v37 = vadd.f32 %v1082_v39, %v1039_v1  ;;  %v1102_v61 = vmul.f32 %v1032_v55, %v2026_v0  ;;  %v1103_v63 = vmul.f32 %v1032_v55, %v2034_v19 }
 0x15d   :  { %1055 = vst.msk [vmem:[%s2179_s4 + $0x4] sm:$0xf] %vm1053_vm5, %v1050_v32  ;;  %v1104_v35 = vadd.f32 %v1100_v17, %v1039_v1  ;;  %v1105_v38 = vadd.f32 %v1101_v25, %v1039_v1  ;;  %v1072_v11 = vpack.c.bf16 %v1068_v21, %v1068_v21  ;;  %v1087_v40 = vmax.f32 %v1083_v31, 0.0 }
 0x15e   :  { %1056 = vst.msk [vmem:[%s2179_s4 + $0x8] sm:$0xf] %vm1053_vm5, %v1051_v20  ;;  %v1088_v41 = vmax.f32 %v1084_v33, 0.0  ;;  %v1089_v42 = vmax.f32 %v1085_v36, 0.0  ;;  %v1073_v43 = vpack.c.bf16 %v1069_v26, %v1069_v26  ;;  %v1090_v0 = vmax.f32 %v1086_v37, 0.0 }
 0x15f   :  { %1057 = vst.msk [vmem:[%s2179_s4 + $0xc] sm:$0xf] %vm1053_vm5, %v1052_v24  ;;  %v1106_v30 = vadd.f32 %v1102_v61, %v1039_v1  ;;  %v1107_v19 = vadd.f32 %v1103_v63, %v1039_v1  ;;  %v1091_v44 = vpack.c.bf16 %v1087_v40, %v1087_v40  ;;  %v1108_v46 = vmax.f32 %v1104_v35, 0.0 }
 0x160   :  { %1553 = vst.msk [vmem:[%s2179_s4 + $0x10] sm:$0xf] %vm1053_vm5, %v1070_v28  ;;  %v1092_v47 = vpack.c.bf16 %v1088_v41, %v1088_v41  ;;  %v1109_v49 = vmax.f32 %v1105_v38, 0.0  ;;  %v1093_v50 = vpack.c.bf16 %v1089_v42, %v1089_v42  ;;  %v1094_v52 = vpack.c.bf16 %v1090_v0, %v1090_v0 }
 0x161   :  { %1554 = vst.msk [vmem:[%s2179_s4 + $0x14] sm:$0xf] %vm1053_vm5, %v1071_v29  ;;  %v1110_v51 = vmax.f32 %v1106_v30, 0.0  ;;  %v1111_v53 = vmax.f32 %v1107_v19, 0.0  ;;  %v1112_v54 = vpack.c.bf16 %v1108_v46, %v1108_v46 }
 0x162   :  { %1555 = vst.msk [vmem:[%s2179_s4 + $0x18] sm:$0xf] %vm1053_vm5, %v1072_v11  ;;  %v1113_v55 = vpack.c.bf16 %v1109_v49, %v1109_v49 }
 0x163   :  { %1556 = vst.msk [vmem:[%s2179_s4 + $0x1c] sm:$0xf] %vm1053_vm5, %v1073_v43  ;;  %v1114_v56 = vpack.c.bf16 %v1110_v51, %v1110_v51  ;;  %v1115_v57 = vpack.c.bf16 %v1111_v53, %v1111_v53 }
 0x164   :  { %1557 = vst.msk [vmem:[%s2179_s4 + $0x20] sm:$0xf] %vm1053_vm5, %v1091_v44 }
 0x165   :  { %1558 = vst.msk [vmem:[%s2179_s4 + $0x24] sm:$0xf] %vm1053_vm5, %v1092_v47 }
 0x166   :  { %1559 = vst.msk [vmem:[%s2179_s4 + $0x28] sm:$0xf] %vm1053_vm5, %v1093_v50 }
 0x167   :  { %1560 = vst.msk [vmem:[%s2179_s4 + $0x2c] sm:$0xf] %vm1053_vm5, %v1094_v52 }
 0x168   :  { %1561 = vst.msk [vmem:[%s2179_s4 + $0x30] sm:$0xf] %vm1053_vm5, %v1112_v54 }
 0x169   :  { %1562 = vst.msk [vmem:[%s2179_s4 + $0x34] sm:$0xf] %vm1053_vm5, %v1113_v55 }
 0x16a   :  { %1563 = vst.msk [vmem:[%s2179_s4 + $0x38] sm:$0xf] %vm1053_vm5, %v1114_v56 }
 0x16b   :  { %1564 = vst.msk [vmem:[%s2179_s4 + $0x3c] sm:$0xf] %vm1053_vm5, %v1115_v57 }

// kernel: memae_forward.17
= control target key start
LH: loop header
LB: loop body
LE: loop exit
PB: predicated region body
PF: predicated region fallthrough
CT: control target
= control target key end

     0   :  { %vm172_vm0 = vcmask 130048   ;;  %vm808_vm1 = vcmask 7168   ;;  %s1877_s1 = inlined_call_operand.vmem [shape: bf16[4,144,1], index: 1, kind: input, shape index: {}]   ;;  %s1878_s0 = inlined_call_operand.vmem [shape: bf16[128,144], index: 0, kind: input, shape index: {}]   ;;  %s1879_s2 = inlined_call_operand.vmem [shape: f32[4,128,1], index: 2, kind: output, shape index: {}]  }
   0x1   :  { %v1245_v0 = vld [vmem:[%s1877_s1 + $0x38] sm:$0xff]  ;;  %v1254_v1 = vld [vmem:[%s1877_s1 + $0x80] sm:$0xff]  ;;  %v1244_v2 = vld [vmem:[%s1877_s1 + $0x30] sm:$0xff] }
   0x2   :  { %197 = vmatpush.bf16.msra.mxu0 %v1245_v0  ;;  %368 = vmatpush.bf16.msra.mxu2 %v1254_v1  ;;  %v1253_v3 = vld [vmem:[%s1877_s1 + $0x78] sm:$0xff]  ;;  %v1255_v4 = vld [vmem:[%s1877_s1 + $0x88] sm:$0xff]  ;;  %v1222_v5 = vld [vmem:[%s1878_s0 + $0x4] sm:$0xf] }
   0x3   :  { %v884_v6 = vld [vmem:[%s1878_s0 + $0x8] sm:$0xf0]  ;;  %v1246_v7 = vld [vmem:[%s1877_s1 + $0x40] sm:$0xff]  ;;  %v1252_v9 = vld [vmem:[%s1877_s1 + $0x70] sm:$0xff]  ;;  %424 = vmatpush.bf16.msra.mxu3 %v1255_v4 }
   0x4   :  { %v1243_v8 = vld [vmem:[%s1877_s1 + $0x28] sm:$0xff]  ;;  %v1319_v10 = vor.u32 %v1222_v5, %v884_v6  ;;  %253 = vmatpush.bf16.msra.mxu1 %v1246_v7  ;;  %v1264_v11 = vld [vmem:[%s1877_s1 + $0xd0] sm:$0xff]  ;;  %v1242_v13 = vld [vmem:[%s1877_s1 + $0x20] sm:$0xff] }
   0x5   :  { %v1263_v12 = vld [vmem:[%s1877_s1 + $0xc8] sm:$0xff]  ;;  %v1241_v15 = vld [vmem:[%s1877_s1 + $0x18] sm:$0xff]  ;;  %v1250_v16 = vld [vmem:[%s1877_s1 + $0x60] sm:$0xff] }
   0x6   :  { %198 = vmatpush.bf16.msra.mxu0 %v1244_v2  ;;  %369 = vmatpush.bf16.msra.mxu2 %v1253_v3  ;;  %v1251_v14 = vld [vmem:[%s1877_s1 + $0x68] sm:$0xff]  ;;  %v1262_v17 = vld [vmem:[%s1877_s1 + $0xc0] sm:$0xff]  ;;  %v1240_v18 = vld [vmem:[%s1877_s1 + $0x10] sm:$0xff] }
   0x7   :  { %595 = vmatpush.bf16.msrb.mxu3 %v1264_v11  ;;  %980 = vmatmul.msk.bf16.vlgmr.msra.gmra.mxu1 %vm172_vm0, %v1319_v10  ;;  %v1249_v19 = vld [vmem:[%s1877_s1 + $0x58] sm:$0xff]  ;;  %v1224_v20 = vld [vmem:[%s1878_s0 + $0x14] sm:$0xf]  ;;  %v1239_v22 = vld [vmem:[%s1877_s1 + $0x8] sm:$0xff] }
   0x8   :  { %1042 = vmatmul.msk.bf16.vlgmr.msra.gmra.mxu3 %vm172_vm0, %v1319_v10  ;;  %539 = vmatpush.bf16.msrb.mxu1 %v1263_v12  ;;  %v892_v21 = vld [vmem:[%s1878_s0 + $0x18] sm:$0xf0]  ;;  %v1248_v23 = vld [vmem:[%s1877_s1 + $0x50] sm:$0xff]  ;;  %v1238_v25 = vld [vmem:[%s1877_s1] sm:$0xff] }
   0x9   :  { %v1364_v24 = vor.u32 %v1224_v20, %v892_v21  ;;  %v1247_v26 = vld [vmem:[%s1877_s1 + $0x48] sm:$0xff]  ;;  %v882_v27 = vld [vmem:[%s1878_s0] sm:$0xf]  ;;  %v1273_v29 = vld [vmem:[%s1877_s1 + $0x118] sm:$0xff] }
   0xa   :  { %199 = vmatpush.bf16.msra.mxu0 %v1243_v8  ;;  %370 = vmatpush.bf16.msra.mxu2 %v1252_v9  ;;  %v1223_v28 = vld [vmem:[%s1878_s0 + $0x4] sm:$0xf0]  ;;  %v1272_v30 = vld [vmem:[%s1877_s1 + $0x110] sm:$0xff]  ;;  %v1261_v33 = vld [vmem:[%s1877_s1 + $0xb8] sm:$0xff] }
   0xb   :  { %v1388_v31 = vor.u32 %v1223_v28, %v882_v27  ;;  %v1271_v32 = vld [vmem:[%s1877_s1 + $0x108] sm:$0xff]  ;;  %v1270_v34 = vld [vmem:[%s1877_s1 + $0x100] sm:$0xff]  ;;  %v890_v38 = vld [vmem:[%s1878_s0 + $0x10] sm:$0xf] }
   0xc   :  { %540 = vmatpush.bf16.msrb.mxu1 %v1262_v17  ;;  %v1226_v35 = vld [vmem:[%s1878_s0 + $0x24] sm:$0xf]  ;;  %v900_v36 = vld [vmem:[%s1878_s0 + $0x28] sm:$0xf0]  ;;  %v1225_v39 = vld [vmem:[%s1878_s0 + $0x14] sm:$0xf0] }
   0xd   :  { %v1407_v37 = vor.u32 %v1226_v35, %v900_v36  ;;  %v1419_v40 = vor.u32 %v1225_v39, %v890_v38  ;;  %v1260_v41 = vld [vmem:[%s1877_s1 + $0xb0] sm:$0xff]  ;;  %v1269_v42 = vld [vmem:[%s1877_s1 + $0xf8] sm:$0xff]  ;;  %v898_v46 = vld [vmem:[%s1878_s0 + $0x20] sm:$0xf] }
   0xe   :  { %200 = vmatpush.bf16.msra.mxu0 %v1242_v13  ;;  %371 = vmatpush.bf16.msra.mxu2 %v1251_v14  ;;  %v1228_v43 = vld [vmem:[%s1878_s0 + $0x34] sm:$0xf]  ;;  %v908_v44 = vld [vmem:[%s1878_s0 + $0x38] sm:$0xf0]  ;;  %v1227_v47 = vld [vmem:[%s1878_s0 + $0x24] sm:$0xf0] }
   0xf   :  { %v1435_v45 = vor.u32 %v1228_v43, %v908_v44  ;;  %v1447_v48 = vor.u32 %v1227_v47, %v898_v46  ;;  %v1259_v49 = vld [vmem:[%s1877_s1 + $0xa8] sm:$0xff]  ;;  %v1268_v50 = vld [vmem:[%s1877_s1 + $0xf0] sm:$0xff]  ;;  %v1230_v51 = vld [vmem:[%s1878_s0 + $0x44] sm:$0xf] }
  0x10   :  { %541 = vmatpush.bf16.msrb.mxu1 %v1261_v33  ;;  %v916_v52 = vld [vmem:[%s1878_s0 + $0x48] sm:$0xf0]  ;;  %v906_v54 = vld [vmem:[%s1878_s0 + $0x30] sm:$0xf]  ;;  %v1229_v55 = vld [vmem:[%s1878_s0 + $0x34] sm:$0xf0] }
  0x11   :  { %v1463_v53 = vor.u32 %v1230_v51, %v916_v52  ;;  %v1475_v56 = vor.u32 %v1229_v55, %v906_v54  ;;  %v1258_v57 = vld [vmem:[%s1877_s1 + $0xa0] sm:$0xff]  ;;  %v1267_v58 = vld [vmem:[%s1877_s1 + $0xe8] sm:$0xff]  ;;  %v1232_v59 = vld [vmem:[%s1878_s0 + $0x54] sm:$0xf] }
  0x12   :  { %201 = vmatpush.bf16.msra.mxu0 %v1241_v15  ;;  %372 = vmatpush.bf16.msra.mxu2 %v1250_v16  ;;  %v924_v60 = vld [vmem:[%s1878_s0 + $0x58] sm:$0xf0]  ;;  %v914_v62 = vld [vmem:[%s1878_s0 + $0x40] sm:$0xf]  ;;  %v1231_v63 = vld [vmem:[%s1878_s0 + $0x44] sm:$0xf0] }
  0x13   :  { %v1491_v61 = vor.u32 %v1232_v59, %v924_v60  ;;  %v1503_v0 = vor.u32 %v1231_v63, %v914_v62  ;;  %v1257_v1 = vld [vmem:[%s1877_s1 + $0x98] sm:$0xff]  ;;  %v1266_v2 = vld [vmem:[%s1877_s1 + $0xe0] sm:$0xff]  ;;  %v932_v4 = vld [vmem:[%s1878_s0 + $0x68] sm:$0xf0] }
  0x14   :  { %542 = vmatpush.bf16.msrb.mxu1 %v1260_v41  ;;  %v1234_v3 = vld [vmem:[%s1878_s0 + $0x64] sm:$0xf]  ;;  %v922_v6 = vld [vmem:[%s1878_s0 + $0x50] sm:$0xf]  ;;  %v1233_v7 = vld [vmem:[%s1878_s0 + $0x54] sm:$0xf0] }
  0x15   :  { %v1519_v5 = vor.u32 %v1234_v3, %v932_v4  ;;  %v1531_v8 = vor.u32 %v1233_v7, %v922_v6  ;;  %v1256_v9 = vld [vmem:[%s1877_s1 + $0x90] sm:$0xff]  ;;  %v1265_v11 = vld [vmem:[%s1877_s1 + $0xd8] sm:$0xff]  ;;  %v930_v15 = vld [vmem:[%s1878_s0 + $0x60] sm:$0xf] }
  0x16   :  { %202 = vmatpush.bf16.msra.mxu0 %v1240_v18  ;;  %373 = vmatpush.bf16.msra.mxu2 %v1249_v19  ;;  %v1236_v12 = vld [vmem:[%s1878_s0 + $0x74] sm:$0xf]  ;;  %v940_v13 = vld [vmem:[%s1878_s0 + $0x78] sm:$0xf0]  ;;  %v1235_v16 = vld [vmem:[%s1878_s0 + $0x64] sm:$0xf0] }
  0x17   :  { %981 = vmatmul.msk.bf16.gmra.mxu1 %vm172_vm0, %v1364_v24  ;;  %v1547_v14 = vor.u32 %v1236_v12, %v940_v13  ;;  %v1559_v17 = vor.u32 %v1235_v16, %v930_v15  ;;  %v938_v19 = vld [vmem:[%s1878_s0 + $0x70] sm:$0xf]  ;;  %v1237_v20 = vld [vmem:[%s1878_s0 + $0x74] sm:$0xf0] }
  0x18   :  { %1043 = vmatmul.msk.bf16.gmra.mxu3 %vm172_vm0, %v1364_v24  ;;  %543 = vmatpush.bf16.msrb.mxu1 %v1259_v49  ;;  %v1572_v21 = vor.u32 %v1237_v20, %v938_v19 }
  0x1a   :  { %203 = vmatpush.bf16.msra.mxu0 %v1239_v22  ;;  %374 = vmatpush.bf16.msra.mxu2 %v1248_v23 }
  0x1c   :  { %544 = vmatpush.bf16.msrb.mxu1 %v1258_v57 }
  0x1e   :  { %204 = vmatpush.bf16.msra.mxu0 %v1238_v25  ;;  %375 = vmatpush.bf16.msra.mxu2 %v1247_v26 }
  0x20   :  { %545 = vmatpush.bf16.msrb.mxu1 %v1257_v1 }
  0x21   :  { %205 = vmatmul.bf16.vlgmr.msra.gmra.mxu0 %v1388_v31  ;;  %376 = vmatmul.bf16.vlgmr.msra.gmra.mxu2 %v1388_v31 }
  0x22   :  { %766 = vmatpush.bf16.msrb.mxu2 %v1273_v29  ;;  %710 = vmatpush.bf16.msrb.mxu0 %v1272_v30 }
  0x24   :  { %546 = vmatpush.bf16.msrb.mxu1 %v1256_v9 }
  0x26   :  { %711 = vmatpush.bf16.msrb.mxu0 %v1271_v32 }
  0x27   :  { %982 = vmatmul.msk.bf16.gmra.mxu1 %vm172_vm0, %v1407_v37 }
  0x28   :  { %1044 = vmatmul.msk.bf16.gmra.mxu3 %vm172_vm0, %v1407_v37 }
  0x2a   :  { %712 = vmatpush.bf16.msrb.mxu0 %v1270_v34 }
  0x2e   :  { %713 = vmatpush.bf16.msrb.mxu0 %v1269_v42 }
  0x31   :  { %210 = vmatmul.bf16.gmra.mxu0 %v1419_v40  ;;  %381 = vmatmul.bf16.gmra.mxu2 %v1419_v40 }
  0x32   :  { %714 = vmatpush.bf16.msrb.mxu0 %v1268_v50 }
  0x36   :  { %715 = vmatpush.bf16.msrb.mxu0 %v1267_v58 }
  0x37   :  { %983 = vmatmul.msk.bf16.gmra.mxu1 %vm172_vm0, %v1435_v45 }
  0x38   :  { %1045 = vmatmul.msk.bf16.gmra.mxu3 %vm172_vm0, %v1435_v45 }
  0x3a   :  { %716 = vmatpush.bf16.msrb.mxu0 %v1266_v2 }
  0x3e   :  { %717 = vmatpush.bf16.msrb.mxu0 %v1265_v11 }
  0x41   :  { %215 = vmatmul.bf16.gmra.mxu0 %v1447_v48  ;;  %386 = vmatmul.bf16.gmra.mxu2 %v1447_v48 }
  0x47   :  { %984 = vmatmul.msk.bf16.gmra.mxu1 %vm172_vm0, %v1463_v53 }
  0x48   :  { %1046 = vmatmul.msk.bf16.gmra.mxu3 %vm172_vm0, %v1463_v53 }
  0x51   :  { %220 = vmatmul.bf16.gmra.mxu0 %v1475_v56  ;;  %391 = vmatmul.bf16.gmra.mxu2 %v1475_v56 }
  0x57   :  { %985 = vmatmul.msk.bf16.gmra.mxu1 %vm172_vm0, %v1491_v61 }
  0x58   :  { %1047 = vmatmul.msk.bf16.gmra.mxu3 %vm172_vm0, %v1491_v61 }
  0x61   :  { %225 = vmatmul.bf16.gmra.mxu0 %v1503_v0  ;;  %396 = vmatmul.bf16.gmra.mxu2 %v1503_v0 }
  0x67   :  { %986 = vmatmul.msk.bf16.gmra.mxu1 %vm172_vm0, %v1519_v5 }
  0x68   :  { %1048 = vmatmul.msk.bf16.gmra.mxu3 %vm172_vm0, %v1519_v5 }
  0x71   :  { %230 = vmatmul.bf16.gmra.mxu0 %v1531_v8  ;;  %401 = vmatmul.bf16.gmra.mxu2 %v1531_v8 }
  0x77   :  { %987 = vmatmul.msk.bf16.gmra.mxu1 %vm172_vm0, %v1547_v14 }
  0x78   :  { %1049 = vmatmul.msk.bf16.gmra.mxu3 %vm172_vm0, %v1547_v14 }
  0x81   :  { %235 = vmatmul.bf16.gmra.mxu0 %v1559_v17  ;;  %406 = vmatmul.bf16.gmra.mxu2 %v1559_v17 }
  0x84   :  { %v255_v18 = vpop.f32.mrf.mxu1 }
  0x87   :  { %547 = vmatmul.bf16.vlgmr.msrb.gmra.mxu1 %v1388_v31 }
  0x88   :  { %1104 = vmatmul.msk.bf16.vlgmr.msrb.gmra.mxu3 %vm172_vm0, %v1319_v10 }
  0x8b   :  { %v426_v22 = vpop.f32.mrf.mxu3 }
  0x8c   :  { %v257_v23 = vpop.f32.mrf.mxu1 }
  0x91   :  { %240 = vmatmul.bf16.gmra.mxu0 %v1572_v21  ;;  %411 = vmatmul.bf16.gmra.mxu2 %v1572_v21 }
  0x93   :  { %v428_v25 = vpop.f32.mrf.mxu3 }
  0x94   :  { %v260_v26 = vpop.f32.mrf.mxu1 }
  0x97   :  { %552 = vmatmul.bf16.gmra.mxu1 %v1419_v40 }
  0x98   :  { %1105 = vmatmul.msk.bf16.gmra.mxu3 %vm172_vm0, %v1364_v24 }
  0x9b   :  { %v431_v28 = vpop.f32.mrf.mxu3 }
  0x9c   :  { %v262_v30 = vpop.f32.mrf.mxu1 }
  0x9e   :  { %v206_v27 = vpop.f32.mrf.mxu0 }
  0x9f   :  { %v256_v29 = vadd.f32 %v255_v18, %v206_v27 }
  0xa1   :  { %809 = vst.msk [vmem:[%s1879_s2] sm:$0xff] %vm808_vm1, %v256_v29  ;;  %718 = vmatmul.bf16.vlgmr.msrb.gmra.mxu0 %v1388_v31  ;;  %1166 = vmatmul.msk.bf16.vlgmr.msrb.gmra.mxu2 %vm172_vm0, %v1319_v10 }
  0xa3   :  { %v433_v35 = vpop.f32.mrf.mxu3 }
  0xa4   :  { %v377_v32 = vpop.f32.mrf.mxu2  ;;  %v265_v38 = vpop.f32.mrf.mxu1 }
  0xa5   :  { %v427_v33 = vadd.f32 %v426_v22, %v377_v32 }
  0xa6   :  { %v208_v34 = vpop.f32.mrf.mxu0 }
  0xa7   :  { %1174 = vst.msk [vmem:[%s1879_s2 + $0x80] sm:$0xff] %vm808_vm1, %v427_v33  ;;  %v258_v36 = vadd.f32 %v257_v23, %v208_v34  ;;  %557 = vmatmul.bf16.gmra.mxu1 %v1447_v48 }
  0xa8   :  { %1106 = vmatmul.msk.bf16.gmra.mxu3 %vm172_vm0, %v1407_v37 }
  0xa9   :  { %810 = vst.msk [vmem:[%s1879_s2 + $0x8] sm:$0xff] %vm808_vm1, %v258_v36 }
  0xab   :  { %v436_v41 = vpop.f32.mrf.mxu3 }
  0xac   :  { %v379_v10 = vpop.f32.mrf.mxu2  ;;  %v267_v43 = vpop.f32.mrf.mxu1 }
  0xad   :  { %v429_v31 = vadd.f32 %v428_v25, %v379_v10 }
  0xae   :  { %v211_v39 = vpop.f32.mrf.mxu0 }
  0xaf   :  { %1175 = vst.msk [vmem:[%s1879_s2 + $0x88] sm:$0xff] %vm808_vm1, %v429_v31  ;;  %v261_v42 = vadd.f32 %v260_v26, %v211_v39 }
  0xb1   :  { %811 = vst.msk [vmem:[%s1879_s2 + $0x10] sm:$0xff] %vm808_vm1, %v261_v42  ;;  %723 = vmatmul.bf16.gmra.mxu0 %v1419_v40  ;;  %1167 = vmatmul.msk.bf16.gmra.mxu2 %vm172_vm0, %v1364_v24 }
  0xb3   :  { %v438_v49 = vpop.f32.mrf.mxu3 }
  0xb4   :  { %v382_v44 = vpop.f32.mrf.mxu2  ;;  %v270_v51 = vpop.f32.mrf.mxu1 }
  0xb5   :  { %v432_v46 = vadd.f32 %v431_v28, %v382_v44 }
  0xb6   :  { %v213_v47 = vpop.f32.mrf.mxu0 }
  0xb7   :  { %1176 = vst.msk [vmem:[%s1879_s2 + $0x90] sm:$0xff] %vm808_vm1, %v432_v46  ;;  %v263_v50 = vadd.f32 %v262_v30, %v213_v47  ;;  %562 = vmatmul.bf16.gmra.mxu1 %v1475_v56 }
  0xb8   :  { %1107 = vmatmul.msk.bf16.gmra.mxu3 %vm172_vm0, %v1435_v45 }
  0xb9   :  { %812 = vst.msk [vmem:[%s1879_s2 + $0x18] sm:$0xff] %vm808_vm1, %v263_v50 }
  0xbb   :  { %v441_v54 = vpop.f32.mrf.mxu3 }
  0xbc   :  { %v384_v24 = vpop.f32.mrf.mxu2  ;;  %v272_v57 = vpop.f32.mrf.mxu1 }
  0xbd   :  { %v434_v40 = vadd.f32 %v433_v35, %v384_v24 }
  0xbe   :  { %v216_v52 = vpop.f32.mrf.mxu0 }
  0xbf   :  { %1177 = vst.msk [vmem:[%s1879_s2 + $0x98] sm:$0xff] %vm808_vm1, %v434_v40  ;;  %v266_v55 = vadd.f32 %v265_v38, %v216_v52 }
  0xc1   :  { %813 = vst.msk [vmem:[%s1879_s2 + $0x20] sm:$0xff] %vm808_vm1, %v266_v55  ;;  %728 = vmatmul.bf16.gmra.mxu0 %v1447_v48  ;;  %1168 = vmatmul.msk.bf16.gmra.mxu2 %vm172_vm0, %v1407_v37 }
  0xc3   :  { %v443_v62 = vpop.f32.mrf.mxu3 }
  0xc4   :  { %v387_v58 = vpop.f32.mrf.mxu2  ;;  %v275_v1 = vpop.f32.mrf.mxu1 }
  0xc5   :  { %v437_v59 = vadd.f32 %v436_v41, %v387_v58 }
  0xc6   :  { %v218_v60 = vpop.f32.mrf.mxu0 }
  0xc7   :  { %1178 = vst.msk [vmem:[%s1879_s2 + $0xa0] sm:$0xff] %vm808_vm1, %v437_v59  ;;  %v268_v63 = vadd.f32 %v267_v43, %v218_v60  ;;  %567 = vmatmul.bf16.gmra.mxu1 %v1503_v0 }
  0xc8   :  { %1108 = vmatmul.msk.bf16.gmra.mxu3 %vm172_vm0, %v1463_v53 }
  0xc9   :  { %814 = vst.msk [vmem:[%s1879_s2 + $0x28] sm:$0xff] %vm808_vm1, %v268_v63 }
  0xcb   :  { %v446_v3 = vpop.f32.mrf.mxu3 }
  0xcc   :  { %v389_v37 = vpop.f32.mrf.mxu2  ;;  %v277_v6 = vpop.f32.mrf.mxu1 }
  0xcd   :  { %v439_v48 = vadd.f32 %v438_v49, %v389_v37 }
  0xce   :  { %v221_v2 = vpop.f32.mrf.mxu0 }
  0xcf   :  { %1179 = vst.msk [vmem:[%s1879_s2 + $0xa8] sm:$0xff] %vm808_vm1, %v439_v48  ;;  %v271_v4 = vadd.f32 %v270_v51, %v221_v2 }
  0xd1   :  { %815 = vst.msk [vmem:[%s1879_s2 + $0x30] sm:$0xff] %vm808_vm1, %v271_v4  ;;  %733 = vmatmul.bf16.gmra.mxu0 %v1475_v56  ;;  %1169 = vmatmul.msk.bf16.gmra.mxu2 %vm172_vm0, %v1435_v45 }
  0xd3   :  { %v448_v12 = vpop.f32.mrf.mxu3 }
  0xd4   :  { %v392_v7 = vpop.f32.mrf.mxu2  ;;  %v280_v15 = vpop.f32.mrf.mxu1 }
  0xd5   :  { %v442_v9 = vadd.f32 %v441_v54, %v392_v7 }
  0xd6   :  { %v223_v11 = vpop.f32.mrf.mxu0 }
  0xd7   :  { %1180 = vst.msk [vmem:[%s1879_s2 + $0xb0] sm:$0xff] %vm808_vm1, %v442_v9  ;;  %v273_v13 = vadd.f32 %v272_v57, %v223_v11  ;;  %572 = vmatmul.bf16.gmra.mxu1 %v1531_v8 }
  0xd8   :  { %1109 = vmatmul.msk.bf16.gmra.mxu3 %vm172_vm0, %v1491_v61 }
  0xd9   :  { %816 = vst.msk [vmem:[%s1879_s2 + $0x38] sm:$0xff] %vm808_vm1, %v273_v13 }
  0xdb   :  { %v451_v18 = vpop.f32.mrf.mxu3 }
  0xdc   :  { %v394_v45 = vpop.f32.mrf.mxu2  ;;  %v282_v20 = vpop.f32.mrf.mxu1 }
  0xdd   :  { %v444_v56 = vadd.f32 %v443_v62, %v394_v45 }
  0xde   :  { %v226_v16 = vpop.f32.mrf.mxu0 }
  0xdf   :  { %1181 = vst.msk [vmem:[%s1879_s2 + $0xb8] sm:$0xff] %vm808_vm1, %v444_v56  ;;  %v276_v19 = vadd.f32 %v275_v1, %v226_v16 }
  0xe1   :  { %817 = vst.msk [vmem:[%s1879_s2 + $0x40] sm:$0xff] %vm808_vm1, %v276_v19  ;;  %738 = vmatmul.bf16.gmra.mxu0 %v1503_v0  ;;  %1170 = vmatmul.msk.bf16.gmra.mxu2 %vm172_vm0, %v1463_v53 }
  0xe3   :  { %v453_v26 = vpop.f32.mrf.mxu3 }
  0xe4   :  { %v397_v22 = vpop.f32.mrf.mxu2  ;;  %v285_v28 = vpop.f32.mrf.mxu1 }
  0xe5   :  { %v447_v23 = vadd.f32 %v446_v3, %v397_v22 }
  0xe6   :  { %v228_v25 = vpop.f32.mrf.mxu0 }
  0xe7   :  { %1182 = vst.msk [vmem:[%s1879_s2 + $0xc0] sm:$0xff] %vm808_vm1, %v447_v23  ;;  %v278_v27 = vadd.f32 %v277_v6, %v228_v25  ;;  %577 = vmatmul.bf16.gmra.mxu1 %v1559_v17 }
  0xe8   :  { %1110 = vmatmul.msk.bf16.gmra.mxu3 %vm172_vm0, %v1519_v5 }
  0xe9   :  { %818 = vst.msk [vmem:[%s1879_s2 + $0x48] sm:$0xff] %vm808_vm1, %v278_v27 }
  0xeb   :  { %v456_v30 = vpop.f32.mrf.mxu3 }
  0xec   :  { %v399_v53 = vpop.f32.mrf.mxu2  ;;  %v287_v33 = vpop.f32.mrf.mxu1 }
  0xed   :  { %v449_v0 = vadd.f32 %v448_v12, %v399_v53 }
  0xee   :  { %v231_v29 = vpop.f32.mrf.mxu0 }
  0xef   :  { %1183 = vst.msk [vmem:[%s1879_s2 + $0xc8] sm:$0xff] %vm808_vm1, %v449_v0  ;;  %v281_v32 = vadd.f32 %v280_v15, %v231_v29 }
  0xf1   :  { %819 = vst.msk [vmem:[%s1879_s2 + $0x50] sm:$0xff] %vm808_vm1, %v281_v32  ;;  %743 = vmatmul.bf16.gmra.mxu0 %v1531_v8  ;;  %1171 = vmatmul.msk.bf16.gmra.mxu2 %vm172_vm0, %v1491_v61 }
  0xf3   :  { %v458_v38 = vpop.f32.mrf.mxu3 }
  0xf4   :  { %v402_v34 = vpop.f32.mrf.mxu2  ;;  %v290_v31 = vpop.f32.mrf.mxu1 }
  0xf5   :  { %v452_v35 = vadd.f32 %v451_v18, %v402_v34 }
  0xf6   :  { %v233_v36 = vpop.f32.mrf.mxu0 }
  0xf7   :  { %1184 = vst.msk [vmem:[%s1879_s2 + $0xd0] sm:$0xff] %vm808_vm1, %v452_v35  ;;  %v283_v10 = vadd.f32 %v282_v20, %v233_v36  ;;  %582 = vmatmul.bf16.gmra.mxu1 %v1572_v21 }
  0xf8   :  { %1111 = vmatmul.msk.bf16.gmra.mxu3 %vm172_vm0, %v1547_v14 }
  0xf9   :  { %820 = vst.msk [vmem:[%s1879_s2 + $0x58] sm:$0xff] %vm808_vm1, %v283_v10 }
  0xfb   :  { %v461_v41 = vpop.f32.mrf.mxu3 }
  0xfc   :  { %v404_v61 = vpop.f32.mrf.mxu2  ;;  %v292_v43 = vpop.f32.mrf.mxu1 }
  0xfd   :  { %v454_v8 = vadd.f32 %v453_v26, %v404_v61 }
  0xfe   :  { %v236_v39 = vpop.f32.mrf.mxu0 }
  0xff   :  { %1185 = vst.msk [vmem:[%s1879_s2 + $0xd8] sm:$0xff] %vm808_vm1, %v454_v8  ;;  %v286_v42 = vadd.f32 %v285_v28, %v236_v39 }
 0x101   :  { %821 = vst.msk [vmem:[%s1879_s2 + $0x60] sm:$0xff] %vm808_vm1, %v286_v42  ;;  %748 = vmatmul.bf16.gmra.mxu0 %v1559_v17  ;;  %1172 = vmatmul.msk.bf16.gmra.mxu2 %vm172_vm0, %v1519_v5 }
 0x103   :  { %v463_v49 = vpop.f32.mrf.mxu3 }
 0x104   :  { %v407_v44 = vpop.f32.mrf.mxu2  ;;  %v548_v51 = vpop.f32.mrf.mxu1 }
 0x105   :  { %v457_v46 = vadd.f32 %v456_v30, %v407_v44 }
 0x106   :  { %v238_v47 = vpop.f32.mrf.mxu0 }
 0x107   :  { %1186 = vst.msk [vmem:[%s1879_s2 + $0xe0] sm:$0xff] %vm808_vm1, %v457_v46  ;;  %v288_v50 = vadd.f32 %v287_v33, %v238_v47 }
 0x109   :  { %822 = vst.msk [vmem:[%s1879_s2 + $0x68] sm:$0xff] %vm808_vm1, %v288_v50 }
 0x10b   :  { %v597_v5 = vpop.f32.mrf.mxu3 }
 0x10c   :  { %v409_v17 = vpop.f32.mrf.mxu2  ;;  %v598_v54 = vadd.f32 %v597_v5, %v548_v51  ;;  %v550_v55 = vpop.f32.mrf.mxu1 }
 0x10d   :  { %v459_v24 = vadd.f32 %v458_v38, %v409_v17 }
 0x10e   :  { %v241_v40 = vpop.f32.mrf.mxu0  ;;  %1190 = vst.msk [vmem:[%s1879_s2 + $0x100] sm:$0xff] %vm808_vm1, %v598_v54 }
 0x10f   :  { %1187 = vst.msk [vmem:[%s1879_s2 + $0xe8] sm:$0xff] %vm808_vm1, %v459_v24  ;;  %v291_v52 = vadd.f32 %v290_v31, %v241_v40 }
 0x111   :  { %823 = vst.msk [vmem:[%s1879_s2 + $0x70] sm:$0xff] %vm808_vm1, %v291_v52  ;;  %753 = vmatmul.bf16.gmra.mxu0 %v1572_v21  ;;  %1173 = vmatmul.msk.bf16.gmra.mxu2 %vm172_vm0, %v1547_v14 }
 0x113   :  { %v599_v60 = vpop.f32.mrf.mxu3 }
 0x114   :  { %v412_v57 = vpop.f32.mrf.mxu2  ;;  %v600_v63 = vadd.f32 %v599_v60, %v550_v55  ;;  %v553_v21 = vpop.f32.mrf.mxu1 }
 0x115   :  { %v462_v58 = vadd.f32 %v461_v41, %v412_v57 }
 0x116   :  { %v243_v59 = vpop.f32.mrf.mxu0  ;;  %1191 = vst.msk [vmem:[%s1879_s2 + $0x108] sm:$0xff] %vm808_vm1, %v600_v63 }
 0x117   :  { %1188 = vst.msk [vmem:[%s1879_s2 + $0xf0] sm:$0xff] %vm808_vm1, %v462_v58  ;;  %v293_v62 = vadd.f32 %v292_v43, %v243_v59 }
 0x119   :  { %824 = vst.msk [vmem:[%s1879_s2 + $0x78] sm:$0xff] %vm808_vm1, %v293_v62 }
 0x11b   :  { %v602_v48 = vpop.f32.mrf.mxu3 }
 0x11c   :  { %v414_v14 = vpop.f32.mrf.mxu2  ;;  %v603_v2 = vadd.f32 %v602_v48, %v553_v21  ;;  %v555_v3 = vpop.f32.mrf.mxu1 }
 0x11d   :  { %v464_v1 = vadd.f32 %v463_v49, %v414_v14 }
 0x11e   :  { %v719_v37 = vpop.f32.mrf.mxu0  ;;  %1192 = vst.msk [vmem:[%s1879_s2 + $0x110] sm:$0xff] %vm808_vm1, %v603_v2 }
 0x11f   :  { %1189 = vst.msk [vmem:[%s1879_s2 + $0xf8] sm:$0xff] %vm808_vm1, %v464_v1 }
 0x123   :  { %v604_v9 = vpop.f32.mrf.mxu3 }
 0x124   :  { %v768_v4 = vpop.f32.mrf.mxu2  ;;  %v605_v11 = vadd.f32 %v604_v9, %v555_v3  ;;  %v558_v12 = vpop.f32.mrf.mxu1 }
 0x125   :  { %v769_v6 = vadd.f32 %v768_v4, %v719_v37 }
 0x126   :  { %v721_v7 = vpop.f32.mrf.mxu0  ;;  %1193 = vst.msk [vmem:[%s1879_s2 + $0x118] sm:$0xff] %vm808_vm1, %v605_v11 }
 0x127   :  { %1206 = vst.msk [vmem:[%s1879_s2 + $0x180] sm:$0xff] %vm808_vm1, %v769_v6 }
 0x12b   :  { %v607_v56 = vpop.f32.mrf.mxu3 }
 0x12c   :  { %v770_v13 = vpop.f32.mrf.mxu2  ;;  %v608_v16 = vadd.f32 %v607_v56, %v558_v12  ;;  %v560_v18 = vpop.f32.mrf.mxu1 }
 0x12d   :  { %v771_v15 = vadd.f32 %v770_v13, %v721_v7 }
 0x12e   :  { %v724_v45 = vpop.f32.mrf.mxu0  ;;  %1194 = vst.msk [vmem:[%s1879_s2 + $0x120] sm:$0xff] %vm808_vm1, %v608_v16 }
 0x12f   :  { %1207 = vst.msk [vmem:[%s1879_s2 + $0x188] sm:$0xff] %vm808_vm1, %v771_v15 }
 0x133   :  { %v609_v23 = vpop.f32.mrf.mxu3 }
 0x134   :  { %v773_v19 = vpop.f32.mrf.mxu2  ;;  %v610_v25 = vadd.f32 %v609_v23, %v560_v18  ;;  %v563_v26 = vpop.f32.mrf.mxu1 }
 0x135   :  { %v774_v20 = vadd.f32 %v773_v19, %v724_v45 }
 0x136   :  { %v726_v22 = vpop.f32.mrf.mxu0  ;;  %1195 = vst.msk [vmem:[%s1879_s2 + $0x128] sm:$0xff] %vm808_vm1, %v610_v25 }
 0x137   :  { %1208 = vst.msk [vmem:[%s1879_s2 + $0x190] sm:$0xff] %vm808_vm1, %v774_v20 }
 0x13b   :  { %v612_v0 = vpop.f32.mrf.mxu3 }
 0x13c   :  { %v775_v27 = vpop.f32.mrf.mxu2  ;;  %v613_v29 = vadd.f32 %v612_v0, %v563_v26  ;;  %v565_v30 = vpop.f32.mrf.mxu1 }
 0x13d   :  { %v776_v28 = vadd.f32 %v775_v27, %v726_v22 }
 0x13e   :  { %v729_v53 = vpop.f32.mrf.mxu0  ;;  %1196 = vst.msk [vmem:[%s1879_s2 + $0x130] sm:$0xff] %vm808_vm1, %v613_v29 }
 0x13f   :  { %1209 = vst.msk [vmem:[%s1879_s2 + $0x198] sm:$0xff] %vm808_vm1, %v776_v28 }
 0x143   :  { %v614_v35 = vpop.f32.mrf.mxu3 }
 0x144   :  { %v778_v32 = vpop.f32.mrf.mxu2  ;;  %v615_v36 = vadd.f32 %v614_v35, %v565_v30  ;;  %v568_v38 = vpop.f32.mrf.mxu1 }
 0x145   :  { %v779_v33 = vadd.f32 %v778_v32, %v729_v53 }
 0x146   :  { %v731_v34 = vpop.f32.mrf.mxu0  ;;  %1197 = vst.msk [vmem:[%s1879_s2 + $0x138] sm:$0xff] %vm808_vm1, %v615_v36 }
 0x147   :  { %1210 = vst.msk [vmem:[%s1879_s2 + $0x1a0] sm:$0xff] %vm808_vm1, %v779_v33 }
 0x14b   :  { %v617_v8 = vpop.f32.mrf.mxu3 }
 0x14c   :  { %v780_v10 = vpop.f32.mrf.mxu2  ;;  %v618_v39 = vadd.f32 %v617_v8, %v568_v38  ;;  %v570_v41 = vpop.f32.mrf.mxu1 }
 0x14d   :  { %v781_v31 = vadd.f32 %v780_v10, %v731_v34 }
 0x14e   :  { %v734_v61 = vpop.f32.mrf.mxu0  ;;  %1198 = vst.msk [vmem:[%s1879_s2 + $0x140] sm:$0xff] %vm808_vm1, %v618_v39 }
 0x14f   :  { %1211 = vst.msk [vmem:[%s1879_s2 + $0x1a8] sm:$0xff] %vm808_vm1, %v781_v31 }
 0x153   :  { %v619_v46 = vpop.f32.mrf.mxu3 }
 0x154   :  { %v783_v42 = vpop.f32.mrf.mxu2  ;;  %v620_v47 = vadd.f32 %v619_v46, %v570_v41  ;;  %v573_v49 = vpop.f32.mrf.mxu1 }
 0x155   :  { %v784_v43 = vadd.f32 %v783_v42, %v734_v61 }
 0x156   :  { %v736_v44 = vpop.f32.mrf.mxu0  ;;  %1199 = vst.msk [vmem:[%s1879_s2 + $0x148] sm:$0xff] %vm808_vm1, %v620_v47 }
 0x157   :  { %1212 = vst.msk [vmem:[%s1879_s2 + $0x1b0] sm:$0xff] %vm808_vm1, %v784_v43 }
 0x15b   :  { %v622_v24 = vpop.f32.mrf.mxu3 }
 0x15c   :  { %v785_v50 = vpop.f32.mrf.mxu2  ;;  %v623_v40 = vadd.f32 %v622_v24, %v573_v49  ;;  %v575_v5 = vpop.f32.mrf.mxu1 }
 0x15d   :  { %v786_v51 = vadd.f32 %v785_v50, %v736_v44 }
 0x15e   :  { %v739_v17 = vpop.f32.mrf.mxu0  ;;  %1200 = vst.msk [vmem:[%s1879_s2 + $0x150] sm:$0xff] %vm808_vm1, %v623_v40 }
 0x15f   :  { %1213 = vst.msk [vmem:[%s1879_s2 + $0x1b8] sm:$0xff] %vm808_vm1, %v786_v51 }
 0x163   :  { %v624_v57 = vpop.f32.mrf.mxu3 }
 0x164   :  { %v788_v52 = vpop.f32.mrf.mxu2  ;;  %v625_v58 = vadd.f32 %v624_v57, %v575_v5  ;;  %v578_v59 = vpop.f32.mrf.mxu1 }
 0x165   :  { %v789_v54 = vadd.f32 %v788_v52, %v739_v17 }
 0x166   :  { %v741_v55 = vpop.f32.mrf.mxu0  ;;  %1201 = vst.msk [vmem:[%s1879_s2 + $0x158] sm:$0xff] %vm808_vm1, %v625_v58 }
 0x167   :  { %1214 = vst.msk [vmem:[%s1879_s2 + $0x1c0] sm:$0xff] %vm808_vm1, %v789_v54 }
 0x16b   :  { %v627_v21 = vpop.f32.mrf.mxu3 }
 0x16c   :  { %v790_v60 = vpop.f32.mrf.mxu2  ;;  %v628_v14 = vadd.f32 %v627_v21, %v578_v59  ;;  %v580_v1 = vpop.f32.mrf.mxu1 }
 0x16d   :  { %v791_v62 = vadd.f32 %v790_v60, %v741_v55 }
 0x16e   :  { %v744_v63 = vpop.f32.mrf.mxu0  ;;  %1202 = vst.msk [vmem:[%s1879_s2 + $0x160] sm:$0xff] %vm808_vm1, %v628_v14 }
 0x16f   :  { %1215 = vst.msk [vmem:[%s1879_s2 + $0x1c8] sm:$0xff] %vm808_vm1, %v791_v62 }
 0x173   :  { %v629_v3 = vpop.f32.mrf.mxu3 }
 0x174   :  { %v793_v37 = vpop.f32.mrf.mxu2  ;;  %v630_v4 = vadd.f32 %v629_v3, %v580_v1  ;;  %v583_v6 = vpop.f32.mrf.mxu1 }
 0x175   :  { %v794_v48 = vadd.f32 %v793_v37, %v744_v63 }
 0x176   :  { %v746_v2 = vpop.f32.mrf.mxu0  ;;  %1203 = vst.msk [vmem:[%s1879_s2 + $0x168] sm:$0xff] %vm808_vm1, %v630_v4 }
 0x177   :  { %1216 = vst.msk [vmem:[%s1879_s2 + $0x1d0] sm:$0xff] %vm808_vm1, %v794_v48 }
 0x17b   :  { %v632_v12 = vpop.f32.mrf.mxu3 }
 0x17c   :  { %v795_v7 = vpop.f32.mrf.mxu2  ;;  %v633_v13 = vadd.f32 %v632_v12, %v583_v6  ;;  %v585_v45 = vpop.f32.mrf.mxu1 }
 0x17d   :  { %v796_v9 = vadd.f32 %v795_v7, %v746_v2 }
 0x17e   :  { %v749_v11 = vpop.f32.mrf.mxu0  ;;  %1204 = vst.msk [vmem:[%s1879_s2 + $0x170] sm:$0xff] %vm808_vm1, %v633_v13 }
 0x17f   :  { %1217 = vst.msk [vmem:[%s1879_s2 + $0x1d8] sm:$0xff] %vm808_vm1, %v796_v9 }
 0x183   :  { %v634_v16 = vpop.f32.mrf.mxu3 }
 0x184   :  { %v798_v15 = vpop.f32.mrf.mxu2  ;;  %v635_v18 = vadd.f32 %v634_v16, %v585_v45 }
 0x185   :  { %v799_v56 = vadd.f32 %v798_v15, %v749_v11 }
 0x186   :  { %v751_v19 = vpop.f32.mrf.mxu0  ;;  %1205 = vst.msk [vmem:[%s1879_s2 + $0x178] sm:$0xff] %vm808_vm1, %v635_v18 }
 0x187   :  { %1218 = vst.msk [vmem:[%s1879_s2 + $0x1e0] sm:$0xff] %vm808_vm1, %v799_v56 }
 0x18c   :  { %v800_v20 = vpop.f32.mrf.mxu2 }
 0x18d   :  { %v801_v22 = vadd.f32 %v800_v20, %v751_v19 }
 0x18e   :  { %v754_v23 = vpop.f32.mrf.mxu0 }
 0x18f   :  { %1219 = vst.msk [vmem:[%s1879_s2 + $0x1e8] sm:$0xff] %vm808_vm1, %v801_v22 }
 0x194   :  { %v803_v25 = vpop.f32.mrf.mxu2 }
 0x195   :  { %v804_v26 = vadd.f32 %v803_v25, %v754_v23 }
 0x196   :  { %v756_v27 = vpop.f32.mrf.mxu0 }
 0x197   :  { %1220 = vst.msk [vmem:[%s1879_s2 + $0x1f0] sm:$0xff] %vm808_vm1, %v804_v26 }
 0x19c   :  { %v805_v28 = vpop.f32.mrf.mxu2 }
 0x19d   :  { %v806_v53 = vadd.f32 %v805_v28, %v756_v27 }
 0x19f   :  { %1221 = vst.msk [vmem:[%s1879_s2 + $0x1f8] sm:$0xff] %vm808_vm1, %v806_v53 }

</bundles_post_ra>
